<compile_context>
chip_gen: v5e
topology: v5e:2x2
jax: 0.10.0
libtpu: 0.0.40
codegen_flags: <defaults>
</compile_context>

<pallas_src>
import functools

import jax
import jax.numpy as jnp
from jax import lax
from jax.experimental import pallas as pl
from jax.experimental.pallas import tpu as pltpu


def _round_up(v, m):
    return (v + m - 1) // m * m


def _choose_hw_tile(hw, hpwp_r, budget_bytes=8 * 2 ** 20):
    """Lane-dense output strip: multiple of 128 (prefer 256/512 for the 256-wide
    v6e/v7x MXU), bounded so the per-tap gather matrix (hpwp_r, tile) f32 stays
    well inside v7x's 64 MiB VMEM."""
    t = min(512, _round_up(min(hw, 512), 128))
    while t > 128 and hpwp_r * t * 4 > budget_bytes:
        t -= 128
    return t


def _dcn_body(p_ref, xflat_ref, wct_ref, mod_ref, out_ref, *, ks, Hp, Wp, WpR, C, Cout):
    """One (batch, HW-strip) grid step.  Everything channel-major (HW on lanes).
      p_ref    : (1, 2N, T)       p = p0 + pn + offset  (rows [:N] = x, [N:] = y)
      xflat_ref: (1, C, Hp*WpR)   zero-padded image, flattened with row stride WpR
      wct_ref  : (N*Cout, C)      final conv weight, tap-major: wct[k*Cout+o, c]
      mod_ref  : (1, N, T) | None modulation (sigmoid already applied)
      out_ref  : (1, Cout, T)
    """
    f32 = jnp.float32
    N = ks * ks
    T = out_ref.shape[-1]
    HpWpR = Hp * WpR

    # Final conv folded into the gather: per-tap image-side operand (N*Cout, HpWpR).
    xw = jnp.dot(wct_ref[...], xflat_ref[0], preferred_element_type=f32)

    # ---- all-tap coordinate math, lane-dense (N, T) ----
    p = p_ref[0].astype(f32)                      # (2N, T)
    px, py = p[:N], p[N:]
    fx, fy = jnp.floor(px), jnp.floor(py)
    lt_x = jnp.clip(fx, 0.0, Hp - 1.0)
    lt_y = jnp.clip(fy, 0.0, Wp - 1.0)
    rb_x = jnp.clip(fx + 1.0, 0.0, Hp - 1.0)
    rb_y = jnp.clip(fy + 1.0, 0.0, Wp - 1.0)
    pxc = jnp.clip(px, 0.0, Hp - 1.0)
    pyc = jnp.clip(py, 0.0, Wp - 1.0)
    # separable bilinear corner weights — exactly the reference's clamp-quirk formulas:
    #   g_lt = wx_lt*wy_lt, g_rb = wx_rb*wy_rb, g_lb = wx_lt*wy_rb, g_rt = wx_rb*wy_lt
    wx_lt = 1.0 + (lt_x - pxc)
    wx_rb = 1.0 - (rb_x - pxc)
    wy_lt = 1.0 + (lt_y - pyc)
    wy_rb = 1.0 - (rb_y - pyc)

    r_iota = lax.broadcasted_iota(jnp.int32, (Hp, T), 0).astype(f32)
    c_iota = lax.broadcasted_iota(jnp.int32, (WpR, T), 0).astype(f32)

    mod = mod_ref[0].astype(f32) if mod_ref is not None else None

    acc = jnp.zeros((Cout, T), f32)
    for k in range(N):                                                    # 9 taps, unrolled
        # weighted row / col one-hots (coincident corners add up, matching the reference)
        rk = (wx_lt[k:k + 1] * (r_iota == lt_x[k:k + 1]).astype(f32)
              + wx_rb[k:k + 1] * (r_iota == rb_x[k:k + 1]).astype(f32))   # (Hp, T)
        ck = (wy_lt[k:k + 1] * (c_iota == lt_y[k:k + 1]).astype(f32)
              + wy_rb[k:k + 1] * (c_iota == rb_y[k:k + 1]).astype(f32))   # (WpR, T)
        # gather matrix via a single outer-product multiply; collapsing (Hp, WpR) is
        # tile-aligned because WpR % 8 == 0, so the reshape is a pure view.
        gk = (rk[:, None, :] * ck[None, :, :]).reshape(HpWpR, T)          # (HpWpR, T)
        sk = jnp.dot(xw[k * Cout:(k + 1) * Cout, :], gk,
                     preferred_element_type=f32)                          # (Cout, T)
        if mod is not None:
            sk = sk * mod[k:k + 1]
        acc = acc + sk

    out_ref[0] = acc.astype(out_ref.dtype)


def _dcn_kernel_plain(p_ref, xflat_ref, wct_ref, out_ref, **kw):
    _dcn_body(p_ref, xflat_ref, wct_ref, None, out_ref, **kw)


def _dcn_kernel_mod(p_ref, xflat_ref, wct_ref, mod_ref, out_ref, **kw):
    _dcn_body(p_ref, xflat_ref, wct_ref, mod_ref, out_ref, **kw)


def deform_conv2d_pallas(x, w_conv, w_p, b_p, w_m=None, b_m=None, *,
                         kernel_size=3, padding=1, stride=1, modulation=False):
    """Forward of DeformConv2dV2 (module defaults: ks=3, padding=1, stride=1,
    final conv bias=None).  x: (B, C, H, W) -> (B, Cout, H, W)."""
    assert padding == 1 and stride == 1, "kernel implements the module defaults"
    f32 = jnp.float32
    B, C, H, W = x.shape
    ks = kernel_size
    N = ks * ks
    Cout = w_conv.shape[0]
    Hp, Wp = H + 2 * padding, W + 2 * padding
    WpR = _round_up(Wp, 8)                 # sublane-aligned flattening stride
    HpWpR = Hp * WpR
    HW = H * W
    dn = ("NCHW", "OIHW", "NCHW")
    conv_pad = [(1, 1), (1, 1)]

    # ---- dense 3x3 offset / modulation convs: plain XLA convs (hoisted) ----
    offset = lax.conv_general_dilated(x, w_p, (stride, stride), conv_pad,
                                      dimension_numbers=dn) + b_p[None, :, None, None]

    half = (ks - 1) // 2
    pn_x = jnp.repeat(jnp.arange(-half, half + 1, dtype=f32), ks)      # (N,) row taps
    pn_y = jnp.tile(jnp.arange(-half, half + 1, dtype=f32), ks)        # (N,) col taps
    p0_x = jnp.arange(1, H * stride + 1, stride, dtype=f32)            # (H,)
    p0_y = jnp.arange(1, W * stride + 1, stride, dtype=f32)            # (W,)
    px = p0_x[None, None, :, None] + pn_x[None, :, None, None] + offset[:, :N]
    py = p0_y[None, None, None, :] + pn_y[None, :, None, None] + offset[:, N:]
    p = jnp.concatenate([px, py], axis=1).reshape(B, 2 * N, HW).astype(f32)

    if modulation:
        m = jax.nn.sigmoid(
            lax.conv_general_dilated(x, w_m, (stride, stride), conv_pad,
                                     dimension_numbers=dn) + b_m[None, :, None, None])
        m = m.reshape(B, N, HW).astype(f32)

    # ---- zero-padded image, channel-major flat layout (single image input) ----
    x_pad = jnp.pad(x.astype(f32), ((0, 0), (0, 0), (padding, padding),
                                    (padding, padding + (WpR - Wp))))
    x_flat = x_pad.reshape(B, C, HpWpR)

    # final conv weight, tap-major: wct[k*Cout + o, c] = w_conv[o, c, k//ks, k%ks]
    wct = jnp.transpose(w_conv, (2, 3, 0, 1)).reshape(N * Cout, C).astype(f32)

    # ---- lane-dense HW strips (bounds gk VMEM, feeds both v7x TensorCores) ----
    tile = _choose_hw_tile(HW, HpWpR)
    HW_pad = _round_up(HW, tile)
    if HW_pad != HW:
        # padded pixels sample the (0,0) corner of the zero-padding -> harmless, sliced off
        p = jnp.pad(p, ((0, 0), (0, 0), (0, HW_pad - HW)))
        if modulation:
            m = jnp.pad(m, ((0, 0), (0, 0), (0, HW_pad - HW)))
    n_strips = HW_pad // tile

    args = [p, x_flat, wct]
    in_specs = [
        pl.BlockSpec((1, 2 * N, tile), lambda b, s: (b, 0, s)),
        pl.BlockSpec((1, C, HpWpR), lambda b, s: (b, 0, 0)),   # fixed across strips: no re-DMA
        pl.BlockSpec((N * Cout, C), lambda b, s: (0, 0)),
    ]
    if modulation:
        args.append(m)
        in_specs.append(pl.BlockSpec((1, N, tile), lambda b, s: (b, 0, s)))
        kern = _dcn_kernel_mod
    else:
        kern = _dcn_kernel_plain

    kernel = functools.partial(kern, ks=ks, Hp=Hp, Wp=Wp, WpR=WpR, C=C, Cout=Cout)

    # VMEM residency estimate (double-buffered blocks + in-kernel temporaries) + headroom
    est = 4 * (2 * C * HpWpR + 4 * 2 * N * tile + (4 * N * tile if modulation else 0)
               + 2 * N * Cout * C + 4 * Cout * tile + N * Cout * HpWpR
               + 2 * HpWpR * tile + 20 * N * tile + 2 * (Hp + WpR) * tile)
    vmem_limit = int(min(64 * 2 ** 20, max(32 * 2 ** 20, 2 * est)))

    out = pl.pallas_call(
        kernel,
        out_shape=jax.ShapeDtypeStruct((B, Cout, HW_pad), x.dtype),
        grid=(B, n_strips),
        in_specs=in_specs,
        out_specs=pl.BlockSpec((1, Cout, tile), lambda b, s: (b, 0, s)),
        compiler_params=pltpu.CompilerParams(
            dimension_semantics=("parallel", "parallel"),
            vmem_limit_bytes=vmem_limit),
    )(*args)

    return out[:, :, :HW].reshape(B, Cout, H, W)


def deform_conv2d_ref(x, w_conv, w_p, b_p, w_m=None, b_m=None, *,
                      kernel_size=3, padding=1, stride=1, modulation=False):
    """Pure-JAX reference mirroring the PyTorch forward exactly (NCHW)."""
    dn = ("NCHW", "OIHW", "NCHW")
    ks = kernel_size
    N = ks * ks
    conv_pad = [(1, 1), (1, 1)]
    offset = lax.conv_general_dilated(x, w_p, (stride, stride), conv_pad,
                                      dimension_numbers=dn)
    offset = offset + b_p[None, :, None, None]
    if modulation:
        m = lax.conv_general_dilated(x, w_m, (stride, stride), conv_pad,
                                     dimension_numbers=dn)
        m = jax.nn.sigmoid(m + b_m[None, :, None, None])

    B, C, H, W = x.shape
    h_out, w_out = offset.shape[2], offset.shape[3]
    if padding:
        x = jnp.pad(x, ((0, 0), (0, 0), (padding, padding), (padding, padding)))
    Hp, Wp = x.shape[2], x.shape[3]

    pn_x = jnp.repeat(jnp.arange(-(ks - 1) // 2, (ks - 1) // 2 + 1), ks).astype(jnp.float32)
    pn_y = jnp.tile(jnp.arange(-(ks - 1) // 2, (ks - 1) // 2 + 1), ks).astype(jnp.float32)
    p0_x = jnp.arange(1, h_out * stride + 1, stride, dtype=jnp.float32)
    p0_y = jnp.arange(1, w_out * stride + 1, stride, dtype=jnp.float32)

    off_t = jnp.transpose(offset, (0, 2, 3, 1))                        # (B, h, w, 2N)
    px = p0_x[None, :, None, None] + pn_x[None, None, None, :] + off_t[..., :N]
    py = p0_y[None, None, :, None] + pn_y[None, None, None, :] + off_t[..., N:]

    lt_x = jnp.clip(jnp.floor(px), 0, Hp - 1)
    lt_y = jnp.clip(jnp.floor(py), 0, Wp - 1)
    rb_x = jnp.clip(jnp.floor(px) + 1, 0, Hp - 1)
    rb_y = jnp.clip(jnp.floor(py) + 1, 0, Wp - 1)
    pxc = jnp.clip(px, 0, Hp - 1)
    pyc = jnp.clip(py, 0, Wp - 1)

    g_lt = (1 + (lt_x - pxc)) * (1 + (lt_y - pyc))
    g_rb = (1 - (rb_x - pxc)) * (1 - (rb_y - pyc))
    g_lb = (1 + (lt_x - pxc)) * (1 - (rb_y - pyc))
    g_rt = (1 - (rb_x - pxc)) * (1 + (lt_y - pyc))

    x_flat = x.reshape(B, C, Hp * Wp)

    def gather(qx, qy):
        idx = (qx * Wp + qy).astype(jnp.int32).reshape(B, 1, -1)
        idx = jnp.broadcast_to(idx, (B, C, idx.shape[-1]))
        return jnp.take_along_axis(x_flat, idx, axis=2).reshape(B, C, h_out, w_out, N)

    xo = (g_lt[:, None] * gather(lt_x, lt_y) + g_rb[:, None] * gather(rb_x, rb_y)
          + g_lb[:, None] * gather(lt_x, rb_y) + g_rt[:, None] * gather(rb_x, lt_y))
    if modulation:
        xo = xo * jnp.transpose(m, (0, 2, 3, 1))[:, None]

    xo = xo.reshape(B, C, h_out, w_out, ks, ks)
    xo = jnp.transpose(xo, (0, 1, 2, 4, 3, 5)).reshape(B, C, h_out * ks, w_out * ks)
    return lax.conv_general_dilated(xo, w_conv, (ks, ks), "VALID",
                                    dimension_numbers=dn)


if __name__ == "__main__":
    B, C, H, W = 2, 4, 16, 16
    Cout, ks = 8, 3
    N = ks * ks

    key = jax.random.PRNGKey(0)
    k0, k1, k2, k3, k4, k5 = jax.random.split(key, 6)
    x = jax.random.normal(k0, (B, C, H, W), jnp.float32)
    w_conv = 0.2 * jax.random.normal(k1, (Cout, C, ks, ks), jnp.float32)
    w_p = 0.1 * jax.random.normal(k2, (2 * N, C, 3, 3), jnp.float32)
    b_p = 0.5 * jax.random.normal(k3, (2 * N,), jnp.float32)
    w_m = 0.1 * jax.random.normal(k4, (N, C, 3, 3), jnp.float32)
    b_m = 0.5 * jax.random.normal(k5, (N,), jnp.float32)

    # --- plain deformable conv (module defaults: modulation=False, conv bias=None) ---
    out = jax.block_until_ready(deform_conv2d_pallas(x, w_conv, w_p, b_p))
    ref = jax.block_until_ready(deform_conv2d_ref(x, w_conv, w_p, b_p))
    assert out.shape == (B, Cout, H, W)
    err = float(jnp.max(jnp.abs(out - ref)))
    assert jnp.allclose(out, ref, atol=1e-3, rtol=1e-3), f"v1 max abs err = {err}"

    # --- modulated path (Deformable ConvNets v2) ---
    out_m = jax.block_until_ready(
        deform_conv2d_pallas(x, w_conv, w_p, b_p, w_m, b_m, modulation=True))
    ref_m = jax.block_until_ready(
        deform_conv2d_ref(x, w_conv, w_p, b_p, w_m, b_m, modulation=True))
    err_m = float(jnp.max(jnp.abs(out_m - ref_m)))
    assert jnp.allclose(out_m, ref_m, atol=1e-3, rtol=1e-3), f"v2 max abs err = {err_m}"

    print("KERNEL_OK")
</pallas_src>

<mosaic_0001>
module attributes {stable_mosaic.version = 11 : i64} {
  func.func @_dcn_kernel_plain(%arg0: i32, %arg1: i32, %arg2: memref<1x18x256xf32, #tpu.memory_space<vmem>>, %arg3: memref<1x4x432xf32, #tpu.memory_space<vmem>>, %arg4: memref<72x4xf32, #tpu.memory_space<vmem>>, %arg5: memref<1x8x256xf32, #tpu.memory_space<vmem>>) attributes {dimension_semantics = [#tpu.dimension_semantics<parallel>, #tpu.dimension_semantics<parallel>], iteration_bounds = array<i64: 2, 1>, scalar_prefetch = 0 : i64, scratch_operands = 0 : i64, tpu.core_type = #tpu.core_type<tc>, window_params = [{transform_indices = @transform_0, window_bounds = array<i64: 1, 18, 256>}, {transform_indices = @transform_1, window_bounds = array<i64: 1, 4, 432>}, {pipeline_mode = #tpu.pipeline_mode<synchronous>, transform_indices = @transform_2, window_bounds = array<i64: 72, 4>}, {transform_indices = @transform_3, window_bounds = array<i64: 1, 8, 256>}]} {
    %c0 = arith.constant 0 : index
    %c0_0 = arith.constant 0 : index
    %0 = vector.load %arg4[%c0, %c0_0] : memref<72x4xf32, #tpu.memory_space<vmem>>, vector<72x4xf32>
    %c0_1 = arith.constant 0 : index
    %c0_2 = arith.constant 0 : index
    %c0_3 = arith.constant 0 : index
    %1 = vector.load %arg3[%c0_1, %c0_2, %c0_3] : memref<1x4x432xf32, #tpu.memory_space<vmem>>, vector<1x4x432xf32>
    %2 = vector.shape_cast %1 : vector<1x4x432xf32> to vector<4x432xf32>
    %cst = arith.constant dense<0.000000e+00> : vector<72x432xf32>
    %3 = tpu.matmul %0, %2, %cst {dimension_numbers = #tpu.dot_dimension_numbers<[1], [0], [0], [1], [0, 0, 1, 1], [], []>} : vector<72x4xf32>, vector<4x432xf32>, vector<72x432xf32> -> vector<72x432xf32>
    %c0_4 = arith.constant 0 : index
    %c0_5 = arith.constant 0 : index
    %c0_6 = arith.constant 0 : index
    %4 = vector.load %arg2[%c0_4, %c0_5, %c0_6] : memref<1x18x256xf32, #tpu.memory_space<vmem>>, vector<1x18x256xf32>
    %5 = vector.shape_cast %4 : vector<1x18x256xf32> to vector<18x256xf32>
    %6 = vector.extract_strided_slice %5 {offsets = [0, 0], sizes = [9, 256], strides = [1, 1]} : vector<18x256xf32> to vector<9x256xf32>
    %7 = vector.extract_strided_slice %5 {offsets = [9, 0], sizes = [9, 256], strides = [1, 1]} : vector<18x256xf32> to vector<9x256xf32>
    %8 = math.floor %6 : vector<9x256xf32>
    %9 = math.floor %7 : vector<9x256xf32>
    %cst_7 = arith.constant 0.000000e+00 : f32
    %cst_8 = arith.constant 1.700000e+01 : f32
    %10 = vector.broadcast %cst_7 : f32 to vector<9x256xf32>
    %11 = arith.maximumf %10, %8 : vector<9x256xf32>
    %12 = vector.broadcast %cst_8 : f32 to vector<9x256xf32>
    %13 = arith.minimumf %12, %11 : vector<9x256xf32>
    %cst_9 = arith.constant 0.000000e+00 : f32
    %cst_10 = arith.constant 1.700000e+01 : f32
    %14 = vector.broadcast %cst_9 : f32 to vector<9x256xf32>
    %15 = arith.maximumf %14, %9 : vector<9x256xf32>
    %16 = vector.broadcast %cst_10 : f32 to vector<9x256xf32>
    %17 = arith.minimumf %16, %15 : vector<9x256xf32>
    %cst_11 = arith.constant 1.000000e+00 : f32
    %18 = vector.broadcast %cst_11 : f32 to vector<9x256xf32>
    %19 = arith.addf %8, %18 : vector<9x256xf32>
    %cst_12 = arith.constant 0.000000e+00 : f32
    %cst_13 = arith.constant 1.700000e+01 : f32
    %20 = vector.broadcast %cst_12 : f32 to vector<9x256xf32>
    %21 = arith.maximumf %20, %19 : vector<9x256xf32>
    %22 = vector.broadcast %cst_13 : f32 to vector<9x256xf32>
    %23 = arith.minimumf %22, %21 : vector<9x256xf32>
    %cst_14 = arith.constant 1.000000e+00 : f32
    %24 = vector.broadcast %cst_14 : f32 to vector<9x256xf32>
    %25 = arith.addf %9, %24 : vector<9x256xf32>
    %cst_15 = arith.constant 0.000000e+00 : f32
    %cst_16 = arith.constant 1.700000e+01 : f32
    %26 = vector.broadcast %cst_15 : f32 to vector<9x256xf32>
    %27 = arith.maximumf %26, %25 : vector<9x256xf32>
    %28 = vector.broadcast %cst_16 : f32 to vector<9x256xf32>
    %29 = arith.minimumf %28, %27 : vector<9x256xf32>
    %cst_17 = arith.constant 0.000000e+00 : f32
    %cst_18 = arith.constant 1.700000e+01 : f32
    %30 = vector.broadcast %cst_17 : f32 to vector<9x256xf32>
    %31 = arith.maximumf %30, %6 : vector<9x256xf32>
    %32 = vector.broadcast %cst_18 : f32 to vector<9x256xf32>
    %33 = arith.minimumf %32, %31 : vector<9x256xf32>
    %cst_19 = arith.constant 0.000000e+00 : f32
    %cst_20 = arith.constant 1.700000e+01 : f32
    %34 = vector.broadcast %cst_19 : f32 to vector<9x256xf32>
    %35 = arith.maximumf %34, %7 : vector<9x256xf32>
    %36 = vector.broadcast %cst_20 : f32 to vector<9x256xf32>
    %37 = arith.minimumf %36, %35 : vector<9x256xf32>
    %38 = arith.subf %13, %33 : vector<9x256xf32>
    %cst_21 = arith.constant 1.000000e+00 : f32
    %39 = vector.broadcast %cst_21 : f32 to vector<9x256xf32>
    %40 = arith.addf %39, %38 : vector<9x256xf32>
    %41 = arith.subf %23, %33 : vector<9x256xf32>
    %cst_22 = arith.constant 1.000000e+00 : f32
    %42 = vector.broadcast %cst_22 : f32 to vector<9x256xf32>
    %43 = arith.subf %42, %41 : vector<9x256xf32>
    %44 = arith.subf %17, %37 : vector<9x256xf32>
    %cst_23 = arith.constant 1.000000e+00 : f32
    %45 = vector.broadcast %cst_23 : f32 to vector<9x256xf32>
    %46 = arith.addf %45, %44 : vector<9x256xf32>
    %47 = arith.subf %29, %37 : vector<9x256xf32>
    %cst_24 = arith.constant 1.000000e+00 : f32
    %48 = vector.broadcast %cst_24 : f32 to vector<9x256xf32>
    %49 = arith.subf %48, %47 : vector<9x256xf32>
    %50 = tpu.iota {dimensions = array<i32: 0>} : vector<18x256xi32>
    %51 = arith.sitofp %50 : vector<18x256xi32> to vector<18x256xf32>
    %52 = tpu.iota {dimensions = array<i32: 0>} : vector<24x256xi32>
    %53 = arith.sitofp %52 : vector<24x256xi32> to vector<24x256xf32>
    %cst_25 = arith.constant 0.000000e+00 : f32
    %54 = vector.broadcast %cst_25 : f32 to vector<8x256xf32>
    %55 = vector.extract_strided_slice %40 {offsets = [0, 0], sizes = [1, 256], strides = [1, 1]} : vector<9x256xf32> to vector<1x256xf32>
    %56 = vector.extract_strided_slice %13 {offsets = [0, 0], sizes = [1, 256], strides = [1, 1]} : vector<9x256xf32> to vector<1x256xf32>
    %57 = vector.broadcast %56 : vector<1x256xf32> to vector<18x256xf32>
    %58 = arith.cmpf oeq, %51, %57 : vector<18x256xf32>
    %59 = arith.extui %58 : vector<18x256xi1> to vector<18x256xi32>
    %60 = arith.sitofp %59 : vector<18x256xi32> to vector<18x256xf32>
    %61 = vector.broadcast %55 : vector<1x256xf32> to vector<18x256xf32>
    %62 = arith.mulf %61, %60 : vector<18x256xf32>
    %63 = vector.extract_strided_slice %43 {offsets = [0, 0], sizes = [1, 256], strides = [1, 1]} : vector<9x256xf32> to vector<1x256xf32>
    %64 = vector.extract_strided_slice %23 {offsets = [0, 0], sizes = [1, 256], strides = [1, 1]} : vector<9x256xf32> to vector<1x256xf32>
    %65 = vector.broadcast %64 : vector<1x256xf32> to vector<18x256xf32>
    %66 = arith.cmpf oeq, %51, %65 : vector<18x256xf32>
    %67 = arith.extui %66 : vector<18x256xi1> to vector<18x256xi32>
    %68 = arith.sitofp %67 : vector<18x256xi32> to vector<18x256xf32>
    %69 = vector.broadcast %63 : vector<1x256xf32> to vector<18x256xf32>
    %70 = arith.mulf %69, %68 : vector<18x256xf32>
    %71 = arith.addf %62, %70 : vector<18x256xf32>
    %72 = vector.extract_strided_slice %46 {offsets = [0, 0], sizes = [1, 256], strides = [1, 1]} : vector<9x256xf32> to vector<1x256xf32>
    %73 = vector.extract_strided_slice %17 {offsets = [0, 0], sizes = [1, 256], strides = [1, 1]} : vector<9x256xf32> to vector<1x256xf32>
    %74 = vector.broadcast %73 : vector<1x256xf32> to vector<24x256xf32>
    %75 = arith.cmpf oeq, %53, %74 : vector<24x256xf32>
    %76 = arith.extui %75 : vector<24x256xi1> to vector<24x256xi32>
    %77 = arith.sitofp %76 : vector<24x256xi32> to vector<24x256xf32>
    %78 = vector.broadcast %72 : vector<1x256xf32> to vector<24x256xf32>
    %79 = arith.mulf %78, %77 : vector<24x256xf32>
    %80 = vector.extract_strided_slice %49 {offsets = [0, 0], sizes = [1, 256], strides = [1, 1]} : vector<9x256xf32> to vector<1x256xf32>
    %81 = vector.extract_strided_slice %29 {offsets = [0, 0], sizes = [1, 256], strides = [1, 1]} : vector<9x256xf32> to vector<1x256xf32>
    %82 = vector.broadcast %81 : vector<1x256xf32> to vector<24x256xf32>
    %83 = arith.cmpf oeq, %53, %82 : vector<24x256xf32>
    %84 = arith.extui %83 : vector<24x256xi1> to vector<24x256xi32>
    %85 = arith.sitofp %84 : vector<24x256xi32> to vector<24x256xf32>
    %86 = vector.broadcast %80 : vector<1x256xf32> to vector<24x256xf32>
    %87 = arith.mulf %86, %85 : vector<24x256xf32>
    %88 = arith.addf %79, %87 : vector<24x256xf32>
    %89 = vector.shape_cast %71 : vector<18x256xf32> to vector<18x1x256xf32>
    %90 = vector.shape_cast %88 : vector<24x256xf32> to vector<1x24x256xf32>
    %91 = vector.broadcast %89 : vector<18x1x256xf32> to vector<18x24x256xf32>
    %92 = vector.broadcast %90 : vector<1x24x256xf32> to vector<18x24x256xf32>
    %93 = arith.mulf %91, %92 : vector<18x24x256xf32>
    %94 = vector.shape_cast %93 : vector<18x24x256xf32> to vector<432x256xf32>
    %95 = vector.extract_strided_slice %3 {offsets = [0, 0], sizes = [8, 432], strides = [1, 1]} : vector<72x432xf32> to vector<8x432xf32>
    %cst_26 = arith.constant dense<0.000000e+00> : vector<8x256xf32>
    %96 = tpu.matmul %95, %94, %cst_26 {dimension_numbers = #tpu.dot_dimension_numbers<[1], [0], [0], [1], [0, 0, 1, 1], [], []>} : vector<8x432xf32>, vector<432x256xf32>, vector<8x256xf32> -> vector<8x256xf32>
    %97 = arith.addf %54, %96 : vector<8x256xf32>
    %98 = vector.extract_strided_slice %40 {offsets = [1, 0], sizes = [1, 256], strides = [1, 1]} : vector<9x256xf32> to vector<1x256xf32>
    %99 = vector.extract_strided_slice %13 {offsets = [1, 0], sizes = [1, 256], strides = [1, 1]} : vector<9x256xf32> to vector<1x256xf32>
    %100 = vector.broadcast %99 : vector<1x256xf32> to vector<18x256xf32>
    %101 = arith.cmpf oeq, %51, %100 : vector<18x256xf32>
    %102 = arith.extui %101 : vector<18x256xi1> to vector<18x256xi32>
    %103 = arith.sitofp %102 : vector<18x256xi32> to vector<18x256xf32>
    %104 = vector.broadcast %98 : vector<1x256xf32> to vector<18x256xf32>
    %105 = arith.mulf %104, %103 : vector<18x256xf32>
    %106 = vector.extract_strided_slice %43 {offsets = [1, 0], sizes = [1, 256], strides = [1, 1]} : vector<9x256xf32> to vector<1x256xf32>
    %107 = vector.extract_strided_slice %23 {offsets = [1, 0], sizes = [1, 256], strides = [1, 1]} : vector<9x256xf32> to vector<1x256xf32>
    %108 = vector.broadcast %107 : vector<1x256xf32> to vector<18x256xf32>
    %109 = arith.cmpf oeq, %51, %108 : vector<18x256xf32>
    %110 = arith.extui %109 : vector<18x256xi1> to vector<18x256xi32>
    %111 = arith.sitofp %110 : vector<18x256xi32> to vector<18x256xf32>
    %112 = vector.broadcast %106 : vector<1x256xf32> to vector<18x256xf32>
    %113 = arith.mulf %112, %111 : vector<18x256xf32>
    %114 = arith.addf %105, %113 : vector<18x256xf32>
    %115 = vector.extract_strided_slice %46 {offsets = [1, 0], sizes = [1, 256], strides = [1, 1]} : vector<9x256xf32> to vector<1x256xf32>
    %116 = vector.extract_strided_slice %17 {offsets = [1, 0], sizes = [1, 256], strides = [1, 1]} : vector<9x256xf32> to vector<1x256xf32>
    %117 = vector.broadcast %116 : vector<1x256xf32> to vector<24x256xf32>
    %118 = arith.cmpf oeq, %53, %117 : vector<24x256xf32>
    %119 = arith.extui %118 : vector<24x256xi1> to vector<24x256xi32>
    %120 = arith.sitofp %119 : vector<24x256xi32> to vector<24x256xf32>
    %121 = vector.broadcast %115 : vector<1x256xf32> to vector<24x256xf32>
    %122 = arith.mulf %121, %120 : vector<24x256xf32>
    %123 = vector.extract_strided_slice %49 {offsets = [1, 0], sizes = [1, 256], strides = [1, 1]} : vector<9x256xf32> to vector<1x256xf32>
    %124 = vector.extract_strided_slice %29 {offsets = [1, 0], sizes = [1, 256], strides = [1, 1]} : vector<9x256xf32> to vector<1x256xf32>
    %125 = vector.broadcast %124 : vector<1x256xf32> to vector<24x256xf32>
    %126 = arith.cmpf oeq, %53, %125 : vector<24x256xf32>
    %127 = arith.extui %126 : vector<24x256xi1> to vector<24x256xi32>
    %128 = arith.sitofp %127 : vector<24x256xi32> to vector<24x256xf32>
    %129 = vector.broadcast %123 : vector<1x256xf32> to vector<24x256xf32>
    %130 = arith.mulf %129, %128 : vector<24x256xf32>
    %131 = arith.addf %122, %130 : vector<24x256xf32>
    %132 = vector.shape_cast %114 : vector<18x256xf32> to vector<18x1x256xf32>
    %133 = vector.shape_cast %131 : vector<24x256xf32> to vector<1x24x256xf32>
    %134 = vector.broadcast %132 : vector<18x1x256xf32> to vector<18x24x256xf32>
    %135 = vector.broadcast %133 : vector<1x24x256xf32> to vector<18x24x256xf32>
    %136 = arith.mulf %134, %135 : vector<18x24x256xf32>
    %137 = vector.shape_cast %136 : vector<18x24x256xf32> to vector<432x256xf32>
    %138 = vector.extract_strided_slice %3 {offsets = [8, 0], sizes = [8, 432], strides = [1, 1]} : vector<72x432xf32> to vector<8x432xf32>
    %cst_27 = arith.constant dense<0.000000e+00> : vector<8x256xf32>
    %139 = tpu.matmul %138, %137, %cst_27 {dimension_numbers = #tpu.dot_dimension_numbers<[1], [0], [0], [1], [0, 0, 1, 1], [], []>} : vector<8x432xf32>, vector<432x256xf32>, vector<8x256xf32> -> vector<8x256xf32>
    %140 = arith.addf %97, %139 : vector<8x256xf32>
    %141 = vector.extract_strided_slice %40 {offsets = [2, 0], sizes = [1, 256], strides = [1, 1]} : vector<9x256xf32> to vector<1x256xf32>
    %142 = vector.extract_strided_slice %13 {offsets = [2, 0], sizes = [1, 256], strides = [1, 1]} : vector<9x256xf32> to vector<1x256xf32>
    %143 = vector.broadcast %142 : vector<1x256xf32> to vector<18x256xf32>
    %144 = arith.cmpf oeq, %51, %143 : vector<18x256xf32>
    %145 = arith.extui %144 : vector<18x256xi1> to vector<18x256xi32>
    %146 = arith.sitofp %145 : vector<18x256xi32> to vector<18x256xf32>
    %147 = vector.broadcast %141 : vector<1x256xf32> to vector<18x256xf32>
    %148 = arith.mulf %147, %146 : vector<18x256xf32>
    %149 = vector.extract_strided_slice %43 {offsets = [2, 0], sizes = [1, 256], strides = [1, 1]} : vector<9x256xf32> to vector<1x256xf32>
    %150 = vector.extract_strided_slice %23 {offsets = [2, 0], sizes = [1, 256], strides = [1, 1]} : vector<9x256xf32> to vector<1x256xf32>
    %151 = vector.broadcast %150 : vector<1x256xf32> to vector<18x256xf32>
    %152 = arith.cmpf oeq, %51, %151 : vector<18x256xf32>
    %153 = arith.extui %152 : vector<18x256xi1> to vector<18x256xi32>
    %154 = arith.sitofp %153 : vector<18x256xi32> to vector<18x256xf32>
    %155 = vector.broadcast %149 : vector<1x256xf32> to vector<18x256xf32>
    %156 = arith.mulf %155, %154 : vector<18x256xf32>
    %157 = arith.addf %148, %156 : vector<18x256xf32>
    %158 = vector.extract_strided_slice %46 {offsets = [2, 0], sizes = [1, 256], strides = [1, 1]} : vector<9x256xf32> to vector<1x256xf32>
    %159 = vector.extract_strided_slice %17 {offsets = [2, 0], sizes = [1, 256], strides = [1, 1]} : vector<9x256xf32> to vector<1x256xf32>
    %160 = vector.broadcast %159 : vector<1x256xf32> to vector<24x256xf32>
    %161 = arith.cmpf oeq, %53, %160 : vector<24x256xf32>
    %162 = arith.extui %161 : vector<24x256xi1> to vector<24x256xi32>
    %163 = arith.sitofp %162 : vector<24x256xi32> to vector<24x256xf32>
    %164 = vector.broadcast %158 : vector<1x256xf32> to vector<24x256xf32>
    %165 = arith.mulf %164, %163 : vector<24x256xf32>
    %166 = vector.extract_strided_slice %49 {offsets = [2, 0], sizes = [1, 256], strides = [1, 1]} : vector<9x256xf32> to vector<1x256xf32>
    %167 = vector.extract_strided_slice %29 {offsets = [2, 0], sizes = [1, 256], strides = [1, 1]} : vector<9x256xf32> to vector<1x256xf32>
    %168 = vector.broadcast %167 : vector<1x256xf32> to vector<24x256xf32>
    %169 = arith.cmpf oeq, %53, %168 : vector<24x256xf32>
    %170 = arith.extui %169 : vector<24x256xi1> to vector<24x256xi32>
    %171 = arith.sitofp %170 : vector<24x256xi32> to vector<24x256xf32>
    %172 = vector.broadcast %166 : vector<1x256xf32> to vector<24x256xf32>
    %173 = arith.mulf %172, %171 : vector<24x256xf32>
    %174 = arith.addf %165, %173 : vector<24x256xf32>
    %175 = vector.shape_cast %157 : vector<18x256xf32> to vector<18x1x256xf32>
    %176 = vector.shape_cast %174 : vector<24x256xf32> to vector<1x24x256xf32>
    %177 = vector.broadcast %175 : vector<18x1x256xf32> to vector<18x24x256xf32>
    %178 = vector.broadcast %176 : vector<1x24x256xf32> to vector<18x24x256xf32>
    %179 = arith.mulf %177, %178 : vector<18x24x256xf32>
    %180 = vector.shape_cast %179 : vector<18x24x256xf32> to vector<432x256xf32>
    %181 = vector.extract_strided_slice %3 {offsets = [16, 0], sizes = [8, 432], strides = [1, 1]} : vector<72x432xf32> to vector<8x432xf32>
    %cst_28 = arith.constant dense<0.000000e+00> : vector<8x256xf32>
    %182 = tpu.matmul %181, %180, %cst_28 {dimension_numbers = #tpu.dot_dimension_numbers<[1], [0], [0], [1], [0, 0, 1, 1], [], []>} : vector<8x432xf32>, vector<432x256xf32>, vector<8x256xf32> -> vector<8x256xf32>
    %183 = arith.addf %140, %182 : vector<8x256xf32>
    %184 = vector.extract_strided_slice %40 {offsets = [3, 0], sizes = [1, 256], strides = [1, 1]} : vector<9x256xf32> to vector<1x256xf32>
    %185 = vector.extract_strided_slice %13 {offsets = [3, 0], sizes = [1, 256], strides = [1, 1]} : vector<9x256xf32> to vector<1x256xf32>
    %186 = vector.broadcast %185 : vector<1x256xf32> to vector<18x256xf32>
    %187 = arith.cmpf oeq, %51, %186 : vector<18x256xf32>
    %188 = arith.extui %187 : vector<18x256xi1> to vector<18x256xi32>
    %189 = arith.sitofp %188 : vector<18x256xi32> to vector<18x256xf32>
    %190 = vector.broadcast %184 : vector<1x256xf32> to vector<18x256xf32>
    %191 = arith.mulf %190, %189 : vector<18x256xf32>
    %192 = vector.extract_strided_slice %43 {offsets = [3, 0], sizes = [1, 256], strides = [1, 1]} : vector<9x256xf32> to vector<1x256xf32>
    %193 = vector.extract_strided_slice %23 {offsets = [3, 0], sizes = [1, 256], strides = [1, 1]} : vector<9x256xf32> to vector<1x256xf32>
    %194 = vector.broadcast %193 : vector<1x256xf32> to vector<18x256xf32>
    %195 = arith.cmpf oeq, %51, %194 : vector<18x256xf32>
    %196 = arith.extui %195 : vector<18x256xi1> to vector<18x256xi32>
    %197 = arith.sitofp %196 : vector<18x256xi32> to vector<18x256xf32>
    %198 = vector.broadcast %192 : vector<1x256xf32> to vector<18x256xf32>
    %199 = arith.mulf %198, %197 : vector<18x256xf32>
    %200 = arith.addf %191, %199 : vector<18x256xf32>
    %201 = vector.extract_strided_slice %46 {offsets = [3, 0], sizes = [1, 256], strides = [1, 1]} : vector<9x256xf32> to vector<1x256xf32>
    %202 = vector.extract_strided_slice %17 {offsets = [3, 0], sizes = [1, 256], strides = [1, 1]} : vector<9x256xf32> to vector<1x256xf32>
    %203 = vector.broadcast %202 : vector<1x256xf32> to vector<24x256xf32>
    %204 = arith.cmpf oeq, %53, %203 : vector<24x256xf32>
    %205 = arith.extui %204 : vector<24x256xi1> to vector<24x256xi32>
    %206 = arith.sitofp %205 : vector<24x256xi32> to vector<24x256xf32>
    %207 = vector.broadcast %201 : vector<1x256xf32> to vector<24x256xf32>
    %208 = arith.mulf %207, %206 : vector<24x256xf32>
    %209 = vector.extract_strided_slice %49 {offsets = [3, 0], sizes = [1, 256], strides = [1, 1]} : vector<9x256xf32> to vector<1x256xf32>
    %210 = vector.extract_strided_slice %29 {offsets = [3, 0], sizes = [1, 256], strides = [1, 1]} : vector<9x256xf32> to vector<1x256xf32>
    %211 = vector.broadcast %210 : vector<1x256xf32> to vector<24x256xf32>
    %212 = arith.cmpf oeq, %53, %211 : vector<24x256xf32>
    %213 = arith.extui %212 : vector<24x256xi1> to vector<24x256xi32>
    %214 = arith.sitofp %213 : vector<24x256xi32> to vector<24x256xf32>
    %215 = vector.broadcast %209 : vector<1x256xf32> to vector<24x256xf32>
    %216 = arith.mulf %215, %214 : vector<24x256xf32>
    %217 = arith.addf %208, %216 : vector<24x256xf32>
    %218 = vector.shape_cast %200 : vector<18x256xf32> to vector<18x1x256xf32>
    %219 = vector.shape_cast %217 : vector<24x256xf32> to vector<1x24x256xf32>
    %220 = vector.broadcast %218 : vector<18x1x256xf32> to vector<18x24x256xf32>
    %221 = vector.broadcast %219 : vector<1x24x256xf32> to vector<18x24x256xf32>
    %222 = arith.mulf %220, %221 : vector<18x24x256xf32>
    %223 = vector.shape_cast %222 : vector<18x24x256xf32> to vector<432x256xf32>
    %224 = vector.extract_strided_slice %3 {offsets = [24, 0], sizes = [8, 432], strides = [1, 1]} : vector<72x432xf32> to vector<8x432xf32>
    %cst_29 = arith.constant dense<0.000000e+00> : vector<8x256xf32>
    %225 = tpu.matmul %224, %223, %cst_29 {dimension_numbers = #tpu.dot_dimension_numbers<[1], [0], [0], [1], [0, 0, 1, 1], [], []>} : vector<8x432xf32>, vector<432x256xf32>, vector<8x256xf32> -> vector<8x256xf32>
    %226 = arith.addf %183, %225 : vector<8x256xf32>
    %227 = vector.extract_strided_slice %40 {offsets = [4, 0], sizes = [1, 256], strides = [1, 1]} : vector<9x256xf32> to vector<1x256xf32>
    %228 = vector.extract_strided_slice %13 {offsets = [4, 0], sizes = [1, 256], strides = [1, 1]} : vector<9x256xf32> to vector<1x256xf32>
    %229 = vector.broadcast %228 : vector<1x256xf32> to vector<18x256xf32>
    %230 = arith.cmpf oeq, %51, %229 : vector<18x256xf32>
    %231 = arith.extui %230 : vector<18x256xi1> to vector<18x256xi32>
    %232 = arith.sitofp %231 : vector<18x256xi32> to vector<18x256xf32>
    %233 = vector.broadcast %227 : vector<1x256xf32> to vector<18x256xf32>
    %234 = arith.mulf %233, %232 : vector<18x256xf32>
    %235 = vector.extract_strided_slice %43 {offsets = [4, 0], sizes = [1, 256], strides = [1, 1]} : vector<9x256xf32> to vector<1x256xf32>
    %236 = vector.extract_strided_slice %23 {offsets = [4, 0], sizes = [1, 256], strides = [1, 1]} : vector<9x256xf32> to vector<1x256xf32>
    %237 = vector.broadcast %236 : vector<1x256xf32> to vector<18x256xf32>
    %238 = arith.cmpf oeq, %51, %237 : vector<18x256xf32>
    %239 = arith.extui %238 : vector<18x256xi1> to vector<18x256xi32>
    %240 = arith.sitofp %239 : vector<18x256xi32> to vector<18x256xf32>
    %241 = vector.broadcast %235 : vector<1x256xf32> to vector<18x256xf32>
    %242 = arith.mulf %241, %240 : vector<18x256xf32>
    %243 = arith.addf %234, %242 : vector<18x256xf32>
    %244 = vector.extract_strided_slice %46 {offsets = [4, 0], sizes = [1, 256], strides = [1, 1]} : vector<9x256xf32> to vector<1x256xf32>
    %245 = vector.extract_strided_slice %17 {offsets = [4, 0], sizes = [1, 256], strides = [1, 1]} : vector<9x256xf32> to vector<1x256xf32>
    %246 = vector.broadcast %245 : vector<1x256xf32> to vector<24x256xf32>
    %247 = arith.cmpf oeq, %53, %246 : vector<24x256xf32>
    %248 = arith.extui %247 : vector<24x256xi1> to vector<24x256xi32>
    %249 = arith.sitofp %248 : vector<24x256xi32> to vector<24x256xf32>
    %250 = vector.broadcast %244 : vector<1x256xf32> to vector<24x256xf32>
    %251 = arith.mulf %250, %249 : vector<24x256xf32>
    %252 = vector.extract_strided_slice %49 {offsets = [4, 0], sizes = [1, 256], strides = [1, 1]} : vector<9x256xf32> to vector<1x256xf32>
    %253 = vector.extract_strided_slice %29 {offsets = [4, 0], sizes = [1, 256], strides = [1, 1]} : vector<9x256xf32> to vector<1x256xf32>
    %254 = vector.broadcast %253 : vector<1x256xf32> to vector<24x256xf32>
    %255 = arith.cmpf oeq, %53, %254 : vector<24x256xf32>
    %256 = arith.extui %255 : vector<24x256xi1> to vector<24x256xi32>
    %257 = arith.sitofp %256 : vector<24x256xi32> to vector<24x256xf32>
    %258 = vector.broadcast %252 : vector<1x256xf32> to vector<24x256xf32>
    %259 = arith.mulf %258, %257 : vector<24x256xf32>
    %260 = arith.addf %251, %259 : vector<24x256xf32>
    %261 = vector.shape_cast %243 : vector<18x256xf32> to vector<18x1x256xf32>
    %262 = vector.shape_cast %260 : vector<24x256xf32> to vector<1x24x256xf32>
    %263 = vector.broadcast %261 : vector<18x1x256xf32> to vector<18x24x256xf32>
    %264 = vector.broadcast %262 : vector<1x24x256xf32> to vector<18x24x256xf32>
    %265 = arith.mulf %263, %264 : vector<18x24x256xf32>
    %266 = vector.shape_cast %265 : vector<18x24x256xf32> to vector<432x256xf32>
    %267 = vector.extract_strided_slice %3 {offsets = [32, 0], sizes = [8, 432], strides = [1, 1]} : vector<72x432xf32> to vector<8x432xf32>
    %cst_30 = arith.constant dense<0.000000e+00> : vector<8x256xf32>
    %268 = tpu.matmul %267, %266, %cst_30 {dimension_numbers = #tpu.dot_dimension_numbers<[1], [0], [0], [1], [0, 0, 1, 1], [], []>} : vector<8x432xf32>, vector<432x256xf32>, vector<8x256xf32> -> vector<8x256xf32>
    %269 = arith.addf %226, %268 : vector<8x256xf32>
    %270 = vector.extract_strided_slice %40 {offsets = [5, 0], sizes = [1, 256], strides = [1, 1]} : vector<9x256xf32> to vector<1x256xf32>
    %271 = vector.extract_strided_slice %13 {offsets = [5, 0], sizes = [1, 256], strides = [1, 1]} : vector<9x256xf32> to vector<1x256xf32>
    %272 = vector.broadcast %271 : vector<1x256xf32> to vector<18x256xf32>
    %273 = arith.cmpf oeq, %51, %272 : vector<18x256xf32>
    %274 = arith.extui %273 : vector<18x256xi1> to vector<18x256xi32>
    %275 = arith.sitofp %274 : vector<18x256xi32> to vector<18x256xf32>
    %276 = vector.broadcast %270 : vector<1x256xf32> to vector<18x256xf32>
    %277 = arith.mulf %276, %275 : vector<18x256xf32>
    %278 = vector.extract_strided_slice %43 {offsets = [5, 0], sizes = [1, 256], strides = [1, 1]} : vector<9x256xf32> to vector<1x256xf32>
    %279 = vector.extract_strided_slice %23 {offsets = [5, 0], sizes = [1, 256], strides = [1, 1]} : vector<9x256xf32> to vector<1x256xf32>
    %280 = vector.broadcast %279 : vector<1x256xf32> to vector<18x256xf32>
    %281 = arith.cmpf oeq, %51, %280 : vector<18x256xf32>
    %282 = arith.extui %281 : vector<18x256xi1> to vector<18x256xi32>
    %283 = arith.sitofp %282 : vector<18x256xi32> to vector<18x256xf32>
    %284 = vector.broadcast %278 : vector<1x256xf32> to vector<18x256xf32>
    %285 = arith.mulf %284, %283 : vector<18x256xf32>
    %286 = arith.addf %277, %285 : vector<18x256xf32>
    %287 = vector.extract_strided_slice %46 {offsets = [5, 0], sizes = [1, 256], strides = [1, 1]} : vector<9x256xf32> to vector<1x256xf32>
    %288 = vector.extract_strided_slice %17 {offsets = [5, 0], sizes = [1, 256], strides = [1, 1]} : vector<9x256xf32> to vector<1x256xf32>
    %289 = vector.broadcast %288 : vector<1x256xf32> to vector<24x256xf32>
    %290 = arith.cmpf oeq, %53, %289 : vector<24x256xf32>
    %291 = arith.extui %290 : vector<24x256xi1> to vector<24x256xi32>
    %292 = arith.sitofp %291 : vector<24x256xi32> to vector<24x256xf32>
    %293 = vector.broadcast %287 : vector<1x256xf32> to vector<24x256xf32>
    %294 = arith.mulf %293, %292 : vector<24x256xf32>
    %295 = vector.extract_strided_slice %49 {offsets = [5, 0], sizes = [1, 256], strides = [1, 1]} : vector<9x256xf32> to vector<1x256xf32>
    %296 = vector.extract_strided_slice %29 {offsets = [5, 0], sizes = [1, 256], strides = [1, 1]} : vector<9x256xf32> to vector<1x256xf32>
    %297 = vector.broadcast %296 : vector<1x256xf32> to vector<24x256xf32>
    %298 = arith.cmpf oeq, %53, %297 : vector<24x256xf32>
    %299 = arith.extui %298 : vector<24x256xi1> to vector<24x256xi32>
    %300 = arith.sitofp %299 : vector<24x256xi32> to vector<24x256xf32>
    %301 = vector.broadcast %295 : vector<1x256xf32> to vector<24x256xf32>
    %302 = arith.mulf %301, %300 : vector<24x256xf32>
    %303 = arith.addf %294, %302 : vector<24x256xf32>
    %304 = vector.shape_cast %286 : vector<18x256xf32> to vector<18x1x256xf32>
    %305 = vector.shape_cast %303 : vector<24x256xf32> to vector<1x24x256xf32>
    %306 = vector.broadcast %304 : vector<18x1x256xf32> to vector<18x24x256xf32>
    %307 = vector.broadcast %305 : vector<1x24x256xf32> to vector<18x24x256xf32>
    %308 = arith.mulf %306, %307 : vector<18x24x256xf32>
    %309 = vector.shape_cast %308 : vector<18x24x256xf32> to vector<432x256xf32>
    %310 = vector.extract_strided_slice %3 {offsets = [40, 0], sizes = [8, 432], strides = [1, 1]} : vector<72x432xf32> to vector<8x432xf32>
    %cst_31 = arith.constant dense<0.000000e+00> : vector<8x256xf32>
    %311 = tpu.matmul %310, %309, %cst_31 {dimension_numbers = #tpu.dot_dimension_numbers<[1], [0], [0], [1], [0, 0, 1, 1], [], []>} : vector<8x432xf32>, vector<432x256xf32>, vector<8x256xf32> -> vector<8x256xf32>
    %312 = arith.addf %269, %311 : vector<8x256xf32>
    %313 = vector.extract_strided_slice %40 {offsets = [6, 0], sizes = [1, 256], strides = [1, 1]} : vector<9x256xf32> to vector<1x256xf32>
    %314 = vector.extract_strided_slice %13 {offsets = [6, 0], sizes = [1, 256], strides = [1, 1]} : vector<9x256xf32> to vector<1x256xf32>
    %315 = vector.broadcast %314 : vector<1x256xf32> to vector<18x256xf32>
    %316 = arith.cmpf oeq, %51, %315 : vector<18x256xf32>
    %317 = arith.extui %316 : vector<18x256xi1> to vector<18x256xi32>
    %318 = arith.sitofp %317 : vector<18x256xi32> to vector<18x256xf32>
    %319 = vector.broadcast %313 : vector<1x256xf32> to vector<18x256xf32>
    %320 = arith.mulf %319, %318 : vector<18x256xf32>
    %321 = vector.extract_strided_slice %43 {offsets = [6, 0], sizes = [1, 256], strides = [1, 1]} : vector<9x256xf32> to vector<1x256xf32>
    %322 = vector.extract_strided_slice %23 {offsets = [6, 0], sizes = [1, 256], strides = [1, 1]} : vector<9x256xf32> to vector<1x256xf32>
    %323 = vector.broadcast %322 : vector<1x256xf32> to vector<18x256xf32>
    %324 = arith.cmpf oeq, %51, %323 : vector<18x256xf32>
    %325 = arith.extui %324 : vector<18x256xi1> to vector<18x256xi32>
    %326 = arith.sitofp %325 : vector<18x256xi32> to vector<18x256xf32>
    %327 = vector.broadcast %321 : vector<1x256xf32> to vector<18x256xf32>
    %328 = arith.mulf %327, %326 : vector<18x256xf32>
    %329 = arith.addf %320, %328 : vector<18x256xf32>
    %330 = vector.extract_strided_slice %46 {offsets = [6, 0], sizes = [1, 256], strides = [1, 1]} : vector<9x256xf32> to vector<1x256xf32>
    %331 = vector.extract_strided_slice %17 {offsets = [6, 0], sizes = [1, 256], strides = [1, 1]} : vector<9x256xf32> to vector<1x256xf32>
    %332 = vector.broadcast %331 : vector<1x256xf32> to vector<24x256xf32>
    %333 = arith.cmpf oeq, %53, %332 : vector<24x256xf32>
    %334 = arith.extui %333 : vector<24x256xi1> to vector<24x256xi32>
    %335 = arith.sitofp %334 : vector<24x256xi32> to vector<24x256xf32>
    %336 = vector.broadcast %330 : vector<1x256xf32> to vector<24x256xf32>
    %337 = arith.mulf %336, %335 : vector<24x256xf32>
    %338 = vector.extract_strided_slice %49 {offsets = [6, 0], sizes = [1, 256], strides = [1, 1]} : vector<9x256xf32> to vector<1x256xf32>
    %339 = vector.extract_strided_slice %29 {offsets = [6, 0], sizes = [1, 256], strides = [1, 1]} : vector<9x256xf32> to vector<1x256xf32>
    %340 = vector.broadcast %339 : vector<1x256xf32> to vector<24x256xf32>
    %341 = arith.cmpf oeq, %53, %340 : vector<24x256xf32>
    %342 = arith.extui %341 : vector<24x256xi1> to vector<24x256xi32>
    %343 = arith.sitofp %342 : vector<24x256xi32> to vector<24x256xf32>
    %344 = vector.broadcast %338 : vector<1x256xf32> to vector<24x256xf32>
    %345 = arith.mulf %344, %343 : vector<24x256xf32>
    %346 = arith.addf %337, %345 : vector<24x256xf32>
    %347 = vector.shape_cast %329 : vector<18x256xf32> to vector<18x1x256xf32>
    %348 = vector.shape_cast %346 : vector<24x256xf32> to vector<1x24x256xf32>
    %349 = vector.broadcast %347 : vector<18x1x256xf32> to vector<18x24x256xf32>
    %350 = vector.broadcast %348 : vector<1x24x256xf32> to vector<18x24x256xf32>
    %351 = arith.mulf %349, %350 : vector<18x24x256xf32>
    %352 = vector.shape_cast %351 : vector<18x24x256xf32> to vector<432x256xf32>
    %353 = vector.extract_strided_slice %3 {offsets = [48, 0], sizes = [8, 432], strides = [1, 1]} : vector<72x432xf32> to vector<8x432xf32>
    %cst_32 = arith.constant dense<0.000000e+00> : vector<8x256xf32>
    %354 = tpu.matmul %353, %352, %cst_32 {dimension_numbers = #tpu.dot_dimension_numbers<[1], [0], [0], [1], [0, 0, 1, 1], [], []>} : vector<8x432xf32>, vector<432x256xf32>, vector<8x256xf32> -> vector<8x256xf32>
    %355 = arith.addf %312, %354 : vector<8x256xf32>
    %356 = vector.extract_strided_slice %40 {offsets = [7, 0], sizes = [1, 256], strides = [1, 1]} : vector<9x256xf32> to vector<1x256xf32>
    %357 = vector.extract_strided_slice %13 {offsets = [7, 0], sizes = [1, 256], strides = [1, 1]} : vector<9x256xf32> to vector<1x256xf32>
    %358 = vector.broadcast %357 : vector<1x256xf32> to vector<18x256xf32>
    %359 = arith.cmpf oeq, %51, %358 : vector<18x256xf32>
    %360 = arith.extui %359 : vector<18x256xi1> to vector<18x256xi32>
    %361 = arith.sitofp %360 : vector<18x256xi32> to vector<18x256xf32>
    %362 = vector.broadcast %356 : vector<1x256xf32> to vector<18x256xf32>
    %363 = arith.mulf %362, %361 : vector<18x256xf32>
    %364 = vector.extract_strided_slice %43 {offsets = [7, 0], sizes = [1, 256], strides = [1, 1]} : vector<9x256xf32> to vector<1x256xf32>
    %365 = vector.extract_strided_slice %23 {offsets = [7, 0], sizes = [1, 256], strides = [1, 1]} : vector<9x256xf32> to vector<1x256xf32>
    %366 = vector.broadcast %365 : vector<1x256xf32> to vector<18x256xf32>
    %367 = arith.cmpf oeq, %51, %366 : vector<18x256xf32>
    %368 = arith.extui %367 : vector<18x256xi1> to vector<18x256xi32>
    %369 = arith.sitofp %368 : vector<18x256xi32> to vector<18x256xf32>
    %370 = vector.broadcast %364 : vector<1x256xf32> to vector<18x256xf32>
    %371 = arith.mulf %370, %369 : vector<18x256xf32>
    %372 = arith.addf %363, %371 : vector<18x256xf32>
    %373 = vector.extract_strided_slice %46 {offsets = [7, 0], sizes = [1, 256], strides = [1, 1]} : vector<9x256xf32> to vector<1x256xf32>
    %374 = vector.extract_strided_slice %17 {offsets = [7, 0], sizes = [1, 256], strides = [1, 1]} : vector<9x256xf32> to vector<1x256xf32>
    %375 = vector.broadcast %374 : vector<1x256xf32> to vector<24x256xf32>
    %376 = arith.cmpf oeq, %53, %375 : vector<24x256xf32>
    %377 = arith.extui %376 : vector<24x256xi1> to vector<24x256xi32>
    %378 = arith.sitofp %377 : vector<24x256xi32> to vector<24x256xf32>
    %379 = vector.broadcast %373 : vector<1x256xf32> to vector<24x256xf32>
    %380 = arith.mulf %379, %378 : vector<24x256xf32>
    %381 = vector.extract_strided_slice %49 {offsets = [7, 0], sizes = [1, 256], strides = [1, 1]} : vector<9x256xf32> to vector<1x256xf32>
    %382 = vector.extract_strided_slice %29 {offsets = [7, 0], sizes = [1, 256], strides = [1, 1]} : vector<9x256xf32> to vector<1x256xf32>
    %383 = vector.broadcast %382 : vector<1x256xf32> to vector<24x256xf32>
    %384 = arith.cmpf oeq, %53, %383 : vector<24x256xf32>
    %385 = arith.extui %384 : vector<24x256xi1> to vector<24x256xi32>
    %386 = arith.sitofp %385 : vector<24x256xi32> to vector<24x256xf32>
    %387 = vector.broadcast %381 : vector<1x256xf32> to vector<24x256xf32>
    %388 = arith.mulf %387, %386 : vector<24x256xf32>
    %389 = arith.addf %380, %388 : vector<24x256xf32>
    %390 = vector.shape_cast %372 : vector<18x256xf32> to vector<18x1x256xf32>
    %391 = vector.shape_cast %389 : vector<24x256xf32> to vector<1x24x256xf32>
    %392 = vector.broadcast %390 : vector<18x1x256xf32> to vector<18x24x256xf32>
    %393 = vector.broadcast %391 : vector<1x24x256xf32> to vector<18x24x256xf32>
    %394 = arith.mulf %392, %393 : vector<18x24x256xf32>
    %395 = vector.shape_cast %394 : vector<18x24x256xf32> to vector<432x256xf32>
    %396 = vector.extract_strided_slice %3 {offsets = [56, 0], sizes = [8, 432], strides = [1, 1]} : vector<72x432xf32> to vector<8x432xf32>
    %cst_33 = arith.constant dense<0.000000e+00> : vector<8x256xf32>
    %397 = tpu.matmul %396, %395, %cst_33 {dimension_numbers = #tpu.dot_dimension_numbers<[1], [0], [0], [1], [0, 0, 1, 1], [], []>} : vector<8x432xf32>, vector<432x256xf32>, vector<8x256xf32> -> vector<8x256xf32>
    %398 = arith.addf %355, %397 : vector<8x256xf32>
    %399 = vector.extract_strided_slice %40 {offsets = [8, 0], sizes = [1, 256], strides = [1, 1]} : vector<9x256xf32> to vector<1x256xf32>
    %400 = vector.extract_strided_slice %13 {offsets = [8, 0], sizes = [1, 256], strides = [1, 1]} : vector<9x256xf32> to vector<1x256xf32>
    %401 = vector.broadcast %400 : vector<1x256xf32> to vector<18x256xf32>
    %402 = arith.cmpf oeq, %51, %401 : vector<18x256xf32>
    %403 = arith.extui %402 : vector<18x256xi1> to vector<18x256xi32>
    %404 = arith.sitofp %403 : vector<18x256xi32> to vector<18x256xf32>
    %405 = vector.broadcast %399 : vector<1x256xf32> to vector<18x256xf32>
    %406 = arith.mulf %405, %404 : vector<18x256xf32>
    %407 = vector.extract_strided_slice %43 {offsets = [8, 0], sizes = [1, 256], strides = [1, 1]} : vector<9x256xf32> to vector<1x256xf32>
    %408 = vector.extract_strided_slice %23 {offsets = [8, 0], sizes = [1, 256], strides = [1, 1]} : vector<9x256xf32> to vector<1x256xf32>
    %409 = vector.broadcast %408 : vector<1x256xf32> to vector<18x256xf32>
    %410 = arith.cmpf oeq, %51, %409 : vector<18x256xf32>
    %411 = arith.extui %410 : vector<18x256xi1> to vector<18x256xi32>
    %412 = arith.sitofp %411 : vector<18x256xi32> to vector<18x256xf32>
    %413 = vector.broadcast %407 : vector<1x256xf32> to vector<18x256xf32>
    %414 = arith.mulf %413, %412 : vector<18x256xf32>
    %415 = arith.addf %406, %414 : vector<18x256xf32>
    %416 = vector.extract_strided_slice %46 {offsets = [8, 0], sizes = [1, 256], strides = [1, 1]} : vector<9x256xf32> to vector<1x256xf32>
    %417 = vector.extract_strided_slice %17 {offsets = [8, 0], sizes = [1, 256], strides = [1, 1]} : vector<9x256xf32> to vector<1x256xf32>
    %418 = vector.broadcast %417 : vector<1x256xf32> to vector<24x256xf32>
    %419 = arith.cmpf oeq, %53, %418 : vector<24x256xf32>
    %420 = arith.extui %419 : vector<24x256xi1> to vector<24x256xi32>
    %421 = arith.sitofp %420 : vector<24x256xi32> to vector<24x256xf32>
    %422 = vector.broadcast %416 : vector<1x256xf32> to vector<24x256xf32>
    %423 = arith.mulf %422, %421 : vector<24x256xf32>
    %424 = vector.extract_strided_slice %49 {offsets = [8, 0], sizes = [1, 256], strides = [1, 1]} : vector<9x256xf32> to vector<1x256xf32>
    %425 = vector.extract_strided_slice %29 {offsets = [8, 0], sizes = [1, 256], strides = [1, 1]} : vector<9x256xf32> to vector<1x256xf32>
    %426 = vector.broadcast %425 : vector<1x256xf32> to vector<24x256xf32>
    %427 = arith.cmpf oeq, %53, %426 : vector<24x256xf32>
    %428 = arith.extui %427 : vector<24x256xi1> to vector<24x256xi32>
    %429 = arith.sitofp %428 : vector<24x256xi32> to vector<24x256xf32>
    %430 = vector.broadcast %424 : vector<1x256xf32> to vector<24x256xf32>
    %431 = arith.mulf %430, %429 : vector<24x256xf32>
    %432 = arith.addf %423, %431 : vector<24x256xf32>
    %433 = vector.shape_cast %415 : vector<18x256xf32> to vector<18x1x256xf32>
    %434 = vector.shape_cast %432 : vector<24x256xf32> to vector<1x24x256xf32>
    %435 = vector.broadcast %433 : vector<18x1x256xf32> to vector<18x24x256xf32>
    %436 = vector.broadcast %434 : vector<1x24x256xf32> to vector<18x24x256xf32>
    %437 = arith.mulf %435, %436 : vector<18x24x256xf32>
    %438 = vector.shape_cast %437 : vector<18x24x256xf32> to vector<432x256xf32>
    %439 = vector.extract_strided_slice %3 {offsets = [64, 0], sizes = [8, 432], strides = [1, 1]} : vector<72x432xf32> to vector<8x432xf32>
    %cst_34 = arith.constant dense<0.000000e+00> : vector<8x256xf32>
    %440 = tpu.matmul %439, %438, %cst_34 {dimension_numbers = #tpu.dot_dimension_numbers<[1], [0], [0], [1], [0, 0, 1, 1], [], []>} : vector<8x432xf32>, vector<432x256xf32>, vector<8x256xf32> -> vector<8x256xf32>
    %441 = arith.addf %398, %440 : vector<8x256xf32>
    %c0_35 = arith.constant 0 : index
    %c0_36 = arith.constant 0 : index
    %c0_37 = arith.constant 0 : index
    %442 = vector.load %arg5[%c0_35, %c0_36, %c0_37] : memref<1x8x256xf32, #tpu.memory_space<vmem>>, vector<1x8x256xf32>
    %443 = vector.shape_cast %442 : vector<1x8x256xf32> to vector<8x256xf32>
    %444 = vector.shape_cast %441 : vector<8x256xf32> to vector<1x8x256xf32>
    tpu.vector_store %arg5[%c0_35, %c0_36, %c0_37], %444 {strides = array<i32>} : memref<1x8x256xf32, #tpu.memory_space<vmem>>, vector<1x8x256xf32>,
    return
  }
  func.func @transform_0(%arg0: i32, %arg1: i32) -> (i32, i32, i32) {
    %c0_i32 = arith.constant 0 : i32
    %c0_i32_0 = arith.constant 0 : i32
    return %arg0, %c0_i32, %arg1 : i32, i32, i32
  }
  func.func @transform_1(%arg0: i32, %arg1: i32) -> (i32, i32, i32) {
    %c0_i32 = arith.constant 0 : i32
    %c0_i32_0 = arith.constant 0 : i32
    %c0_i32_1 = arith.constant 0 : i32
    return %arg0, %c0_i32, %c0_i32_0 : i32, i32, i32
  }
  func.func @transform_2(%arg0: i32, %arg1: i32) -> (i32, i32) {
    %c0_i32 = arith.constant 0 : i32
    %c0_i32_0 = arith.constant 0 : i32
    %c0_i32_1 = arith.constant 0 : i32
    return %c0_i32, %c0_i32_0 : i32, i32
  }
  func.func @transform_3(%arg0: i32, %arg1: i32) -> (i32, i32, i32) {
    %c0_i32 = arith.constant 0 : i32
    %c0_i32_0 = arith.constant 0 : i32
    return %arg0, %c0_i32, %arg1 : i32, i32, i32
  }
}

</mosaic_0001>

<bundles_post_ra>
// kernel: tpu_custom_call.1
= control target key start
LH: loop header
LB: loop body
LE: loop exit
PB: predicated region body
PF: predicated region fallthrough
CT: control target
= control target key end

     0   :  { %8 = vsyncpa [#allocation3], 0  ;;  %s11093_s0 = inlined_call_operand.vmem [shape: f32[2,18,256], index: 0, kind: input, shape index: {}]   ;;  %s11094_s1 = inlined_call_operand.vmem [shape: f32[2,4,432], index: 1, kind: input, shape index: {}]   ;;  %s11095_s2 = inlined_call_operand.vmem [shape: f32[72,4], index: 2, kind: input, shape index: {}]   ;;  %s11096_s3 = inlined_call_operand.hbm [shape: f32[2,8,256], index: 3, kind: output, shape index: {}]  }
   0x1   :  { %10 = vsyncpa [#allocation3 + $0x1], 0  ;;  %s5699_s12 = smov 0   ;;  %s5701_s13 = smov 0  }
   0x2   :  { %s5703_s14 = smov 0   ;;  %s5705_s15 = smov 0  }
   0x3   :  { %s5707_s16 = smov 0   ;;  %s5709_s17 = smov 0  }
   0x4 LB: > { %s5251_s18 = sadd.s32 4294967295, %s5676_s17   ;;  %s5252_s19 = sadd.s32 4294967294, %s5676_s17   ;;  %s5676_s17 = sphi %s5709_s17, %s16_s17   ;;  %s5672_s16 = sphi %s5707_s16, %s11700_s16   ;;  %s5668_s15 = sphi %s5705_s15, %s11699_s15   ;;  %s5664_s14 = sphi %s5703_s14, %s11698_s14   ;;  %s5660_s13 = sphi %s5701_s13, %s11697_s13   ;;  %s5656_s12 = sphi %s5699_s12, %s11696_s12  }
   0x5   : > { %s28_s20 = sadd.s32 1, %s5672_s16  ;;  %s112_s21 = sadd.s32 1, %s5664_s14 }
   0x6   : > { %p30_p0 = scmp.ge.s32.totalorder %s28_s20, 2  ;;  %p122_p1 = scmp.ne.s32.totalorder %s5664_s14, %s5660_s13 }
   0x7   : > { %p123_p2 = scmp.eq.s32.totalorder %s5251_s18, 1  ;;  %p128_p3 = scmp.ne.s32.totalorder %s5660_s13, %s5656_s12 }
   0x8   : > { %s11702_s20 = smov (%p30_p0, %s28_s20), 0  ;;  %p129_p5 = scmp.eq.s32.totalorder %s5252_s19, 1 }
   0x9   : > { %p5739_p4 = por %p123_p2, %p122_p1  ;;  %s107_s23 = ssub.s32 %s5672_s16, %s11702_s20 }
   0xa   : > { %p5255_p6 = scmp.ge.s32.totalorder %s5676_s17, 1  ;;  %p110_p7 = scmp.eq.s32.totalorder %s107_s23, 0 }
   0xb   : > { %p5746_p8 = por %p129_p5, %p128_p3  ;;  %p171_p9 = scmp.lt.s32.totalorder %s5676_s17, 3 }
   0xc   : > { %s5752_s25 = scalar_select %p110_p7, %s5664_s14, %s112_s21  }
   0xd   : > { %p172_p10 = pnand %p5255_p6, %p171_p9 }
   0xf   : > { %175 = sbr.rel (%p172_p10) target bundleno = 888 (0x378), region = 32 }
  0x14   : > { %p205_p11 = scmp.lt.s32.totalorder %s5668_s15, 1  ;;  %v531_v0 = vlaneseq  ;;  %vm268_vm0 = vcmask 1043456   ;;  %vm240_vm1 = vcmask 31744   ;;  %v220_v36 = vld [vmem:[%s11095_s2] sm:$0xff]  ;;  %s201_s9 = sand.u32 1, %s5660_s13  }
  0x15   : > { %s5256_s10 = sshll.u32 %s201_s9, 4  ;;  %s5540_s11 = sshll.u32 %s5668_s15, 4 }
  0x16   : > { %s206_s26 = scalar_select %p205_p11, %s5668_s15, 1  ;;  %v532_v1 = vshrl.u32 %v531_v0, 7 }
  0x17   : > { %s203_s18 = scalar_lea.vmem [#allocation2], %s5256_s10  ;;  %s5158_s23 = scalar_lea.hbm %s11096_s3, %s5540_s11 }
  0x18   : > { %s5541_s27 = smul.u32 48, %s206_s26  ;;  %s5539_s28 = sshll.u32 %s206_s26, 4  ;;  %v533_v3 = vadd.s32 8, %v532_v1  ;;  %v5762_v8 = vadd.s32 16, %v532_v1  ;;  %v5764_v15 = vcvt.s32.f32 %v532_v1 }
  0x19   : > { %s218_s4 = scalar_lea.vmem %s11094_s1, %s5539_s28  ;;  %s5160_s15 = sshll.u32 %s203_s18, 4  ;;  %s5161_s15 = int_to_ptr.vmem [resolvable:$true] %s5160_s15 }
  0x1a   : > { %s212_s7 = scalar_lea.vmem %s11093_s0, %s5541_s27  ;;  %v229_v2 = vld [vmem:[%s218_s4] sm:$0xff]  ;;  %v230_v4 = vld [vmem:[%s218_s4 + $0x8] sm:$0xff]  ;;  %11309 = vst [vmem:[#allocation5_spill] sm:$0xff] %v5764_v15  ;;  %v5779_v41 = vcvt.s32.f32 %v533_v3  ;;  %s5162_s26 = sshll.u32 %s5158_s23, 4  ;;  %s5163_s26 = int_to_ptr.hbm [resolvable:$true] %s5162_s26 }
  0x1b   : > { %233 = vst [vmem:[#allocation1] ss:$2 sm:$0xff] %v229_v2  ;;  %v453_v5 = vld [vmem:[%s212_s7] sm:$0xff]  ;;  %v454_v6 = vld [vmem:[%s212_s7 + $0x8] sm:$0xff]  ;;  %v455_v7 = vld [vmem:[%s212_s7 + $0x10] sm:$0xff]  ;;  %s5145_s27 = scalar_lea.sflag [#allocation3], %s201_s9 }
  0x1c   : > { %v456_v9 = vld [vmem:[%s212_s7 + $0x18] sm:$0xff]  ;;  %v457_v10 = vld [vmem:[%s212_s7 + $0x20] sm:$0x3]  ;;  %v458_v11 = vld [vmem:[%s212_s7 + $0x28] sm:$0x3]  ;;  %v459_v12 = vfloor.f32 %v453_v5  ;;  %v460_v13 = vfloor.f32 %v454_v6  ;;  %v461_v14 = vfloor.f32 %v455_v7  ;;  %v495_v19 = vmax.f32 %v453_v5, 0.0 }
  0x1d   : > { %v462_v16 = vfloor.f32 %v456_v9  ;;  %v463_v17 = vfloor.f32 %v457_v10  ;;  %v464_v18 = vfloor.f32 %v458_v11  ;;  %235 = vst [vmem:[#allocation1 + $0x10] ss:$2 sm:$0xff] %v230_v4  ;;  %v496_v27 = vmax.f32 %v454_v6, 0.0  ;;  %s5612_s28 = sshra.s32 %s5163_s26, 4  ;;  %s5618_s5 = scalar_lea.hbm %s11096_s3, 32  ;;  %s5613_s28 = int_to_ptr.hbm [resolvable:$true] %s5612_s28 }
  0x1e   : > { %v465_v20 = vmax.f32 %v459_v12, 0.0  ;;  %v466_v21 = vmax.f32 %v460_v13, 0.0  ;;  %v467_v22 = vmax.f32 %v461_v14, 0.0  ;;  %v477_v23 = vadd.f32 1.0, %v459_v12  ;;  %11314 = vst [vmem:[#allocation10_spill] sm:$0xff] %v5779_v41  ;;  %s5614_s29 = scalar_lea.hbm %s5613_s28, 16  ;;  %p5619_p1 = scmp.lt.s32.totalorder %s5613_s28, %s11096_s3 }
  0x1f   : > { %v468_v24 = vmax.f32 %v462_v16, 0.0  ;;  %v473_v25 = vmax.f32 %v463_v17, 0.0  ;;  %v478_v26 = vadd.f32 1.0, %v460_v13  ;;  %v474_v30 = vmax.f32 %v464_v18, 0.0  ;;  %p5615_p12 = scmp.ne.s32.totalorder %s5613_s28, %s5614_s29  ;;  %p5620_p2 = scmp.lt.s32.totalorder %s5618_s5, %s5614_s29 }
  0x20   : > { %v5766_v28 = vmin.f32 %v465_v20, 17.0  ;;  %v5768_v29 = vmin.f32 %v466_v21, 17.0  ;;  %v479_v31 = vadd.f32 1.0, %v461_v14  ;;  %v5770_v32 = vmin.f32 %v467_v22, 17.0 }
  0x21   : > { %v5772_v33 = vmin.f32 %v468_v24, 17.0  ;;  %v5774_v34 = vmin.f32 %v473_v25, 17.0  ;;  %v480_v35 = vadd.f32 1.0, %v462_v16  ;;  %v481_v38 = vmax.f32 %v477_v23, 0.0  ;;  %p5616_p13 = pnand %p5615_p12, %p5739_p4  ;;  %p5621_p3 = por %p5620_p2, %p5619_p1 }
  0x22   : > { %11310 = vst [vmem:[#allocation6_spill] sm:$0xff] %v5766_v28  ;;  %v236_v37 = vld.sshfl [vmem:[#allocation1] sm:$0xff pattern:$0x75316420]  ;;  %v482_v39 = vmax.f32 %v478_v26, 0.0  ;;  %v483_v40 = vmax.f32 %v479_v31, 0.0  ;;  %v5817_v14 = vcvt.s32.f32 %v5762_v8 }
  0x23   : > { %11311 = vst [vmem:[#allocation7_spill] sm:$0xff] %v5768_v29  ;;  %5260 = vmatpush.msk.msra.mxu0 %vm268_vm0, %v236_v37  ;;  %v484_v42 = vmax.f32 %v480_v35, 0.0  ;;  %v489_v43 = vadd.f32 1.0, %v463_v17  ;;  %v490_v44 = vadd.f32 1.0, %v464_v18  ;;  %v497_v45 = vmax.f32 %v455_v7, 0.0  ;;  %p5617_p0 = pneg %p5616_p13 }
  0x24   : > { %11312 = vst [vmem:[#allocation8_spill] sm:$0xff] %v5770_v32  ;;  %v5782_v46 = vmin.f32 %v474_v30, 17.0  ;;  %v5784_v47 = vmin.f32 %v481_v38, 17.0  ;;  %v5786_v48 = vmin.f32 %v482_v39, 17.0  ;;  %v498_v49 = vmax.f32 %v456_v9, 0.0  ;;  %5261 = vmatmul.msk.f32.vlgmr.msra.gmra.mxu0 %vm240_vm1, %v220_v36 }
  0x25   : > { %11313 = vst [vmem:[#allocation9_spill] sm:$0xff] %v5772_v33  ;;  %v5789_v50 = vmin.f32 %v483_v40, 17.0  ;;  %v491_v51 = vmax.f32 %v489_v43, 0.0  ;;  %v492_v52 = vmax.f32 %v490_v44, 0.0  ;;  %v499_v53 = vmin.f32 %v495_v19, 17.0  ;;  %p5622_p5 = pnand %p5621_p3, %p5617_p0 }
  0x26   : > { %11315 = vst [vmem:[#allocation11_spill] sm:$0xff] %v5784_v47  ;;  %v500_v54 = vmin.f32 %v496_v27, 17.0  ;;  %v501_v55 = vmin.f32 %v497_v45, 17.0  ;;  %v502_v56 = vmin.f32 %v498_v49, 17.0  ;;  %v503_v57 = vmax.f32 %v457_v10, 0.0  ;;  %v221_v10 = vld [vmem:[%s11095_s2 + $0x8] sm:$0xff] }
  0x27   : > { %11316 = vst [vmem:[#allocation12_spill] sm:$0xff] %v5786_v48  ;;  %v5791_v58 = vmin.f32 %v484_v42, 17.0  ;;  %v5793_v59 = vmin.f32 %v491_v51, 17.0  ;;  %v504_v60 = vmax.f32 %v458_v11, 0.0  ;;  %v507_v61 = vsub.f32 %v5766_v28, %v499_v53 }
  0x28   : > { %11317 = vst [vmem:[#allocation13_spill] sm:$0xff] %v5789_v50  ;;  %v237_v62 = vld.sshfl [vmem:[#allocation1 + $0x8] sm:$0xff pattern:$0x75316420]  ;;  %v505_v63 = vmin.f32 %v503_v57, 17.0  ;;  %v508_v0 = vsub.f32 %v5768_v29, %v500_v54  ;;  %v509_v1 = vsub.f32 %v5770_v32, %v501_v55  ;;  %v510_v2 = vsub.f32 %v5772_v33, %v502_v56 }
  0x29   : > { %11318 = vst [vmem:[#allocation14_spill] sm:$0xff] %v5791_v58  ;;  %5270 = vmatpush.msk.msra.mxu1 %vm268_vm0, %v237_v62  ;;  %v238_v3 = vld.sshfl [vmem:[#allocation1 + $0x10] sm:$0xff pattern:$0x75316420]  ;;  %v5800_v4 = vmin.f32 %v492_v52, 17.0  ;;  %v5802_v5 = vmin.f32 %v504_v60, 17.0  ;;  %v515_v6 = vsub.f32 %v5784_v47, %v499_v53  ;;  %v516_v7 = vsub.f32 %v5786_v48, %v500_v54 }
  0x2a   : > { %5280 = vmatpush.msk.msra.mxu2 %vm268_vm0, %v238_v3  ;;  %5271 = vmatmul.msk.f32.vlgmr.msra.gmra.mxu1 %vm240_vm1, %v220_v36  ;;  %v239_v9 = vld.sshfl [vmem:[#allocation1 + $0x18] sm:$0xff pattern:$0x75316420]  ;;  %v5811_v11 = vadd.f32 1.0, %v507_v61  ;;  %v5813_v12 = vadd.f32 1.0, %v508_v0  ;;  %v517_v13 = vsub.f32 %v5789_v50, %v501_v55  ;;  %11321 = vst [vmem:[#allocation17_spill] sm:$0xff] %v5817_v14  ;;  %v518_v18 = vsub.f32 %v5791_v58, %v502_v56 }
  0x2b   : > { %5281 = vmatmul.msk.f32.vlgmr.msra.gmra.mxu2 %vm240_vm1, %v220_v36  ;;  %5290 = vmatpush.msk.msra.mxu3 %vm268_vm0, %v239_v9  ;;  %v5821_v16 = vadd.f32 1.0, %v509_v1  ;;  %v5823_v17 = vadd.f32 1.0, %v510_v2  ;;  %v523_v19 = vsub.f32 %v5774_v34, %v505_v63  ;;  %v5828_v20 = vsub.f32 1.0, %v515_v6 }
  0x2c   : > { %11319 = vst [vmem:[#allocation15_spill] sm:$0xff] %v5811_v11  ;;  %5291 = vmatmul.msk.f32.vlgmr.msra.gmra.mxu3 %vm240_vm1, %v220_v36  ;;  %v5830_v21 = vsub.f32 1.0, %v516_v7  ;;  %v524_v8 = vsub.f32 %v5782_v46, %v5802_v5  ;;  %v527_v22 = vsub.f32 %v5793_v59, %v505_v63  ;;  %5262 = vmatmul.msk.f32.gmra.mxu0 %vm240_vm1, %v221_v10  ;;  %v5836_v23 = vsub.f32 1.0, %v517_v13 }
  0x2d   : > { %11320 = vst [vmem:[#allocation16_spill] sm:$0xff] %v5813_v12  ;;  %v528_v24 = vsub.f32 %v5800_v4, %v5802_v5  ;;  %v600_v25 = vperm.slane %v5770_v32, 1  ;;  %v601_v26 = vperm.slane %v5772_v33, 1  ;;  %v5842_v27 = vsub.f32 1.0, %v518_v18 }
  0x2e   : > { %11322 = vst [vmem:[#allocation18_spill] sm:$0xff] %v5821_v16  ;;  %v5844_v30 = vadd.f32 1.0, %v523_v19  ;;  %v5846_v31 = vadd.f32 1.0, %v524_v8  ;;  %v620_v35 = vperm.slane %v5821_v16, 1  ;;  %v5853_v36 = vsub.f32 1.0, %v527_v22 }
  0x2f   : > { %11323 = vst [vmem:[#allocation19_spill] sm:$0xff] %v5823_v17  ;;  %vm602_vm2 = vcmp.eq.f32.partialorder %v5764_v15, %v600_v25  ;;  %vm603_vm3 = vcmp.eq.f32.partialorder %v5764_v15, %v601_v26  ;;  %vm604_vm4 = vcmp.eq.f32.partialorder %v5779_v41, %v600_v25  ;;  %vm605_vm5 = vcmp.eq.f32.partialorder %v5779_v41, %v601_v26 }
  0x30   : > { %11324 = vst [vmem:[#allocation20_spill] sm:$0xff] %v5828_v20  ;;  %vm606_vm6 = vcmp.eq.f32.partialorder %v5817_v14, %v600_v25  ;;  %vm607_vm7 = vcmp.eq.f32.partialorder %v5817_v14, %v601_v26  ;;  %v11102_v37 = vmov 0.0   ;;  %v621_v45 = vperm.slane %v5823_v17, 1 }
  0x31   : > { %11325 = vst [vmem:[#allocation21_spill] sm:$0xff] %v5830_v21  ;;  %v5312_v38 = vsel %vm602_vm2, 1.0, %v11102_v37  ;;  %v5313_v39 = vsel %vm603_vm3, 1.0, %v11102_v37  ;;  %v5314_v40 = vsel %vm604_vm4, 1.0, %v11102_v37  ;;  %v5315_v42 = vsel %vm605_vm5, 1.0, %v11102_v37 }
  0x32   : > { %11326 = vst [vmem:[#allocation22_spill] sm:$0xff] %v5836_v23  ;;  %v5316_v43 = vsel %vm606_vm6, 1.0, %v11102_v37  ;;  %5272 = vmatmul.msk.f32.gmra.mxu1 %vm240_vm1, %v221_v10  ;;  %v5317_v44 = vsel %vm607_vm7, 1.0, %v11102_v37  ;;  %v622_v49 = vmul.f32 %v5312_v38, %v620_v35  ;;  %v624_v51 = vmul.f32 %v5314_v40, %v620_v35 }
  0x33   : > { %11327 = vst [vmem:[#allocation23_spill] sm:$0xff] %v5842_v27  ;;  %5282 = vmatmul.msk.f32.gmra.mxu2 %vm240_vm1, %v221_v10  ;;  %v626_v52 = vmul.f32 %v5316_v43, %v620_v35  ;;  %v628_v53 = vperm.slane %v5789_v50, 1  ;;  %v629_v54 = vperm.slane %v5791_v58, 1  ;;  %v648_v55 = vperm.slane %v5836_v23, 1 }
  0x34   : > { %5292 = vmatmul.msk.f32.gmra.mxu3 %vm240_vm1, %v221_v10  ;;  %v623_v56 = vmul.f32 %v5313_v39, %v621_v45  ;;  %v625_v57 = vmul.f32 %v5315_v42, %v621_v45  ;;  %v649_v60 = vperm.slane %v5842_v27, 1  ;;  %v954_v61 = vperm.slane %v5770_v32, 2 }
  0x35   : > { %vm630_vm8 = vcmp.eq.f32.partialorder %v5764_v15, %v628_v53  ;;  %vm631_vm9 = vcmp.eq.f32.partialorder %v5764_v15, %v629_v54  ;;  %vm632_vm10 = vcmp.eq.f32.partialorder %v5779_v41, %v628_v53  ;;  %vm633_vm11 = vcmp.eq.f32.partialorder %v5779_v41, %v629_v54 }
  0x36   : > { %vm634_vm12 = vcmp.eq.f32.partialorder %v5817_v14, %v628_v53  ;;  %vm635_vm13 = vcmp.eq.f32.partialorder %v5817_v14, %v629_v54  ;;  %v5318_v62 = vsel %vm630_vm8, 1.0, %v11102_v37  ;;  %v5319_v63 = vsel %vm631_vm9, 1.0, %v11102_v37 }
  0x37   : > { %v5320_v0 = vsel %vm632_vm10, 1.0, %v11102_v37  ;;  %v5321_v1 = vsel %vm633_vm11, 1.0, %v11102_v37  ;;  %v5322_v2 = vsel %vm634_vm12, 1.0, %v11102_v37  ;;  %v5323_v3 = vsel %vm635_vm13, 1.0, %v11102_v37 }
  0x38   : > { %v650_v5 = vmul.f32 %v5318_v62, %v648_v55  ;;  %v651_v6 = vmul.f32 %v5319_v63, %v649_v60  ;;  %v652_v7 = vmul.f32 %v5320_v0, %v648_v55  ;;  %v653_v9 = vmul.f32 %v5321_v1, %v649_v60 }
  0x39   : > { %v627_v10 = vmul.f32 %v5317_v44, %v621_v45  ;;  %v654_v13 = vmul.f32 %v5322_v2, %v648_v55  ;;  %v655_v18 = vmul.f32 %v5323_v3, %v649_v60  ;;  %v955_v19 = vperm.slane %v5772_v33, 2 }
  0x3a   : > { %v5885_v8 = vsub.f32 1.0, %v528_v24  ;;  %v5887_v22 = vadd.f32 %v650_v5, %v622_v49  ;;  %v5889_v25 = vadd.f32 %v651_v6, %v623_v56  ;;  %vm956_vm14 = vcmp.eq.f32.partialorder %v5764_v15, %v954_v61 }
  0x3b   : > { %v5892_v26 = vadd.f32 %v652_v7, %v624_v51  ;;  %v5894_v35 = vadd.f32 %v653_v9, %v625_v57  ;;  %vm957_vm15 = vcmp.eq.f32.partialorder %v5764_v15, %v955_v19  ;;  %vm958_vm0 = vcmp.eq.f32.partialorder %v5779_v41, %v954_v61 }
  0x3c   : > { %11328 = vst [vmem:[#allocation24_spill] sm:$0xff] %v5887_v22  ;;  %v5898_v38 = vadd.f32 %v654_v13, %v626_v52  ;;  %vm959_vm2 = vcmp.eq.f32.partialorder %v5779_v41, %v955_v19  ;;  %vm960_vm3 = vcmp.eq.f32.partialorder %v5817_v14, %v954_v61  ;;  %vm961_vm4 = vcmp.eq.f32.partialorder %v5817_v14, %v955_v19 }
  0x3d   : > { %11329 = vst [vmem:[#allocation25_spill] sm:$0xff] %v5889_v25  ;;  %v5903_v24 = vadd.f32 %v655_v18, %v627_v10  ;;  %v5336_v39 = vsel %vm956_vm14, 1.0, %v11102_v37  ;;  %v5337_v40 = vsel %vm957_vm15, 1.0, %v11102_v37  ;;  %v5338_v42 = vsel %vm958_vm0, 1.0, %v11102_v37 }
  0x3e   : > { %11330 = vst [vmem:[#allocation26_spill] sm:$0xff] %v5892_v26  ;;  %v5339_v43 = vsel %vm959_vm2, 1.0, %v11102_v37  ;;  %v974_v44 = vperm.slane %v5821_v16, 2  ;;  %v975_v45 = vperm.slane %v5823_v17, 2  ;;  %v982_v49 = vperm.slane %v5789_v50, 2 }
  0x3f   : > { %11331 = vst [vmem:[#allocation27_spill] sm:$0xff] %v5894_v35  ;;  %v5340_v51 = vsel %vm960_vm3, 1.0, %v11102_v37  ;;  %v5341_v52 = vsel %vm961_vm4, 1.0, %v11102_v37  ;;  %v983_v53 = vperm.slane %v5791_v58, 2  ;;  %v1002_v54 = vperm.slane %v5836_v23, 2 }
  0x40   : > { %11332 = vst [vmem:[#allocation28_spill] sm:$0xff] %v5898_v38  ;;  %v976_v55 = vmul.f32 %v5336_v39, %v974_v44  ;;  %v977_v56 = vmul.f32 %v5337_v40, %v975_v45  ;;  %v1003_v57 = vperm.slane %v5842_v27, 2  ;;  %v1627_v60 = vperm.slane %v5770_v32, 3 }
  0x41   : > { %11333 = vst [vmem:[#allocation29_spill] sm:$0xff] %v5903_v24  ;;  %v978_v61 = vmul.f32 %v5338_v42, %v974_v44  ;;  %v979_v62 = vmul.f32 %v5339_v43, %v975_v45  ;;  %vm984_vm5 = vcmp.eq.f32.partialorder %v5764_v15, %v982_v49  ;;  %vm985_vm6 = vcmp.eq.f32.partialorder %v5764_v15, %v983_v53 }
  0x42   : > { %vm986_vm7 = vcmp.eq.f32.partialorder %v5779_v41, %v982_v49  ;;  %vm987_vm8 = vcmp.eq.f32.partialorder %v5779_v41, %v983_v53  ;;  %vm988_vm9 = vcmp.eq.f32.partialorder %v5817_v14, %v982_v49  ;;  %vm989_vm10 = vcmp.eq.f32.partialorder %v5817_v14, %v983_v53 }
  0x43   : > { %v5342_v63 = vsel %vm984_vm5, 1.0, %v11102_v37  ;;  %v5343_v0 = vsel %vm985_vm6, 1.0, %v11102_v37  ;;  %v5344_v1 = vsel %vm986_vm7, 1.0, %v11102_v37  ;;  %v5345_v2 = vsel %vm987_vm8, 1.0, %v11102_v37 }
  0x44   : > { %v5346_v3 = vsel %vm988_vm9, 1.0, %v11102_v37  ;;  %v5347_v5 = vsel %vm989_vm10, 1.0, %v11102_v37  ;;  %v1004_v6 = vmul.f32 %v5342_v63, %v1002_v54  ;;  %v1005_v7 = vmul.f32 %v5343_v0, %v1003_v57 }
  0x45   : > { %v980_v9 = vmul.f32 %v5340_v51, %v974_v44  ;;  %v1006_v10 = vmul.f32 %v5344_v1, %v1002_v54  ;;  %v1007_v13 = vmul.f32 %v5345_v2, %v1003_v57  ;;  %v1008_v18 = vmul.f32 %v5346_v3, %v1002_v54 }
  0x46   : > { %v981_v19 = vmul.f32 %v5341_v52, %v975_v45  ;;  %v1009_v39 = vmul.f32 %v5347_v5, %v1003_v57  ;;  %v1628_v40 = vperm.slane %v5772_v33, 3  ;;  %vm1629_vm11 = vcmp.eq.f32.partialorder %v5764_v15, %v1627_v60 }
  0x47   : > { %v5932_v42 = vadd.f32 %v1004_v6, %v976_v55  ;;  %v5934_v43 = vadd.f32 %v1005_v7, %v977_v56  ;;  %v5936_v49 = vadd.f32 %v1006_v10, %v978_v61  ;;  %v5938_v53 = vadd.f32 %v1007_v13, %v979_v62 }
  0x48   : > { %vm1630_vm12 = vcmp.eq.f32.partialorder %v5764_v15, %v1628_v40  ;;  %vm1631_vm13 = vcmp.eq.f32.partialorder %v5779_v41, %v1627_v60  ;;  %vm1632_vm14 = vcmp.eq.f32.partialorder %v5779_v41, %v1628_v40  ;;  %vm1633_vm15 = vcmp.eq.f32.partialorder %v5817_v14, %v1627_v60 }
  0x49   : > { %11334 = vst [vmem:[#allocation30_spill] sm:$0xff] %v5938_v53  ;;  %v5944_v44 = vadd.f32 %v1008_v18, %v980_v9  ;;  %vm1634_vm0 = vcmp.eq.f32.partialorder %v5817_v14, %v1628_v40  ;;  %v5364_v45 = vsel %vm1629_vm11, 1.0, %v11102_v37  ;;  %v5366_v51 = vsel %vm1631_vm13, 1.0, %v11102_v37 }
  0x4a   : > { %v5365_v52 = vsel %vm1630_vm12, 1.0, %v11102_v37  ;;  %v5367_v54 = vsel %vm1632_vm14, 1.0, %v11102_v37  ;;  %v5368_v55 = vsel %vm1633_vm15, 1.0, %v11102_v37  ;;  %v1647_v56 = vperm.slane %v5821_v16, 3 }
  0x4b   : > { %v5369_v57 = vsel %vm1634_vm0, 1.0, %v11102_v37  ;;  %v1648_v60 = vperm.slane %v5823_v17, 3  ;;  %v1655_v61 = vperm.slane %v5789_v50, 3  ;;  %v1656_v62 = vperm.slane %v5791_v58, 3 }
  0x4c   : > { %v1649_v63 = vmul.f32 %v5364_v45, %v1647_v56  ;;  %v1651_v0 = vmul.f32 %v5366_v51, %v1647_v56  ;;  %v1653_v1 = vmul.f32 %v5368_v55, %v1647_v56  ;;  %v1675_v2 = vperm.slane %v5836_v23, 3 }
  0x4d   : > { %v1650_v3 = vmul.f32 %v5365_v52, %v1648_v60  ;;  %v1652_v5 = vmul.f32 %v5367_v54, %v1648_v60  ;;  %vm1657_vm2 = vcmp.eq.f32.partialorder %v5764_v15, %v1655_v61  ;;  %v1676_v6 = vperm.slane %v5842_v27, 3 }
  0x4e   : > { %vm1658_vm3 = vcmp.eq.f32.partialorder %v5764_v15, %v1656_v62  ;;  %vm1659_vm4 = vcmp.eq.f32.partialorder %v5779_v41, %v1655_v61  ;;  %vm1660_vm5 = vcmp.eq.f32.partialorder %v5779_v41, %v1656_v62  ;;  %vm1661_vm6 = vcmp.eq.f32.partialorder %v5817_v14, %v1655_v61 }
  0x4f   : > { %vm1662_vm7 = vcmp.eq.f32.partialorder %v5817_v14, %v1656_v62  ;;  %v5370_v7 = vsel %vm1657_vm2, 1.0, %v11102_v37  ;;  %v5371_v9 = vsel %vm1658_vm3, 1.0, %v11102_v37  ;;  %v5372_v10 = vsel %vm1659_vm4, 1.0, %v11102_v37 }
  0x50   : > { %v5373_v13 = vsel %vm1660_vm5, 1.0, %v11102_v37  ;;  %v5374_v18 = vsel %vm1661_vm6, 1.0, %v11102_v37  ;;  %v5375_v40 = vsel %vm1662_vm7, 1.0, %v11102_v37  ;;  %v1677_v45 = vmul.f32 %v5370_v7, %v1675_v2 }
  0x51   : > { %v1678_v51 = vmul.f32 %v5371_v9, %v1676_v6  ;;  %v1679_v52 = vmul.f32 %v5372_v10, %v1675_v2  ;;  %v1680_v54 = vmul.f32 %v5373_v13, %v1676_v6  ;;  %v1681_v55 = vmul.f32 %v5374_v18, %v1675_v2 }
  0x52   : > { %v1654_v56 = vmul.f32 %v5369_v57, %v1648_v60  ;;  %v1682_v61 = vmul.f32 %v5375_v40, %v1676_v6  ;;  %v2138_v62 = vperm.slane %v5770_v32, 4  ;;  %v2139_v35 = vperm.slane %v5772_v33, 4 }
  0x53   : > { %v5973_v24 = vadd.f32 %v1009_v39, %v981_v19  ;;  %v5975_v25 = vadd.f32 %v1677_v45, %v1649_v63  ;;  %v5977_v22 = vadd.f32 %v1678_v51, %v1650_v3  ;;  %v5979_v26 = vadd.f32 %v1679_v52, %v1651_v0 }
  0x54   : > { %v5981_v37 = vadd.f32 %v1680_v54, %v1652_v5  ;;  %vm2140_vm8 = vcmp.eq.f32.partialorder %v5764_v15, %v2138_v62  ;;  %vm2141_vm9 = vcmp.eq.f32.partialorder %v5764_v15, %v2139_v35  ;;  %vm2142_vm10 = vcmp.eq.f32.partialorder %v5779_v41, %v2138_v62 }
  0x55   : > { %11335 = vst [vmem:[#allocation31_spill] sm:$0xff] %v5975_v25  ;;  %v5986_v57 = vadd.f32 %v1681_v55, %v1653_v1  ;;  %vm2143_vm11 = vcmp.eq.f32.partialorder %v5779_v41, %v2139_v35  ;;  %vm2144_vm12 = vcmp.eq.f32.partialorder %v5817_v14, %v2138_v62  ;;  %vm2145_vm13 = vcmp.eq.f32.partialorder %v5817_v14, %v2139_v35 }
  0x56   : > { %11336 = vst [vmem:[#allocation32_spill] sm:$0xff] %v5977_v22  ;;  %v5991_v19 = vadd.f32 %v1682_v61, %v1654_v56  ;;  %v11341_v39 = vmov 0.0   ;;  %v2158_v3 = vperm.slane %v5821_v16, 4  ;;  %v2159_v1 = vperm.slane %v5823_v17, 4 }
  0x57   : > { %11337 = vst [vmem:[#allocation33_spill] sm:$0xff] %v5979_v26  ;;  %v5390_v60 = vsel %vm2140_vm8, 1.0, %v11341_v39  ;;  %v5391_v63 = vsel %vm2141_vm9, 1.0, %v11341_v39  ;;  %v5392_v0 = vsel %vm2142_vm10, 1.0, %v11341_v39  ;;  %v5393_v2 = vsel %vm2143_vm11, 1.0, %v11341_v39 }
  0x58   : > { %11338 = vst [vmem:[#allocation34_spill] sm:$0xff] %v5981_v37  ;;  %v2166_v5 = vperm.slane %v5789_v50, 4  ;;  %v5394_v6 = vsel %vm2144_vm12, 1.0, %v11341_v39  ;;  %v5395_v35 = vsel %vm2145_vm13, 1.0, %v11341_v39  ;;  %v2167_v7 = vperm.slane %v5791_v58, 4 }
  0x59   : > { %11339 = vst [vmem:[#allocation35_spill] sm:$0xff] %v5986_v57  ;;  %v2186_v9 = vperm.slane %v5836_v23, 4  ;;  %v2160_v10 = vmul.f32 %v5390_v60, %v2158_v3  ;;  %v2161_v13 = vmul.f32 %v5391_v63, %v2159_v1  ;;  %v2187_v18 = vperm.slane %v5842_v27, 4 }
  0x5a   : > { %11340 = vst [vmem:[#allocation36_spill] sm:$0xff] %v5991_v19  ;;  %v2649_v40 = vperm.slane %v5770_v32, 5  ;;  %v2162_v45 = vmul.f32 %v5392_v0, %v2158_v3  ;;  %v2163_v51 = vmul.f32 %v5393_v2, %v2159_v1  ;;  %vm2168_vm14 = vcmp.eq.f32.partialorder %v5764_v15, %v2166_v5 }
  0x5b   : > { %vm2169_vm15 = vcmp.eq.f32.partialorder %v5764_v15, %v2167_v7  ;;  %vm2170_vm0 = vcmp.eq.f32.partialorder %v5779_v41, %v2166_v5  ;;  %vm2171_vm2 = vcmp.eq.f32.partialorder %v5779_v41, %v2167_v7  ;;  %vm2172_vm3 = vcmp.eq.f32.partialorder %v5817_v14, %v2166_v5 }
  0x5c   : > { %vm2173_vm4 = vcmp.eq.f32.partialorder %v5817_v14, %v2167_v7  ;;  %v5396_v52 = vsel %vm2168_vm14, 1.0, %v11341_v39  ;;  %v5397_v54 = vsel %vm2169_vm15, 1.0, %v11341_v39  ;;  %v5398_v55 = vsel %vm2170_vm0, 1.0, %v11341_v39 }
  0x5d   : > { %v5399_v56 = vsel %vm2171_vm2, 1.0, %v11341_v39  ;;  %v5400_v61 = vsel %vm2172_vm3, 1.0, %v11341_v39  ;;  %v5401_v62 = vsel %vm2173_vm4, 1.0, %v11341_v39  ;;  %v2188_v60 = vmul.f32 %v5396_v52, %v2186_v9 }
  0x5e   : > { %v2189_v63 = vmul.f32 %v5397_v54, %v2187_v18  ;;  %v2164_v0 = vmul.f32 %v5394_v6, %v2158_v3  ;;  %v2190_v2 = vmul.f32 %v5398_v55, %v2186_v9  ;;  %v2191_v19 = vmul.f32 %v5399_v56, %v2187_v18 }
  0x5f   : > { %v2192_v5 = vmul.f32 %v5400_v61, %v2186_v9  ;;  %v2165_v22 = vmul.f32 %v5395_v35, %v2159_v1  ;;  %v2193_v7 = vmul.f32 %v5401_v62, %v2187_v18  ;;  %v2650_v37 = vperm.slane %v5772_v33, 5 }
  0x60   : > { %vm2651_vm5 = vcmp.eq.f32.partialorder %v5764_v15, %v2649_v40  ;;  %v6020_v26 = vadd.f32 %v2188_v60, %v2160_v10  ;;  %v6022_v57 = vadd.f32 %v2189_v63, %v2161_v13  ;;  %v6024_v25 = vadd.f32 %v2190_v2, %v2162_v45 }
  0x61   : > { %v6026_v38 = vadd.f32 %v2191_v19, %v2163_v51  ;;  %vm2652_vm6 = vcmp.eq.f32.partialorder %v5764_v15, %v2650_v37  ;;  %vm2653_vm7 = vcmp.eq.f32.partialorder %v5779_v41, %v2649_v40  ;;  %vm2654_vm8 = vcmp.eq.f32.partialorder %v5779_v41, %v2650_v37 }
  0x62   : > { %11342 = vst [vmem:[#allocation37_spill] sm:$0xff] %v6020_v26  ;;  %vm2655_vm9 = vcmp.eq.f32.partialorder %v5817_v14, %v2649_v40  ;;  %v6032_v3 = vadd.f32 %v2192_v5, %v2164_v0  ;;  %vm2656_vm10 = vcmp.eq.f32.partialorder %v5817_v14, %v2650_v37  ;;  %v5416_v1 = vsel %vm2651_vm5, 1.0, %v11341_v39 }
  0x63   : > { %11343 = vst [vmem:[#allocation38_spill] sm:$0xff] %v6022_v57  ;;  %v5418_v6 = vsel %vm2653_vm7, 1.0, %v11341_v39  ;;  %v5417_v35 = vsel %vm2652_vm6, 1.0, %v11341_v39  ;;  %v5419_v19 = vsel %vm2654_vm8, 1.0, %v11341_v39  ;;  %v5420_v9 = vsel %vm2655_vm9, 1.0, %v11341_v39 }
  0x64   : > { %11344 = vst [vmem:[#allocation39_spill] sm:$0xff] %v6024_v25  ;;  %v2669_v10 = vperm.slane %v5821_v16, 5  ;;  %v5421_v13 = vsel %vm2656_vm10, 1.0, %v11341_v39  ;;  %v2670_v18 = vperm.slane %v5823_v17, 5  ;;  %v2677_v40 = vperm.slane %v5789_v50, 5 }
  0x65   : > { %11345 = vst [vmem:[#allocation40_spill] sm:$0xff] %v6026_v38  ;;  %v2678_v37 = vperm.slane %v5791_v58, 5  ;;  %v2697_v54 = vperm.slane %v5836_v23, 5  ;;  %v2698_v61 = vperm.slane %v5842_v27, 5  ;;  %v3161_v57 = vperm.slane %v5772_v33, 6 }
  0x66   : > { %11346 = vst [vmem:[#allocation41_spill] sm:$0xff] %v6032_v3  ;;  %v2671_v45 = vmul.f32 %v5416_v1, %v2669_v10  ;;  %v2673_v51 = vmul.f32 %v5418_v6, %v2669_v10  ;;  %v2675_v52 = vmul.f32 %v5420_v9, %v2669_v10  ;;  %v2672_v55 = vmul.f32 %v5417_v35, %v2670_v18 }
  0x67   : > { %v2674_v56 = vmul.f32 %v5419_v19, %v2670_v18  ;;  %vm2679_vm11 = vcmp.eq.f32.partialorder %v5764_v15, %v2677_v40  ;;  %vm2680_vm12 = vcmp.eq.f32.partialorder %v5764_v15, %v2678_v37  ;;  %vm2681_vm13 = vcmp.eq.f32.partialorder %v5779_v41, %v2677_v40 }
  0x68   : > { %vm2682_vm14 = vcmp.eq.f32.partialorder %v5779_v41, %v2678_v37  ;;  %vm2683_vm15 = vcmp.eq.f32.partialorder %v5817_v14, %v2677_v40  ;;  %vm2684_vm0 = vcmp.eq.f32.partialorder %v5817_v14, %v2678_v37  ;;  %v5422_v62 = vsel %vm2679_vm11, 1.0, %v11341_v39 }
  0x69   : > { %v5423_v60 = vsel %vm2680_vm12, 1.0, %v11341_v39  ;;  %v5424_v63 = vsel %vm2681_vm13, 1.0, %v11341_v39  ;;  %v5425_v0 = vsel %vm2682_vm14, 1.0, %v11341_v39  ;;  %v5426_v2 = vsel %vm2683_vm15, 1.0, %v11341_v39 }
  0x6a   : > { %v5427_v5 = vsel %vm2684_vm0, 1.0, %v11341_v39  ;;  %v2699_v1 = vmul.f32 %v5422_v62, %v2697_v54  ;;  %v2700_v6 = vmul.f32 %v5423_v60, %v2698_v61  ;;  %v2701_v35 = vmul.f32 %v5424_v63, %v2697_v54 }
  0x6b   : > { %v2702_v19 = vmul.f32 %v5425_v0, %v2698_v61  ;;  %v2703_v9 = vmul.f32 %v5426_v2, %v2697_v54  ;;  %v2676_v10 = vmul.f32 %v5421_v13, %v2670_v18  ;;  %v2704_v40 = vmul.f32 %v5427_v5, %v2698_v61 }
  0x6c   : > { %v3160_v37 = vperm.slane %v5770_v32, 6  ;;  %v6061_v38 = vadd.f32 %v2193_v7, %v2165_v22  ;;  %v6063_v26 = vadd.f32 %v2699_v1, %v2671_v45  ;;  %v6065_v25 = vadd.f32 %v2700_v6, %v2672_v55 }
  0x6d   : > { %v6067_v3 = vadd.f32 %v2701_v35, %v2673_v51  ;;  %v6069_v53 = vadd.f32 %v2702_v19, %v2674_v56  ;;  %vm3163_vm3 = vcmp.eq.f32.partialorder %v5764_v15, %v3161_v57  ;;  %v6074_v13 = vadd.f32 %v2703_v9, %v2675_v52 }
  0x6e   : > { %11347 = vst [vmem:[#allocation42_spill] sm:$0xff] %v6061_v38  ;;  %vm3162_vm2 = vcmp.eq.f32.partialorder %v5764_v15, %v3160_v37  ;;  %vm3164_vm4 = vcmp.eq.f32.partialorder %v5779_v41, %v3160_v37  ;;  %vm3165_vm5 = vcmp.eq.f32.partialorder %v5779_v41, %v3161_v57  ;;  %vm3166_vm6 = vcmp.eq.f32.partialorder %v5817_v14, %v3160_v37 }
  0x6f   : > { %11348 = vst [vmem:[#allocation43_spill] sm:$0xff] %v6063_v26  ;;  %vm3167_vm7 = vcmp.eq.f32.partialorder %v5817_v14, %v3161_v57  ;;  %v6079_v22 = vadd.f32 %v2704_v40, %v2676_v10  ;;  %v5442_v7 = vsel %vm3162_vm2, 1.0, %v11341_v39  ;;  %v5443_v18 = vsel %vm3163_vm3, 1.0, %v11341_v39 }
  0x70   : > { %11349 = vst [vmem:[#allocation44_spill] sm:$0xff] %v6065_v25  ;;  %v5444_v45 = vsel %vm3164_vm4, 1.0, %v11341_v39  ;;  %v5445_v51 = vsel %vm3165_vm5, 1.0, %v11341_v39  ;;  %v3180_v54 = vperm.slane %v5821_v16, 6  ;;  %v3181_v52 = vperm.slane %v5823_v17, 6 }
  0x71   : > { %11350 = vst [vmem:[#allocation45_spill] sm:$0xff] %v6067_v3  ;;  %v3188_v55 = vperm.slane %v5789_v50, 6  ;;  %v5446_v56 = vsel %vm3166_vm6, 1.0, %v11341_v39  ;;  %v5447_v57 = vsel %vm3167_vm7, 1.0, %v11341_v39  ;;  %v3189_v61 = vperm.slane %v5791_v58, 6 }
  0x72   : > { %11351 = vst [vmem:[#allocation46_spill] sm:$0xff] %v6069_v53  ;;  %v3208_v62 = vperm.slane %v5836_v23, 6  ;;  %v3182_v60 = vmul.f32 %v5442_v7, %v3180_v54  ;;  %v3183_v63 = vmul.f32 %v5443_v18, %v3181_v52  ;;  %v3209_v0 = vperm.slane %v5842_v27, 6 }
  0x73   : > { %11352 = vst [vmem:[#allocation47_spill] sm:$0xff] %v6074_v13  ;;  %v3671_v2 = vperm.slane %v5770_v32, 7  ;;  %v3184_v5 = vmul.f32 %v5444_v45, %v3180_v54  ;;  %v3185_v1 = vmul.f32 %v5445_v51, %v3181_v52  ;;  %vm3190_vm8 = vcmp.eq.f32.partialorder %v5764_v15, %v3188_v55 }
  0x74   : > { %11353 = vst [vmem:[#allocation48_spill] sm:$0xff] %v6079_v22  ;;  %vm3191_vm9 = vcmp.eq.f32.partialorder %v5764_v15, %v3189_v61  ;;  %vm3192_vm10 = vcmp.eq.f32.partialorder %v5779_v41, %v3188_v55  ;;  %vm3193_vm11 = vcmp.eq.f32.partialorder %v5779_v41, %v3189_v61  ;;  %vm3194_vm12 = vcmp.eq.f32.partialorder %v5817_v14, %v3188_v55 }
  0x75   : > { %vm3195_vm13 = vcmp.eq.f32.partialorder %v5817_v14, %v3189_v61  ;;  %v5448_v6 = vsel %vm3190_vm8, 1.0, %v11341_v39  ;;  %v5449_v35 = vsel %vm3191_vm9, 1.0, %v11341_v39  ;;  %v5450_v19 = vsel %vm3192_vm10, 1.0, %v11341_v39 }
  0x76   : > { %v5451_v9 = vsel %vm3193_vm11, 1.0, %v11341_v39  ;;  %v5452_v10 = vsel %vm3194_vm12, 1.0, %v11341_v39  ;;  %v5453_v40 = vsel %vm3195_vm13, 1.0, %v11341_v39  ;;  %v3210_v37 = vmul.f32 %v5448_v6, %v3208_v62 }
  0x77   : > { %v3211_v7 = vmul.f32 %v5449_v35, %v3209_v0  ;;  %v3186_v18 = vmul.f32 %v5446_v56, %v3180_v54  ;;  %v3212_v45 = vmul.f32 %v5450_v19, %v3208_v62  ;;  %v3213_v51 = vmul.f32 %v5451_v9, %v3209_v0 }
  0x78   : > { %v3214_v55 = vmul.f32 %v5452_v10, %v3208_v62  ;;  %v3187_v32 = vmul.f32 %v5447_v57, %v3181_v52  ;;  %v3215_v61 = vmul.f32 %v5453_v40, %v3209_v0  ;;  %v3672_v22 = vperm.slane %v5772_v33, 7 }
  0x79   : > { %vm3673_vm14 = vcmp.eq.f32.partialorder %v5764_v15, %v3671_v2  ;;  %v6108_v25 = vadd.f32 %v3210_v37, %v3182_v60  ;;  %v6110_v53 = vadd.f32 %v3211_v7, %v3183_v63  ;;  %v6112_v3 = vadd.f32 %v3212_v45, %v3184_v5 }
  0x7a   : > { %v6114_v13 = vadd.f32 %v3213_v51, %v3185_v1  ;;  %vm3674_vm15 = vcmp.eq.f32.partialorder %v5764_v15, %v3672_v22  ;;  %vm3675_vm0 = vcmp.eq.f32.partialorder %v5779_v41, %v3671_v2  ;;  %vm3676_vm2 = vcmp.eq.f32.partialorder %v5779_v41, %v3672_v22 }
  0x7b   : > { %11354 = vst [vmem:[#allocation49_spill] sm:$0xff] %v6108_v25  ;;  %vm3677_vm3 = vcmp.eq.f32.partialorder %v5817_v14, %v3671_v2  ;;  %v6120_v54 = vadd.f32 %v3214_v55, %v3186_v18  ;;  %vm3678_vm4 = vcmp.eq.f32.partialorder %v5817_v14, %v3672_v22  ;;  %v5468_v52 = vsel %vm3673_vm14, 1.0, %v11341_v39 }
  0x7c   : > { %11355 = vst [vmem:[#allocation50_spill] sm:$0xff] %v6110_v53  ;;  %v5470_v56 = vsel %vm3675_vm0, 1.0, %v11341_v39  ;;  %v5469_v57 = vsel %vm3674_vm15, 1.0, %v11341_v39  ;;  %v5471_v62 = vsel %vm3676_vm2, 1.0, %v11341_v39  ;;  %v5472_v60 = vsel %vm3677_vm3, 1.0, %v11341_v39  ;;  %v11385_v53 = vld [vmem:[#allocation30_spill] sm:$0xff] }
  0x7d   : > { %11356 = vst [vmem:[#allocation51_spill] sm:$0xff] %v6112_v3  ;;  %v3691_v63 = vperm.slane %v5821_v16, 7  ;;  %v5473_v0 = vsel %vm3678_vm4, 1.0, %v11341_v39  ;;  %v3692_v2 = vperm.slane %v5823_v17, 7  ;;  %v3699_v5 = vperm.slane %v5789_v50, 7 }
  0x7e   : > { %11357 = vst [vmem:[#allocation52_spill] sm:$0xff] %v6114_v13  ;;  %v3700_v22 = vperm.slane %v5791_v58, 7  ;;  %v3719_v19 = vperm.slane %v5836_v23, 7  ;;  %v3720_v40 = vperm.slane %v5842_v27, 7  ;;  %v4183_v27 = vperm.slane %v5782_v46, 0 }
  0x7f   : > { %11358 = vst [vmem:[#allocation53_spill] sm:$0xff] %v6120_v54  ;;  %v3693_v1 = vmul.f32 %v5468_v52, %v3691_v63  ;;  %v3695_v6 = vmul.f32 %v5470_v56, %v3691_v63  ;;  %v3697_v35 = vmul.f32 %v5472_v60, %v3691_v63  ;;  %v3694_v9 = vmul.f32 %v5469_v57, %v3692_v2 }
  0x80   : > { %v3696_v10 = vmul.f32 %v5471_v62, %v3692_v2  ;;  %vm3701_vm5 = vcmp.eq.f32.partialorder %v5764_v15, %v3699_v5  ;;  %vm3702_vm6 = vcmp.eq.f32.partialorder %v5764_v15, %v3700_v22  ;;  %vm3703_vm7 = vcmp.eq.f32.partialorder %v5779_v41, %v3699_v5 }
  0x81   : > { %vm3704_vm8 = vcmp.eq.f32.partialorder %v5779_v41, %v3700_v22  ;;  %vm3705_vm9 = vcmp.eq.f32.partialorder %v5817_v14, %v3699_v5  ;;  %vm3706_vm10 = vcmp.eq.f32.partialorder %v5817_v14, %v3700_v22  ;;  %v5474_v37 = vsel %vm3701_vm5, 1.0, %v11341_v39 }
  0x82   : > { %v5475_v7 = vsel %vm3702_vm6, 1.0, %v11341_v39  ;;  %v5476_v18 = vsel %vm3703_vm7, 1.0, %v11341_v39  ;;  %v5477_v45 = vsel %vm3704_vm8, 1.0, %v11341_v39  ;;  %v5478_v51 = vsel %vm3705_vm9, 1.0, %v11341_v39 }
  0x83   : > { %v5479_v55 = vsel %vm3706_vm10, 1.0, %v11341_v39  ;;  %v3721_v52 = vmul.f32 %v5474_v37, %v3719_v19  ;;  %v3722_v56 = vmul.f32 %v5475_v7, %v3720_v40  ;;  %v3723_v57 = vmul.f32 %v5476_v18, %v3719_v19 }
  0x84   : > { %v3724_v62 = vmul.f32 %v5477_v45, %v3720_v40  ;;  %v3725_v60 = vmul.f32 %v5478_v51, %v3719_v19  ;;  %v3698_v63 = vmul.f32 %v5473_v0, %v3692_v2  ;;  %v3726_v5 = vmul.f32 %v5479_v55, %v3720_v40 }
  0x85   : > { %v4182_v22 = vperm.slane %v5774_v34, 0  ;;  %v6149_v23 = vadd.f32 %v3215_v61, %v3187_v32  ;;  %v6151_v58 = vadd.f32 %v3721_v52, %v3693_v1  ;;  %v6153_v50 = vadd.f32 %v3722_v56, %v3694_v9 }
  0x86   : > { %v6155_v17 = vadd.f32 %v3723_v57, %v3695_v6  ;;  %v6157_v16 = vadd.f32 %v3724_v62, %v3696_v10  ;;  %vm4185_vm12 = vcmp.eq.f32.partialorder %v5764_v15, %v4183_v27  ;;  %v6162_v0 = vadd.f32 %v3725_v60, %v3697_v35 }
  0x87   : > { %11359 = vst [vmem:[#allocation54_spill] sm:$0xff] %v6149_v23  ;;  %vm4184_vm11 = vcmp.eq.f32.partialorder %v5764_v15, %v4182_v22  ;;  %vm4186_vm13 = vcmp.eq.f32.partialorder %v5779_v41, %v4182_v22  ;;  %vm4187_vm14 = vcmp.eq.f32.partialorder %v5779_v41, %v4183_v27  ;;  %vm4188_vm15 = vcmp.eq.f32.partialorder %v5817_v14, %v4182_v22 }
  0x88   : > { %11360 = vst [vmem:[#allocation55_spill] sm:$0xff] %v6151_v58  ;;  %vm4189_vm0 = vcmp.eq.f32.partialorder %v5817_v14, %v4183_v27  ;;  %v6167_v32 = vadd.f32 %v3726_v5, %v3698_v63  ;;  %v5494_v61 = vsel %vm4184_vm11, 1.0, %v11341_v39  ;;  %v5495_v2 = vsel %vm4185_vm12, 1.0, %v11341_v39 }
  0x89   : > { %11361 = vst [vmem:[#allocation56_spill] sm:$0xff] %v6153_v50  ;;  %v5496_v1 = vsel %vm4186_vm13, 1.0, %v11341_v39  ;;  %v5497_v6 = vsel %vm4187_vm14, 1.0, %v11341_v39  ;;  %v4202_v19 = vperm.slane %v5844_v30, 0  ;;  %v4203_v35 = vperm.slane %v5846_v31, 0 }
  0x8a   : > { %11362 = vst [vmem:[#allocation57_spill] sm:$0xff] %v6155_v17  ;;  %v4210_v9 = vperm.slane %v5793_v59, 0  ;;  %v5498_v10 = vsel %vm4188_vm15, 1.0, %v11341_v39  ;;  %v5499_v27 = vsel %vm4189_vm0, 1.0, %v11341_v39  ;;  %v4211_v40 = vperm.slane %v5800_v4, 0 }
  0x8b   : > { %11363 = vst [vmem:[#allocation58_spill] sm:$0xff] %v6157_v16  ;;  %v4230_v37 = vperm.slane %v5853_v36, 0  ;;  %v4204_v7 = vmul.f32 %v5494_v61, %v4202_v19  ;;  %v4205_v18 = vmul.f32 %v5495_v2, %v4203_v35  ;;  %v4231_v45 = vperm.slane %v5885_v8, 0 }
  0x8c   : > { %11364 = vst [vmem:[#allocation59_spill] sm:$0xff] %v6162_v0  ;;  %v4693_v51 = vperm.slane %v5774_v34, 1  ;;  %v4206_v55 = vmul.f32 %v5496_v1, %v4202_v19  ;;  %v4207_v52 = vmul.f32 %v5497_v6, %v4203_v35  ;;  %vm4212_vm2 = vcmp.eq.f32.partialorder %v5764_v15, %v4210_v9 }
  0x8d   : > { %11365 = vst [vmem:[#allocation60_spill] sm:$0xff] %v6167_v32  ;;  %vm4213_vm3 = vcmp.eq.f32.partialorder %v5764_v15, %v4211_v40  ;;  %vm4214_vm4 = vcmp.eq.f32.partialorder %v5779_v41, %v4210_v9  ;;  %vm4215_vm5 = vcmp.eq.f32.partialorder %v5779_v41, %v4211_v40  ;;  %vm4216_vm6 = vcmp.eq.f32.partialorder %v5817_v14, %v4210_v9 }
  0x8e   : > { %vm4217_vm7 = vcmp.eq.f32.partialorder %v5817_v14, %v4211_v40  ;;  %v5500_v56 = vsel %vm4212_vm2, 1.0, %v11341_v39  ;;  %v5501_v57 = vsel %vm4213_vm3, 1.0, %v11341_v39  ;;  %v5502_v34 = vsel %vm4214_vm4, 1.0, %v11341_v39 }
  0x8f   : > { %v5503_v62 = vsel %vm4215_vm5, 1.0, %v11341_v39  ;;  %v5504_v60 = vsel %vm4216_vm6, 1.0, %v11341_v39  ;;  %v5505_v63 = vsel %vm4217_vm7, 1.0, %v11341_v39  ;;  %v4232_v5 = vmul.f32 %v5500_v56, %v4230_v37 }
  0x90   : > { %v4233_v22 = vmul.f32 %v5501_v57, %v4231_v45  ;;  %v4208_v61 = vmul.f32 %v5498_v10, %v4202_v19  ;;  %v4234_v2 = vmul.f32 %v5502_v34, %v4230_v37  ;;  %v4235_v1 = vmul.f32 %v5503_v62, %v4231_v45 }
  0x91   : > { %v4236_v6 = vmul.f32 %v5504_v60, %v4230_v37  ;;  %v4209_v9 = vmul.f32 %v5499_v27, %v4203_v35  ;;  %v4237_v40 = vmul.f32 %v5505_v63, %v4231_v45  ;;  %v4694_v33 = vperm.slane %v5782_v46, 1 }
  0x92   : > { %vm4695_vm8 = vcmp.eq.f32.partialorder %v5764_v15, %v4693_v51  ;;  %v6196_v32 = vadd.f32 %v4232_v5, %v4204_v7  ;;  %v6198_v50 = vadd.f32 %v4233_v22, %v4205_v18  ;;  %v6200_v16 = vadd.f32 %v4234_v2, %v4206_v55 }
  0x93   : > { %v6202_v17 = vadd.f32 %v4235_v1, %v4207_v52  ;;  %vm4696_vm9 = vcmp.eq.f32.partialorder %v5764_v15, %v4694_v33  ;;  %vm4697_vm10 = vcmp.eq.f32.partialorder %v5779_v41, %v4693_v51  ;;  %vm4698_vm11 = vcmp.eq.f32.partialorder %v5779_v41, %v4694_v33 }
  0x94   : > { %11366 = vst [vmem:[#allocation61_spill] sm:$0xff] %v6196_v32  ;;  %vm4699_vm12 = vcmp.eq.f32.partialorder %v5817_v14, %v4693_v51  ;;  %v6208_v19 = vadd.f32 %v4236_v6, %v4208_v61  ;;  %vm4700_vm13 = vcmp.eq.f32.partialorder %v5817_v14, %v4694_v33  ;;  %v5520_v46 = vsel %vm4695_vm8, 1.0, %v11341_v39 }
  0x95   : > { %11367 = vst [vmem:[#allocation62_spill] sm:$0xff] %v6198_v50  ;;  %v5522_v35 = vsel %vm4697_vm10, 1.0, %v11341_v39  ;;  %v5521_v10 = vsel %vm4696_vm9, 1.0, %v11341_v39  ;;  %v5523_v27 = vsel %vm4698_vm11, 1.0, %v11341_v39  ;;  %v5525_v37 = vsel %vm4700_vm13, 1.0, %v11341_v39 }
  0x96   : > { %11368 = vst [vmem:[#allocation63_spill] sm:$0xff] %v6200_v16  ;;  %v4713_v7 = vperm.slane %v5844_v30, 1  ;;  %v5524_v18 = vsel %vm4699_vm12, 1.0, %v11341_v39  ;;  %v4714_v45 = vperm.slane %v5846_v31, 1  ;;  %v4721_v51 = vperm.slane %v5793_v59, 1  ;;  %v222_v59 = vld [vmem:[%s11095_s2 + $0x10] sm:$0xff] }
  0x97   : > { %11369 = vst [vmem:[#allocation64_spill] sm:$0xff] %v6202_v17  ;;  %v4722_v33 = vperm.slane %v5800_v4, 1  ;;  %v4741_v56 = vperm.slane %v5853_v36, 1  ;;  %v4742_v57 = vperm.slane %v5885_v8, 1  ;;  %5263 = vmatmul.msk.f32.gmra.mxu0 %vm240_vm1, %v222_v59  ;;  %5273 = vmatmul.msk.f32.gmra.mxu1 %vm240_vm1, %v222_v59  ;;  %v6242_v22 = vadd.f32 %v4237_v40, %v4209_v9 }
  0x98   : > { %11370 = vst [vmem:[#allocation65_spill] sm:$0xff] %v6208_v19  ;;  %v4715_v55 = vmul.f32 %v5520_v46, %v4713_v7  ;;  %v4717_v52 = vmul.f32 %v5522_v35, %v4713_v7  ;;  %v4716_v34 = vmul.f32 %v5521_v10, %v4714_v45  ;;  %v4718_v62 = vmul.f32 %v5523_v27, %v4714_v45 }
  0x99   : > { %v4720_v60 = vmul.f32 %v5525_v37, %v4714_v45  ;;  %vm4723_vm14 = vcmp.eq.f32.partialorder %v5764_v15, %v4721_v51  ;;  %vm4724_vm15 = vcmp.eq.f32.partialorder %v5764_v15, %v4722_v33  ;;  %vm4725_vm0 = vcmp.eq.f32.partialorder %v5779_v41, %v4721_v51  ;;  %5293 = vmatmul.msk.f32.gmra.mxu3 %vm240_vm1, %v222_v59 }
  0x9a   : > { %vm4726_vm2 = vcmp.eq.f32.partialorder %v5779_v41, %v4722_v33  ;;  %vm4727_vm3 = vcmp.eq.f32.partialorder %v5817_v14, %v4721_v51  ;;  %vm4728_vm4 = vcmp.eq.f32.partialorder %v5817_v14, %v4722_v33  ;;  %v5526_v4 = vsel %vm4723_vm14, 1.0, %v11341_v39  ;;  %5283 = vmatmul.msk.f32.gmra.mxu2 %vm240_vm1, %v222_v59  ;;  %11371 = vst [vmem:[#allocation66_spill] sm:$0xff] %v6242_v22 }
  0x9b   : > { %v5527_v30 = vsel %vm4724_vm15, 1.0, %v11341_v39  ;;  %v5528_v31 = vsel %vm4725_vm0, 1.0, %v11341_v39  ;;  %v5529_v36 = vsel %vm4726_vm2, 1.0, %v11341_v39  ;;  %v5530_v8 = vsel %vm4727_vm3, 1.0, %v11341_v39 }
  0x9c   : > { %v5531_v63 = vsel %vm4728_vm4, 1.0, %v11341_v39  ;;  %v4743_v5 = vmul.f32 %v5526_v4, %v4741_v56  ;;  %v4744_v61 = vmul.f32 %v5527_v30, %v4742_v57  ;;  %v4745_v2 = vmul.f32 %v5528_v31, %v4741_v56 }
  0x9d   : > { %v4746_v1 = vmul.f32 %v5529_v36, %v4742_v57  ;;  %v4719_v6 = vmul.f32 %v5524_v18, %v4713_v7  ;;  %v4747_v46 = vmul.f32 %v5530_v8, %v4741_v56  ;;  %v4748_v35 = vmul.f32 %v5531_v63, %v4742_v57 }
  0x9e   : > { %v6245_v10 = vperm.slane %v5766_v28, 1  ;;  %v6247_v27 = vadd.f32 %v4743_v5, %v4715_v55  ;;  %v6249_v37 = vadd.f32 %v4744_v61, %v4716_v34  ;;  %v6251_v45 = vadd.f32 %v4745_v2, %v4717_v52 }
  0x9f   : > { %v6253_v51 = vadd.f32 %v4746_v1, %v4718_v62  ;;  %v6255_v33 = vadd.f32 %v4748_v35, %v4720_v60  ;;  %vm676_vm5 = vcmask 1042434   ;;  %v6258_v9 = vperm.slane %v5768_v29, 1  ;;  %v223_v62 = vld [vmem:[%s11095_s2 + $0x18] sm:$0xff] }
  0xa0   : > { %11372 = vst [vmem:[#allocation67_spill] sm:$0xff] %v6247_v27  ;;  %vm896_vm6 = vcmp.eq.f32.partialorder %v5779_v41, %v6245_v10  ;;  %v6263_v40 = vperm.slane %v5811_v11, 1  ;;  %v6267_v18 = vperm.slane %v5813_v12, 1  ;;  %v6270_v55 = vperm.slane %v5784_v47, 1  ;;  %5264 = vmatmul.msk.f32.gmra.mxu0 %vm240_vm1, %v223_v62  ;;  %5274 = vmatmul.msk.f32.gmra.mxu1 %vm240_vm1, %v223_v62 }
  0xa1   : > { %11373 = vst [vmem:[#allocation68_spill] sm:$0xff] %v6249_v37  ;;  %v5326_v7 = vsel %vm896_vm6, 1.0, %v11341_v39  ;;  %v6273_v52 = vperm.slane %v5786_v48, 1  ;;  %v6275_v56 = vadd.f32 %v4747_v46, %v4719_v6  ;;  %vm897_vm7 = vcmp.eq.f32.partialorder %v5779_v41, %v6258_v9  ;;  %5294 = vmatmul.msk.f32.gmra.mxu3 %vm240_vm1, %v223_v62 }
  0xa2   : > { %11374 = vst [vmem:[#allocation69_spill] sm:$0xff] %v6251_v45  ;;  %v6280_v57 = vperm.slane %v5828_v20, 1  ;;  %v6283_v34 = vperm.slane %v5830_v21, 1  ;;  %v5327_v60 = vsel %vm897_vm7, 1.0, %v11341_v39  ;;  %v916_v59 = vmul.f32 %v5326_v7, %v6263_v40  ;;  %5284 = vmatmul.msk.f32.gmra.mxu2 %vm240_vm1, %v223_v62 }
  0xa3   : > { %11375 = vst [vmem:[#allocation70_spill] sm:$0xff] %v6253_v51  ;;  %vm924_vm8 = vcmp.eq.f32.partialorder %v5779_v41, %v6270_v55  ;;  %vm925_vm9 = vcmp.eq.f32.partialorder %v5779_v41, %v6273_v52  ;;  %v917_v4 = vmul.f32 %v5327_v60, %v6267_v18  ;;  %vm685_vm10 = vcmask 1045509  }
  0xa4   : > { %11376 = vst [vmem:[#allocation71_spill] sm:$0xff] %v6255_v33  ;;  %v5332_v30 = vsel %vm924_vm8, 1.0, %v11341_v39  ;;  %v5333_v31 = vsel %vm925_vm9, 1.0, %v11341_v39  ;;  %vm894_vm11 = vcmp.eq.f32.partialorder %v5764_v15, %v6245_v10  ;;  %vm895_vm12 = vcmp.eq.f32.partialorder %v5764_v15, %v6258_v9 }
  0xa5   : > { %11377 = vst [vmem:[#allocation72_spill] sm:$0xff] %v6263_v40  ;;  %v944_v36 = vmul.f32 %v5332_v30, %v6280_v57  ;;  %v945_v8 = vmul.f32 %v5333_v31, %v6283_v34  ;;  %v5324_v63 = vsel %vm894_vm11, 1.0, %v11341_v39  ;;  %v5325_v5 = vsel %vm895_vm12, 1.0, %v11341_v39 }
  0xa6   : > { %11378 = vst [vmem:[#allocation73_spill] sm:$0xff] %v6267_v18  ;;  %v914_v61 = vmul.f32 %v5324_v63, %v6263_v40  ;;  %vm922_vm13 = vcmp.eq.f32.partialorder %v5764_v15, %v6270_v55  ;;  %vm923_vm14 = vcmp.eq.f32.partialorder %v5764_v15, %v6273_v52  ;;  %v915_v6 = vmul.f32 %v5325_v5, %v6267_v18 }
  0xa7   : > { %11379 = vst [vmem:[#allocation74_spill] sm:$0xff] %v6270_v55  ;;  %v6314_v2 = vadd.f32 %v944_v36, %v916_v59  ;;  %v951_v1 = vadd.f32 %v945_v8, %v917_v4  ;;  %v5330_v46 = vsel %vm922_vm13, 1.0, %v11341_v39  ;;  %v5331_v35 = vsel %vm923_vm14, 1.0, %v11341_v39  ;;  %v224_v59 = vld [vmem:[%s11095_s2 + $0x20] sm:$0xff] }
  0xa8   : > { %11380 = vst [vmem:[#allocation75_spill] sm:$0xff] %v6273_v52  ;;  %v942_v7 = vmul.f32 %v5330_v46, %v6280_v57  ;;  %vm682_vm15 = vcmask 1044484   ;;  %vm673_vm0 = vcmask 1041409   ;;  %v943_v60 = vmul.f32 %v5331_v35, %v6283_v34  ;;  %5265 = vmatmul.msk.f32.gmra.mxu0 %vm240_vm1, %v224_v59  ;;  %5275 = vmatmul.msk.f32.gmra.mxu1 %vm240_vm1, %v224_v59 }
  0xa9   : > { %11381 = vst [vmem:[#allocation76_spill] sm:$0xff] %v6275_v56  ;;  %v6320_v62 = vrot.slane %v951_v1, 7  ;;  %vm691_vm2 = vcmask 1046528   ;;  %vm679_vm3 = vcmask 1043459   ;;  %vm671_vm4 = vcmask 1040384   ;;  %5295 = vmatmul.msk.f32.gmra.mxu3 %vm240_vm1, %v224_v59 }
  0xaa   : > { %11382 = vst [vmem:[#allocation77_spill] sm:$0xff] %v6280_v57  ;;  %v6323_v30 = vadd.f32 %v942_v7, %v914_v61  ;;  %vm688_vm6 = vcmask 1046534   ;;  %v6329_v4 = vperm.slane %v5766_v28, 0  ;;  %v949_v36 = vadd.f32 %v943_v60, %v915_v6  ;;  %5285 = vmatmul.msk.f32.gmra.mxu2 %vm240_vm1, %v224_v59 }
  0xab   : > { %11383 = vst [vmem:[#allocation78_spill] sm:$0xff] %v6283_v34  ;;  %v1043_v31 = vsel %vm676_vm5, %v6314_v2, %v6320_v62  ;;  %v6337_v8 = vsel %vm673_vm0, %v6314_v2, %v6320_v62  ;;  %v1053_v63 = vsel %vm691_vm2, %v6320_v62, %v6314_v2  ;;  %v1040_v46 = vsel %vm671_vm4, %v6314_v2, %v6320_v62 }
  0xac   : > { %v1044_v5 = vrot.slane %v1043_v31, 2  ;;  %v11137_v61 = vrot.slane %v6337_v8, 1  ;;  %v1054_v1 = vrot.slane %v1053_v63, 7  ;;  %v6349_v6 = vrot.slane %v949_v36, 7 }
  0xad   : > { %v1074_v35 = vperm.slane %v1040_v46, 0  ;;  %v6351_v7 = vperm.slane %v1040_v46, 1  ;;  %v6356_v60 = vsel %vm688_vm6, %v6314_v2, %v6320_v62  ;;  %vm542_vm7 = vcmp.eq.f32.partialorder %v5779_v41, %v6329_v4 }
  0xae   : > { %v6359_v31 = vperm.slane %v1044_v5, 0  ;;  %v6361_v63 = vperm.slane %v1044_v5, 1  ;;  %v1076_v33 = vperm.slane %v11137_v61, 0  ;;  %v1088_v37 = vperm.slane %v1054_v1, 0 }
  0xaf   : > { %v1034_v36 = vsel %vm685_vm10, %v6323_v30, %v6349_v6  ;;  %v1032_v46 = vsel %vm682_vm15, %v6323_v30, %v6349_v6  ;;  %v6371_v51 = vperm.slane %v1054_v1, 1  ;;  %v6376_v59 = vsel %vm679_vm3, %v6323_v30, %v6349_v6 }
  0xb0   : > { %v1192_v5 = vmul.f32 %v6359_v31, %v5936_v49  ;;  %v1035_v61 = vrot.slane %v1034_v36, 5  ;;  %v1190_v45 = vmul.f32 %v6359_v31, %v5932_v42  ;;  %v1033_v56 = vrot.slane %v1032_v46, 4  ;;  %v6393_v46 = vld [vmem:[%s11095_s2 + $0x28] sm:$0xff] }
  0xb1   : > { %v1188_v27 = vmul.f32 %v1076_v33, %v5944_v44  ;;  %v1186_v50 = vmul.f32 %v1076_v33, %v5936_v49  ;;  %v1224_v1 = vmul.f32 %v1088_v37, %v5944_v44  ;;  %v1184_v17 = vmul.f32 %v1076_v33, %v5932_v42  ;;  %5266 = vmatmul.msk.f32.gmra.mxu0 %vm240_vm1, %v6393_v46 }
  0xb2   : > { %1262 = vmatpush.msrb.mxu1 %v1192_v5  ;;  %v6386_v22 = vperm.slane %v1035_v61, 1  ;;  %v1067_v32 = vperm.slane %v1033_v56, 1  ;;  %v1222_v16 = vmul.f32 %v1088_v37, %v5936_v49  ;;  %v1182_v19 = vmul.f32 %v1074_v35, %v5944_v44  ;;  %5296 = vmatmul.msk.f32.gmra.mxu3 %vm240_vm1, %v6393_v46 }
  0xb3   : > { %1282 = vmatpush.msrb.mxu2 %v1224_v1  ;;  %v1220_v0 = vmul.f32 %v1088_v37, %v5932_v42  ;;  %v1180_v33 = vmul.f32 %v1074_v35, %v5936_v49  ;;  %v11154_v5 = vrot.slane %v6356_v60, 6  ;;  %v11386_v37 = vrot.slane %v6376_v59, 3  ;;  %5276 = vmatmul.msk.f32.gmra.mxu1 %vm240_vm1, %v6393_v46 }
  0xb4   : > { %11384 = vst [vmem:[#allocation79_spill] sm:$0xff] %v6386_v22  ;;  %v1161_v36 = vmul.f32 %v6386_v22, %v5934_v43  ;;  %1263 = vmatpush.msrb.mxu1 %v1190_v45  ;;  %v1159_v58 = vmul.f32 %v1067_v32, %v5973_v24  ;;  %v1157_v13 = vmul.f32 %v1067_v32, %v11385_v53  ;;  %v11389_v52 = vrot.slane %v6376_v59, 3 }
  0xb5   : > { %v1155_v1 = vmul.f32 %v1067_v32, %v5934_v43  ;;  %1283 = vmatpush.msrb.mxu2 %v1222_v16  ;;  %v1065_v23 = vperm.slane %v11386_v37, 1  ;;  %v1086_v25 = vperm.slane %v11154_v5, 0  ;;  %v6411_v3 = vmul.f32 %v1074_v35, %v5932_v42 }
  0xb6   : > { %v6416_v45 = vsel %vm676_vm5, %v6323_v30, %v6349_v6  ;;  %1322 = vmatpush.msrb.mxu0 %v1161_v36  ;;  %1264 = vmatpush.msrb.mxu1 %v1188_v27  ;;  %v6424_v32 = vsel %vm691_vm2, %v6349_v6, %v6323_v30  ;;  %v6429_v35 = vsel %vm685_vm10, %v6314_v2, %v6320_v62  ;;  %v6431_v37 = vperm.slane %v1035_v61, 0 }
  0xb7   : > { %v1153_v5 = vmul.f32 %v1065_v23, %v5973_v24  ;;  %1284 = vmatpush.msrb.mxu2 %v1220_v0  ;;  %v1151_v36 = vmul.f32 %v1065_v23, %v11385_v53  ;;  %v1218_v27 = vmul.f32 %v1086_v25, %v5944_v44  ;;  %v1149_v16 = vmul.f32 %v1065_v23, %v5934_v43 }
  0xb8   : > { %1323 = vmatpush.msrb.mxu0 %v1159_v58  ;;  %1265 = vmatpush.msrb.mxu1 %v1186_v50  ;;  %v1216_v54 = vmul.f32 %v1086_v25, %v5936_v49  ;;  %v11387_v26 = vrot.slane %v6416_v45, 2  ;;  %v11163_v28 = vrot.slane %v6424_v32, 7  ;;  %v1214_v61 = vmul.f32 %v1086_v25, %v5932_v42 }
  0xb9   : > { %1285 = vmatpush.msrb.mxu2 %v1218_v27  ;;  %v11164_v0 = vrot.slane %v6429_v35, 5  ;;  %v1160_v22 = vmul.f32 %v6431_v37, %v5932_v42  ;;  %v6448_v58 = vsel %vm673_vm0, %v6323_v30, %v6349_v6  ;;  %v1066_v50 = vperm.slane %v1033_v56, 0 }
  0xba   : > { %v1063_v38 = vperm.slane %v11387_v26, 1  ;;  %1324 = vmatpush.msrb.mxu0 %v1157_v13  ;;  %1266 = vmatpush.msrb.mxu1 %v1184_v17  ;;  %v1072_v25 = vperm.slane %v11163_v28, 0  ;;  %v6468_v13 = vsel %vm688_vm6, %v6323_v30, %v6349_v6  ;;  %v11388_v57 = vrot.slane %v6448_v58, 1 }
  0xbb   : > { %1286 = vmatpush.msrb.mxu2 %v1216_v54  ;;  %v1084_v56 = vperm.slane %v11164_v0, 0  ;;  %1242 = vmatpush.msrb.mxu3 %v1160_v22  ;;  %v1158_v17 = vmul.f32 %v1066_v50, %v5944_v44  ;;  %v11168_v0 = vrot.slane %v6468_v13, 6  ;;  %v1154_v40 = vmul.f32 %v1066_v50, %v5932_v42 }
  0xbc   : > { %v1147_v23 = vmul.f32 %v1063_v38, %v5973_v24  ;;  %v6456_v26 = vmul.f32 %v1063_v38, %v11385_v53  ;;  %v6459_v27 = vmul.f32 %v1063_v38, %v5934_v43  ;;  %1325 = vmatpush.msrb.mxu0 %v1155_v1  ;;  %1267 = vmatpush.msrb.mxu1 %v1182_v19  ;;  %v1061_v18 = vperm.slane %v11388_v57, 1  ;;  %v6491_v57 = vld [vmem:[%s11095_s2 + $0x30] sm:$0xff] }
  0xbd   : > { %v1176_v28 = vmul.f32 %v1072_v25, %v5944_v44  ;;  %v1174_v38 = vmul.f32 %v1072_v25, %v5936_v49  ;;  %v1172_v54 = vmul.f32 %v1072_v25, %v5932_v42  ;;  %1287 = vmatpush.msrb.mxu2 %v1214_v61  ;;  %v1212_v22 = vmul.f32 %v1084_v56, %v5944_v44 }
  0xbe   : > { %v1210_v34 = vmul.f32 %v1084_v56, %v5936_v49  ;;  %1243 = vmatpush.msrb.mxu3 %v1158_v17  ;;  %v1208_v1 = vmul.f32 %v1084_v56, %v5932_v42  ;;  %1326 = vmatpush.msrb.mxu0 %v1153_v5  ;;  %v1070_v19 = vperm.slane %v11168_v0, 0  ;;  %v1156_v25 = vmul.f32 %v1066_v50, %v5936_v49 }
  0xbf   : > { %1268 = vmatpush.msrb.mxu1 %v1180_v33  ;;  %v6485_v61 = vsel %vm682_vm15, %v6314_v2, %v6320_v62  ;;  %1288 = vmatpush.msrb.mxu2 %v1212_v22  ;;  %v6494_v33 = vmul.f32 %v1061_v18, %v5973_v24  ;;  %v6497_v5 = vmul.f32 %v1061_v18, %v11385_v53  ;;  %v1064_v55 = vperm.slane %v11389_v52, 0 }
  0xc0   : > { %v11171_v56 = vrot.slane %v6485_v61, 4  ;;  %v6501_v17 = vmul.f32 %v1061_v18, %v5934_v43  ;;  %5267 = vmatmul.msk.f32.gmra.mxu0 %vm240_vm1, %v6491_v57  ;;  %v1170_v50 = vmul.f32 %v1070_v19, %v5944_v44  ;;  %v1168_v22 = vmul.f32 %v1070_v19, %v5936_v49  ;;  %1244 = vmatpush.msrb.mxu3 %v1156_v25 }
  0xc1   : > { %1327 = vmatpush.msrb.mxu0 %v1151_v36  ;;  %1269 = vmatpush.msrb.mxu1 %v6411_v3  ;;  %v6509_v0 = vmul.f32 %v1070_v19, %v5932_v42  ;;  %v6518_v36 = vsel %vm671_vm4, %v6323_v30, %v6349_v6  ;;  %v6522_v3 = vmul.f32 %v6431_v37, %v5944_v44 }
  0xc2   : > { %1289 = vmatpush.msrb.mxu2 %v1210_v34  ;;  %v1082_v18 = vperm.slane %v11171_v56, 0  ;;  %v6526_v19 = vmul.f32 %v6431_v37, %v5936_v49  ;;  %v1059_v52 = vperm.slane %v6518_v36, 1  ;;  %v1152_v34 = vmul.f32 %v1064_v55, %v5944_v44  ;;  %1245 = vmatpush.msrb.mxu3 %v1154_v40 }
  0xc3   : > { %1328 = vmatpush.msrb.mxu0 %v1149_v16  ;;  %1270 = vmatpush.msrb.mxu1 %v1176_v28  ;;  %v1150_v59 = vmul.f32 %v1064_v55, %v5936_v49  ;;  %v6534_v30 = vsel %vm679_vm3, %v6314_v2, %v6320_v62  ;;  %v6550_v62 = vperm.slane %v5768_v29, 0  ;;  %vm540_vm12 = vcmp.eq.f32.partialorder %v5764_v15, %v6329_v4 }
  0xc4   : > { %1290 = vmatpush.msrb.mxu2 %v1208_v1  ;;  %v1206_v6 = vmul.f32 %v1082_v18, %v5944_v44  ;;  %v1204_v37 = vmul.f32 %v1082_v18, %v5936_v49  ;;  %v1202_v16 = vmul.f32 %v1082_v18, %v5932_v42  ;;  %v11172_v28 = vrot.slane %v6534_v30, 3  ;;  %1246 = vmatpush.msrb.mxu3 %v1152_v34 }
  0xc5   : > { %1329 = vmatpush.msrb.mxu0 %v1147_v23  ;;  %1271 = vmatpush.msrb.mxu1 %v1174_v38  ;;  %v6541_v25 = vmul.f32 %v1059_v52, %v5973_v24  ;;  %v6544_v56 = vmul.f32 %v1059_v52, %v11385_v53  ;;  %v6547_v2 = vmul.f32 %v1059_v52, %v5934_v43  ;;  %v6561_v38 = vperm.slane %v5811_v11, 0 }
  0xc6   : > { %1291 = vmatpush.msrb.mxu2 %v1206_v6  ;;  %v1080_v40 = vperm.slane %v11172_v28, 0  ;;  %v6556_v23 = vmul.f32 %v6361_v63, %v11385_v53  ;;  %vm543_vm8 = vcmp.eq.f32.partialorder %v5779_v41, %v6550_v62  ;;  %v5302_v1 = vsel %vm542_vm7, 1.0, %v11341_v39  ;;  %1247 = vmatpush.msrb.mxu3 %v1150_v59 }
  0xc7   : > { %1330 = vmatpush.msrb.mxu0 %v6456_v26  ;;  %1272 = vmatpush.msrb.mxu1 %v1172_v54  ;;  %v6568_v18 = vperm.slane %v5813_v12, 0  ;;  %v6571_v52 = vperm.slane %v5784_v47, 0  ;;  %v5303_v6 = vsel %vm543_vm8, 1.0, %v11341_v39  ;;  %v562_v26 = vmul.f32 %v5302_v1, %v6561_v38 }
  0xc8   : > { %1292 = vmatpush.msrb.mxu2 %v1204_v37  ;;  %v1200_v34 = vmul.f32 %v1080_v40, %v5944_v44  ;;  %v6577_v54 = vperm.slane %v5786_v48, 0  ;;  %v6584_v37 = vperm.slane %v5828_v20, 0  ;;  %v6587_v59 = vperm.slane %v5830_v21, 0  ;;  %5277 = vmatmul.msk.f32.gmra.mxu1 %vm240_vm1, %v6491_v57 }
  0xc9   : > { %1331 = vmatpush.msrb.mxu0 %v6459_v27  ;;  %1273 = vmatpush.msrb.mxu1 %v1170_v50  ;;  %v563_v28 = vmul.f32 %v5303_v6, %v6568_v18  ;;  %vm570_vm9 = vcmp.eq.f32.partialorder %v5779_v41, %v6571_v52  ;;  %v1148_v27 = vmul.f32 %v1064_v55, %v5932_v42  ;;  %v11391_v47 = vrot.slane %v6337_v8, 1 }
  0xca   : > { %1293 = vmatpush.msrb.mxu2 %v1202_v16  ;;  %vm571_vm11 = vcmp.eq.f32.partialorder %v5779_v41, %v6577_v54  ;;  %v5308_v1 = vsel %vm570_vm9, 1.0, %v11341_v39  ;;  %v1198_v50 = vmul.f32 %v1080_v40, %v5936_v49  ;;  %v1191_v16 = vmul.f32 %v6361_v63, %v5934_v43  ;;  %5297 = vmatmul.msk.f32.gmra.mxu3 %vm240_vm1, %v6491_v57 }
  0xcb   : > { %1332 = vmatpush.msrb.mxu0 %v6494_v33  ;;  %1274 = vmatpush.msrb.mxu1 %v1168_v22  ;;  %v5309_v6 = vsel %vm571_vm11, 1.0, %v11341_v39  ;;  %v590_v21 = vmul.f32 %v5308_v1, %v6584_v37  ;;  %v11390_v41 = vrot.slane %v6416_v45, 2  ;;  %v1196_v48 = vmul.f32 %v1080_v40, %v5932_v42 }
  0xcc   : > { %1294 = vmatpush.msrb.mxu2 %v1200_v34  ;;  %v591_v55 = vmul.f32 %v5309_v6, %v6587_v59  ;;  %1248 = vmatpush.msrb.mxu3 %v1148_v27  ;;  %v1077_v33 = vperm.slane %v11391_v47, 1  ;;  %v1194_v22 = vmul.f32 %v6359_v31, %v5944_v44  ;;  %v11392_v34 = vrot.slane %v6448_v58, 1 }
  0xcd   : > { %v1062_v20 = vperm.slane %v11390_v41, 0  ;;  %1333 = vmatpush.msrb.mxu0 %v6497_v5  ;;  %1275 = vmatpush.msrb.mxu1 %v6509_v0  ;;  %v6611_v1 = vadd.f32 %v590_v21, %v562_v26  ;;  %v1225_v31 = vmul.f32 %v6371_v51, %v5973_v24  ;;  %v1223_v58 = vmul.f32 %v6371_v51, %v11385_v53 }
  0xce   : > { %v1060_v27 = vperm.slane %v11392_v34, 0  ;;  %v597_v40 = vadd.f32 %v591_v55, %v563_v28  ;;  %1295 = vmatpush.msrb.mxu2 %v1198_v50  ;;  %v1189_v47 = vmul.f32 %v1077_v33, %v5973_v24  ;;  %v1187_v8 = vmul.f32 %v1077_v33, %v11385_v53 }
  0xcf   : > { %v1146_v41 = vmul.f32 %v1062_v20, %v5944_v44  ;;  %v1144_v45 = vmul.f32 %v1062_v20, %v5936_v49  ;;  %1334 = vmatpush.msrb.mxu0 %v6501_v17  ;;  %1276 = vmatpush.msrb.mxu1 %v6522_v3  ;;  %v1142_v21 = vmul.f32 %v1062_v20, %v5932_v42  ;;  %v11393_v5 = vrot.slane %v6356_v60, 6 }
  0xd0   : > { %v1185_v0 = vmul.f32 %v1077_v33, %v5934_v43  ;;  %v6629_v26 = vrot.slane %v597_v40, 7  ;;  %1296 = vmatpush.msrb.mxu2 %v1196_v48  ;;  %v1140_v50 = vmul.f32 %v1060_v27, %v5944_v44  ;;  %v6634_v17 = vmul.f32 %v6351_v7, %v5973_v24 }
  0xd1   : > { %v1087_v28 = vperm.slane %v11393_v5, 1  ;;  %1249 = vmatpush.msrb.mxu3 %v1146_v41  ;;  %v1221_v20 = vmul.f32 %v6371_v51, %v5934_v43  ;;  %1335 = vmatpush.msrb.mxu0 %v6541_v25  ;;  %v1138_v60 = vmul.f32 %v1060_v27, %v5936_v49  ;;  %v6643_v3 = vmul.f32 %v6351_v7, %v11385_v53  ;;  %v11400_v5 = vld [vmem:[#allocation24_spill] sm:$0xff] }
  0xd2   : > { %1277 = vmatpush.msrb.mxu1 %v6526_v19  ;;  %v1058_v6 = vperm.slane %v6518_v36, 0  ;;  %v6651_v51 = vsel %vm676_vm5, %v6611_v1, %v6629_v26  ;;  %v6656_v19 = vsel %vm673_vm0, %v6611_v1, %v6629_v26  ;;  %5286 = vmatmul.msk.f32.gmra.mxu2 %vm240_vm1, %v6393_v46  ;;  %v6663_v25 = vsel %vm671_vm4, %v6611_v1, %v6629_v26 }
  0xd3   : > { %v1219_v48 = vmul.f32 %v1087_v28, %v5973_v24  ;;  %11394 = vst [vmem:[#allocation30_spill] sm:$0xff] %v6651_v51  ;;  %v11397_v36 = vrot.slane %v6424_v32, 7  ;;  %1336 = vmatpush.msrb.mxu0 %v6544_v56  ;;  %v11184_v55 = vrot.slane %v6651_v51, 2  ;;  %v11183_v33 = vrot.slane %v6656_v19, 1  ;;  %1250 = vmatpush.msrb.mxu3 %v1144_v45 }
  0xd4   : > { %1342 = vmatpush.msra.mxu1 %v6556_v23  ;;  %11395 = vst [vmem:[#allocation80_spill] sm:$0xff] %v6656_v19  ;;  %v728_v41 = vperm.slane %v6663_v25, 0  ;;  %v1136_v46 = vmul.f32 %v1060_v27, %v5932_v42  ;;  %1297 = vmatpush.msrb.mxu2 %v1194_v22  ;;  %v6676_v34 = vmul.f32 %v6351_v7, %v5934_v43  ;;  %v11399_v7 = vld [vmem:[#allocation26_spill] sm:$0xff]  ;;  %v5300_v51 = vsel %vm540_vm12, 1.0, %v11341_v39 }
  0xd5   : > { %11396 = vst [vmem:[#allocation81_spill] sm:$0xff] %v6663_v25  ;;  %v6667_v23 = vperm.slane %v11397_v36, 1  ;;  %v1217_v32 = vmul.f32 %v1087_v28, %v11385_v53  ;;  %v6680_v40 = vmul.f32 %v1058_v6, %v5944_v44  ;;  %1337 = vmatpush.msrb.mxu0 %v6547_v2  ;;  %v6685_v56 = vperm.slane %v11184_v55, 0  ;;  %1251 = vmatpush.msrb.mxu3 %v1142_v21 }
  0xd6   : > { %1343 = vmatpush.msra.mxu1 %v1191_v16  ;;  %v730_v45 = vperm.slane %v11183_v33, 0  ;;  %1362 = vmatpush.msra.mxu2 %v1225_v31  ;;  %v11398_v16 = vld [vmem:[#allocation28_spill] sm:$0xff]  ;;  %v6693_v27 = vmul.f32 %v728_v41, %v11399_v7  ;;  %v6698_v2 = vmul.f32 %v728_v41, %v11400_v5  ;;  %v6705_v33 = vmul.f32 %v1087_v28, %v5934_v43 }
  0xd7   : > { %v6690_v22 = vmul.f32 %v728_v41, %v11398_v16  ;;  %v6702_v36 = vmul.f32 %v6667_v23, %v5973_v24  ;;  %v846_v31 = vmul.f32 %v6685_v56, %v11399_v7  ;;  %v844_v55 = vmul.f32 %v6685_v56, %v11400_v5  ;;  %1252 = vmatpush.msrb.mxu3 %v1140_v50 }
  0xd8   : > { %1344 = vmatpush.msra.mxu1 %v1189_v47  ;;  %v842_v47 = vmul.f32 %v730_v45, %v11398_v16  ;;  %v840_v25 = vmul.f32 %v730_v45, %v11399_v7  ;;  %1363 = vmatpush.msra.mxu2 %v1223_v58  ;;  %v838_v41 = vmul.f32 %v730_v45, %v11400_v5  ;;  %v11401_v28 = vrot.slane %v6429_v35, 5 }
  0xd9   : > { %vm541_vm13 = vcmp.eq.f32.partialorder %v5764_v15, %v6550_v62  ;;  %1425 = vmatpush.msra.mxu0 %v846_v31  ;;  %vm568_vm14 = vcmp.eq.f32.partialorder %v5764_v15, %v6571_v52  ;;  %vm569_vm7 = vcmp.eq.f32.partialorder %v5764_v15, %v6577_v54  ;;  %1253 = vmatpush.msrb.mxu3 %v1138_v60  ;;  %v6745_v60 = vld [vmem:[%s11095_s2 + $0x38] sm:$0xff] }
  0xda   : > { %1345 = vmatpush.msra.mxu1 %v1187_v8  ;;  %v1085_v19 = vperm.slane %v11401_v28, 1  ;;  %v5301_v12 = vsel %vm541_vm13, 1.0, %v11341_v39  ;;  %1364 = vmatpush.msra.mxu2 %v1221_v20  ;;  %v560_v8 = vmul.f32 %v5300_v51, %v6561_v38  ;;  %v5306_v35 = vsel %vm568_vm14, 1.0, %v11341_v39 }
  0xdb   : > { %v561_v21 = vmul.f32 %v5301_v12, %v6568_v18  ;;  %v5307_v58 = vsel %vm569_vm7, 1.0, %v11341_v39  ;;  %1426 = vmatpush.msra.mxu0 %v844_v55  ;;  %v588_v50 = vmul.f32 %v5306_v35, %v6584_v37  ;;  %v1132_v31 = vmul.f32 %v1058_v6, %v5936_v49  ;;  %5287 = vmatmul.msk.f32.gmra.mxu2 %vm240_vm1, %v6491_v57  ;;  %v11404_v57 = vld [vmem:[#allocation74_spill] sm:$0xff] }
  0xdc   : > { %1346 = vmatpush.msra.mxu1 %v1185_v0  ;;  %v589_v45 = vmul.f32 %v5307_v58, %v6587_v59  ;;  %1365 = vmatpush.msra.mxu2 %v1219_v48  ;;  %v1175_v0 = vmul.f32 %v6667_v23, %v11385_v53  ;;  %v1213_v12 = vmul.f32 %v1085_v19, %v5973_v24  ;;  %v11402_v51 = vrot.slane %v6468_v13, 6  ;;  %v11408_v58 = vld [vmem:[#allocation77_spill] sm:$0xff] }
  0xdd   : > { %v1130_v20 = vmul.f32 %v1058_v6, %v5932_v42  ;;  %1427 = vmatpush.msra.mxu0 %v842_v47  ;;  %vm898_vm8 = vcmp.eq.f32.partialorder %v5817_v14, %v6245_v10  ;;  %v11403_v6 = vrot.slane %v6485_v61, 4  ;;  %1254 = vmatpush.msrb.mxu3 %v1136_v46  ;;  %vm899_vm9 = vcmp.eq.f32.partialorder %v5817_v14, %v6258_v9  ;;  %v11405_v47 = vld [vmem:[#allocation75_spill] sm:$0xff]  ;;  %v11407_v9 = vld [vmem:[#allocation73_spill] sm:$0xff] }
  0xde   : > { %1347 = vmatpush.msra.mxu1 %v6634_v17  ;;  %v1071_v55 = vperm.slane %v11402_v51, 1  ;;  %v6747_v17 = vadd.f32 %v588_v50, %v560_v8  ;;  %v595_v48 = vadd.f32 %v589_v45, %v561_v21  ;;  %v5328_v13 = vsel %vm898_vm8, 1.0, %v11341_v39  ;;  %1366 = vmatpush.msra.mxu2 %v1217_v32  ;;  %v11406_v8 = vld [vmem:[#allocation72_spill] sm:$0xff]  ;;  %v11410_v50 = vld [vmem:[#allocation78_spill] sm:$0xff] }
  0xdf   : > { %v1083_v28 = vperm.slane %v11403_v6, 1  ;;  %vm926_vm11 = vcmp.eq.f32.partialorder %v5817_v14, %v11404_v57  ;;  %vm927_vm12 = vcmp.eq.f32.partialorder %v5817_v14, %v11405_v47  ;;  %1428 = vmatpush.msra.mxu0 %v840_v25  ;;  %v5329_v61 = vsel %vm899_vm9, 1.0, %v11341_v39  ;;  %5278 = vmatmul.msk.f32.gmra.mxu1 %vm240_vm1, %v6745_v60 }
  0xe0   : > { %1348 = vmatpush.msra.mxu1 %v6643_v3  ;;  %v6761_v10 = vrot.slane %v595_v48, 7  ;;  %v918_v3 = vmul.f32 %v5328_v13, %v11406_v8  ;;  %v5334_v46 = vsel %vm926_vm11, 1.0, %v11341_v39  ;;  %5268 = vmatmul.msk.f32.gmra.mxu0 %vm240_vm1, %v6745_v60  ;;  %v919_v21 = vmul.f32 %v5329_v61, %v11407_v9 }
  0xe1   : > { %v5335_v35 = vsel %vm927_vm12, 1.0, %v11341_v39  ;;  %v946_v25 = vmul.f32 %v5334_v46, %v11408_v58  ;;  %v1173_v32 = vmul.f32 %v6667_v23, %v5934_v43  ;;  %1429 = vmatpush.msra.mxu0 %v838_v41  ;;  %v1211_v51 = vmul.f32 %v1085_v19, %v11385_v53  ;;  %5298 = vmatmul.msk.f32.gmra.mxu3 %vm240_vm1, %v6745_v60  ;;  %v11413_v46 = vld [vmem:[#allocation79_spill] sm:$0xff] }
  0xe2   : > { %1349 = vmatpush.msra.mxu1 %v6676_v34  ;;  %v6779_v34 = vsel %vm691_vm2, %v6761_v10, %v6747_v17  ;;  %v947_v45 = vmul.f32 %v5335_v35, %v11410_v50  ;;  %v1171_v48 = vmul.f32 %v1071_v55, %v5973_v24  ;;  %v1209_v6 = vmul.f32 %v1085_v19, %v5934_v43  ;;  %v6843_v50 = vpop.f32.mrf.mxu1 }
  0xe3   : > { %11409 = vst [vmem:[#allocation28_spill] sm:$0xff] %v6779_v34  ;;  %v11191_v23 = vrot.slane %v6779_v34, 7  ;;  %v952_v41 = vadd.f32 %v946_v25, %v918_v3  ;;  %1430 = vmatpush.msra.mxu0 %v6690_v22  ;;  %1255 = vmatpush.msrb.mxu3 %v6680_v40  ;;  %v6794_v57 = vsel %vm688_vm6, %v6747_v17, %v6761_v10  ;;  %v6836_v25 = vpop.f32.mrf.mxu0 }
  0xe4   : > { %1350 = vmatpush.msra.mxu1 %v6702_v36  ;;  %v953_v13 = vadd.f32 %v947_v45, %v919_v21  ;;  %11411 = vst [vmem:[#allocation26_spill] sm:$0xff] %v6794_v57  ;;  %v1169_v47 = vmul.f32 %v1071_v55, %v11385_v53  ;;  %v11412_v36 = vrot.slane %v6534_v30, 3  ;;  %1367 = vmatpush.msra.mxu2 %v6705_v33  ;;  %v11190_v40 = vrot.slane %v6794_v57, 6 }
  0xe5   : > { %v726_v19 = vperm.slane %v11191_v23, 0  ;;  %v1207_v22 = vmul.f32 %v1083_v28, %v5973_v24  ;;  %v1167_v8 = vmul.f32 %v1071_v55, %v5934_v43  ;;  %1431 = vmatpush.msra.mxu0 %v6693_v27  ;;  %1256 = vmatpush.msrb.mxu3 %v1132_v31  ;;  %v1205_v30 = vmul.f32 %v1083_v28, %v11385_v53 }
  0xe6   : > { %v6799_v61 = vperm.slane %v11412_v36, 1  ;;  %1351 = vmatpush.msra.mxu1 %v1175_v0  ;;  %v1024_v3 = vrot.slane %v953_v13, 7  ;;  %v6811_v9 = vmul.f32 %v11413_v46, %v5973_v24  ;;  %v6814_v33 = vmul.f32 %v1083_v28, %v5934_v43  ;;  %1368 = vmatpush.msra.mxu2 %v1213_v12  ;;  %v6826_v28 = vld [vmem:[%s11095_s2 + $0x40] sm:$0xff]  ;;  %11414 = vst [vmem:[#allocation24_spill] sm:$0xff] %v6843_v50 }
  0xe7   : > { %v830_v0 = vmul.f32 %v726_v19, %v11398_v16  ;;  %v828_v21 = vmul.f32 %v726_v19, %v11399_v7  ;;  %v826_v55 = vmul.f32 %v726_v19, %v11400_v5  ;;  %v724_v27 = vperm.slane %v11190_v40, 0  ;;  %1432 = vmatpush.msra.mxu0 %v6698_v2  ;;  %1257 = vmatpush.msrb.mxu3 %v1130_v20 }
  0xe8   : > { %1352 = vmatpush.msra.mxu1 %v1173_v32  ;;  %v1056_v31 = vsel %vm673_vm0, %v952_v41, %v1024_v3  ;;  %v6829_v12 = vsel %vm671_vm4, %v952_v41, %v1024_v3  ;;  %v6834_v35 = vsel %vm685_vm10, %v6747_v17, %v6761_v10  ;;  %1369 = vmatpush.msra.mxu2 %v1211_v51 }
  0xe9   : > { %v1057_v58 = vrot.slane %v1056_v31, 1  ;;  %v824_v2 = vmul.f32 %v724_v27, %v11398_v16  ;;  %v822_v20 = vmul.f32 %v724_v27, %v11399_v7  ;;  %v1090_v32 = vperm.slane %v6829_v12, 0  ;;  %1433 = vmatpush.msra.mxu0 %v830_v0  ;;  %5288 = vmatmul.msk.f32.gmra.mxu2 %vm240_vm1, %v6745_v60 }
  0xea   : > { %1353 = vmatpush.msra.mxu1 %v1171_v48  ;;  %v820_v45 = vmul.f32 %v724_v27, %v11400_v5  ;;  %v687_v41 = vrot.slane %v6834_v35, 5  ;;  %v1163_v51 = vmul.f32 %v11413_v46, %v11385_v53  ;;  %v6851_v48 = vmul.f32 %v6799_v61, %v5973_v24  ;;  %1370 = vmatpush.msra.mxu2 %v1209_v6  ;;  %v6876_v35 = vpop.f32.mrf.mxu2 }
  0xeb   : > { %v1092_v13 = vperm.slane %v1057_v58, 0  ;;  %5269 = vmatmul.msk.f32.gmra.mxu0 %vm240_vm1, %v6826_v28  ;;  %v1230_v60 = vmul.f32 %v1090_v32, %v5944_v44  ;;  %v6857_v36 = vmul.f32 %v1090_v32, %v5936_v49  ;;  %v6860_v19 = vmul.f32 %v1090_v32, %v5932_v42  ;;  %5279 = vmatmul.msk.f32.gmra.mxu1 %vm240_vm1, %v6826_v28 }
  0xec   : > { %1434 = vmatpush.msra.mxu0 %v828_v21  ;;  %v6864_v3 = vperm.slane %v687_v41, 0  ;;  %v1093_v46 = vperm.slane %v1057_v58, 1  ;;  %v707_v6 = vsel %vm691_vm2, %v6629_v26, %v6611_v1  ;;  %vm544_vm13 = vcmp.eq.f32.partialorder %v5817_v14, %v6329_v4  ;;  %5299 = vmatmul.msk.f32.gmra.mxu3 %vm240_vm1, %v6826_v28 }
  0xed   : > { %v1236_v0 = vmul.f32 %v1092_v13, %v5944_v44  ;;  %v1234_v27 = vmul.f32 %v1092_v13, %v5936_v49  ;;  %v1232_v21 = vmul.f32 %v1092_v13, %v5932_v42  ;;  %1354 = vmatpush.msra.mxu1 %v1169_v47  ;;  %v708_v31 = vrot.slane %v707_v6, 7  ;;  %1371 = vmatpush.msra.mxu2 %v1207_v22  ;;  %v6918_v6 = vpop.f32.mrf.mxu3 }
  0xee   : > { %1435 = vmatpush.msra.mxu0 %v826_v55  ;;  %v818_v58 = vmul.f32 %v6864_v3, %v11398_v16  ;;  %v816_v4 = vmul.f32 %v6864_v3, %v11399_v7  ;;  %v6883_v44 = vmul.f32 %v1093_v46, %v5973_v24  ;;  %v5304_v49 = vsel %vm544_vm13, 1.0, %v11341_v39 }
  0xef   : > { %1312 = vmatpush.msra.mxu3 %v1236_v0  ;;  %1355 = vmatpush.msra.mxu1 %v1167_v8  ;;  %v742_v42 = vperm.slane %v708_v31, 0  ;;  %vm545_vm14 = vcmp.eq.f32.partialorder %v5817_v14, %v6550_v62  ;;  %v564_v47 = vmul.f32 %v5304_v49, %v6561_v38  ;;  %vm572_vm7 = vcmp.eq.f32.partialorder %v5817_v14, %v6571_v52 }
  0xf0   : > { %1436 = vmatpush.msra.mxu0 %v824_v2  ;;  %1372 = vmatpush.msra.mxu2 %v1205_v30  ;;  %v5305_v22 = vsel %vm545_vm14, 1.0, %v11341_v39  ;;  %vm573_vm8 = vcmp.eq.f32.partialorder %v5817_v14, %v6577_v54  ;;  %v5310_v55 = vsel %vm572_vm7, 1.0, %v11341_v39  ;;  %v1199_v8 = vmul.f32 %v6799_v61, %v11385_v53  ;;  %v11424_v14 = vld [vmem:[#allocation21_spill] sm:$0xff] }
  0xf1   : > { %1313 = vmatpush.msra.mxu3 %v1234_v27  ;;  %1356 = vmatpush.msra.mxu1 %v6811_v9  ;;  %v878_v62 = vmul.f32 %v742_v42, %v11398_v16  ;;  %v565_v38 = vmul.f32 %v5305_v22, %v6568_v18  ;;  %v5311_v52 = vsel %vm573_vm8, 1.0, %v11341_v39  ;;  %v592_v30 = vmul.f32 %v5310_v55, %v6584_v37  ;;  %v297_v18 = vpop.f32.mrf.mxu0 }
  0xf2   : > { %1437 = vmatpush.msra.mxu0 %v822_v20  ;;  %1373 = vmatpush.msra.mxu2 %v6814_v33  ;;  %v593_v54 = vmul.f32 %v5311_v52, %v6587_v59  ;;  %v1235_v2 = vmul.f32 %v1093_v46, %v11385_v53  ;;  %v876_v32 = vmul.f32 %v742_v42, %v11399_v7  ;;  %v1091_v13 = vperm.slane %v6829_v12, 1  ;;  %v6916_v59 = vpop.f32.mrf.mxu1 }
  0xf3   : > { %1314 = vmatpush.msra.mxu3 %v1232_v21  ;;  %5289 = vmatmul.msk.f32.gmra.mxu2 %vm240_vm1, %v6826_v28  ;;  %v598_v9 = vadd.f32 %v592_v30, %v564_v47  ;;  %v1197_v37 = vmul.f32 %v6799_v61, %v5934_v43  ;;  %v6912_v20 = vmul.f32 %v1093_v46, %v5934_v43  ;;  %v6914_v33 = vperm.slane %v687_v41, 1  ;;  %v11416_v41 = vld [vmem:[#allocation25_spill] sm:$0xff]  ;;  %v11417_v46 = vld [vmem:[#allocation6_spill] sm:$0xff] }
  0xf4   : > { %1438 = vmatpush.msra.mxu0 %v820_v45  ;;  %1357 = vmatpush.msra.mxu1 %v1163_v51  ;;  %v599_v12 = vadd.f32 %v593_v54, %v565_v38  ;;  %v874_v0 = vmul.f32 %v742_v42, %v11400_v5  ;;  %v1195_v28 = vmul.f32 %v6361_v63, %v5973_v24  ;;  %v6923_v27 = vperm.slane %v708_v31, 1  ;;  %v11418_v42 = vld [vmem:[#allocation29_spill] sm:$0xff] }
  0xf5   : > { %11415 = vst [vmem:[#allocation74_spill] sm:$0xff] %v6914_v33  ;;  %1315 = vmatpush.msra.mxu3 %v1230_v60  ;;  %1374 = vmatpush.msra.mxu2 %v6851_v48  ;;  %v6927_v61 = vmul.f32 %v1091_v13, %v5973_v24  ;;  %v705_v45 = vsel %vm688_vm6, %v6611_v1, %v6629_v26  ;;  %v6937_v21 = vperm.slane %v11417_v46, 2  ;;  %vm1238_vm1 = vcmask 392192  }
  0xf6   : > { %v6934_v51 = vmul.f32 %v6914_v33, %v11416_v41  ;;  %1439 = vmatpush.msra.mxu0 %v818_v58  ;;  %1258 = vmatmul.f32.vlgmr.msrb.gmra.mxu3 %v297_v18  ;;  %v670_v63 = vrot.slane %v599_v12, 7  ;;  %v706_v60 = vrot.slane %v705_v45, 6  ;;  %v6940_v48 = vmul.f32 %v1091_v13, %v11385_v53  ;;  %v11419_v12 = vld [vmem:[#allocation27_spill] sm:$0xff] }
  0xf7   : > { %v683_v24 = vsel %vm682_vm15, %v6747_v17, %v6761_v10  ;;  %1316 = vmatpush.msra.mxu3 %v6857_v36  ;;  %1278 = vmatmul.f32.vlgmr.msrb.gmra.mxu1 %v6916_v59  ;;  %v6948_v49 = vmul.f32 %v1091_v13, %v5934_v43  ;;  %v6952_v58 = vmul.f32 %v6864_v3, %v11400_v5  ;;  %v6961_v36 = vpop.f32.mrf.mxu2  ;;  %v7183_v34 = vperm.slane %v11424_v14, 2  ;;  %v11426_v14 = vld [vmem:[#allocation10_spill] sm:$0xff] }
  0xf8   : > { %v684_v31 = vrot.slane %v683_v24, 4  ;;  %v6956_v53 = vmul.f32 %v6923_v27, %v11418_v42  ;;  %1440 = vmatpush.msra.mxu0 %v816_v4  ;;  %1445 = vmatpush.msrb.mxu1 %v878_v62  ;;  %v6959_v47 = vsel %vm673_vm0, %v598_v9, %v670_v63  ;;  %v740_v22 = vperm.slane %v706_v60, 0 }
  0xf9   : > { %v6964_v55 = vsel %vm671_vm4, %v598_v9, %v670_v63  ;;  %v703_v43 = vsel %vm685_vm10, %v6611_v1, %v6629_v26  ;;  %1317 = vmatpush.msra.mxu3 %v6860_v19  ;;  %1338 = vmatmul.f32.vlgmr.msrb.gmra.mxu0 %v297_v18  ;;  %v11192_v3 = vrot.slane %v6959_v47, 1  ;;  %vm1567_vm9 = vcmp.eq.f32.partialorder %v5764_v15, %v6937_v21 }
  0xfa   : > { %v744_v4 = vperm.slane %v6964_v55, 0  ;;  %v721_v62 = vperm.slane %v684_v31, 1  ;;  %v704_v38 = vrot.slane %v703_v43, 5  ;;  %1375 = vmatpush.msra.mxu2 %v1199_v8  ;;  %v872_v52 = vmul.f32 %v740_v22, %v11398_v16  ;;  %1446 = vmatpush.msrb.mxu1 %v876_v32 }
  0xfb   : > { %1392 = vmatpush.msrb.mxu3 %v6883_v44  ;;  %v870_v30 = vmul.f32 %v740_v22, %v11399_v7  ;;  %v6976_v54 = vmul.f32 %v740_v22, %v11400_v5  ;;  %v720_v13 = vperm.slane %v684_v31, 0  ;;  %v746_v19 = vperm.slane %v11192_v3, 0  ;;  %1298 = vmatmul.f32.vlgmr.msrb.gmra.mxu2 %v6961_v36 }
  0xfc   : > { %v884_v18 = vmul.f32 %v744_v4, %v11398_v16  ;;  %v6983_v9 = vmul.f32 %v744_v4, %v11399_v7  ;;  %v813_v44 = vmul.f32 %v721_v62, %v11418_v42  ;;  %1376 = vmatpush.msra.mxu2 %v1197_v37  ;;  %v6987_v8 = vmul.f32 %v744_v4, %v11400_v5 }
  0xfd   : > { %1393 = vmatpush.msrb.mxu3 %v1235_v2  ;;  %v811_v45 = vmul.f32 %v721_v62, %v11419_v12  ;;  %v738_v63 = vperm.slane %v704_v38, 0  ;;  %v6991_v24 = vmul.f32 %v721_v62, %v11416_v41  ;;  %v890_v32 = vmul.f32 %v746_v19, %v11398_v16  ;;  %1447 = vmatpush.msrb.mxu1 %v874_v0  ;;  %v7000_v2 = vpop.f32.mrf.mxu3 }
  0xfe   : > { %v888_v31 = vmul.f32 %v746_v19, %v11399_v7  ;;  %v886_v22 = vmul.f32 %v746_v19, %v11400_v5  ;;  %v6997_v43 = vmul.f32 %v720_v13, %v11398_v16  ;;  %1377 = vmatpush.msra.mxu2 %v1195_v28  ;;  %v7005_v4 = vmul.f32 %v6923_v27, %v11419_v12 }
  0xff   : > { %1394 = vmatpush.msrb.mxu3 %v6912_v20  ;;  %v866_v37 = vmul.f32 %v738_v63, %v11398_v16  ;;  %v7008_v62 = vmul.f32 %v738_v63, %v11399_v7  ;;  %v741_v0 = vperm.slane %v706_v60, 1  ;;  %1475 = vmatpush.msrb.mxu0 %v890_v32  ;;  %v680_v19 = vsel %vm679_vm3, %v6747_v17, %v6761_v10 }
 0x100   : > { %1448 = vmatpush.msrb.mxu1 %v872_v52  ;;  %v7014_v20 = vmul.f32 %v720_v13, %v11399_v7  ;;  %v7018_v28 = vmul.f32 %v6923_v27, %v11416_v41  ;;  %v739_v40 = vperm.slane %v704_v38, 1  ;;  %1485 = vmatpush.msrb.mxu2 %v6934_v51  ;;  %v681_v23 = vrot.slane %v680_v19, 3 }
 0x101   : > { %1395 = vmatpush.msrb.mxu3 %v6927_v61  ;;  %v7023_v60 = vmul.f32 %v738_v63, %v11400_v5  ;;  %v7026_v52 = vmul.f32 %v720_v13, %v11400_v5  ;;  %v7029_v32 = vmul.f32 %v741_v0, %v11418_v42  ;;  %1476 = vmatpush.msrb.mxu0 %v888_v31  ;;  %v7043_v38 = vperm.slane %v5768_v29, 2 }
 0x102   : > { %5348 = vmatmul.msk.f32.vlgmr.msra.gmra.mxu3 %vm1238_vm1, %v7000_v2  ;;  %v701_v27 = vsel %vm682_vm15, %v6611_v1, %v6629_v26  ;;  %v7037_v61 = vmul.f32 %v741_v0, %v11419_v12  ;;  %v677_v51 = vsel %vm676_vm5, %v6747_v17, %v6761_v10  ;;  %1358 = vmatmul.f32.vlgmr.msra.gmra.mxu1 %v6916_v59  ;;  %v719_v13 = vperm.slane %v681_v23, 1 }
 0x103   : > { %1396 = vmatpush.msrb.mxu3 %v6940_v48  ;;  %v702_v63 = vrot.slane %v701_v27, 4  ;;  %v718_v31 = vperm.slane %v681_v23, 0  ;;  %v678_v19 = vrot.slane %v677_v51, 2  ;;  %1477 = vmatpush.msrb.mxu0 %v886_v22  ;;  %v7048_v3 = vmul.f32 %v741_v0, %v11416_v41 }
 0x104   : > { %1449 = vmatpush.msrb.mxu1 %v870_v30  ;;  %v7051_v46 = vmul.f32 %v739_v40, %v11418_v42  ;;  %v7056_v29 = vsel %vm679_vm3, %v6611_v1, %v6629_v26  ;;  %v7059_v59 = vperm.slane %v5811_v11, 2  ;;  %1441 = vmatmul.f32.vlgmr.msra.gmra.mxu0 %v6843_v50  ;;  %v807_v23 = vmul.f32 %v719_v13, %v11418_v42  ;;  %v11421_v11 = vld [vmem:[#allocation11_spill] sm:$0xff] }
 0x105   : > { %1486 = vmatpush.msrb.mxu2 %v813_v44  ;;  %v805_v48 = vmul.f32 %v719_v13, %v11419_v12  ;;  %v736_v30 = vperm.slane %v702_v63, 0  ;;  %v7065_v22 = vmul.f32 %v719_v13, %v11416_v41  ;;  %1478 = vmatpush.msrb.mxu0 %v884_v18  ;;  %v7069_v1 = vmul.f32 %v718_v31, %v11398_v16 }
 0x106   : > { %1397 = vmatpush.msrb.mxu3 %v6948_v49  ;;  %v717_v26 = vperm.slane %v678_v19, 1  ;;  %v7072_v0 = vmul.f32 %v718_v31, %v11399_v7  ;;  %v7075_v44 = vmul.f32 %v718_v31, %v11400_v5  ;;  %1450 = vmatpush.msrb.mxu1 %v6976_v54  ;;  %v11196_v18 = vrot.slane %v7056_v29, 3 }
 0x107   : > { %1487 = vmatpush.msrb.mxu2 %v811_v45  ;;  %v860_v27 = vmul.f32 %v736_v30, %v11398_v16  ;;  %v7080_v51 = vmul.f32 %v736_v30, %v11399_v7  ;;  %v7083_v49 = vmul.f32 %v736_v30, %v11400_v5  ;;  %1479 = vmatpush.msrb.mxu0 %v6983_v9  ;;  %v716_v31 = vperm.slane %v678_v19, 0 }
 0x108   : > { %1405 = vmatpush.msra.mxu3 %v6952_v58  ;;  %v7089_v13 = vmul.f32 %v717_v26, %v11418_v42  ;;  %v7092_v54 = vmul.f32 %v717_v26, %v11419_v12  ;;  %v7095_v45 = vmul.f32 %v717_v26, %v11416_v41  ;;  %1451 = vmatpush.msrb.mxu1 %v866_v37  ;;  %v734_v30 = vperm.slane %v11196_v18, 0 }
 0x109   : > { %1488 = vmatpush.msrb.mxu2 %v6991_v24  ;;  %v7101_v9 = vmul.f32 %v739_v40, %v11419_v12  ;;  %v674_v58 = vsel %vm673_vm0, %v6747_v17, %v6761_v10  ;;  %v7107_v50 = vmul.f32 %v739_v40, %v11416_v41  ;;  %1480 = vmatpush.msrb.mxu0 %v6987_v8  ;;  %v7171_v33 = vperm.slane %v11421_v11, 2 }
 0x10a   : > { %1406 = vmatpush.msra.mxu3 %v6997_v43  ;;  %v7112_v37 = vmul.f32 %v716_v31, %v11398_v16  ;;  %v675_v24 = vrot.slane %v674_v58, 1  ;;  %v7115_v19 = vmul.f32 %v716_v31, %v11399_v7  ;;  %v7118_v26 = vmul.f32 %v716_v31, %v11400_v5  ;;  %1378 = vmatmul.f32.vlgmr.msra.gmra.mxu2 %v6961_v36 }
 0x10b   : > { %1525 = vmatpush.msra.mxu0 %v6956_v53  ;;  %v7123_v40 = vmul.f32 %v734_v30, %v11398_v16  ;;  %v7126_v8 = vmul.f32 %v734_v30, %v11399_v7  ;;  %v7129_v43 = vmul.f32 %v734_v30, %v11400_v5  ;;  %v737_v58 = vperm.slane %v702_v63, 1  ;;  %1452 = vmatpush.msrb.mxu1 %v7008_v62 }
 0x10c   : > { %1489 = vmatpush.msrb.mxu2 %v807_v23  ;;  %v715_v18 = vperm.slane %v675_v24, 1  ;;  %v7134_v31 = vmul.f32 %v6685_v56, %v11398_v16  ;;  %v714_v53 = vperm.slane %v675_v24, 0  ;;  %1407 = vmatpush.msra.mxu3 %v7014_v20  ;;  %vm1568_vm11 = vcmp.eq.f32.partialorder %v5764_v15, %v7043_v38 }
 0x10d   : > { %1526 = vmatpush.msra.mxu0 %v7005_v4  ;;  %v7141_v36 = vmul.f32 %v737_v58, %v11418_v42  ;;  %v7144_v63 = vmul.f32 %v737_v58, %v11419_v12  ;;  %v5352_v56 = vsel %vm1567_vm9, 1.0, %v11341_v39  ;;  %5349 = vmatmul.msk.f32.vlgmr.msrb.gmra.mxu3 %vm1238_vm1, %v7000_v2  ;;  %v5353_v23 = vsel %vm1568_vm11, 1.0, %v11341_v39  ;;  %v11420_v2 = vld [vmem:[#allocation16_spill] sm:$0xff] }
 0x10e   : > { %1453 = vmatpush.msrb.mxu1 %v7023_v60  ;;  %v7153_v4 = vmul.f32 %v715_v18, %v11418_v42  ;;  %v7156_v62 = vmul.f32 %v715_v18, %v11419_v12  ;;  %v7159_v20 = vmul.f32 %v715_v18, %v11416_v41  ;;  %1490 = vmatpush.msrb.mxu2 %v805_v48  ;;  %v7167_v24 = vperm.slane %v11420_v2, 2  ;;  %v11422_v18 = vld [vmem:[#allocation12_spill] sm:$0xff] }
 0x10f   : > { %1527 = vmatpush.msra.mxu0 %v7018_v28  ;;  %v7164_v30 = vmul.f32 %v714_v53, %v11398_v16  ;;  %v1587_v60 = vmul.f32 %v5352_v56, %v7059_v59  ;;  %1408 = vmatpush.msra.mxu3 %v7026_v52  ;;  %v7177_v57 = vperm.slane %v11422_v18, 2  ;;  %v11423_v28 = vld [vmem:[#allocation20_spill] sm:$0xff]  ;;  %v672_v56 = vsel %vm671_vm4, %v6747_v17, %v6761_v10 }
 0x110   : > { %5350 = vmatmul.msk.f32.vlgmr.msrb.gmra.mxu0 %vm1238_vm1, %v6918_v6  ;;  %v7180_v48 = vperm.slane %v11423_v28, 2  ;;  %1454 = vmatpush.msrb.mxu1 %v860_v27  ;;  %v1588_v11 = vmul.f32 %v5353_v23, %v7167_v24  ;;  %vm1595_vm12 = vcmp.eq.f32.partialorder %v5764_v15, %v7171_v33  ;;  %v713_v52 = vperm.slane %v672_v56, 1 }
 0x111   : > { %1528 = vmatpush.msra.mxu0 %v7029_v32  ;;  %v7193_v18 = vmul.f32 %v714_v53, %v11399_v7  ;;  %1491 = vmatpush.msrb.mxu2 %v7065_v22  ;;  %vm1596_vm13 = vcmp.eq.f32.partialorder %v5764_v15, %v7177_v57  ;;  %v5358_v17 = vsel %vm1595_vm12, 1.0, %v11341_v39  ;;  %v7201_v10 = vmul.f32 %v737_v58, %v11416_v41 }
 0x112   : > { %1409 = vmatpush.msra.mxu3 %v7069_v1  ;;  %v7204_v32 = vmul.f32 %v714_v53, %v11400_v5  ;;  %1455 = vmatpush.msrb.mxu1 %v7080_v51  ;;  %v5359_v27 = vsel %vm1596_vm13, 1.0, %v11341_v39  ;;  %v1615_v22 = vmul.f32 %v5358_v17, %v7180_v48  ;;  %v7211_v1 = vmul.f32 %v713_v52, %v11418_v42 }
 0x113   : > { %1529 = vmatpush.msra.mxu0 %v7037_v61  ;;  %v7214_v23 = vmul.f32 %v713_v52, %v11419_v12  ;;  %1492 = vmatpush.msrb.mxu2 %v7089_v13  ;;  %v1616_v58 = vmul.f32 %v5359_v27, %v7183_v34  ;;  %v11425_v61 = vrot.slane %v7056_v29, 3  ;;  %v7222_v51 = vmul.f32 %v713_v52, %v11416_v41 }
 0x114   : > { %1410 = vmatpush.msra.mxu3 %v7072_v0  ;;  %v712_v15 = vperm.slane %v672_v56, 0  ;;  %1456 = vmatpush.msrb.mxu1 %v7083_v49  ;;  %v7226_v17 = vadd.f32 %v1615_v22, %v1587_v60  ;;  %vm1569_vm14 = vcmp.eq.f32.partialorder %v11426_v14, %v6937_v21  ;;  %vm1570_vm7 = vcmp.eq.f32.partialorder %v11426_v14, %v7043_v38  ;;  %v11427_v0 = vld [vmem:[#allocation30_spill] sm:$0xff] }
 0x115   : > { %v735_v53 = vperm.slane %v11425_v61, 1  ;;  %1530 = vmatpush.msra.mxu0 %v7048_v3  ;;  %v11428_v13 = vrot.slane %v11427_v0, 2  ;;  %1493 = vmatpush.msrb.mxu2 %v7092_v54  ;;  %v1622_v56 = vadd.f32 %v1616_v58, %v1588_v11  ;;  %v5354_v60 = vsel %vm1569_vm14, 1.0, %v11341_v39 }
 0x116   : > { %1411 = vmatpush.msra.mxu3 %v7075_v44  ;;  %v7240_v49 = vmul.f32 %v712_v15, %v11398_v16  ;;  %1457 = vmatpush.msrb.mxu1 %v7123_v40  ;;  %v5355_v54 = vsel %vm1570_vm7, 1.0, %v11341_v39  ;;  %v1589_v44 = vmul.f32 %v5354_v60, %v7059_v59  ;;  %vm1597_vm8 = vcmp.eq.f32.partialorder %v11426_v14, %v7171_v33  ;;  %v11431_v60 = vld [vmem:[#allocation31_spill] sm:$0xff] }
 0x117   : > { %v733_v29 = vperm.slane %v11428_v13, 1  ;;  %v7237_v3 = vmul.f32 %v735_v53, %v11418_v42  ;;  %1531 = vmatpush.msra.mxu0 %v7051_v46  ;;  %v7246_v52 = vmul.f32 %v735_v53, %v11419_v12  ;;  %1494 = vmatpush.msrb.mxu2 %v7095_v45  ;;  %v7254_v11 = vrot.slane %v1622_v56, 7 }
 0x118   : > { %1412 = vmatpush.msra.mxu3 %v7112_v37  ;;  %v1590_v16 = vmul.f32 %v5355_v54, %v7167_v24  ;;  %vm1598_vm9 = vcmp.eq.f32.partialorder %v11426_v14, %v7177_v57  ;;  %v5360_v46 = vsel %vm1597_vm8, 1.0, %v11341_v39  ;;  %1458 = vmatpush.msrb.mxu1 %v7126_v8  ;;  %v7265_v45 = vmul.f32 %v712_v15, %v11399_v7  ;;  %v11432_v54 = vld [vmem:[#allocation35_spill] sm:$0xff] }
 0x119   : > { %1532 = vmatpush.msra.mxu0 %v7101_v9  ;;  %v5361_v40 = vsel %vm1598_vm9, 1.0, %v11341_v39  ;;  %v1617_v27 = vmul.f32 %v5360_v46, %v7180_v48  ;;  %v7268_v37 = vmul.f32 %v735_v53, %v11416_v41  ;;  %1495 = vmatpush.msrb.mxu2 %v7153_v4  ;;  %v7275_v9 = vsel %vm685_vm10, %v7226_v17, %v7254_v11  ;;  %v11434_v46 = vld [vmem:[#allocation80_spill] sm:$0xff] }
 0x11a   : > { %1413 = vmatpush.msra.mxu3 %v7115_v19  ;;  %v7280_v8 = vsel %vm682_vm15, %v7226_v17, %v7254_v11  ;;  %v1618_v7 = vmul.f32 %v5361_v40, %v7183_v34  ;;  %v11429_v22 = vrot.slane %v6959_v47, 1  ;;  %1459 = vmatpush.msrb.mxu1 %v7129_v43  ;;  %v11210_v19 = vrot.slane %v7275_v9, 5 }
 0x11b   : > { %1533 = vmatpush.msra.mxu0 %v7107_v50  ;;  %v11209_v4 = vrot.slane %v7280_v8, 4  ;;  %v7289_v61 = vadd.f32 %v1617_v27, %v1589_v44  ;;  %v7294_v53 = vsel %vm679_vm3, %v7226_v17, %v7254_v11  ;;  %1496 = vmatpush.msrb.mxu2 %v7156_v62  ;;  %v7300_v43 = vmul.f32 %v712_v15, %v11400_v5  ;;  %v11433_v44 = vld [vmem:[#allocation33_spill] sm:$0xff] }
 0x11c   : > { %v747_v58 = vperm.slane %v11429_v22, 1  ;;  %1414 = vmatpush.msra.mxu3 %v7118_v26  ;;  %v1624_v47 = vadd.f32 %v1618_v7, %v1590_v16  ;;  %v11207_v50 = vrot.slane %v7294_v53, 3  ;;  %v7303_v0 = vmul.f32 %v733_v29, %v11418_v42  ;;  %1460 = vmatpush.msrb.mxu1 %v7134_v31 }
 0x11d   : > { %1534 = vmatpush.msra.mxu0 %v7141_v36  ;;  %v7309_v13 = vperm.slane %v11210_v19, 0  ;;  %v1739_v26 = vperm.slane %v11209_v4, 0  ;;  %v7314_v62 = vmul.f32 %v733_v29, %v11419_v12  ;;  %1497 = vmatpush.msrb.mxu2 %v7159_v20  ;;  %v7326_v36 = vmul.f32 %v733_v29, %v11416_v41  ;;  %v11437_v19 = vld [vmem:[#allocation81_spill] sm:$0xff] }
 0x11e   : > { %v7317_v15 = vmul.f32 %v747_v58, %v11418_v42  ;;  %1415 = vmatpush.msra.mxu3 %v7164_v30  ;;  %v7321_v5 = vrot.slane %v1624_v47, 7  ;;  %v1737_v31 = vperm.slane %v11207_v50, 0  ;;  %v7329_v56 = vmul.f32 %v747_v58, %v11419_v12  ;;  %1461 = vmatmul.f32.vlgmr.msrb.gmra.mxu1 %v6876_v35 }
 0x11f   : > { %1535 = vmatpush.msra.mxu0 %v7144_v63  ;;  %v1833_v20 = vmul.f32 %v7309_v13, %v11431_v60  ;;  %v1831_v30 = vmul.f32 %v1739_v26, %v11432_v54  ;;  %v1829_v16 = vmul.f32 %v1739_v26, %v11433_v44  ;;  %v11435_v40 = vrot.slane %v11434_v46, 1  ;;  %1498 = vmatpush.msrb.mxu2 %v7211_v1 }
 0x120   : > { %11430 = vst [vmem:[#allocation75_spill] sm:$0xff] %v7321_v5  ;;  %1416 = vmatpush.msra.mxu3 %v7193_v18  ;;  %v1827_v29 = vmul.f32 %v1739_v26, %v11431_v60  ;;  %v1716_v63 = vsel %vm676_vm5, %v7289_v61, %v7321_v5  ;;  %v1825_v7 = vmul.f32 %v1737_v31, %v11432_v54  ;;  %v745_v22 = vperm.slane %v6964_v55, 1 }
 0x121   : > { %v731_v27 = vperm.slane %v11435_v40, 1  ;;  %1914 = vmatpush.msra.mxu1 %v1833_v20  ;;  %1536 = vmatpush.msra.mxu0 %v7201_v10  ;;  %v1717_v47 = vrot.slane %v1716_v63, 2  ;;  %v1823_v46 = vmul.f32 %v1737_v31, %v11433_v44  ;;  %v7352_v18 = vsel %vm673_vm0, %v7289_v61, %v7321_v5 }
 0x122   : > { %v7355_v1 = vmul.f32 %v1737_v31, %v11431_v60  ;;  %1499 = vmatpush.msrb.mxu2 %v7214_v23  ;;  %1417 = vmatpush.msra.mxu3 %v7204_v32  ;;  %v11208_v55 = vrot.slane %v7352_v18, 1  ;;  %v7363_v10 = vsel %vm676_vm5, %v7226_v17, %v7254_v11  ;;  %v7369_v20 = vmul.f32 %v747_v58, %v11416_v41 }
 0x123   : > { %v7366_v26 = vmul.f32 %v731_v27, %v11418_v42  ;;  %1915 = vmatpush.msra.mxu1 %v1831_v30  ;;  %1537 = vmatpush.msra.mxu0 %v7237_v3  ;;  %v7372_v31 = vperm.slane %v1717_v47, 0  ;;  %v11213_v32 = vrot.slane %v7363_v10, 2  ;;  %v7378_v23 = vsel %vm671_vm4, %v7289_v61, %v7321_v5 }
 0x124   : > { %v7381_v40 = vmul.f32 %v731_v27, %v11419_v12  ;;  %1500 = vmatpush.msrb.mxu2 %v7222_v51  ;;  %1418 = vmatpush.msra.mxu3 %v7240_v49  ;;  %v1749_v58 = vperm.slane %v11208_v55, 0  ;;  %v1747_v3 = vperm.slane %v7378_v23, 0  ;;  %v7389_v30 = vmul.f32 %v745_v22, %v11418_v42 }
 0x125   : > { %11436 = vst [vmem:[#allocation72_spill] sm:$0xff] %v7372_v31  ;;  %v7392_v63 = vmul.f32 %v731_v27, %v11416_v41  ;;  %1916 = vmatpush.msra.mxu1 %v1829_v16  ;;  %1501 = vmatmul.f32.vlgmr.msrb.gmra.mxu2 %v6836_v25  ;;  %v1865_v50 = vmul.f32 %v7372_v31, %v11433_v44  ;;  %v1735_v49 = vperm.slane %v11213_v32, 0  ;;  %v729_v14 = vperm.slane %v11437_v19, 1 }
 0x126   : > { %v1863_v51 = vmul.f32 %v7372_v31, %v11431_v60  ;;  %v7402_v55 = vmul.f32 %v745_v22, %v11419_v12  ;;  %1538 = vmatpush.msra.mxu0 %v7246_v52  ;;  %1419 = vmatpush.msra.mxu3 %v7265_v45  ;;  %v1861_v16 = vmul.f32 %v1749_v58, %v11432_v54  ;;  %v11438_v52 = vld [vmem:[#allocation28_spill] sm:$0xff] }
 0x127   : > { %v1859_v27 = vmul.f32 %v1749_v58, %v11433_v44  ;;  %v1857_v4 = vmul.f32 %v1749_v58, %v11431_v60  ;;  %1917 = vmatpush.msra.mxu1 %v1827_v29  ;;  %1934 = vmatpush.msra.mxu2 %v1865_v50  ;;  %v1819_v31 = vmul.f32 %v1735_v49, %v11432_v54  ;;  %v11439_v2 = vrot.slane %v11438_v52, 7 }
 0x128   : > { %v1817_v32 = vmul.f32 %v1735_v49, %v11433_v44  ;;  %v7413_v28 = vmul.f32 %v1747_v3, %v11432_v54  ;;  %1539 = vmatpush.msra.mxu0 %v7268_v37  ;;  %1420 = vmatpush.msra.mxu3 %v7300_v43  ;;  %v7422_v58 = vmul.f32 %v1735_v49, %v11431_v60  ;;  %v7432_v29 = vperm.slane %v1717_v47, 1  ;;  %v11440_v47 = vld [vmem:[#allocation17_spill] sm:$0xff] }
 0x129   : > { %v7417_v45 = vperm.slane %v11439_v2, 1  ;;  %v7425_v19 = vmul.f32 %v1747_v3, %v11433_v44  ;;  %v7430_v50 = vsel %vm673_vm0, %v7226_v17, %v7254_v11  ;;  %1918 = vmatpush.msra.mxu1 %v1825_v7  ;;  %1935 = vmatpush.msra.mxu2 %v1863_v51  ;;  %v7436_v37 = vmul.f32 %v1747_v3, %v11431_v60  ;;  %v11441_v3 = vld [vmem:[#allocation26_spill] sm:$0xff] }
 0x12a   : > { %v1700_v2 = vrot.slane %v7430_v50, 1  ;;  %v7439_v43 = vmul.f32 %v729_v14, %v11418_v42  ;;  %v7442_v49 = vmul.f32 %v745_v22, %v11416_v41  ;;  %1540 = vmatpush.msra.mxu0 %v7303_v0  ;;  %1421 = vmatmul.f32.vlgmr.msra.gmra.mxu3 %v6836_v25  ;;  %v7449_v7 = vsel %vm691_vm2, %v7254_v11, %v7226_v17 }
 0x12b   : > { %vm1571_vm11 = vcmp.eq.f32.partialorder %v11440_v47, %v6937_v21  ;;  %vm1572_vm12 = vcmp.eq.f32.partialorder %v11440_v47, %v7043_v38  ;;  %v11442_v51 = vrot.slane %v11441_v3, 6  ;;  %1919 = vmatpush.msra.mxu1 %v1823_v46  ;;  %1936 = vmatpush.msra.mxu2 %v1861_v16  ;;  %v1712_v0 = vrot.slane %v7449_v7, 7 }
 0x12c   : > { %v1733_v25 = vperm.slane %v1700_v2, 0  ;;  %v5356_v22 = vsel %vm1571_vm11, 1.0, %v11341_v39  ;;  %v5357_v5 = vsel %vm1572_vm12, 1.0, %v11341_v39  ;;  %1505 = vmatpush.msrb.mxu3 %v7314_v62  ;;  %1541 = vmatmul.f32.vlgmr.msra.gmra.mxu0 %v6876_v35  ;;  %vm1599_vm13 = vcmp.eq.f32.partialorder %v11440_v47, %v7171_v33 }
 0x12d   : > { %v7457_v52 = vperm.slane %v11442_v51, 1  ;;  %v1591_v21 = vmul.f32 %v5356_v22, %v7059_v59  ;;  %v1592_v38 = vmul.f32 %v5357_v5, %v7167_v24  ;;  %v11443_v46 = vrot.slane %v7275_v9, 5  ;;  %1555 = vmatpush.msrb.mxu0 %v7317_v15  ;;  %1920 = vmatpush.msra.mxu1 %v7355_v1 }
 0x12e   : > { %v1813_v3 = vmul.f32 %v1733_v25, %v11432_v54  ;;  %v1811_v62 = vmul.f32 %v1733_v25, %v11433_v44  ;;  %v1745_v35 = vperm.slane %v1712_v0, 0  ;;  %vm1600_vm14 = vcmp.eq.f32.partialorder %v11440_v47, %v7177_v57  ;;  %1937 = vmatpush.msra.mxu2 %v1859_v27  ;;  %1506 = vmatpush.msrb.mxu3 %v7326_v36 }
 0x12f   : > { %v7472_v16 = vperm.slane %v11443_v46, 1  ;;  %v5362_v33 = vsel %vm1599_vm13, 1.0, %v11341_v39  ;;  %v5363_v59 = vsel %vm1600_vm14, 1.0, %v11341_v39  ;;  %v7486_v24 = vmul.f32 %v729_v14, %v11419_v12  ;;  %1556 = vmatpush.msrb.mxu0 %v7329_v56  ;;  %1921 = vmatpush.msra.mxu1 %v1819_v31 }
 0x130   : > { %v7489_v9 = vmul.f32 %v1733_v25, %v11431_v60  ;;  %v1849_v15 = vmul.f32 %v1745_v35, %v11432_v54  ;;  %v1619_v57 = vmul.f32 %v5362_v33, %v7180_v48  ;;  %v1620_v5 = vmul.f32 %v5363_v59, %v7183_v34  ;;  %1938 = vmatpush.msra.mxu2 %v1857_v4 }
 0x131   : > { %v11444_v36 = vrot.slane %v7280_v8, 4  ;;  %1507 = vmatpush.msrb.mxu3 %v7366_v26  ;;  %v1847_v27 = vmul.f32 %v1745_v35, %v11433_v44  ;;  %v7502_v51 = vmul.f32 %v729_v14, %v11416_v41  ;;  %v7507_v56 = vsel %vm671_vm4, %v7226_v17, %v7254_v11  ;;  %v7513_v8 = vpop.f32.mrf.mxu1  ;;  %1557 = vmatpush.msrb.mxu0 %v7369_v20 }
 0x132   : > { %v11445_v48 = vrot.slane %v7352_v18, 1  ;;  %1922 = vmatpush.msra.mxu1 %v1817_v32  ;;  %v1625_v4 = vadd.f32 %v1619_v57, %v1591_v21  ;;  %v1626_v26 = vadd.f32 %v1620_v5, %v1592_v38  ;;  %v1731_v31 = vperm.slane %v7507_v56, 0  ;;  %1939 = vmatpush.msra.mxu2 %v7413_v28 }
 0x133   : > { %v7497_v1 = vperm.slane %v11444_v36, 1  ;;  %v7518_v14 = vmul.f32 %v1745_v35, %v11431_v60  ;;  %1508 = vmatpush.msrb.mxu3 %v7381_v40  ;;  %v7524_v18 = vmul.f32 %v7417_v45, %v11418_v42  ;;  %v7529_v20 = vsel %vm688_vm6, %v7226_v17, %v7254_v11  ;;  %1558 = vmatpush.msrb.mxu0 %v7389_v30  ;;  %v11447_v30 = vld [vmem:[#allocation34_spill] sm:$0xff]  ;;  %v7571_v35 = vpop.f32.mrf.mxu3 }
 0x134   : > { %v7511_v34 = vperm.slane %v11445_v48, 1  ;;  %v7533_v32 = vmul.f32 %v7417_v45, %v11419_v12  ;;  %v11446_v25 = vrot.slane %v7294_v53, 3  ;;  %1923 = vmatpush.msra.mxu1 %v7422_v58  ;;  %v1697_v28 = vrot.slane %v1626_v26, 7  ;;  %1940 = vmatpush.msra.mxu2 %v7425_v19 }
 0x135   : > { %v1807_v40 = vmul.f32 %v1731_v31, %v11432_v54  ;;  %v1805_v21 = vmul.f32 %v1731_v31, %v11433_v44  ;;  %v1710_v17 = vrot.slane %v7529_v20, 6  ;;  %1509 = vmatpush.msrb.mxu3 %v7392_v63  ;;  %v7547_v11 = vmul.f32 %v1731_v31, %v11431_v60  ;;  %1559 = vmatpush.msrb.mxu0 %v7402_v55 }
 0x136   : > { %v7537_v22 = vperm.slane %v11446_v25, 1  ;;  %v7551_v53 = vmul.f32 %v7417_v45, %v11416_v41  ;;  %v7555_v58 = vmul.f32 %v7432_v29, %v11447_v30  ;;  %v7558_v38 = vperm.slane %v7378_v23, 1  ;;  %1924 = vmatpush.msra.mxu1 %v1813_v3  ;;  %1941 = vmatpush.msra.mxu2 %v7436_v37  ;;  %v11449_v3 = vld [vmem:[#allocation32_spill] sm:$0xff] }
 0x137   : > { %v7562_v19 = vsel %vm673_vm0, %v1625_v4, %v1697_v28  ;;  %v1743_v63 = vperm.slane %v1710_v17, 0  ;;  %v7565_v46 = vsel %vm671_vm4, %v1625_v4, %v1697_v28  ;;  %v7569_v45 = vmul.f32 %v7457_v52, %v11418_v42  ;;  %1510 = vmatpush.msrb.mxu3 %v7439_v43  ;;  %1560 = vmatpush.msrb.mxu0 %v7442_v49 }
 0x138   : > { %11448 = vst [vmem:[#allocation73_spill] sm:$0xff] %v7565_v46  ;;  %v11216_v55 = vrot.slane %v7562_v19, 1  ;;  %v1763_v23 = vperm.slane %v7565_v46, 0  ;;  %v7579_v33 = vmul.f32 %v7472_v16, %v11449_v3  ;;  %v7583_v59 = vmul.f32 %v7432_v29, %v11449_v3  ;;  %1925 = vmatpush.msra.mxu1 %v1811_v62  ;;  %5351 = vmatmul.msk.f32.vlgmr.msrb.gmra.mxu0 %vm1238_vm1, %v6918_v6 }
 0x139   : > { %v1843_v57 = vmul.f32 %v1743_v63, %v11432_v54  ;;  %v1841_v37 = vmul.f32 %v1743_v63, %v11433_v44  ;;  %v7589_v43 = vmul.f32 %v1743_v63, %v11431_v60  ;;  %v11450_v5 = vrot.slane %v7363_v10, 2  ;;  %1942 = vmatpush.msra.mxu2 %v1849_v15  ;;  %1511 = vmatpush.msrb.mxu3 %v7486_v24  ;;  %v11451_v15 = vld [vmem:[#allocation36_spill] sm:$0xff]  ;;  %v7631_v28 = vpop.f32.mrf.mxu1  ;;  %v7646_v63 = vpop.f32.mrf.mxu0 }
 0x13a   : > { %v1765_v48 = vperm.slane %v11216_v55, 0  ;;  %v1903_v49 = vmul.f32 %v1763_v23, %v11432_v54  ;;  %v7601_v62 = vmul.f32 %v1763_v23, %v11433_v44  ;;  %v7604_v4 = vmul.f32 %v1763_v23, %v11431_v60  ;;  %1926 = vmatpush.msra.mxu1 %v7489_v9  ;;  %11452 = vst [vmem:[#allocation77_spill] sm:$0xff] %v7631_v28  ;;  %v11459_v28 = vld [vmem:[#allocation7_spill] sm:$0xff] }
 0x13b   : > { %v7593_v36 = vperm.slane %v11450_v5, 1  ;;  %v7610_v10 = vmul.f32 %v7309_v13, %v11432_v54  ;;  %v7614_v6 = vmul.f32 %v7457_v52, %v11419_v12  ;;  %v7618_v26 = vmul.f32 %v7497_v1, %v11451_v15  ;;  %1943 = vmatpush.msra.mxu2 %v1847_v27  ;;  %1512 = vmatpush.msrb.mxu3 %v7502_v51  ;;  %v11454_v51 = vld [vmem:[#allocation74_spill] sm:$0xff] }
 0x13c   : > { %v7622_v31 = vperm.slane %v1712_v0, 1  ;;  %v1909_v24 = vmul.f32 %v1765_v48, %v11432_v54  ;;  %v1907_v9 = vmul.f32 %v1765_v48, %v11433_v44  ;;  %v1905_v20 = vmul.f32 %v1765_v48, %v11431_v60  ;;  %1927 = vmatpush.msra.mxu1 %v1807_v40 }
 0x13d   : > { %v7629_v25 = vmul.f32 %v7511_v34, %v11451_v15  ;;  %v7636_v7 = vmul.f32 %v7309_v13, %v11433_v44  ;;  %v7640_v0 = vmul.f32 %v7457_v52, %v11416_v41  ;;  %v7644_v27 = vmul.f32 %v7497_v1, %v11447_v30  ;;  %1944 = vmatpush.msra.mxu2 %v7518_v14  ;;  %v11453_v41 = vld [vmem:[#allocation75_spill] sm:$0xff] }
 0x13e   : > { %v7650_v23 = vperm.slane %v1700_v2, 1  ;;  %1984 = vmatpush.msra.mxu0 %v1909_v24  ;;  %v7655_v13 = vmul.f32 %v7511_v34, %v11447_v30  ;;  %v1726_v52 = vsel %vm691_vm2, %v11453_v41, %v7289_v61  ;;  %v7662_v40 = vmul.f32 %v11454_v51, %v11418_v42  ;;  %1513 = vmatpush.msrb.mxu3 %v7524_v18  ;;  %v7703_v24 = vpop.f32.mrf.mxu2 }
 0x13f   : > { %v7664_v5 = vperm.slane %v1710_v17, 1  ;;  %1928 = vmatpush.msra.mxu1 %v1805_v21  ;;  %v1727_v50 = vrot.slane %v1726_v52, 7  ;;  %v7669_v2 = vmul.f32 %v7497_v1, %v11449_v3  ;;  %v7673_v14 = vmul.f32 %v7511_v34, %v11449_v3  ;;  %1945 = vmatpush.msra.mxu2 %v1843_v57  ;;  %11455 = vst [vmem:[#allocation78_spill] sm:$0xff] %v7703_v24 }
 0x140   : > { %v7677_v48 = vmul.f32 %v11454_v51, %v11419_v12  ;;  %1985 = vmatpush.msra.mxu0 %v1907_v9  ;;  %v7681_v42 = vmul.f32 %v7537_v22, %v11451_v15  ;;  %v7685_v18 = vmul.f32 %v7558_v38, %v11451_v15  ;;  %v7689_v1 = vmul.f32 %v7537_v22, %v11447_v30  ;;  %v7705_v9 = vpop.f32.mrf.mxu3 }
 0x141   : > { %v7692_v34 = vperm.slane %v7507_v56, 1  ;;  %1514 = vmatpush.msrb.mxu3 %v7533_v32  ;;  %1929 = vmatpush.msra.mxu1 %v7547_v11  ;;  %v1762_v12 = vperm.slane %v1727_v50, 1  ;;  %v1761_v21 = vperm.slane %v1727_v50, 0  ;;  %v7698_v17 = vmul.f32 %v7558_v38, %v11447_v30  ;;  %11456 = vst [vmem:[#allocation79_spill] sm:$0xff] %v7705_v9 }
 0x142   : > { %v1724_v57 = vsel %vm688_vm6, %v7289_v61, %v11453_v41  ;;  %1986 = vmatpush.msra.mxu0 %v1905_v20  ;;  %1946 = vmatpush.msra.mxu2 %v1841_v37  ;;  %v7709_v32 = vmul.f32 %v7537_v22, %v11449_v3  ;;  %v7713_v11 = vmul.f32 %v7558_v38, %v11449_v3  ;;  %v11457_v22 = vld [vmem:[#allocation6_spill] sm:$0xff]  ;;  %v7767_v9 = vperm.slane %v11459_v28, 3 }
 0x143   : > { %v1725_v56 = vrot.slane %v1724_v57, 6  ;;  %v7717_v52 = vmul.f32 %v7593_v36, %v11451_v15  ;;  %1515 = vmatpush.msrb.mxu3 %v7551_v53  ;;  %2014 = vmatpush.msrb.mxu1 %v7555_v58  ;;  %v1898_v20 = vmul.f32 %v1762_v12, %v11451_v15  ;;  %v1896_v37 = vmul.f32 %v1762_v12, %v11447_v30 }
 0x144   : > { %v7724_v51 = vmul.f32 %v1762_v12, %v11449_v3  ;;  %v7727_v50 = vperm.slane %v11457_v22, 3  ;;  %1987 = vmatpush.msra.mxu0 %v1903_v49  ;;  %1947 = vmatpush.msra.mxu2 %v7589_v43  ;;  %v7731_v38 = vmul.f32 %v1761_v21, %v11432_v54  ;;  %v7734_v53 = vmul.f32 %v1761_v21, %v11433_v44 }
 0x145   : > { %v1760_v57 = vperm.slane %v1725_v56, 1  ;;  %v7737_v58 = vmul.f32 %v1761_v21, %v11431_v60  ;;  %1516 = vmatpush.msrb.mxu3 %v7569_v45  ;;  %2015 = vmatpush.msrb.mxu1 %v7583_v59  ;;  %v7743_v12 = vmul.f32 %v7622_v31, %v11451_v15  ;;  %v1759_v49 = vperm.slane %v1725_v56, 0  ;;  %v7764_v56 = vpop.f32.mrf.mxu1 }
 0x146   : > { %v7747_v43 = vmul.f32 %v7593_v36, %v11447_v30  ;;  %v7751_v55 = vmul.f32 %v7622_v31, %v11447_v30  ;;  %1988 = vmatpush.msra.mxu0 %v7601_v62  ;;  %1948 = vmatpush.msra.mxu2 %v7610_v10  ;;  %11458 = vst [vmem:[#allocation25_spill] sm:$0xff] %v7764_v56  ;;  %v7771_v62 = vpop.f32.mrf.mxu0  ;;  %v11461_v56 = vld [vmem:[#allocation15_spill] sm:$0xff] }
 0x147   : > { %v7756_v45 = vmul.f32 %v1760_v57, %v11451_v15  ;;  %v7759_v59 = vmul.f32 %v1760_v57, %v11447_v30  ;;  %v7762_v21 = vmul.f32 %v1760_v57, %v11449_v3  ;;  %1517 = vmatpush.msrb.mxu3 %v7614_v6  ;;  %2016 = vmatpush.msrb.mxu1 %v7629_v25  ;;  %v7783_v24 = vperm.slane %v11461_v56, 3 }
 0x148   : > { %11460 = vst [vmem:[#allocation29_spill] sm:$0xff] %v7771_v62  ;;  %v7774_v10 = vmul.f32 %v1759_v49, %v11432_v54  ;;  %v1722_v22 = vsel %vm685_vm10, %v7289_v61, %v11453_v41  ;;  %v7780_v57 = vmul.f32 %v1759_v49, %v11433_v44  ;;  %1989 = vmatpush.msra.mxu0 %v7604_v4 }
 0x149   : > { %1949 = vmatpush.msra.mxu2 %v7636_v7  ;;  %v1723_v6 = vrot.slane %v1722_v22, 5  ;;  %v7789_v25 = vmul.f32 %v7593_v36, %v11449_v3  ;;  %v7793_v62 = vmul.f32 %v7622_v31, %v11449_v3  ;;  %v7796_v28 = vmul.f32 %v1759_v49, %v11431_v60  ;;  %1518 = vmatpush.msrb.mxu3 %v7640_v0  ;;  %v11463_v31 = vld [vmem:[#allocation16_spill] sm:$0xff] }
 0x14a   : > { %1994 = vmatpush.msrb.mxu0 %v7579_v33  ;;  %v7802_v4 = vmul.f32 %v7650_v23, %v11451_v15  ;;  %v7806_v7 = vmul.f32 %v7664_v5, %v11451_v15  ;;  %v7810_v36 = vmul.f32 %v7650_v23, %v11447_v30  ;;  %v7813_v22 = vperm.slane %v11463_v31, 3  ;;  %2017 = vmatpush.msrb.mxu1 %v7655_v13 }
 0x14b   : > { %2034 = vmatpush.msrb.mxu2 %v1898_v20  ;;  %v1758_v33 = vperm.slane %v1723_v6, 1  ;;  %v1757_v0 = vperm.slane %v1723_v6, 0  ;;  %v7818_v49 = vmul.f32 %v7664_v5, %v11447_v30  ;;  %v1720_v56 = vsel %vm682_vm15, %v7289_v61, %v11453_v41  ;;  %1519 = vmatpush.msrb.mxu3 %v7662_v40  ;;  %v7833_v20 = vpop.f32.mrf.mxu2 }
 0x14c   : > { %11462 = vst [vmem:[#allocation27_spill] sm:$0xff] %v7810_v36  ;;  %1995 = vmatpush.msrb.mxu0 %v7618_v26  ;;  %v1721_v46 = vrot.slane %v1720_v56, 4  ;;  %v7827_v31 = vmul.f32 %v7650_v23, %v11449_v3  ;;  %v7831_v13 = vmul.f32 %v7664_v5, %v11449_v3  ;;  %v7837_v6 = vmul.f32 %v7692_v34, %v11451_v15  ;;  %v7839_v36 = vpop.f32.mrf.mxu3  ;;  %v11467_v5 = vld [vmem:[#allocation11_spill] sm:$0xff] }
 0x14d   : > { %11464 = vst [vmem:[#allocation30_spill] sm:$0xff] %v7833_v20  ;;  %2018 = vmatpush.msrb.mxu1 %v7673_v14  ;;  %2035 = vmatpush.msrb.mxu2 %v1896_v37  ;;  %v7843_v26 = vmul.f32 %v1758_v33, %v11451_v15  ;;  %v7846_v23 = vmul.f32 %v1758_v33, %v11447_v30  ;;  %v7852_v56 = vperm.slane %v11467_v5, 3 }
 0x14e   : > { %11465 = vst [vmem:[#allocation31_spill] sm:$0xff] %v7837_v6  ;;  %v7849_v40 = vmul.f32 %v1758_v33, %v11449_v3  ;;  %1996 = vmatpush.msrb.mxu0 %v7644_v27  ;;  %1520 = vmatpush.msrb.mxu3 %v7677_v48  ;;  %v1756_v14 = vperm.slane %v1721_v46, 1  ;;  %v7860_v37 = vmul.f32 %v1757_v0, %v11433_v44  ;;  %v1755_v27 = vperm.slane %v1721_v46, 0  ;;  %v11472_v6 = vld [vmem:[#allocation12_spill] sm:$0xff] }
 0x14f   : > { %11466 = vst [vmem:[#allocation35_spill] sm:$0xff] %v7839_v36  ;;  %v7857_v36 = vmul.f32 %v1757_v0, %v11432_v54  ;;  %v7863_v20 = vmul.f32 %v1757_v0, %v11431_v60  ;;  %2019 = vmatpush.msrb.mxu1 %v7685_v18  ;;  %2036 = vmatpush.msrb.mxu2 %v7724_v51  ;;  %v11471_v0 = vld [vmem:[#allocation24_spill] sm:$0xff] }
 0x150   : > { %v7869_v33 = vmul.f32 %v7472_v16, %v11451_v15  ;;  %v7873_v48 = vmul.f32 %v7692_v34, %v11447_v30  ;;  %v7877_v5 = vmul.f32 %v7472_v16, %v11447_v30  ;;  %1997 = vmatpush.msrb.mxu0 %v7669_v2  ;;  %1521 = vmatmul.f32.vlgmr.msrb.gmra.mxu3 %v11471_v0  ;;  %v7901_v0 = vpop.f32.mrf.mxu1 }
 0x151   : > { %v7882_v18 = vmul.f32 %v1756_v14, %v11451_v15  ;;  %v7885_v51 = vmul.f32 %v1756_v14, %v11447_v30  ;;  %v7888_v46 = vmul.f32 %v1756_v14, %v11449_v3  ;;  %1954 = vmatpush.msra.mxu3 %v7731_v38  ;;  %2020 = vmatpush.msrb.mxu1 %v7698_v17  ;;  %v11474_v14 = vld [vmem:[#allocation20_spill] sm:$0xff]  ;;  %v7911_v17 = vpop.f32.mrf.mxu0 }
 0x152   : > { %11468 = vst [vmem:[#allocation33_spill] sm:$0xff] %v7869_v33  ;;  %v7891_v33 = vperm.slane %v11472_v6, 3  ;;  %v7896_v16 = vmul.f32 %v1755_v27, %v11432_v54  ;;  %v1718_v2 = vsel %vm679_vm3, %v7289_v61, %v11453_v41  ;;  %1998 = vmatpush.msrb.mxu0 %v7681_v42  ;;  %2037 = vmatpush.msrb.mxu2 %v7756_v45  ;;  %v11476_v6 = vld [vmem:[#allocation10_spill] sm:$0xff] }
 0x153   : > { %11469 = vst [vmem:[#allocation80_spill] sm:$0xff] %v7873_v48  ;;  %v7904_v48 = vmul.f32 %v1755_v27, %v11433_v44  ;;  %v1719_v38 = vrot.slane %v1718_v2, 3  ;;  %vm2080_vm7 = vcmp.eq.f32.partialorder %v11476_v6, %v7727_v50  ;;  %vm2081_vm8 = vcmp.eq.f32.partialorder %v11476_v6, %v7767_v9  ;;  %1955 = vmatpush.msra.mxu3 %v7734_v53 }
 0x154   : > { %11470 = vst [vmem:[#allocation81_spill] sm:$0xff] %v7877_v5  ;;  %v7907_v5 = vperm.slane %v11474_v14, 3  ;;  %vm2108_vm9 = vcmp.eq.f32.partialorder %v11476_v6, %v7852_v56  ;;  %5376 = vmatmul.msk.f32.vlgmr.msra.gmra.mxu0 %vm1238_vm1, %v7571_v35  ;;  %v5380_v61 = vsel %vm2080_vm7, 1.0, %v11341_v39  ;;  %v5381_v41 = vsel %vm2081_vm8, 1.0, %v11341_v39  ;;  %2021 = vmatpush.msrb.mxu1 %v7713_v11 }
 0x155   : > { %11473 = vst [vmem:[#allocation28_spill] sm:$0xff] %v7901_v0  ;;  %vm2109_vm11 = vcmp.eq.f32.partialorder %v11476_v6, %v7891_v33  ;;  %v5386_v42 = vsel %vm2108_vm9, 1.0, %v11341_v39  ;;  %1999 = vmatpush.msrb.mxu0 %v7689_v1  ;;  %v1754_v45 = vperm.slane %v1719_v38, 1  ;;  %v2100_v2 = vmul.f32 %v5380_v61, %v7783_v24  ;;  %2038 = vmatpush.msrb.mxu2 %v7759_v59 }
 0x156   : > { %11475 = vst [vmem:[#allocation26_spill] sm:$0xff] %v7911_v17  ;;  %v2101_v53 = vmul.f32 %v5381_v41, %v7813_v22  ;;  %v5387_v0 = vsel %vm2109_vm11, 1.0, %v11341_v39  ;;  %1956 = vmatpush.msra.mxu3 %v7737_v58  ;;  %v11477_v17 = vld [vmem:[#allocation21_spill] sm:$0xff]  ;;  %v2128_v6 = vmul.f32 %v5386_v42, %v7907_v5  ;;  %v7940_v1 = vmul.f32 %v7692_v34, %v11449_v3  ;;  %v7956_v41 = vpop.f32.mrf.mxu2  ;;  %v7958_v42 = vpop.f32.mrf.mxu3 }
 0x157   : > { %v7935_v14 = vperm.slane %v11477_v17, 3  ;;  %v7943_v11 = vmul.f32 %v1755_v27, %v11431_v60  ;;  %2000 = vmatpush.msrb.mxu0 %v7709_v32  ;;  %2022 = vmatpush.msrb.mxu1 %v7743_v12  ;;  %v7948_v59 = vmul.f32 %v1754_v45, %v11451_v15  ;;  %v7951_v58 = vmul.f32 %v1754_v45, %v11447_v30 }
 0x158   : > { %v7954_v61 = vmul.f32 %v1754_v45, %v11449_v3  ;;  %11478 = vst [vmem:[#allocation34_spill] sm:$0xff] %v7956_v41  ;;  %v1753_v34 = vperm.slane %v1719_v38, 0  ;;  %2039 = vmatpush.msrb.mxu2 %v7762_v21  ;;  %1957 = vmatpush.msra.mxu3 %v7774_v10  ;;  %v7963_v12 = vadd.f32 %v2128_v6, %v2100_v2  ;;  %v11480_v21 = vrot.slane %v7562_v19, 1  ;;  %v11483_v2 = vld [vmem:[#allocation72_spill] sm:$0xff] }
 0x159   : > { %11479 = vst [vmem:[#allocation32_spill] sm:$0xff] %v7958_v42  ;;  %v2129_v32 = vmul.f32 %v5387_v0, %v7935_v14  ;;  %v7967_v27 = vmul.f32 %v7432_v29, %v11451_v15  ;;  %2001 = vmatpush.msrb.mxu0 %v7717_v52  ;;  %2023 = vmatpush.msrb.mxu1 %v7751_v55  ;;  %v8008_v0 = vpop.f32.mrf.mxu0 }
 0x15a   : > { %v7972_v38 = vmul.f32 %v1753_v34, %v11432_v54  ;;  %v7975_v45 = vmul.f32 %v1753_v34, %v11433_v44  ;;  %vm2082_vm12 = vcmp.eq.f32.partialorder %v11440_v47, %v7727_v50  ;;  %v7981_v10 = vperm.slane %v11480_v21, 1  ;;  %2040 = vmatpush.msrb.mxu2 %v7843_v26  ;;  %1958 = vmatpush.msra.mxu3 %v7780_v57  ;;  %v8004_v26 = vpop.f32.mrf.mxu1 }
 0x15b   : > { %v2135_v29 = vadd.f32 %v2129_v32, %v2101_v53  ;;  %vm2083_vm13 = vcmp.eq.f32.partialorder %v11440_v47, %v7767_v9  ;;  %v5382_v55 = vsel %vm2082_vm12, 1.0, %v11341_v39  ;;  %vm2110_vm14 = vcmp.eq.f32.partialorder %v11440_v47, %v7852_v56  ;;  %2002 = vmatpush.msrb.mxu0 %v7747_v43  ;;  %2024 = vmatpush.msrb.mxu1 %v7793_v62 }
 0x15c   : > { %v5383_v44 = vsel %vm2083_vm13, 1.0, %v11341_v39  ;;  %v2102_v19 = vmul.f32 %v5382_v55, %v7783_v24  ;;  %vm2111_vm7 = vcmp.eq.f32.partialorder %v11440_v47, %v7891_v33  ;;  %v5388_v52 = vsel %vm2110_vm14, 1.0, %v11341_v39  ;;  %2041 = vmatpush.msrb.mxu2 %v7846_v23  ;;  %1959 = vmatpush.msra.mxu3 %v7796_v28  ;;  %11481 = vst [vmem:[#allocation36_spill] sm:$0xff] %v8004_v26  ;;  %v11486_v55 = vld [vmem:[#allocation27_spill] sm:$0xff] }
 0x15d   : > { %v7999_v57 = vrot.slane %v2135_v29, 7  ;;  %v2103_v6 = vmul.f32 %v5383_v44, %v7813_v22  ;;  %v5389_v43 = vsel %vm2111_vm7, 1.0, %v11341_v39  ;;  %v2130_v62 = vmul.f32 %v5388_v52, %v7907_v5  ;;  %2003 = vmatpush.msrb.mxu0 %v7789_v25  ;;  %2025 = vmatpush.msrb.mxu1 %v7806_v7  ;;  %11482 = vst [vmem:[#allocation75_spill] sm:$0xff] %v8008_v0  ;;  %v11495_v26 = vld [vmem:[#allocation31_spill] sm:$0xff] }
 0x15e   : > { %v2131_v23 = vmul.f32 %v5389_v43, %v7935_v14  ;;  %v8012_v28 = vmul.f32 %v1753_v34, %v11431_v60  ;;  %v8016_v53 = vmul.f32 %v11483_v2, %v11432_v54  ;;  %2042 = vmatpush.msrb.mxu2 %v7849_v40  ;;  %1960 = vmatpush.msra.mxu3 %v7857_v36  ;;  %v8069_v43 = vpop.f32.mrf.mxu3 }
 0x15f   : > { %v8023_v25 = vsel %vm691_vm2, %v7999_v57, %v7963_v12  ;;  %v8028_v7 = vsel %vm676_vm5, %v7963_v12, %v7999_v57  ;;  %v8033_v60 = vsel %vm673_vm0, %v7963_v12, %v7999_v57  ;;  %2004 = vmatpush.msrb.mxu0 %v7802_v4  ;;  %1930 = vmatmul.f32.vlgmr.msra.gmra.mxu1 %v7646_v63 }
 0x160   : > { %11484 = vst [vmem:[#allocation74_spill] sm:$0xff] %v8028_v7  ;;  %v11231_v54 = vrot.slane %v8023_v25, 7  ;;  %v11229_v36 = vrot.slane %v8028_v7, 2  ;;  %v11228_v40 = vrot.slane %v8033_v60, 1  ;;  %v8043_v34 = vsel %vm688_vm6, %v7963_v12, %v7999_v57  ;;  %1950 = vmatmul.f32.vlgmr.msra.gmra.mxu2 %v7513_v8  ;;  %2026 = vmatpush.msrb.mxu1 %v7818_v49 }
 0x161   : > { %11485 = vst [vmem:[#allocation24_spill] sm:$0xff] %v8033_v60  ;;  %v11230_v32 = vrot.slane %v8043_v34, 6  ;;  %v2136_v4 = vadd.f32 %v2130_v62, %v2102_v19  ;;  %v2137_v21 = vadd.f32 %v2131_v23, %v2103_v6  ;;  %v8050_v29 = vmul.f32 %v7981_v10, %v11451_v15  ;;  %2005 = vmatpush.msrb.mxu0 %v11486_v55  ;;  %v8062_v19 = vpop.f32.mrf.mxu2  ;;  %v11491_v55 = vld [vmem:[#allocation41_spill] sm:$0xff] }
 0x162   : > { %2043 = vmatpush.msrb.mxu2 %v7882_v18  ;;  %v2272_v44 = vperm.slane %v11231_v54, 0  ;;  %v8058_v52 = vperm.slane %v11229_v36, 0  ;;  %v2260_v49 = vperm.slane %v11228_v40, 0  ;;  %11487 = vst [vmem:[#allocation72_spill] sm:$0xff] %v8062_v19  ;;  %v8067_v6 = vsel %vm671_vm4, %v7963_v12, %v7999_v57  ;;  %1961 = vmatpush.msra.mxu3 %v7860_v37  ;;  %v11492_v37 = vld [vmem:[#allocation39_spill] sm:$0xff]  ;;  %v11494_v54 = vld [vmem:[#allocation37_spill] sm:$0xff]  ;;  %v8118_v47 = vpop.f32.mrf.mxu1 }
 0x163   : > { %11488 = vst [vmem:[#allocation27_spill] sm:$0xff] %v8067_v6  ;;  %2027 = vmatpush.msrb.mxu1 %v7831_v13  ;;  %v2270_v18 = vperm.slane %v11230_v32, 0  ;;  %v2208_v62 = vrot.slane %v2137_v21, 7  ;;  %v2258_v23 = vperm.slane %v8067_v6, 0  ;;  %v8079_v2 = vsel %vm685_vm10, %v7963_v12, %v7999_v57  ;;  %2006 = vmatpush.msrb.mxu0 %v7827_v31  ;;  %v11493_v32 = vld [vmem:[#allocation33_spill] sm:$0xff]  ;;  %v11499_v6 = vld [vmem:[#allocation80_spill] sm:$0xff] }
 0x164   : > { %11489 = vst [vmem:[#allocation82_spill] sm:$0xff] %v8069_v43  ;;  %2044 = vmatpush.msrb.mxu2 %v7885_v51  ;;  %v2408_v40 = vmul.f32 %v2272_v44, %v11491_v55  ;;  %v2376_v13 = vmul.f32 %v8058_v52, %v11492_v37  ;;  %v2406_v36 = vmul.f32 %v2272_v44, %v11492_v37 }
 0x165   : > { %11490 = vst [vmem:[#allocation83_spill] sm:$0xff] %v8079_v2  ;;  %1962 = vmatpush.msra.mxu3 %v7863_v20  ;;  %2028 = vmatpush.msrb.mxu1 %v11493_v32  ;;  %v2374_v43 = vmul.f32 %v8058_v52, %v11494_v54  ;;  %v2404_v31 = vmul.f32 %v2272_v44, %v11494_v54  ;;  %v11496_v32 = vrot.slane %v8079_v2, 5  ;;  %v11497_v44 = vld [vmem:[#allocation81_spill] sm:$0xff] }
 0x166   : > { %v8094_v51 = vmul.f32 %v2260_v49, %v11491_v55  ;;  %2007 = vmatpush.msrb.mxu0 %v11495_v26  ;;  %2045 = vmatpush.msrb.mxu2 %v7888_v46  ;;  %v8099_v0 = vmul.f32 %v2270_v18, %v11491_v55  ;;  %v2240_v21 = vsel %vm673_vm0, %v2136_v4, %v2208_v62  ;;  %v8174_v7 = vpop.f32.mrf.mxu3 }
 0x167   : > { %v8103_v20 = vmul.f32 %v2260_v49, %v11492_v37  ;;  %v2268_v19 = vperm.slane %v11496_v32, 0  ;;  %1963 = vmatpush.msra.mxu3 %v7896_v16  ;;  %2029 = vmatpush.msrb.mxu1 %v11497_v44  ;;  %v2241_v42 = vrot.slane %v2240_v21, 1  ;;  %v8110_v26 = vmul.f32 %v2270_v18, %v11492_v37  ;;  %11498 = vst [vmem:[#allocation41_spill] sm:$0xff] %v8118_v47  ;;  %v8122_v32 = vpop.f32.mrf.mxu0  ;;  %v11501_v44 = vld [vmem:[#allocation73_spill] sm:$0xff] }
 0x168   : > { %v8113_v46 = vmul.f32 %v2260_v49, %v11494_v54  ;;  %v8116_v41 = vmul.f32 %v2270_v18, %v11494_v54  ;;  %2008 = vmatpush.msrb.mxu0 %v11499_v6  ;;  %2046 = vmatpush.msrb.mxu2 %v7948_v59  ;;  %11500 = vst [vmem:[#allocation39_spill] sm:$0xff] %v8122_v32  ;;  %v1764_v60 = vperm.slane %v11501_v44, 1  ;;  %v11502_v44 = vld [vmem:[#allocation7_spill] sm:$0xff] }
 0x169   : > { %v8125_v16 = vmul.f32 %v2258_v23, %v11491_v55  ;;  %v8128_v21 = vmul.f32 %v2268_v19, %v11491_v55  ;;  %v2239_v49 = vsel %vm671_vm4, %v2136_v4, %v2208_v62  ;;  %1964 = vmatpush.msra.mxu3 %v7904_v48  ;;  %2465 = vmatpush.msra.mxu1 %v2408_v40  ;;  %v2276_v18 = vperm.slane %v2241_v42, 0 }
 0x16a   : > { %v2274_v47 = vperm.slane %v2239_v49, 0  ;;  %v8135_v59 = vmul.f32 %v7981_v10, %v11447_v30  ;;  %v8138_v6 = vmul.f32 %v2258_v23, %v11492_v37  ;;  %2009 = vmatpush.msrb.mxu0 %v7940_v1  ;;  %2030 = vmatmul.f32.vlgmr.msrb.gmra.mxu1 %v7513_v8  ;;  %v8143_v4 = vmul.f32 %v2268_v19, %v11492_v37 }
 0x16b   : > { %v8147_v48 = vmul.f32 %v7981_v10, %v11449_v3  ;;  %v8150_v40 = vmul.f32 %v2258_v23, %v11494_v54  ;;  %2047 = vmatpush.msrb.mxu2 %v7951_v58  ;;  %1965 = vmatpush.msra.mxu3 %v7943_v11  ;;  %v2420_v62 = vmul.f32 %v2276_v18, %v11491_v55  ;;  %v8160_v32 = vperm.slane %v11502_v44, 4  ;;  %v8172_v23 = vpop.f32.mrf.mxu2  ;;  %v11505_v44 = vld [vmem:[#allocation5_spill] sm:$0xff] }
 0x16c   : > { %v2418_v1 = vmul.f32 %v2276_v18, %v11492_v37  ;;  %v8157_v8 = vmul.f32 %v2276_v18, %v11494_v54  ;;  %2010 = vmatmul.f32.vlgmr.msrb.gmra.mxu0 %v7646_v63  ;;  %2466 = vmatpush.msra.mxu1 %v2406_v36  ;;  %v8164_v10 = vmul.f32 %v2274_v47, %v11491_v55  ;;  %v2277_v18 = vperm.slane %v2241_v42, 1 }
 0x16d   : > { %v8167_v58 = vmul.f32 %v2274_v47, %v11492_v37  ;;  %v8170_v11 = vmul.f32 %v2268_v19, %v11494_v54  ;;  %11503 = vst [vmem:[#allocation33_spill] sm:$0xff] %v8172_v23  ;;  %2445 = vmatpush.msra.mxu0 %v2376_v13  ;;  %2048 = vmatpush.msrb.mxu2 %v7954_v61  ;;  %v11506_v19 = vrot.slane %v8023_v25, 7  ;;  %v11508_v25 = vld [vmem:[#allocation6_spill] sm:$0xff] }
 0x16e   : > { %11504 = vst [vmem:[#allocation37_spill] sm:$0xff] %v8174_v7  ;;  %v8178_v63 = vmul.f32 %v2274_v47, %v11494_v54  ;;  %v8181_v36 = vmul.f32 %v1764_v60, %v11451_v15  ;;  %vm2078_vm8 = vcmp.eq.f32.partialorder %v11505_v44, %v7727_v50  ;;  %1966 = vmatpush.msra.mxu3 %v7972_v38 }
 0x16f   : > { %v2273_v2 = vperm.slane %v11506_v19, 1  ;;  %2467 = vmatpush.msra.mxu1 %v2404_v31  ;;  %vm2079_vm9 = vcmp.eq.f32.partialorder %v11505_v44, %v7767_v9  ;;  %v5378_v61 = vsel %vm2078_vm8, 1.0, %v11341_v39  ;;  %vm2106_vm11 = vcmp.eq.f32.partialorder %v11505_v44, %v7852_v56  ;;  %2446 = vmatpush.msra.mxu0 %v2374_v43  ;;  %v11507_v9 = vld [vmem:[#allocation78_spill] sm:$0xff]  ;;  %v8226_v43 = vpop.f32.mrf.mxu0 }
 0x170   : > { %vm2107_vm12 = vcmp.eq.f32.partialorder %v11505_v44, %v7891_v33  ;;  %2049 = vmatpush.msrb.mxu2 %v7967_v27  ;;  %v5379_v47 = vsel %vm2079_vm9, 1.0, %v11341_v39  ;;  %v2098_v15 = vmul.f32 %v5378_v61, %v7783_v24  ;;  %v5384_v50 = vsel %vm2106_vm11, 1.0, %v11341_v39  ;;  %1967 = vmatpush.msra.mxu3 %v7975_v45  ;;  %11510 = vst [vmem:[#allocation81_spill] sm:$0xff] %v8226_v43 }
 0x171   : > { %v5385_v42 = vsel %vm2107_vm12, 1.0, %v11341_v39  ;;  %2050 = vmatmul.f32.vlgmr.msrb.gmra.mxu2 %v11507_v9  ;;  %v2099_v56 = vmul.f32 %v5379_v47, %v7813_v22  ;;  %v2126_v38 = vmul.f32 %v5384_v50, %v7907_v5  ;;  %v8206_v27 = vperm.slane %v11508_v25, 4  ;;  %2447 = vmatpush.msra.mxu0 %v8094_v51  ;;  %v8221_v5 = vpop.f32.mrf.mxu1  ;;  %v8289_v47 = vpop.f32.mrf.mxu3 }
 0x172   : > { %v2127_v33 = vmul.f32 %v5385_v42, %v7935_v14  ;;  %2468 = vmatpush.msra.mxu1 %v8099_v0  ;;  %v8213_v24 = vsel %vm682_vm15, %v7963_v12, %v7999_v57  ;;  %v8216_v45 = vmul.f32 %v1764_v60, %v11447_v30  ;;  %v8219_v22 = vmul.f32 %v1764_v60, %v11449_v3  ;;  %v11511_v60 = vld [vmem:[#allocation42_spill] sm:$0xff] }
 0x173   : > { %11509 = vst [vmem:[#allocation31_spill] sm:$0xff] %v8221_v5  ;;  %v8223_v14 = vperm.slane %v2239_v49, 1  ;;  %2495 = vmatpush.msra.mxu2 %v2420_v62  ;;  %1968 = vmatpush.msra.mxu3 %v8012_v28  ;;  %v8228_v0 = vadd.f32 %v2126_v38, %v2098_v15  ;;  %v11247_v31 = vrot.slane %v8213_v24, 4  ;;  %v8234_v30 = vsel %vm679_vm3, %v7963_v12, %v7999_v57  ;;  %v11516_v15 = vld [vmem:[#allocation15_spill] sm:$0xff] }
 0x174   : > { %v2133_v13 = vadd.f32 %v2127_v33, %v2099_v56  ;;  %2448 = vmatpush.msra.mxu0 %v8103_v20  ;;  %2469 = vmatpush.msra.mxu1 %v8110_v26  ;;  %v11246_v3 = vrot.slane %v8234_v30, 3  ;;  %v8241_v28 = vmul.f32 %v8058_v52, %v11491_v55  ;;  %v8244_v51 = vmul.f32 %v2277_v18, %v11511_v60  ;;  %v11512_v20 = vld [vmem:[#allocation40_spill] sm:$0xff]  ;;  %v11519_v5 = vld [vmem:[#allocation79_spill] sm:$0xff] }
 0x175   : > { %v8247_v49 = vmul.f32 %v2273_v2, %v11511_v60  ;;  %2496 = vmatpush.msra.mxu2 %v2418_v1  ;;  %1969 = vmatpush.msra.mxu3 %v8016_v53  ;;  %v2266_v57 = vperm.slane %v11247_v31, 0  ;;  %v8255_v26 = vmul.f32 %v2277_v18, %v11512_v20  ;;  %v8258_v52 = vmul.f32 %v2273_v2, %v11512_v20  ;;  %v11513_v53 = vld [vmem:[#allocation38_spill] sm:$0xff] }
 0x176   : > { %v8250_v12 = vrot.slane %v2133_v13, 7  ;;  %2449 = vmatpush.msra.mxu0 %v8113_v46  ;;  %2470 = vmatpush.msra.mxu1 %v8116_v41  ;;  %v8264_v62 = vperm.slane %v11246_v3, 0  ;;  %v8267_v1 = vmul.f32 %v2277_v18, %v11513_v53  ;;  %v8270_v19 = vmul.f32 %v2273_v2, %v11513_v53  ;;  %v8287_v18 = vpop.f32.mrf.mxu2  ;;  %11515 = vst [vmem:[#allocation73_spill] sm:$0xff] %v8289_v47 }
 0x177   : > { %v8274_v61 = vmul.f32 %v8223_v14, %v11511_v60  ;;  %2497 = vmatpush.msra.mxu2 %v8157_v8  ;;  %1970 = vmatmul.f32.vlgmr.msra.gmra.mxu3 %v11507_v9  ;;  %v2390_v2 = vmul.f32 %v2266_v57, %v11491_v55  ;;  %11514 = vst [vmem:[#allocation80_spill] sm:$0xff] %v8287_v18  ;;  %v8292_v50 = vperm.slane %v11516_v15, 4  ;;  %v8344_v31 = vpop.f32.mrf.mxu0  ;;  %v11520_v43 = vrot.slane %v8043_v34, 6  ;;  %v11522_v15 = vld [vmem:[#allocation16_spill] sm:$0xff] }
 0x178   : > { %v2218_v41 = vsel %vm685_vm10, %v8228_v0, %v8250_v12  ;;  %v8284_v46 = vsel %vm691_vm2, %v8250_v12, %v8228_v0  ;;  %2064 = vmatpush.msrb.mxu3 %v8050_v29  ;;  %2450 = vmatpush.msra.mxu0 %v8125_v16  ;;  %v2216_v9 = vsel %vm682_vm15, %v8228_v0, %v8250_v12 }
 0x179   : > { %v2219_v8 = vrot.slane %v2218_v41, 5  ;;  %v11245_v42 = vrot.slane %v8284_v46, 7  ;;  %v2388_v56 = vmul.f32 %v2266_v57, %v11492_v37  ;;  %2471 = vmatpush.msra.mxu1 %v8128_v21  ;;  %2498 = vmatpush.msra.mxu2 %v8164_v10  ;;  %v2217_v38 = vrot.slane %v2216_v9, 4  ;;  %11518 = vst [vmem:[#allocation42_spill] sm:$0xff] %v8344_v31 }
 0x17a   : > { %v8304_v33 = vmul.f32 %v2266_v57, %v11494_v54  ;;  %v8309_v29 = vsel %vm688_vm6, %v8228_v0, %v8250_v12  ;;  %v8313_v16 = vmul.f32 %v8264_v62, %v11491_v55  ;;  %2065 = vmatpush.msrb.mxu3 %v8135_v59  ;;  %2451 = vmatpush.msra.mxu0 %v8138_v6  ;;  %v8354_v18 = vperm.slane %v11520_v43, 1 }
 0x17b   : > { %v8317_v21 = vperm.slane %v2219_v8, 1  ;;  %v2256_v10 = vperm.slane %v11245_v42, 0  ;;  %v2252_v13 = vperm.slane %v2219_v8, 0  ;;  %v11250_v57 = vrot.slane %v8309_v29, 6  ;;  %2472 = vmatpush.msra.mxu1 %v8143_v4  ;;  %2499 = vmatpush.msra.mxu2 %v8167_v58  ;;  %v1279_v42 = vpop.f32.mrf.mxu1 }
 0x17c   : > { %v2251_v41 = vperm.slane %v2217_v38, 1  ;;  %v2250_v9 = vperm.slane %v2217_v38, 0  ;;  %v2214_v59 = vsel %vm679_vm3, %v8228_v0, %v8250_v12  ;;  %v8329_v6 = vmul.f32 %v8264_v62, %v11492_v37  ;;  %2066 = vmatpush.msrb.mxu3 %v8147_v48  ;;  %2452 = vmatpush.msra.mxu0 %v8150_v40 }
 0x17d   : > { %11517 = vst [vmem:[#allocation78_spill] sm:$0xff] %v8317_v21  ;;  %v2345_v8 = vmul.f32 %v8317_v21, %v11513_v53  ;;  %v2360_v4 = vmul.f32 %v2256_v10, %v11491_v55  ;;  %v2358_v58 = vmul.f32 %v2256_v10, %v11492_v37  ;;  %v2254_v38 = vperm.slane %v11250_v57, 0  ;;  %2473 = vmatpush.msra.mxu1 %v8170_v11 }
 0x17e   : > { %2500 = vmatpush.msra.mxu2 %v8178_v63  ;;  %v2343_v3 = vmul.f32 %v2251_v41, %v11511_v60  ;;  %v2341_v48 = vmul.f32 %v2251_v41, %v11512_v20  ;;  %v2344_v40 = vmul.f32 %v2252_v13, %v11494_v54  ;;  %v2215_v47 = vrot.slane %v2214_v59, 3  ;;  %2067 = vmatpush.msrb.mxu3 %v8181_v36 }
 0x17f   : > { %5402 = vmatmul.msk.f32.vlgmr.msra.gmra.mxu2 %vm1238_vm1, %v11519_v5  ;;  %v2356_v57 = vmul.f32 %v2256_v10, %v11494_v54  ;;  %v2339_v11 = vmul.f32 %v2251_v41, %v11513_v53  ;;  %v2342_v63 = vmul.f32 %v2250_v9, %v11491_v55  ;;  %2453 = vmatpush.msra.mxu0 %v2360_v4 }
 0x180   : > { %2505 = vmatpush.msrb.mxu2 %v2345_v8  ;;  %v2354_v31 = vmul.f32 %v2254_v38, %v11491_v55  ;;  %v2249_v59 = vperm.slane %v2215_v47, 1  ;;  %v2340_v36 = vmul.f32 %v2250_v9, %v11492_v37  ;;  %v2352_v7 = vmul.f32 %v2254_v38, %v11492_v37  ;;  %2474 = vmatpush.msra.mxu1 %v2390_v2  ;;  %v8369_v2 = vpop.f32.mrf.mxu2 }
 0x181   : > { %2068 = vmatpush.msrb.mxu3 %v8216_v45  ;;  %v2338_v10 = vmul.f32 %v2250_v9, %v11494_v54  ;;  %v2350_v41 = vmul.f32 %v2254_v38, %v11494_v54  ;;  %v8364_v34 = vmul.f32 %v8264_v62, %v11494_v54  ;;  %v2248_v43 = vperm.slane %v2215_v47, 0  ;;  %2454 = vmatpush.msra.mxu0 %v2358_v58  ;;  %v1259_v45 = vpop.f32.mrf.mxu3  ;;  %v11523_v58 = vld [vmem:[#allocation11_spill] sm:$0xff] }
 0x182   : > { %2506 = vmatpush.msrb.mxu2 %v2343_v3  ;;  %v2337_v8 = vmul.f32 %v2249_v59, %v11511_v60  ;;  %v2335_v4 = vmul.f32 %v2249_v59, %v11512_v20  ;;  %v2333_v23 = vmul.f32 %v2249_v59, %v11513_v53  ;;  %11521 = vst [vmem:[#allocation40_spill] sm:$0xff] %v8369_v2  ;;  %v8372_v9 = vperm.slane %v11522_v15, 4 }
 0x183   : > { %2475 = vmatpush.msra.mxu1 %v2388_v56  ;;  %2069 = vmatpush.msrb.mxu3 %v8219_v22  ;;  %v2336_v62 = vmul.f32 %v2248_v43, %v11491_v55  ;;  %v2348_v3 = vmul.f32 %v2252_v13, %v11491_v55  ;;  %v2212_v47 = vsel %vm676_vm5, %v8228_v0, %v8250_v12  ;;  %v8381_v38 = vperm.slane %v11523_v58, 4 }
 0x184   : > { %2507 = vmatpush.msrb.mxu2 %v2341_v48  ;;  %5377 = vmatmul.msk.f32.vlgmr.msrb.gmra.mxu3 %vm1238_vm1, %v7571_v35  ;;  %v2213_v59 = vrot.slane %v2212_v47, 2  ;;  %v8386_v56 = vmul.f32 %v2248_v43, %v11492_v37  ;;  %v8389_v22 = vmul.f32 %v2252_v13, %v11492_v37  ;;  %v8392_v2 = vmul.f32 %v2248_v43, %v11494_v54  ;;  %v11524_v47 = vld [vmem:[#allocation12_spill] sm:$0xff] }
 0x185   : > { %2425 = vmatpush.msra.mxu3 %v2344_v40  ;;  %2455 = vmatpush.msra.mxu0 %v2356_v57  ;;  %v2210_v58 = vsel %vm673_vm0, %v8228_v0, %v8250_v12  ;;  %v8397_v48 = vadd.f32 %v1279_v42, %v1259_v45  ;;  %v8401_v35 = vmul.f32 %v8354_v18, %v11511_v60  ;;  %v8404_v15 = vperm.slane %v11524_v47, 4  ;;  %v1359_v42 = vpop.f32.mrf.mxu1 }
 0x186   : > { %2476 = vmatpush.msra.mxu1 %v8304_v33  ;;  %2508 = vmatpush.msrb.mxu2 %v2339_v11  ;;  %v2247_v13 = vperm.slane %v2213_v59, 1  ;;  %v2246_v43 = vperm.slane %v2213_v59, 0  ;;  %v2211_v40 = vrot.slane %v2210_v58, 1  ;;  %v8409_v57 = vmul.f32 %v8223_v14, %v11512_v20  ;;  %v11525_v33 = vld [vmem:[#allocation20_spill] sm:$0xff] }
 0x187   : > { %2426 = vmatpush.msra.mxu3 %v2342_v63  ;;  %2456 = vmatpush.msra.mxu0 %v2354_v31  ;;  %v8413_v45 = vmul.f32 %v8354_v18, %v11512_v20  ;;  %v8417_v47 = vmul.f32 %v8223_v14, %v11513_v53  ;;  %vm2589_vm13 = vcmp.eq.f32.partialorder %v11505_v44, %v8206_v27  ;;  %v8422_v11 = vperm.slane %v11525_v33, 4  ;;  %v1339_v63 = vpop.f32.mrf.mxu0 }
 0x188   : > { %2477 = vmatpush.msra.mxu1 %v8313_v16  ;;  %2509 = vmatpush.msrb.mxu2 %v2337_v8  ;;  %v2331_v31 = vmul.f32 %v2247_v13, %v11511_v60  ;;  %v2329_v58 = vmul.f32 %v2247_v13, %v11512_v20  ;;  %v8428_v59 = vmul.f32 %v2247_v13, %v11513_v53  ;;  %v2245_v25 = vperm.slane %v2211_v40, 1 }
 0x189   : > { %2427 = vmatpush.msra.mxu3 %v2340_v36  ;;  %2457 = vmatpush.msra.mxu0 %v2352_v7  ;;  %v8431_v14 = vmul.f32 %v2246_v43, %v11491_v55  ;;  %v8434_v33 = vmul.f32 %v2246_v43, %v11492_v37  ;;  %v8436_v21 = vadd.f32 %v1359_v42, %v1339_v63  ;;  %v8439_v16 = vperm.slane %v11477_v17, 4 }
 0x18a   : > { %2478 = vmatpush.msra.mxu1 %v8329_v6  ;;  %2510 = vmatpush.msrb.mxu2 %v2335_v4  ;;  %v8443_v8 = vmul.f32 %v2245_v25, %v11511_v60  ;;  %v8446_v36 = vmul.f32 %v2245_v25, %v11512_v20  ;;  %v2244_v7 = vperm.slane %v2211_v40, 0  ;;  %v5404_v13 = vsel %vm2589_vm13, 1.0, %v11341_v39  ;;  %v11526_v4 = vld [vmem:[#allocation83_spill] sm:$0xff] }
 0x18b   : > { %2428 = vmatpush.msra.mxu3 %v2338_v10  ;;  %2458 = vmatpush.msra.mxu0 %v2350_v41  ;;  %v8453_v42 = vmul.f32 %v2246_v43, %v11494_v54  ;;  %v8456_v6 = vmul.f32 %v2245_v25, %v11513_v53  ;;  %vm2590_vm14 = vcmp.eq.f32.partialorder %v11505_v44, %v8160_v32  ;;  %v11527_v63 = vrot.slane %v11526_v4, 5  ;;  %v1299_v25 = vpop.f32.mrf.mxu2 }
 0x18c   : > { %2479 = vmatpush.msra.mxu1 %v8364_v34  ;;  %2511 = vmatpush.msrb.mxu2 %v2333_v23  ;;  %v5405_v40 = vsel %vm2590_vm14, 1.0, %v11341_v39  ;;  %v2609_v10 = vmul.f32 %v5404_v13, %v8292_v50  ;;  %vm2617_vm7 = vcmp.eq.f32.partialorder %v11505_v44, %v8381_v38  ;;  %vm2618_vm8 = vcmp.eq.f32.partialorder %v11505_v44, %v8404_v15 }
 0x18d   : > { %v8462_v17 = vperm.slane %v11527_v63, 1  ;;  %2429 = vmatpush.msra.mxu3 %v2336_v62  ;;  %2459 = vmatpush.msra.mxu0 %v2348_v3  ;;  %v2610_v41 = vmul.f32 %v5405_v40, %v8372_v9  ;;  %v5410_v43 = vsel %vm2617_vm7, 1.0, %v11341_v39  ;;  %v5411_v34 = vsel %vm2618_vm8, 1.0, %v11341_v39  ;;  %v1319_v63 = vpop.f32.mrf.mxu3  ;;  %v11528_v40 = vld [vmem:[#allocation30_spill] sm:$0xff] }
 0x18e   : > { %v2209_v23 = vsel %vm671_vm4, %v8228_v0, %v8250_v12  ;;  %2480 = vmatpush.msra.mxu1 %v8241_v28  ;;  %2512 = vmatpush.msrb.mxu2 %v2331_v31  ;;  %v8479_v13 = vmul.f32 %v2244_v7, %v11491_v55  ;;  %v2637_v4 = vmul.f32 %v5410_v43, %v8422_v11 }
 0x18f   : > { %v2638_v62 = vmul.f32 %v5411_v34, %v8439_v16  ;;  %v2243_v3 = vperm.slane %v2209_v23, 1  ;;  %2481 = vmatmul.f32.vlgmr.msra.gmra.mxu1 %v11528_v40  ;;  %2430 = vmatpush.msra.mxu3 %v8386_v56  ;;  %v8487_v44 = vmul.f32 %v8354_v18, %v11513_v53  ;;  %v1300_v0 = vadd.f32 %v1299_v25, %v8397_v48  ;;  %v11530_v34 = vld [vmem:[#allocation77_spill] sm:$0xff] }
 0x190   : > { %v8491_v28 = vmul.f32 %v2244_v7, %v11492_v37  ;;  %2575 = vmatpush.msrb.mxu1 %v8244_v51  ;;  %2460 = vmatpush.msra.mxu0 %v8389_v22  ;;  %v8495_v12 = vadd.f32 %v2637_v4, %v2609_v10  ;;  %v8499_v43 = vmul.f32 %v8462_v17, %v11511_v60  ;;  %v11529_v56 = vrot.slane %v8213_v24, 4 }
 0x191   : > { %v2644_v31 = vadd.f32 %v2638_v62, %v2610_v41  ;;  %2461 = vmatmul.f32.vlgmr.msra.gmra.mxu0 %v11530_v34  ;;  %2513 = vmatpush.msrb.mxu2 %v2329_v58  ;;  %v8507_v48 = vmul.f32 %v2243_v3, %v11511_v60  ;;  %v8510_v51 = vmul.f32 %v2243_v3, %v11512_v20  ;;  %v2242_v10 = vperm.slane %v2209_v23, 0 }
 0x192   : > { %v8503_v18 = vperm.slane %v11529_v56, 1  ;;  %v8512_v22 = vadd.f32 %v1319_v63, %v1300_v0  ;;  %2545 = vmatpush.msrb.mxu0 %v8247_v49  ;;  %2576 = vmatpush.msrb.mxu1 %v8255_v26  ;;  %v8519_v24 = vmul.f32 %v2244_v7, %v11494_v54  ;;  %v8522_v58 = vmul.f32 %v2243_v3, %v11513_v53  ;;  %v11532_v49 = vld [vmem:[#allocation10_spill] sm:$0xff] }
 0x193   : > { %v8516_v25 = vrot.slane %v2644_v31, 7  ;;  %v8526_v41 = vmul.f32 %v8462_v17, %v11512_v20  ;;  %2431 = vmatpush.msra.mxu3 %v8392_v2  ;;  %2514 = vmatpush.msrb.mxu2 %v8428_v59  ;;  %vm2591_vm9 = vcmp.eq.f32.partialorder %v11532_v49, %v8206_v27  ;;  %vm2592_vm11 = vcmp.eq.f32.partialorder %v11532_v49, %v8160_v32  ;;  %v11533_v26 = vld [vmem:[#allocation74_spill] sm:$0xff]  ;;  %v1379_v56 = vpop.f32.mrf.mxu2 }
 0x194   : > { %11531 = vst [vmem:[#allocation38_spill] sm:$0xff] %v8512_v22  ;;  %vm2619_vm12 = vcmp.eq.f32.partialorder %v11532_v49, %v8381_v38  ;;  %v11534_v7 = vrot.slane %v11533_v26, 2  ;;  %2546 = vmatpush.msrb.mxu0 %v8258_v52  ;;  %2577 = vmatpush.msrb.mxu1 %v8267_v1  ;;  %v5406_v4 = vsel %vm2591_vm9, 1.0, %v11341_v39  ;;  %v5407_v62 = vsel %vm2592_vm11, 1.0, %v11341_v39  ;;  %v11535_v26 = vld [vmem:[#allocation24_spill] sm:$0xff] }
 0x195   : > { %v8545_v2 = vsel %vm685_vm10, %v8495_v12, %v8516_v25  ;;  %v8550_v59 = vsel %vm682_vm15, %v8495_v12, %v8516_v25  ;;  %2432 = vmatpush.msra.mxu3 %v8431_v14  ;;  %2515 = vmatpush.msrb.mxu2 %v8443_v8  ;;  %v8559_v3 = vmul.f32 %v2242_v10, %v11491_v55  ;;  %v5412_v14 = vsel %vm2619_vm12, 1.0, %v11341_v39 }
 0x196   : > { %v8538_v23 = vperm.slane %v11534_v7, 1  ;;  %v11262_v52 = vrot.slane %v8545_v2, 5  ;;  %v11261_v1 = vrot.slane %v8550_v59, 4  ;;  %v2611_v63 = vmul.f32 %v5406_v4, %v8292_v50  ;;  %2547 = vmatpush.msrb.mxu0 %v8270_v19  ;;  %2578 = vmatpush.msrb.mxu1 %v8274_v61 }
 0x197   : > { %v2612_v0 = vmul.f32 %v5407_v62, %v8372_v9  ;;  %vm2620_vm13 = vcmp.eq.f32.partialorder %v11532_v49, %v8404_v15  ;;  %v8573_v55 = vmul.f32 %v8462_v17, %v11513_v53  ;;  %2433 = vmatpush.msra.mxu3 %v8434_v33  ;;  %2516 = vmatpush.msrb.mxu2 %v8446_v36  ;;  %v11536_v7 = vrot.slane %v11535_v26, 1  ;;  %v11538_v62 = vld [vmem:[#allocation47_spill] sm:$0xff]  ;;  %v11539_v26 = vld [vmem:[#allocation45_spill] sm:$0xff] }
 0x198   : > { %v8579_v19 = vperm.slane %v11262_v52, 0  ;;  %v2761_v61 = vperm.slane %v11261_v1, 0  ;;  %v5413_v8 = vsel %vm2620_vm13, 1.0, %v11341_v39  ;;  %v2639_v31 = vmul.f32 %v5412_v14, %v8422_v11  ;;  %2548 = vmatpush.msrb.mxu0 %v8401_v35  ;;  %2579 = vmatpush.msrb.mxu1 %v8409_v57  ;;  %v11537_v35 = vld [vmem:[#allocation43_spill] sm:$0xff]  ;;  %v1399_v1 = vpop.f32.mrf.mxu3 }
 0x199   : > { %v2640_v17 = vmul.f32 %v5413_v8, %v8439_v16  ;;  %v8589_v33 = vmul.f32 %v2242_v10, %v11492_v37  ;;  %v8594_v36 = vsel %vm679_vm3, %v8495_v12, %v8516_v25  ;;  %v2261_v4 = vperm.slane %v11536_v7, 1  ;;  %2434 = vmatpush.msra.mxu3 %v8453_v42  ;;  %2517 = vmatpush.msrb.mxu2 %v8456_v6 }
 0x19a   : > { %v2855_v57 = vmul.f32 %v8579_v19, %v11537_v35  ;;  %v2853_v14 = vmul.f32 %v2761_v61, %v11538_v62  ;;  %v8606_v8 = vmul.f32 %v8503_v18, %v11511_v60  ;;  %2549 = vmatpush.msrb.mxu0 %v8413_v45  ;;  %2580 = vmatpush.msrb.mxu1 %v8417_v47  ;;  %v11540_v52 = vrot.slane %v8234_v30, 3 }
 0x19b   : > { %v2851_v7 = vmul.f32 %v2761_v61, %v11539_v26  ;;  %v8611_v42 = vadd.f32 %v2639_v31, %v2611_v63  ;;  %v2646_v6 = vadd.f32 %v2640_v17, %v2612_v0  ;;  %2435 = vmatpush.msra.mxu3 %v8479_v13  ;;  %5403 = vmatmul.msk.f32.vlgmr.msrb.gmra.mxu1 %vm1238_vm1, %v11519_v5  ;;  %v11541_v45 = vrot.slane %v8594_v36, 3 }
 0x19c   : > { %v2265_v49 = vperm.slane %v11540_v52, 1  ;;  %v2849_v37 = vmul.f32 %v2761_v61, %v11537_v35  ;;  %v1380_v47 = vadd.f32 %v1379_v56, %v8436_v21  ;;  %v2314_v63 = vmul.f32 %v2242_v10, %v11494_v54  ;;  %2936 = vmatpush.msra.mxu1 %v2855_v57  ;;  %2518 = vmatpush.msrb.mxu2 %v8507_v48 }
 0x19d   : > { %v2759_v34 = vperm.slane %v11541_v45, 0  ;;  %v8624_v0 = vrot.slane %v2646_v6, 7  ;;  %v8628_v30 = vmul.f32 %v8538_v23, %v11512_v20  ;;  %v8632_v5 = vmul.f32 %v8503_v18, %v11512_v20  ;;  %2550 = vmatpush.msrb.mxu0 %v8487_v44  ;;  %2436 = vmatpush.msra.mxu3 %v8491_v28  ;;  %v11543_v28 = vld [vmem:[#allocation27_spill] sm:$0xff] }
 0x19e   : > { %v8636_v13 = vmul.f32 %v8538_v23, %v11513_v53  ;;  %v8641_v21 = vadd.f32 %v1399_v1, %v1380_v47  ;;  %v8645_v48 = vmul.f32 %v8503_v18, %v11513_v53  ;;  %2937 = vmatpush.msra.mxu1 %v2853_v14  ;;  %2519 = vmatpush.msrb.mxu2 %v8510_v51  ;;  %v8658_v1 = vperm.slane %v11543_v28, 1 }
 0x19f   : > { %11542 = vst [vmem:[#allocation79_spill] sm:$0xff] %v8624_v0  ;;  %v2847_v54 = vmul.f32 %v2759_v34, %v11538_v62  ;;  %v2738_v10 = vsel %vm676_vm5, %v8611_v42, %v8624_v0  ;;  %v2845_v52 = vmul.f32 %v2759_v34, %v11539_v26  ;;  %v8655_v44 = vsel %vm673_vm0, %v8611_v42, %v8624_v0 }
 0x1a0   : > { %2551 = vmatpush.msrb.mxu0 %v8499_v43  ;;  %2437 = vmatpush.msra.mxu3 %v8519_v24  ;;  %v2739_v18 = vrot.slane %v2738_v10, 2  ;;  %v11265_v51 = vrot.slane %v8655_v44, 1  ;;  %v2843_v61 = vmul.f32 %v2759_v34, %v11537_v35  ;;  %v8667_v31 = vsel %vm676_vm5, %v8495_v12, %v8516_v25 }
 0x1a1   : > { %2938 = vmatpush.msra.mxu1 %v2851_v7  ;;  %2520 = vmatpush.msrb.mxu2 %v8522_v58  ;;  %v11264_v17 = vrot.slane %v8667_v31, 2  ;;  %v8672_v56 = vmul.f32 %v2261_v4, %v11511_v60  ;;  %v8675_v43 = vmul.f32 %v2265_v49, %v11511_v60  ;;  %v8680_v34 = vsel %vm671_vm4, %v8611_v42, %v8624_v0  ;;  %v11545_v7 = vld [vmem:[#allocation29_spill] sm:$0xff] }
 0x1a2   : > { %2552 = vmatpush.msrb.mxu0 %v8526_v41  ;;  %2438 = vmatpush.msra.mxu3 %v8559_v3  ;;  %v8684_v24 = vperm.slane %v2739_v18, 0  ;;  %v2771_v58 = vperm.slane %v11265_v51, 0  ;;  %v2769_v57 = vperm.slane %v8680_v34, 0  ;;  %v8690_v14 = vmul.f32 %v2261_v4, %v11512_v20 }
 0x1a3   : > { %2521 = vmatmul.f32.vlgmr.msrb.gmra.mxu2 %v11545_v7  ;;  %2939 = vmatpush.msra.mxu1 %v2849_v37  ;;  %v2757_v6 = vperm.slane %v11264_v17, 0  ;;  %v8696_v41 = vmul.f32 %v2265_v49, %v11512_v20  ;;  %v8699_v3 = vmul.f32 %v2261_v4, %v11513_v53  ;;  %v8704_v45 = vsel %vm673_vm0, %v8495_v12, %v8516_v25 }
 0x1a4   : > { %11544 = vst [vmem:[#allocation83_spill] sm:$0xff] %v8684_v24  ;;  %v2887_v47 = vmul.f32 %v8684_v24, %v11539_v26  ;;  %2553 = vmatpush.msrb.mxu0 %v8573_v55  ;;  %2439 = vmatpush.msra.mxu3 %v8589_v33  ;;  %v2885_v37 = vmul.f32 %v8684_v24, %v11537_v35  ;;  %v2722_v4 = vrot.slane %v8704_v45, 1 }
 0x1a5   : > { %v8713_v10 = vmul.f32 %v2265_v49, %v11513_v53  ;;  %2940 = vmatpush.msra.mxu1 %v2847_v54  ;;  %v2883_v28 = vmul.f32 %v2771_v58, %v11538_v62  ;;  %v2881_v17 = vmul.f32 %v2771_v58, %v11539_v26  ;;  %v2841_v51 = vmul.f32 %v2757_v6, %v11538_v62 }
 0x1a6   : > { %v2879_v22 = vmul.f32 %v2771_v58, %v11537_v35  ;;  %2956 = vmatpush.msra.mxu2 %v2887_v47  ;;  %2554 = vmatpush.msrb.mxu0 %v8606_v8  ;;  %v2839_v55 = vmul.f32 %v2757_v6, %v11539_v26  ;;  %v2877_v33 = vmul.f32 %v2769_v57, %v11538_v62  ;;  %v2755_v54 = vperm.slane %v2722_v4, 0 }
 0x1a7   : > { %v2837_v49 = vmul.f32 %v2757_v6, %v11537_v35  ;;  %2440 = vmatpush.msra.mxu3 %v2314_v63  ;;  %2941 = vmatpush.msra.mxu1 %v2845_v52  ;;  %v8727_v24 = vmul.f32 %v2769_v57, %v11539_v26  ;;  %v8730_v0 = vmul.f32 %v2769_v57, %v11537_v35  ;;  %v11546_v58 = vrot.slane %v8284_v46, 7 }
 0x1a8   : > { %v8734_v8 = vmul.f32 %v8658_v1, %v11511_v60  ;;  %2957 = vmatpush.msra.mxu2 %v2885_v37  ;;  %2441 = vmatmul.f32.vlgmr.msra.gmra.mxu3 %v11545_v7  ;;  %v2835_v6 = vmul.f32 %v2755_v54, %v11538_v62  ;;  %v8742_v63 = vmul.f32 %v8538_v23, %v11511_v60  ;;  %v8749_v57 = vperm.slane %v2739_v18, 1  ;;  %v11547_v7 = vld [vmem:[#allocation17_spill] sm:$0xff] }
 0x1a9   : > { %v2257_v47 = vperm.slane %v11546_v58, 1  ;;  %v8747_v52 = vsel %vm691_vm2, %v8516_v25, %v8495_v12  ;;  %2525 = vmatpush.msrb.mxu3 %v8628_v30  ;;  %2555 = vmatpush.msrb.mxu0 %v8632_v5  ;;  %vm2593_vm14 = vcmp.eq.f32.partialorder %v11547_v7, %v8206_v27  ;;  %vm2594_vm7 = vcmp.eq.f32.partialorder %v11547_v7, %v8160_v32 }
 0x1aa   : > { %v2734_v46 = vrot.slane %v8747_v52, 7  ;;  %vm2621_vm8 = vcmp.eq.f32.partialorder %v11547_v7, %v8381_v38  ;;  %2958 = vmatpush.msra.mxu2 %v2883_v28  ;;  %2942 = vmatpush.msra.mxu1 %v2843_v61  ;;  %v5408_v23 = vsel %vm2593_vm14, 1.0, %v11341_v39  ;;  %v5409_v18 = vsel %vm2594_vm7, 1.0, %v11341_v39 }
 0x1ab   : > { %vm2622_vm9 = vcmp.eq.f32.partialorder %v11547_v7, %v8404_v15  ;;  %v5414_v30 = vsel %vm2621_vm8, 1.0, %v11341_v39  ;;  %2526 = vmatpush.msrb.mxu3 %v8636_v13  ;;  %2556 = vmatpush.msrb.mxu0 %v8645_v48  ;;  %v2613_v27 = vmul.f32 %v5408_v23, %v8292_v50  ;;  %v2614_v38 = vmul.f32 %v5409_v18, %v8372_v9  ;;  %v1502_v23 = vpop.f32.mrf.mxu2 }
 0x1ac   : > { %v2767_v32 = vperm.slane %v2734_v46, 0  ;;  %v5415_v5 = vsel %vm2622_vm9, 1.0, %v11341_v39  ;;  %2959 = vmatpush.msra.mxu2 %v2881_v17  ;;  %2943 = vmatpush.msra.mxu1 %v2841_v51  ;;  %v2833_v61 = vmul.f32 %v2755_v54, %v11539_v26  ;;  %v2641_v15 = vmul.f32 %v5414_v30, %v8422_v11 }
 0x1ad   : > { %v2642_v37 = vmul.f32 %v5415_v5, %v8439_v16  ;;  %v11548_v13 = vrot.slane %v8309_v29, 6  ;;  %2527 = vmatpush.msrb.mxu3 %v8672_v56  ;;  %2557 = vmatpush.msrb.mxu0 %v8675_v43  ;;  %v2365_v9 = vmul.f32 %v8658_v1, %v11512_v20  ;;  %v2831_v51 = vmul.f32 %v2755_v54, %v11537_v35 }
 0x1ae   : > { %v2871_v50 = vmul.f32 %v2767_v32, %v11538_v62  ;;  %v11549_v17 = vrot.slane %v8545_v2, 5  ;;  %2960 = vmatpush.msra.mxu2 %v2879_v22  ;;  %2944 = vmatpush.msra.mxu1 %v2839_v55  ;;  %v2647_v29 = vadd.f32 %v2641_v15, %v2613_v27  ;;  %v2869_v28 = vmul.f32 %v2767_v32, %v11539_v26  ;;  %v11555_v27 = vld [vmem:[#allocation44_spill] sm:$0xff] }
 0x1af   : > { %v8777_v48 = vperm.slane %v11548_v13, 1  ;;  %v2648_v16 = vadd.f32 %v2642_v37, %v2614_v38  ;;  %v11550_v56 = vrot.slane %v8550_v59, 4  ;;  %2528 = vmatpush.msrb.mxu3 %v8690_v14  ;;  %2558 = vmatpush.msrb.mxu0 %v8696_v41  ;;  %v2363_v54 = vmul.f32 %v8658_v1, %v11513_v53 }
 0x1b0   : > { %v8787_v11 = vperm.slane %v11549_v17, 1  ;;  %v8801_v22 = vsel %vm671_vm4, %v8495_v12, %v8516_v25  ;;  %v2867_v2 = vmul.f32 %v2767_v32, %v11537_v35  ;;  %v11551_v55 = vrot.slane %v8655_v44, 1  ;;  %2961 = vmatpush.msra.mxu2 %v2877_v33  ;;  %2945 = vmatpush.msra.mxu1 %v2837_v49 }
 0x1b1   : > { %v8792_v43 = vperm.slane %v11550_v56, 1  ;;  %v2719_v59 = vrot.slane %v2648_v16, 7  ;;  %v2753_v14 = vperm.slane %v8801_v22, 0  ;;  %v2361_v41 = vmul.f32 %v2257_v47, %v11511_v60  ;;  %2529 = vmatpush.msrb.mxu3 %v8699_v3  ;;  %2559 = vmatpush.msrb.mxu0 %v8713_v10  ;;  %v11552_v3 = vld [vmem:[#allocation46_spill] sm:$0xff] }
 0x1b2   : > { %v8806_v58 = vperm.slane %v11551_v55, 1  ;;  %v8813_v1 = vsel %vm688_vm6, %v8495_v12, %v8516_v25  ;;  %v8819_v33 = vmul.f32 %v2257_v47, %v11512_v20  ;;  %v8822_v49 = vmul.f32 %v2257_v47, %v11513_v53  ;;  %2962 = vmatpush.msra.mxu2 %v8727_v24  ;;  %2946 = vmatpush.msra.mxu1 %v2835_v6 }
 0x1b3   : > { %v2732_v44 = vrot.slane %v8813_v1, 6  ;;  %v8825_v18 = vadd.f32 %v1502_v23, %v8641_v21  ;;  %v8829_v12 = vsel %vm673_vm0, %v2647_v29, %v2719_v59  ;;  %v2829_v25 = vmul.f32 %v2753_v14, %v11538_v62  ;;  %2530 = vmatpush.msrb.mxu3 %v8734_v8  ;;  %2560 = vmatpush.msrb.mxu0 %v8742_v63 }
 0x1b4   : > { %v8834_v10 = vmul.f32 %v8749_v57, %v11552_v3  ;;  %v11553_v30 = vrot.slane %v8594_v36, 3  ;;  %v11269_v21 = vrot.slane %v8829_v12, 1  ;;  %v2827_v24 = vmul.f32 %v2753_v14, %v11539_v26  ;;  %2963 = vmatpush.msra.mxu2 %v8730_v0  ;;  %2561 = vmatmul.f32.vlgmr.msrb.gmra.mxu0 %v11528_v40 }
 0x1b5   : > { %v2765_v47 = vperm.slane %v2732_v44, 0  ;;  %v8847_v6 = vsel %vm671_vm4, %v2647_v29, %v2719_v59  ;;  %v2825_v8 = vmul.f32 %v2753_v14, %v11537_v35  ;;  %v8855_v63 = vmul.f32 %v8777_v48, %v11511_v60  ;;  %2947 = vmatpush.msra.mxu1 %v2833_v61  ;;  %2531 = vmatpush.msrb.mxu3 %v2365_v9  ;;  %v11556_v14 = vld [vmem:[#allocation48_spill] sm:$0xff] }
 0x1b6   : > { %v8838_v32 = vperm.slane %v11553_v30, 1  ;;  %11554 = vst [vmem:[#allocation30_spill] sm:$0xff] %v8847_v6  ;;  %v2785_v36 = vperm.slane %v8847_v6, 0  ;;  %v8859_v38 = vmul.f32 %v8787_v11, %v11555_v27  ;;  %v2787_v5 = vperm.slane %v11269_v21, 0  ;;  %2964 = vmatpush.msra.mxu2 %v2871_v50  ;;  %v1422_v50 = vpop.f32.mrf.mxu3 }
 0x1b7   : > { %v2865_v0 = vmul.f32 %v2765_v47, %v11538_v62  ;;  %v2863_v40 = vmul.f32 %v2765_v47, %v11539_v26  ;;  %v8867_v15 = vmul.f32 %v8749_v57, %v11555_v27  ;;  %v2861_v61 = vmul.f32 %v2765_v47, %v11537_v35  ;;  %2948 = vmatpush.msra.mxu1 %v2831_v51 }
 0x1b8   : > { %v2925_v37 = vmul.f32 %v2785_v36, %v11538_v62  ;;  %v8871_v13 = vmul.f32 %v2785_v36, %v11539_v26  ;;  %v8875_v17 = vmul.f32 %v2785_v36, %v11537_v35  ;;  %v2931_v9 = vmul.f32 %v2787_v5, %v11538_v62  ;;  %2532 = vmatpush.msrb.mxu3 %v2363_v54 }
 0x1b9   : > { %v2929_v29 = vmul.f32 %v2787_v5, %v11539_v26  ;;  %v8881_v16 = vmul.f32 %v8579_v19, %v11538_v62  ;;  %v2770_v56 = vperm.slane %v8680_v34, 1  ;;  %2965 = vmatpush.msra.mxu2 %v2869_v28  ;;  %v2927_v55 = vmul.f32 %v2787_v5, %v11537_v35  ;;  %2949 = vmatpush.msra.mxu1 %v2829_v25 }
 0x1ba   : > { %v8887_v59 = vmul.f32 %v8777_v48, %v11512_v20  ;;  %v8891_v51 = vmul.f32 %v8792_v43, %v11556_v14  ;;  %v8895_v54 = vmul.f32 %v8806_v58, %v11556_v14  ;;  %3006 = vmatpush.msra.mxu0 %v2931_v9  ;;  %v8899_v34 = vmul.f32 %v8579_v19, %v11539_v26  ;;  %v11558_v19 = vld [vmem:[#allocation79_spill] sm:$0xff]  ;;  %v1442_v9 = vpop.f32.mrf.mxu0 }
 0x1bb   : > { %v8903_v28 = vmul.f32 %v8777_v48, %v11513_v53  ;;  %v8907_v23 = vmul.f32 %v8792_v43, %v11552_v3  ;;  %v11557_v30 = vrot.slane %v8667_v31, 2  ;;  %2966 = vmatpush.msra.mxu2 %v2867_v2  ;;  %2533 = vmatpush.msrb.mxu3 %v2361_v41  ;;  %v8915_v25 = vmul.f32 %v8806_v58, %v11552_v3  ;;  %v11559_v53 = vld [vmem:[#allocation38_spill] sm:$0xff] }
 0x1bc   : > { %v2748_v36 = vsel %vm691_vm2, %v11558_v19, %v8611_v42  ;;  %v1423_v48 = vadd.f32 %v1422_v50, %v11559_v53  ;;  %v8923_v5 = vperm.slane %v2734_v46, 1  ;;  %3007 = vmatpush.msra.mxu0 %v2929_v29  ;;  %2950 = vmatpush.msra.mxu1 %v2827_v24  ;;  %v11560_v2 = vld [vmem:[#allocation78_spill] sm:$0xff]  ;;  %v8935_v21 = vmul.f32 %v8806_v58, %v11555_v27  ;;  %v1462_v24 = vpop.f32.mrf.mxu1 }
 0x1bd   : > { %v8911_v47 = vperm.slane %v11557_v30, 1  ;;  %v2749_v31 = vrot.slane %v2748_v36, 7  ;;  %v8927_v41 = vmul.f32 %v11560_v2, %v11511_v60  ;;  %v8931_v30 = vmul.f32 %v8792_v43, %v11555_v27  ;;  %2967 = vmatpush.msra.mxu2 %v2865_v0  ;;  %2534 = vmatpush.msrb.mxu3 %v8819_v33  ;;  %v11562_v50 = vld [vmem:[#allocation26_spill] sm:$0xff] }
 0x1be   : > { %v1443_v52 = vadd.f32 %v1442_v9, %v1423_v48  ;;  %v8940_v46 = vmul.f32 %v11560_v2, %v11512_v20  ;;  %v8944_v60 = vmul.f32 %v8838_v32, %v11556_v14  ;;  %v8948_v43 = vperm.slane %v2722_v4, 1  ;;  %3008 = vmatpush.msra.mxu0 %v2927_v55  ;;  %2951 = vmatpush.msra.mxu1 %v2825_v8  ;;  %v11563_v2 = vld [vmem:[#allocation35_spill] sm:$0xff] }
 0x1bf   : > { %v2784_v58 = vperm.slane %v2749_v31, 1  ;;  %v8951_v0 = vmul.f32 %v2770_v56, %v11556_v14  ;;  %v2783_v33 = vperm.slane %v2749_v31, 0  ;;  %v8955_v20 = vmul.f32 %v8838_v32, %v11552_v3  ;;  %2968 = vmatpush.msra.mxu2 %v2863_v40  ;;  %2535 = vmatpush.msrb.mxu3 %v8822_v49 }
 0x1c0   : > { %v8958_v29 = vadd.f32 %v1462_v24, %v1443_v52  ;;  %v8961_v45 = vmul.f32 %v2770_v56, %v11552_v3  ;;  %v2746_v4 = vsel %vm688_vm6, %v8611_v42, %v11558_v19  ;;  %v8968_v8 = vperm.slane %v2732_v44, 1  ;;  %3009 = vmatpush.msra.mxu0 %v2925_v37  ;;  %2952 = vmatmul.f32.vlgmr.msra.gmra.mxu1 %v11562_v50  ;;  %v11564_v24 = vld [vmem:[#allocation6_spill] sm:$0xff] }
 0x1c1   : > { %v2920_v40 = vmul.f32 %v2784_v58, %v11556_v14  ;;  %v8973_v49 = vmul.f32 %v2784_v58, %v11552_v3  ;;  %v2747_v55 = vrot.slane %v2746_v4, 6  ;;  %v8977_v36 = vmul.f32 %v8838_v32, %v11555_v27  ;;  %3036 = vmatpush.msrb.mxu1 %v8834_v10  ;;  %2969 = vmatpush.msra.mxu2 %v2861_v61 }
 0x1c2   : > { %11561 = vst [vmem:[#allocation74_spill] sm:$0xff] %v8958_v29  ;;  %v8981_v1 = vmul.f32 %v2784_v58, %v11555_v27  ;;  %v8984_v44 = vmul.f32 %v2783_v33, %v11538_v62  ;;  %v8987_v37 = vmul.f32 %v2783_v33, %v11539_v26  ;;  %v8990_v53 = vperm.slane %v8801_v22, 1  ;;  %3010 = vmatpush.msra.mxu0 %v8871_v13  ;;  %v11566_v29 = vld [vmem:[#allocation7_spill] sm:$0xff]  ;;  %v9136_v6 = vpop.f32.mrf.mxu0 }
 0x1c3   : > { %2536 = vmatpush.msrb.mxu3 %v8855_v63  ;;  %v2782_v32 = vperm.slane %v2747_v55, 1  ;;  %v8995_v10 = vmul.f32 %v2770_v56, %v11555_v27  ;;  %v8998_v61 = vmul.f32 %v2783_v33, %v11537_v35  ;;  %v9002_v48 = vmul.f32 %v8911_v47, %v11556_v14  ;;  %3037 = vmatpush.msrb.mxu1 %v8867_v15 }
 0x1c4   : > { %2970 = vmatpush.msra.mxu2 %v8881_v16  ;;  %v9008_v22 = vmul.f32 %v8923_v5, %v11556_v14  ;;  %v2781_v63 = vperm.slane %v2747_v55, 0  ;;  %v9012_v13 = vmul.f32 %v8911_v47, %v11552_v3  ;;  %v2744_v56 = vsel %vm685_vm10, %v8611_v42, %v11558_v19  ;;  %3011 = vmatpush.msra.mxu0 %v8875_v17 }
 0x1c5   : > { %2537 = vmatpush.msrb.mxu3 %v8887_v59  ;;  %v9020_v15 = vmul.f32 %v2782_v32, %v11556_v14  ;;  %v9023_v16 = vmul.f32 %v2782_v32, %v11552_v3  ;;  %v9027_v9 = vmul.f32 %v8923_v5, %v11552_v3  ;;  %v2745_v31 = vrot.slane %v2744_v56, 5  ;;  %5428 = vmatmul.msk.f32.vlgmr.msra.gmra.mxu0 %vm1238_vm1, %v11563_v2 }
 0x1c6   : > { %3038 = vmatpush.msrb.mxu1 %v8895_v54  ;;  %v9033_v17 = vmul.f32 %v2782_v32, %v11555_v27  ;;  %v9036_v59 = vmul.f32 %v2781_v63, %v11538_v62  ;;  %v9039_v52 = vmul.f32 %v2781_v63, %v11539_v26  ;;  %v9042_v58 = vperm.slane %v11564_v24, 5  ;;  %3016 = vmatpush.msrb.mxu0 %v8859_v38  ;;  %v11565_v32 = vld [vmem:[#allocation25_spill] sm:$0xff]  ;;  %v11567_v24 = vld [vmem:[#allocation15_spill] sm:$0xff] }
 0x1c7   : > { %2971 = vmatpush.msra.mxu2 %v8899_v34  ;;  %v2780_v33 = vperm.slane %v2745_v31, 1  ;;  %v9048_v54 = vmul.f32 %v8911_v47, %v11555_v27  ;;  %v9052_v4 = vmul.f32 %v8923_v5, %v11555_v27  ;;  %v9055_v55 = vmul.f32 %v2781_v63, %v11537_v35  ;;  %2538 = vmatpush.msrb.mxu3 %v8903_v28 }
 0x1c8   : > { %2972 = vmatmul.f32.vlgmr.msra.gmra.mxu2 %v11565_v32  ;;  %v9061_v38 = vmul.f32 %v8948_v43, %v11556_v14  ;;  %v9065_v34 = vmul.f32 %v8968_v8, %v11556_v14  ;;  %v2779_v47 = vperm.slane %v2745_v31, 0  ;;  %v9069_v5 = vmul.f32 %v8948_v43, %v11552_v3  ;;  %3017 = vmatpush.msrb.mxu0 %v8891_v51 }
 0x1c9   : > { %3039 = vmatpush.msrb.mxu1 %v8915_v25  ;;  %v9074_v28 = vmul.f32 %v2780_v33, %v11556_v14  ;;  %v9077_v63 = vmul.f32 %v2780_v33, %v11552_v3  ;;  %v9081_v56 = vmul.f32 %v8968_v8, %v11552_v3  ;;  %v9084_v31 = vperm.slane %v11566_v29, 5  ;;  %3056 = vmatpush.msrb.mxu2 %v2920_v40 }
 0x1ca   : > { %2539 = vmatpush.msrb.mxu3 %v8927_v41  ;;  %v9088_v51 = vmul.f32 %v2780_v33, %v11555_v27  ;;  %v9091_v25 = vmul.f32 %v2779_v47, %v11538_v62  ;;  %v2742_v2 = vsel %vm682_vm15, %v8611_v42, %v11558_v19  ;;  %v9097_v50 = vperm.slane %v11567_v24, 5  ;;  %3018 = vmatpush.msrb.mxu0 %v8907_v23 }
 0x1cb   : > { %3040 = vmatpush.msrb.mxu1 %v8935_v21  ;;  %v2743_v40 = vrot.slane %v2742_v2, 4  ;;  %v9102_v41 = vmul.f32 %v2779_v47, %v11539_v26  ;;  %v9106_v33 = vmul.f32 %v8948_v43, %v11555_v27  ;;  %v9110_v29 = vmul.f32 %v8968_v8, %v11555_v27  ;;  %3057 = vmatpush.msrb.mxu2 %v8973_v49  ;;  %v11569_v43 = vld [vmem:[#allocation16_spill] sm:$0xff] }
 0x1cc   : > { %2540 = vmatpush.msrb.mxu3 %v8940_v46  ;;  %v9115_v23 = vmul.f32 %v2779_v47, %v11537_v35  ;;  %v9119_v21 = vmul.f32 %v8990_v53, %v11556_v14  ;;  %v9123_v2 = vmul.f32 %v8787_v11, %v11556_v14  ;;  %v9126_v24 = vperm.slane %v11569_v43, 5  ;;  %3019 = vmatpush.msrb.mxu0 %v8931_v30  ;;  %v11570_v47 = vld [vmem:[#allocation11_spill] sm:$0xff]  ;;  %v11573_v30 = vld [vmem:[#allocation10_spill] sm:$0xff] }
 0x1cd   : > { %3041 = vmatpush.msrb.mxu1 %v8951_v0  ;;  %v2778_v8 = vperm.slane %v2743_v40, 1  ;;  %v2777_v46 = vperm.slane %v2743_v40, 0  ;;  %v2740_v49 = vsel %vm679_vm3, %v8611_v42, %v11558_v19  ;;  %v9134_v32 = vperm.slane %v11570_v47, 5  ;;  %11571 = vst [vmem:[#allocation43_spill] sm:$0xff] %v9136_v6  ;;  %3058 = vmatpush.msrb.mxu2 %v8981_v1  ;;  %v11574_v0 = vld [vmem:[#allocation12_spill] sm:$0xff] }
 0x1ce   : > { %11568 = vst [vmem:[#allocation24_spill] sm:$0xff] %v9119_v21  ;;  %v11572_v21 = vld [vmem:[#allocation77_spill] sm:$0xff]  ;;  %v2741_v43 = vrot.slane %v2740_v49, 3  ;;  %vm3102_vm11 = vcmp.eq.f32.partialorder %v11573_v30, %v9042_v58  ;;  %vm3103_vm12 = vcmp.eq.f32.partialorder %v11573_v30, %v9084_v31  ;;  %v9145_v40 = vperm.slane %v11574_v0, 5  ;;  %3020 = vmatpush.msrb.mxu0 %v8944_v60  ;;  %2976 = vmatpush.msra.mxu3 %v8984_v44 }
 0x1cf   : > { %2541 = vmatmul.f32.vlgmr.msrb.gmra.mxu3 %v11572_v21  ;;  %v9150_v42 = vmul.f32 %v2778_v8, %v11556_v14  ;;  %v9154_v19 = vmul.f32 %v8990_v53, %v11552_v3  ;;  %v9158_v1 = vmul.f32 %v8787_v11, %v11552_v3  ;;  %v5432_v21 = vsel %vm3102_vm11, 1.0, %v11341_v39  ;;  %3042 = vmatpush.msrb.mxu1 %v8961_v45 }
 0x1d0   : > { %3059 = vmatpush.msrb.mxu2 %v9020_v15  ;;  %v9164_v60 = vmul.f32 %v2778_v8, %v11552_v3  ;;  %v9167_v44 = vmul.f32 %v2778_v8, %v11555_v27  ;;  %v2776_v49 = vperm.slane %v2741_v43, 1  ;;  %v5433_v0 = vsel %vm3103_vm12, 1.0, %v11341_v39  ;;  %3021 = vmatpush.msrb.mxu0 %v8955_v20  ;;  %v11575_v15 = vld [vmem:[#allocation20_spill] sm:$0xff] }
 0x1d1   : > { %2977 = vmatpush.msra.mxu3 %v8987_v37  ;;  %v9173_v11 = vmul.f32 %v2777_v46, %v11538_v62  ;;  %v3122_v45 = vmul.f32 %v5432_v21, %v9097_v50  ;;  %vm3130_vm13 = vcmp.eq.f32.partialorder %v11573_v30, %v9134_v32  ;;  %v9179_v47 = vperm.slane %v11575_v15, 5  ;;  %3043 = vmatpush.msrb.mxu1 %v8995_v10  ;;  %v11576_v37 = vld [vmem:[#allocation21_spill] sm:$0xff] }
 0x1d2   : > { %3060 = vmatpush.msrb.mxu2 %v9023_v16  ;;  %v3123_v8 = vmul.f32 %v5433_v0, %v9126_v24  ;;  %vm3131_vm14 = vcmp.eq.f32.partialorder %v11573_v30, %v9145_v40  ;;  %v5438_v20 = vsel %vm3130_vm13, 1.0, %v11341_v39  ;;  %v9188_v6 = vperm.slane %v11576_v37, 5  ;;  %3022 = vmatpush.msrb.mxu0 %v8977_v36 }
 0x1d3   : > { %2978 = vmatpush.msra.mxu3 %v8998_v61  ;;  %v9193_v21 = vmul.f32 %v2776_v49, %v11556_v14  ;;  %v9196_v10 = vmul.f32 %v2777_v46, %v11539_v26  ;;  %v5439_v16 = vsel %vm3131_vm14, 1.0, %v11341_v39  ;;  %v3150_v0 = vmul.f32 %v5438_v20, %v9179_v47  ;;  %3044 = vmatpush.msrb.mxu1 %v9008_v22 }
 0x1d4   : > { %3061 = vmatpush.msrb.mxu2 %v9033_v17  ;;  %v3151_v30 = vmul.f32 %v5439_v16, %v9188_v6  ;;  %v9205_v36 = vmul.f32 %v8990_v53, %v11555_v27  ;;  %v9208_v61 = vmul.f32 %v2776_v49, %v11552_v3  ;;  %v2775_v37 = vperm.slane %v2741_v43, 0  ;;  %3023 = vmatpush.msrb.mxu0 %v9002_v48  ;;  %v1542_v17 = vpop.f32.mrf.mxu0 }
 0x1d5   : > { %2979 = vmatpush.msra.mxu3 %v9036_v59  ;;  %v9213_v20 = vmul.f32 %v2777_v46, %v11537_v35  ;;  %v9216_v22 = vmul.f32 %v2776_v49, %v11555_v27  ;;  %vm3104_vm7 = vcmp.eq.f32.partialorder %v11547_v7, %v9042_v58  ;;  %3045 = vmatpush.msrb.mxu1 %v9027_v9  ;;  %v1522_v49 = vpop.f32.mrf.mxu3 }
 0x1d6   : > { %3062 = vmatpush.msrb.mxu2 %v9074_v28  ;;  %v9222_v53 = vadd.f32 %v3150_v0, %v3122_v45  ;;  %v3157_v43 = vadd.f32 %v3151_v30, %v3123_v8  ;;  %v9226_v48 = vmul.f32 %v8749_v57, %v11556_v14  ;;  %v5434_v59 = vsel %vm3104_vm7, 1.0, %v11341_v39  ;;  %3024 = vmatpush.msrb.mxu0 %v9012_v13 }
 0x1d7   : > { %2980 = vmatpush.msra.mxu3 %v9039_v52  ;;  %v9232_v46 = vmul.f32 %v2775_v37, %v11538_v62  ;;  %vm3105_vm8 = vcmp.eq.f32.partialorder %v11547_v7, %v9084_v31  ;;  %vm3132_vm9 = vcmp.eq.f32.partialorder %v11547_v7, %v9134_v32  ;;  %3046 = vmatpush.msrb.mxu1 %v9052_v4 }
 0x1d8   : > { %3063 = vmatpush.msrb.mxu2 %v9077_v63  ;;  %v9240_v57 = vrot.slane %v3157_v43, 7  ;;  %v5435_v9 = vsel %vm3105_vm8, 1.0, %v11341_v39  ;;  %vm3133_vm11 = vcmp.eq.f32.partialorder %v11547_v7, %v9145_v40  ;;  %v5440_v13 = vsel %vm3132_vm9, 1.0, %v11341_v39  ;;  %3025 = vmatpush.msrb.mxu0 %v9048_v54 }
 0x1d9   : > { %2981 = vmatpush.msra.mxu3 %v9055_v55  ;;  %v3124_v52 = vmul.f32 %v5434_v59, %v9097_v50  ;;  %v3125_v28 = vmul.f32 %v5435_v9, %v9126_v24  ;;  %v5441_v4 = vsel %vm3133_vm11, 1.0, %v11341_v39  ;;  %v3152_v63 = vmul.f32 %v5440_v13, %v9179_v47  ;;  %3047 = vmatpush.msrb.mxu1 %v9065_v34 }
 0x1da   : > { %3064 = vmatpush.msrb.mxu2 %v9088_v51  ;;  %v9257_v30 = vsel %vm691_vm2, %v9240_v57, %v9222_v53  ;;  %v9262_v54 = vsel %vm676_vm5, %v9222_v53, %v9240_v57  ;;  %v9267_v55 = vsel %vm673_vm0, %v9222_v53, %v9240_v57  ;;  %v11577_v34 = vrot.slane %v8829_v12, 1  ;;  %3026 = vmatpush.msrb.mxu0 %v9061_v38 }
 0x1db   : > { %2982 = vmatpush.msra.mxu3 %v9091_v25  ;;  %v11275_v51 = vrot.slane %v9257_v30, 7  ;;  %v11273_v8 = vrot.slane %v9262_v54, 2  ;;  %v11272_v16 = vrot.slane %v9267_v55, 1  ;;  %v9281_v0 = vsel %vm688_vm6, %v9222_v53, %v9240_v57  ;;  %3048 = vmatpush.msrb.mxu1 %v9081_v56 }
 0x1dc   : > { %v9271_v45 = vperm.slane %v11577_v34, 1  ;;  %3065 = vmatpush.msrb.mxu2 %v9150_v42  ;;  %v9286_v12 = vmul.f32 %v2775_v37, %v11539_v26  ;;  %v11274_v38 = vrot.slane %v9281_v0, 6  ;;  %v3153_v25 = vmul.f32 %v5441_v4, %v9188_v6  ;;  %3027 = vmatpush.msrb.mxu0 %v9069_v5  ;;  %v9304_v9 = vpop.f32.mrf.mxu0  ;;  %v11578_v4 = vld [vmem:[#allocation53_spill] sm:$0xff] }
 0x1dd   : > { %v1523_v43 = vadd.f32 %v1522_v49, %v8825_v18  ;;  %2983 = vmatpush.msra.mxu3 %v9102_v41  ;;  %v3294_v59 = vperm.slane %v11275_v51, 0  ;;  %v9297_v56 = vperm.slane %v11273_v8, 0  ;;  %v3282_v26 = vperm.slane %v11272_v16, 0  ;;  %3049 = vmatpush.msrb.mxu1 %v9110_v29 }
 0x1de   : > { %v9302_v42 = vmul.f32 %v2775_v37, %v11537_v35  ;;  %3066 = vmatpush.msrb.mxu2 %v9164_v60  ;;  %v3292_v18 = vperm.slane %v11274_v38, 0  ;;  %v3158_v5 = vadd.f32 %v3152_v63, %v3124_v52  ;;  %v3159_v41 = vadd.f32 %v3153_v25, %v3125_v28  ;;  %3028 = vmatpush.msrb.mxu0 %v9106_v33  ;;  %v11579_v37 = vld [vmem:[#allocation83_spill] sm:$0xff]  ;;  %v11582_v63 = vld [vmem:[#allocation24_spill] sm:$0xff] }
 0x1df   : > { %v9310_v13 = vadd.f32 %v1542_v17, %v1523_v43  ;;  %2984 = vmatpush.msra.mxu3 %v9115_v23  ;;  %v3430_v35 = vmul.f32 %v3294_v59, %v11578_v4  ;;  %v9317_v49 = vmul.f32 %v11579_v37, %v11538_v62  ;;  %v9321_v29 = vmul.f32 %v9271_v45, %v11556_v14  ;;  %v11580_v60 = vld [vmem:[#allocation51_spill] sm:$0xff]  ;;  %v11581_v23 = vld [vmem:[#allocation49_spill] sm:$0xff] }
 0x1e0   : > { %3050 = vmatpush.msrb.mxu1 %v9123_v2  ;;  %3067 = vmatpush.msrb.mxu2 %v9167_v44  ;;  %v3398_v17 = vmul.f32 %v9297_v56, %v11580_v60  ;;  %v3428_v33 = vmul.f32 %v3294_v59, %v11580_v60  ;;  %v3396_v52 = vmul.f32 %v9297_v56, %v11581_v23  ;;  %v3230_v28 = vrot.slane %v3159_v41, 7 }
 0x1e1   : > { %3029 = vmatpush.msrb.mxu0 %v11582_v63  ;;  %2985 = vmatpush.msra.mxu3 %v9173_v11  ;;  %v3426_v62 = vmul.f32 %v3294_v59, %v11581_v23  ;;  %v3394_v34 = vmul.f32 %v3282_v26, %v11578_v4  ;;  %v3424_v2 = vmul.f32 %v3292_v18, %v11578_v4  ;;  %v9346_v11 = vpop.f32.mrf.mxu1  ;;  %v11583_v59 = vld [vmem:[#allocation30_spill] sm:$0xff] }
 0x1e2   : > { %3051 = vmatpush.msrb.mxu1 %v9158_v1  ;;  %3068 = vmatpush.msrb.mxu2 %v9193_v21  ;;  %v9338_v44 = vsel %vm673_vm0, %v3158_v5, %v3230_v28  ;;  %v9341_v25 = vmul.f32 %v3282_v26, %v11580_v60  ;;  %v9344_v43 = vmul.f32 %v3292_v18, %v11580_v60  ;;  %v9349_v41 = vperm.slane %v11583_v59, 1  ;;  %v11585_v59 = vld [vmem:[#allocation25_spill] sm:$0xff] }
 0x1e3   : > { %3030 = vmatpush.msrb.mxu0 %v9154_v19  ;;  %2986 = vmatpush.msra.mxu3 %v9196_v10  ;;  %v11277_v1 = vrot.slane %v9338_v44, 1  ;;  %v9357_v21 = vsel %vm671_vm4, %v9222_v53, %v9240_v57  ;;  %v9362_v37 = vsel %vm685_vm10, %v9222_v53, %v9240_v57  ;;  %v9365_v63 = vsel %vm671_vm4, %v3158_v5, %v3230_v28 }
 0x1e4   : > { %11584 = vst [vmem:[#allocation47_spill] sm:$0xff] %v9357_v21  ;;  %3052 = vmatmul.f32.vlgmr.msrb.gmra.mxu1 %v11585_v59  ;;  %3069 = vmatpush.msrb.mxu2 %v9208_v61  ;;  %v9370_v19 = vmul.f32 %v3282_v26, %v11581_v23  ;;  %v3280_v10 = vperm.slane %v9357_v21, 0  ;;  %v11276_v16 = vrot.slane %v9362_v37, 5  ;;  %v3296_v8 = vperm.slane %v9365_v63, 0  ;;  %v11586_v26 = vld [vmem:[#allocation5_spill] sm:$0xff]  ;;  %v11587_v59 = vld [vmem:[#allocation26_spill] sm:$0xff] }
 0x1e5   : > { %3487 = vmatpush.msra.mxu1 %v3430_v35  ;;  %3031 = vmatpush.msrb.mxu0 %v9205_v36  ;;  %v3298_v5 = vperm.slane %v11277_v1, 0  ;;  %v9379_v28 = vmul.f32 %v3292_v18, %v11581_v23  ;;  %v9383_v61 = vmul.f32 %v9271_v45, %v11552_v3  ;;  %vm3100_vm12 = vcmp.eq.f32.partialorder %v11586_v26, %v9042_v58  ;;  %v9389_v35 = vpop.f32.mrf.mxu0  ;;  %v11607_v21 = vld [vmem:[#allocation12_spill] sm:$0xff] }
 0x1e6   : > { %2987 = vmatpush.msra.mxu3 %v9213_v20  ;;  %3032 = vmatmul.f32.vlgmr.msrb.gmra.mxu0 %v11587_v59  ;;  %v9392_v36 = vmul.f32 %v3280_v10, %v11578_v4  ;;  %v3290_v18 = vperm.slane %v11276_v16, 0  ;;  %v9398_v38 = vmul.f32 %v9271_v45, %v11555_v27  ;;  %v9402_v51 = vmul.f32 %v9349_v41, %v11556_v14 }
 0x1e7   : > { %3467 = vmatpush.msra.mxu0 %v3398_v17  ;;  %3488 = vmatpush.msra.mxu1 %v3428_v33  ;;  %v3442_v58 = vmul.f32 %v3298_v5, %v11578_v4  ;;  %v9406_v20 = vmul.f32 %v3296_v8, %v11578_v4  ;;  %v9409_v59 = vmul.f32 %v3280_v10, %v11580_v60  ;;  %v5430_v16 = vsel %vm3100_vm12, 1.0, %v11341_v39 }
 0x1e8   : > { %3070 = vmatpush.msrb.mxu2 %v9216_v22  ;;  %2988 = vmatpush.msra.mxu3 %v9232_v46  ;;  %v3440_v45 = vmul.f32 %v3298_v5, %v11580_v60  ;;  %v3438_v14 = vmul.f32 %v3298_v5, %v11581_v23  ;;  %v3418_v17 = vmul.f32 %v3290_v18, %v11578_v4  ;;  %v1951_v46 = vpop.f32.mrf.mxu2 }
 0x1e9   : > { %3468 = vmatpush.msra.mxu0 %v3396_v52  ;;  %3489 = vmatpush.msra.mxu1 %v3426_v62  ;;  %v9418_v33 = vmul.f32 %v3290_v18, %v11580_v60  ;;  %v9421_v1 = vmul.f32 %v3296_v8, %v11580_v60  ;;  %v9424_v7 = vmul.f32 %v3280_v10, %v11581_v23  ;;  %v11588_v52 = vld [vmem:[#allocation34_spill] sm:$0xff] }
 0x1ea   : > { %3071 = vmatpush.msrb.mxu2 %v9226_v48  ;;  %2989 = vmatpush.msra.mxu3 %v9286_v12  ;;  %vm3101_vm13 = vcmp.eq.f32.partialorder %v11586_v26, %v9084_v31  ;;  %v3120_v22 = vmul.f32 %v5430_v16, %v9097_v50  ;;  %vm3128_vm14 = vcmp.eq.f32.partialorder %v11586_v26, %v9134_v32 }
 0x1eb   : > { %3072 = vmatmul.f32.vlgmr.msrb.gmra.mxu2 %v11588_v52  ;;  %3469 = vmatpush.msra.mxu0 %v3394_v34  ;;  %v5431_v62 = vsel %vm3101_vm13, 1.0, %v11341_v39  ;;  %vm3129_vm7 = vcmp.eq.f32.partialorder %v11586_v26, %v9145_v40  ;;  %v5436_v48 = vsel %vm3128_vm14, 1.0, %v11341_v39  ;;  %v9441_v31 = vsel %vm682_vm15, %v9222_v53, %v9240_v57  ;;  %v2031_v34 = vpop.f32.mrf.mxu1 }
 0x1ec   : > { %3490 = vmatpush.msra.mxu1 %v3424_v2  ;;  %3517 = vmatpush.msra.mxu2 %v3442_v58  ;;  %v3121_v50 = vmul.f32 %v5431_v62, %v9126_v24  ;;  %v5437_v32 = vsel %vm3129_vm7, 1.0, %v11341_v39  ;;  %v3148_v16 = vmul.f32 %v5436_v48, %v9179_v47  ;;  %v11282_v12 = vrot.slane %v9441_v31, 4  ;;  %v11595_v48 = vld [vmem:[#allocation50_spill] sm:$0xff] }
 0x1ed   : > { %2990 = vmatpush.msra.mxu3 %v9302_v42  ;;  %3470 = vmatpush.msra.mxu0 %v9341_v25  ;;  %v3414_v40 = vmul.f32 %v3290_v18, %v11581_v23  ;;  %v3149_v10 = vmul.f32 %v5437_v32, %v9188_v6  ;;  %v9452_v2 = vadd.f32 %v1951_v46, %v9346_v11  ;;  %v11589_v24 = vrot.slane %v9338_v44, 1  ;;  %v2011_v58 = vpop.f32.mrf.mxu0 }
 0x1ee   : > { %3491 = vmatpush.msra.mxu1 %v9344_v43  ;;  %3518 = vmatpush.msra.mxu2 %v3440_v45  ;;  %v3432_v47 = vmul.f32 %v3296_v8, %v11581_v23  ;;  %v3288_v42 = vperm.slane %v11282_v12, 0  ;;  %v9463_v25 = vsel %vm679_vm3, %v9222_v53, %v9240_v57  ;;  %v11590_v6 = vrot.slane %v9257_v30, 7  ;;  %v11601_v12 = vld [vmem:[#allocation35_spill] sm:$0xff] }
 0x1ef   : > { %v3299_v5 = vperm.slane %v11589_v24, 1  ;;  %2991 = vmatpush.msra.mxu3 %v9317_v49  ;;  %3471 = vmatpush.msra.mxu0 %v9370_v19  ;;  %v9471_v44 = vadd.f32 %v3148_v16, %v3120_v22  ;;  %v3155_v8 = vadd.f32 %v3149_v10, %v3121_v50  ;;  %v9473_v43 = vadd.f32 %v2031_v34, %v2011_v58 }
 0x1f0   : > { %v9467_v11 = vperm.slane %v11590_v6, 1  ;;  %v11281_v18 = vrot.slane %v9463_v25, 3  ;;  %3492 = vmatpush.msra.mxu1 %v9379_v28  ;;  %3519 = vmatpush.msra.mxu2 %v3438_v14  ;;  %v2924_v53 = vmul.f32 %v9349_v41, %v11552_v3  ;;  %v9481_v57 = vmul.f32 %v9349_v41, %v11555_v27  ;;  %v11591_v27 = vld [vmem:[#allocation54_spill] sm:$0xff] }
 0x1f1   : > { %v9485_v30 = vmul.f32 %v9297_v56, %v11578_v4  ;;  %2992 = vmatmul.f32.vlgmr.msra.gmra.mxu3 %v11588_v52  ;;  %3472 = vmatpush.msra.mxu0 %v9392_v36  ;;  %v9489_v49 = vrot.slane %v3155_v8, 7  ;;  %v3412_v19 = vmul.f32 %v3288_v42, %v11578_v4  ;;  %v3410_v28 = vmul.f32 %v3288_v42, %v11580_v60  ;;  %v11592_v36 = vld [vmem:[#allocation52_spill] sm:$0xff] }
 0x1f2   : > { %v9494_v3 = vmul.f32 %v3288_v42, %v11581_v23  ;;  %3086 = vmatpush.msrb.mxu3 %v9321_v29  ;;  %3493 = vmatpush.msra.mxu1 %v3418_v17  ;;  %v9498_v41 = vmul.f32 %v3299_v5, %v11591_v27  ;;  %v9502_v56 = vmul.f32 %v9467_v11, %v11591_v27  ;;  %v9508_v14 = vperm.slane %v9365_v63, 1 }
 0x1f3   : > { %v9505_v45 = vmul.f32 %v3299_v5, %v11592_v36  ;;  %3520 = vmatpush.msra.mxu2 %v9406_v20  ;;  %3473 = vmatpush.msra.mxu0 %v9409_v59  ;;  %v3240_v29 = vsel %vm685_vm10, %v9471_v44, %v9489_v49  ;;  %v9518_v17 = vsel %vm691_vm2, %v9489_v49, %v9471_v44  ;;  %v3286_v63 = vperm.slane %v11281_v18, 0 }
 0x1f4   : > { %11593 = vst [vmem:[#allocation45_spill] sm:$0xff] %v9518_v17  ;;  %v3238_v22 = vsel %vm682_vm15, %v9471_v44, %v9489_v49  ;;  %3087 = vmatpush.msrb.mxu3 %v9383_v61  ;;  %3494 = vmatpush.msra.mxu1 %v9418_v33  ;;  %v3241_v20 = vrot.slane %v3240_v29, 5  ;;  %v11280_v59 = vrot.slane %v9518_v17, 7  ;;  %v9531_v52 = vsel %vm688_vm6, %v9471_v44, %v9489_v49 }
 0x1f5   : > { %v3239_v46 = vrot.slane %v3238_v22, 4  ;;  %11594 = vst [vmem:[#allocation27_spill] sm:$0xff] %v9531_v52  ;;  %3521 = vmatpush.msra.mxu2 %v9421_v1  ;;  %3474 = vmatpush.msra.mxu0 %v9424_v7  ;;  %v11279_v62 = vrot.slane %v9531_v52, 6  ;;  %v3236_v61 = vsel %vm679_vm3, %v9471_v44, %v9489_v49  ;;  %v9541_v33 = vmul.f32 %v9467_v11, %v11592_v36 }
 0x1f6   : > { %v9544_v50 = vmul.f32 %v3299_v5, %v11595_v48  ;;  %3088 = vmatpush.msrb.mxu3 %v9398_v38  ;;  %3495 = vmatpush.msra.mxu1 %v3414_v40  ;;  %v9547_v32 = vperm.slane %v3241_v20, 1  ;;  %v3278_v7 = vperm.slane %v11280_v59, 0  ;;  %v3274_v16 = vperm.slane %v3241_v20, 0  ;;  %v11597_v5 = vld [vmem:[#allocation32_spill] sm:$0xff] }
 0x1f7   : > { %v3273_v1 = vperm.slane %v3239_v46, 1  ;;  %3522 = vmatpush.msra.mxu2 %v3432_v47  ;;  %v3272_v34 = vperm.slane %v3239_v46, 0  ;;  %v3276_v10 = vperm.slane %v11279_v62, 0  ;;  %v3406_v24 = vmul.f32 %v3286_v63, %v11578_v4 }
 0x1f8   : > { %11596 = vst [vmem:[#allocation29_spill] sm:$0xff] %v9547_v32  ;;  %v3237_v42 = vrot.slane %v3236_v61, 3  ;;  %3089 = vmatpush.msrb.mxu3 %v9402_v51  ;;  %5454 = vmatmul.msk.f32.vlgmr.msra.gmra.mxu2 %vm1238_vm1, %v11597_v5  ;;  %v3367_v38 = vmul.f32 %v9547_v32, %v11595_v48  ;;  %v3382_v40 = vmul.f32 %v3278_v7, %v11578_v4  ;;  %v11598_v47 = vrot.slane %v9281_v0, 6  ;;  %v11602_v32 = vld [vmem:[#allocation15_spill] sm:$0xff] }
 0x1f9   : > { %v3365_v58 = vmul.f32 %v3273_v1, %v11591_v27  ;;  %3496 = vmatpush.msra.mxu1 %v3412_v19  ;;  %v3380_v8 = vmul.f32 %v3278_v7, %v11580_v60  ;;  %v3363_v29 = vmul.f32 %v3273_v1, %v11592_v36  ;;  %v3404_v51 = vmul.f32 %v3286_v63, %v11580_v60 }
 0x1fa   : > { %v9563_v6 = vperm.slane %v11598_v47, 1  ;;  %v9569_v22 = vmul.f32 %v3286_v63, %v11581_v23  ;;  %3527 = vmatpush.msrb.mxu2 %v3367_v38  ;;  %3475 = vmatpush.msra.mxu0 %v3382_v40  ;;  %v3366_v20 = vmul.f32 %v3274_v16, %v11581_v23  ;;  %v3378_v46 = vmul.f32 %v3278_v7, %v11581_v23  ;;  %v2051_v40 = vpop.f32.mrf.mxu2 }
 0x1fb   : > { %v3361_v0 = vmul.f32 %v3273_v1, %v11595_v48  ;;  %v3271_v61 = vperm.slane %v3237_v42, 1  ;;  %3090 = vmatpush.msrb.mxu3 %v2924_v53  ;;  %3497 = vmatpush.msra.mxu1 %v3410_v28  ;;  %v3364_v19 = vmul.f32 %v3272_v34, %v11578_v4  ;;  %v3376_v47 = vmul.f32 %v3276_v10, %v11578_v4  ;;  %v11599_v1 = vld [vmem:[#allocation6_spill] sm:$0xff] }
 0x1fc   : > { %v3362_v62 = vmul.f32 %v3272_v34, %v11580_v60  ;;  %v3270_v59 = vperm.slane %v3237_v42, 0  ;;  %3528 = vmatpush.msrb.mxu2 %v3365_v58  ;;  %3476 = vmatpush.msra.mxu0 %v3380_v8  ;;  %v3374_v38 = vmul.f32 %v3276_v10, %v11580_v60  ;;  %v3360_v7 = vmul.f32 %v3272_v34, %v11581_v23  ;;  %v11600_v58 = vld [vmem:[#allocation7_spill] sm:$0xff] }
 0x1fd   : > { %v3359_v63 = vmul.f32 %v3271_v61, %v11591_v27  ;;  %v9581_v18 = vperm.slane %v11599_v1, 6  ;;  %3091 = vmatpush.msrb.mxu3 %v9481_v57  ;;  %3498 = vmatpush.msra.mxu1 %v9494_v3  ;;  %v3357_v53 = vmul.f32 %v3271_v61, %v11592_v36  ;;  %v3372_v28 = vmul.f32 %v3276_v10, %v11581_v23  ;;  %v1971_v3 = vpop.f32.mrf.mxu3 }
 0x1fe   : > { %v3355_v42 = vmul.f32 %v3271_v61, %v11595_v48  ;;  %v9589_v8 = vperm.slane %v11600_v58, 6  ;;  %3529 = vmatpush.msrb.mxu2 %v3363_v29  ;;  %5429 = vmatmul.msk.f32.vlgmr.msrb.gmra.mxu3 %vm1238_vm1, %v11601_v12  ;;  %v3358_v34 = vmul.f32 %v3270_v59, %v11578_v4  ;;  %v3370_v1 = vmul.f32 %v3274_v16, %v11578_v4 }
 0x1ff   : > { %v3234_v57 = vsel %vm676_vm5, %v9471_v44, %v9489_v49  ;;  %v9599_v10 = vperm.slane %v11602_v32, 6  ;;  %3447 = vmatpush.msra.mxu3 %v3366_v20  ;;  %3477 = vmatpush.msra.mxu0 %v3378_v46  ;;  %v3356_v29 = vmul.f32 %v3270_v59, %v11580_v60  ;;  %v9603_v58 = vadd.f32 %v2051_v40, %v9473_v43 }
 0x200   : > { %v3235_v61 = vrot.slane %v3234_v57, 2  ;;  %v3232_v12 = vsel %vm673_vm0, %v9471_v44, %v9489_v49  ;;  %3530 = vmatpush.msrb.mxu2 %v3361_v0  ;;  %3499 = vmatpush.msra.mxu1 %v3406_v24  ;;  %v3368_v52 = vmul.f32 %v3274_v16, %v11580_v60  ;;  %v9610_v17 = vmul.f32 %v3270_v59, %v11581_v23  ;;  %v11603_v59 = vld [vmem:[#allocation74_spill] sm:$0xff]  ;;  %v11604_v0 = vld [vmem:[#allocation43_spill] sm:$0xff] }
 0x201   : > { %v3233_v32 = vrot.slane %v3232_v12, 1  ;;  %v9614_v20 = vmul.f32 %v9467_v11, %v11595_v48  ;;  %3448 = vmatpush.msra.mxu3 %v3364_v19  ;;  %3478 = vmatpush.msra.mxu0 %v3376_v47  ;;  %v9618_v40 = vmul.f32 %v9508_v14, %v11591_v27  ;;  %v1972_v24 = vadd.f32 %v1971_v3, %v9452_v2  ;;  %v11606_v12 = vld [vmem:[#allocation11_spill] sm:$0xff] }
 0x202   : > { %v3269_v43 = vperm.slane %v3235_v61, 1  ;;  %v3268_v46 = vperm.slane %v3235_v61, 0  ;;  %3531 = vmatpush.msrb.mxu2 %v3359_v63  ;;  %3500 = vmatpush.msra.mxu1 %v3404_v51  ;;  %v1483_v57 = vadd.f32 %v11604_v0, %v11603_v59  ;;  %v9625_v11 = vmul.f32 %v9563_v6, %v11591_v27  ;;  %v11605_v63 = vld [vmem:[#allocation16_spill] sm:$0xff] }
 0x203   : > { %v3267_v16 = vperm.slane %v3233_v32, 1  ;;  %v9629_v19 = vmul.f32 %v9508_v14, %v11592_v36  ;;  %3449 = vmatpush.msra.mxu3 %v3362_v62  ;;  %3479 = vmatpush.msra.mxu0 %v3374_v38  ;;  %v9634_v2 = vmul.f32 %v9563_v6, %v11592_v36  ;;  %v9638_v51 = vmul.f32 %v9508_v14, %v11595_v48 }
 0x204   : > { %v3353_v47 = vmul.f32 %v3269_v43, %v11591_v27  ;;  %v9641_v3 = vperm.slane %v11605_v63, 6  ;;  %3532 = vmatpush.msrb.mxu2 %v3357_v53  ;;  %3501 = vmatpush.msra.mxu1 %v9569_v22  ;;  %v3351_v61 = vmul.f32 %v3269_v43, %v11592_v36  ;;  %v3349_v62 = vmul.f32 %v3269_v43, %v11595_v48 }
 0x205   : > { %v1992_v38 = vadd.f32 %v9389_v35, %v1972_v24  ;;  %v9648_v59 = vperm.slane %v11606_v12, 6  ;;  %3450 = vmatpush.msra.mxu3 %v3360_v7  ;;  %3480 = vmatpush.msra.mxu0 %v3372_v28  ;;  %v3352_v14 = vmul.f32 %v3268_v46, %v11578_v4  ;;  %v3347_v0 = vmul.f32 %v3267_v16, %v11591_v27  ;;  %v11610_v28 = vld [vmem:[#allocation72_spill] sm:$0xff] }
 0x206   : > { %v3266_v63 = vperm.slane %v3233_v32, 0  ;;  %v9653_v53 = vperm.slane %v11607_v21, 6  ;;  %3533 = vmatpush.msrb.mxu2 %v3355_v42  ;;  %3502 = vmatpush.msra.mxu1 %v9485_v30  ;;  %v3350_v35 = vmul.f32 %v3268_v46, %v11580_v60  ;;  %v3345_v43 = vmul.f32 %v3267_v16, %v11592_v36  ;;  %v11609_v30 = vld [vmem:[#allocation21_spill] sm:$0xff] }
 0x207   : > { %v9656_v22 = vadd.f32 %v1992_v38, %v1483_v57  ;;  %v9661_v7 = vperm.slane %v11575_v15, 6  ;;  %3451 = vmatpush.msra.mxu3 %v3358_v34  ;;  %3481 = vmatpush.msra.mxu0 %v3370_v1  ;;  %vm3611_vm8 = vcmp.eq.f32.partialorder %v11586_v26, %v9581_v18  ;;  %vm3612_vm9 = vcmp.eq.f32.partialorder %v11586_v26, %v9589_v8 }
 0x208   : > { %vm3639_vm11 = vcmp.eq.f32.partialorder %v11586_v26, %v9648_v59  ;;  %v9670_v32 = vperm.slane %v11609_v30, 6  ;;  %3503 = vmatmul.f32.vlgmr.msra.gmra.mxu1 %v11610_v28  ;;  %3534 = vmatpush.msrb.mxu2 %v3353_v47  ;;  %v5456_v42 = vsel %vm3611_vm8, 1.0, %v11341_v39  ;;  %v5457_v34 = vsel %vm3612_vm9, 1.0, %v11341_v39 }
 0x209   : > { %11608 = vst [vmem:[#allocation46_spill] sm:$0xff] %v9656_v22  ;;  %vm3640_vm12 = vcmp.eq.f32.partialorder %v11586_v26, %v9653_v53  ;;  %v5462_v1 = vsel %vm3639_vm11, 1.0, %v11341_v39  ;;  %3597 = vmatpush.msrb.mxu1 %v9498_v41  ;;  %3452 = vmatpush.msra.mxu3 %v3356_v29  ;;  %v3631_v24 = vmul.f32 %v5456_v42, %v9599_v10  ;;  %v11611_v41 = vrot.slane %v9362_v37, 5  ;;  %v11612_v42 = vld [vmem:[#allocation28_spill] sm:$0xff] }
 0x20a   : > { %v3632_v57 = vmul.f32 %v5457_v34, %v9641_v3  ;;  %v5463_v38 = vsel %vm3640_vm12, 1.0, %v11341_v39  ;;  %v3659_v47 = vmul.f32 %v5462_v1, %v9661_v7  ;;  %3482 = vmatpush.msra.mxu0 %v3368_v52  ;;  %3535 = vmatpush.msrb.mxu2 %v3351_v61  ;;  %v3348_v22 = vmul.f32 %v3268_v46, %v11581_v23 }
 0x20b   : > { %v3660_v30 = vmul.f32 %v5463_v38, %v9670_v32  ;;  %v3231_v26 = vsel %vm671_vm4, %v9471_v44, %v9489_v49  ;;  %v9690_v29 = vperm.slane %v11611_v41, 1  ;;  %3483 = vmatmul.f32.vlgmr.msra.gmra.mxu0 %v11612_v42  ;;  %3598 = vmatpush.msrb.mxu1 %v9505_v45  ;;  %v3343_v34 = vmul.f32 %v3267_v16, %v11595_v48 }
 0x20c   : > { %v3346_v52 = vmul.f32 %v3266_v63, %v11578_v4  ;;  %v3265_v61 = vperm.slane %v3231_v26, 1  ;;  %v3421_v46 = vmul.f32 %v9563_v6, %v11595_v48  ;;  %3567 = vmatpush.msrb.mxu0 %v9502_v56  ;;  %3453 = vmatpush.msra.mxu3 %v9610_v17  ;;  %v9700_v44 = vadd.f32 %v3659_v47, %v3631_v24 }
 0x20d   : > { %v3666_v37 = vadd.f32 %v3660_v30, %v3632_v57  ;;  %v3344_v49 = vmul.f32 %v3266_v63, %v11580_v60  ;;  %3536 = vmatpush.msrb.mxu2 %v3349_v62  ;;  %3599 = vmatpush.msrb.mxu1 %v9544_v50  ;;  %v9706_v45 = vmul.f32 %v9690_v29, %v11591_v27  ;;  %v9715_v17 = vperm.slane %v3231_v26, 0  ;;  %v11613_v62 = vld [vmem:[#allocation10_spill] sm:$0xff]  ;;  %v2071_v30 = vpop.f32.mrf.mxu3 }
 0x20e   : > { %v9709_v16 = vmul.f32 %v3266_v63, %v11581_v23  ;;  %v9713_v56 = vmul.f32 %v9690_v29, %v11592_v36  ;;  %3568 = vmatpush.msrb.mxu0 %v9541_v33  ;;  %3454 = vmatpush.msra.mxu3 %v3352_v14  ;;  %v3341_v50 = vmul.f32 %v3265_v61, %v11591_v27 }
 0x20f   : > { %v9718_v6 = vrot.slane %v3666_v37, 7  ;;  %vm3613_vm13 = vcmp.eq.f32.partialorder %v11613_v62, %v9581_v18  ;;  %vm3614_vm14 = vcmp.eq.f32.partialorder %v11613_v62, %v9589_v8  ;;  %3537 = vmatpush.msrb.mxu2 %v3347_v0  ;;  %3600 = vmatpush.msrb.mxu1 %v9618_v40  ;;  %vm3641_vm7 = vcmp.eq.f32.partialorder %v11613_v62, %v9648_v59  ;;  %v11615_v37 = vld [vmem:[#allocation55_spill] sm:$0xff] }
 0x210   : > { %v5458_v63 = vsel %vm3613_vm13, 1.0, %v11341_v39  ;;  %v5459_v26 = vsel %vm3614_vm14, 1.0, %v11341_v39  ;;  %vm3642_vm8 = vcmp.eq.f32.partialorder %v11613_v62, %v9653_v53  ;;  %3569 = vmatpush.msrb.mxu0 %v9614_v20  ;;  %3455 = vmatpush.msra.mxu3 %v3350_v35  ;;  %v5464_v0 = vsel %vm3641_vm7, 1.0, %v11341_v39 }
 0x211   : > { %v9736_v33 = vsel %vm685_vm10, %v9700_v44, %v9718_v6  ;;  %v9741_v40 = vsel %vm682_vm15, %v9700_v44, %v9718_v6  ;;  %v3633_v14 = vmul.f32 %v5458_v63, %v9599_v10  ;;  %3538 = vmatpush.msrb.mxu2 %v3345_v43  ;;  %3601 = vmatpush.msrb.mxu1 %v9629_v19  ;;  %v5465_v24 = vsel %vm3642_vm8, 1.0, %v11341_v39 }
 0x212   : > { %v11293_v20 = vrot.slane %v9736_v33, 5  ;;  %v11292_v35 = vrot.slane %v9741_v40, 4  ;;  %v3634_v1 = vmul.f32 %v5459_v26, %v9641_v3  ;;  %3570 = vmatpush.msrb.mxu0 %v9625_v11  ;;  %3456 = vmatpush.msra.mxu3 %v3348_v22  ;;  %v3661_v57 = vmul.f32 %v5464_v0, %v9661_v7  ;;  %v11616_v26 = vld [vmem:[#allocation59_spill] sm:$0xff] }
 0x213   : > { %v3662_v38 = vmul.f32 %v5465_v24, %v9670_v32  ;;  %v1563_v43 = vadd.f32 %v9304_v9, %v9310_v13  ;;  %3539 = vmatpush.msrb.mxu2 %v3343_v34  ;;  %3602 = vmatpush.msrb.mxu1 %v9638_v51  ;;  %v3339_v11 = vmul.f32 %v3265_v61, %v11592_v36  ;;  %v11614_v51 = vrot.slane %v9441_v31, 4 }
 0x214   : > { %v9758_v19 = vperm.slane %v11293_v20, 0  ;;  %v3783_v47 = vperm.slane %v11292_v35, 0  ;;  %v2072_v22 = vadd.f32 %v2071_v30, %v9603_v58  ;;  %3571 = vmatpush.msrb.mxu0 %v9634_v2  ;;  %3457 = vmatpush.msra.mxu3 %v3346_v52  ;;  %v3337_v41 = vmul.f32 %v3265_v61, %v11595_v48 }
 0x215   : > { %v9766_v9 = vadd.f32 %v3661_v57, %v3633_v14  ;;  %v3668_v13 = vadd.f32 %v3662_v38, %v3634_v1  ;;  %v3289_v34 = vperm.slane %v11614_v51, 1  ;;  %5455 = vmatmul.msk.f32.vlgmr.msrb.gmra.mxu1 %vm1238_vm1, %v11597_v5  ;;  %3540 = vmatpush.msrb.mxu2 %v3341_v50  ;;  %v3340_v2 = vmul.f32 %v9715_v17, %v11578_v4  ;;  %v11619_v4 = vld [vmem:[#allocation57_spill] sm:$0xff] }
 0x216   : > { %v3877_v63 = vmul.f32 %v9758_v19, %v11615_v37  ;;  %v3875_v58 = vmul.f32 %v3783_v47, %v11616_v26  ;;  %v11617_v52 = vrot.slane %v9262_v54, 2  ;;  %3572 = vmatpush.msrb.mxu0 %v3421_v46  ;;  %3458 = vmatpush.msra.mxu3 %v3344_v49  ;;  %v9783_v14 = vadd.f32 %v2072_v22, %v1563_v43 }
 0x217   : > { %v9781_v31 = vrot.slane %v3668_v13, 7  ;;  %v3415_v5 = vmul.f32 %v9690_v29, %v11595_v48  ;;  %v9790_v50 = vsel %vm679_vm3, %v9700_v44, %v9718_v6  ;;  %3541 = vmatpush.msrb.mxu2 %v3339_v11  ;;  %v3873_v54 = vmul.f32 %v3783_v47, %v11619_v4 }
 0x218   : > { %v9779_v61 = vperm.slane %v11617_v52, 1  ;;  %11618 = vst [vmem:[#allocation44_spill] sm:$0xff] %v9783_v14  ;;  %3958 = vmatpush.msra.mxu1 %v3877_v63  ;;  %v3871_v0 = vmul.f32 %v3783_v47, %v11615_v37  ;;  %v3338_v46 = vmul.f32 %v9715_v17, %v11580_v60  ;;  %v11289_v49 = vrot.slane %v9790_v50, 3  ;;  %3573 = vmatpush.msrb.mxu0 %v9706_v45 }
 0x219   : > { %3459 = vmatpush.msra.mxu3 %v9709_v16  ;;  %v9802_v29 = vsel %vm676_vm5, %v9766_v9, %v9781_v31  ;;  %v3413_v30 = vmul.f32 %v3289_v34, %v11591_v27  ;;  %v9808_v1 = vsel %vm673_vm0, %v9766_v9, %v9781_v31  ;;  %v11620_v60 = vrot.slane %v9267_v55, 1  ;;  %3542 = vmatpush.msrb.mxu2 %v3337_v41 }
 0x21a   : > { %3959 = vmatpush.msra.mxu1 %v3875_v58  ;;  %v3761_v45 = vrot.slane %v9802_v29, 2  ;;  %v3781_v16 = vperm.slane %v11289_v49, 0  ;;  %v3336_v57 = vmul.f32 %v9715_v17, %v11581_v23  ;;  %v11290_v38 = vrot.slane %v9808_v1, 1  ;;  %3574 = vmatpush.msrb.mxu0 %v9713_v56  ;;  %v11622_v23 = vld [vmem:[#allocation75_spill] sm:$0xff] }
 0x21b   : > { %v3283_v24 = vperm.slane %v11620_v60, 1  ;;  %3460 = vmatpush.msra.mxu3 %v3340_v2  ;;  %v3399_v43 = vmul.f32 %v9779_v61, %v11592_v36  ;;  %v3411_v55 = vmul.f32 %v3289_v34, %v11592_v36  ;;  %v9825_v47 = vsel %vm676_vm5, %v9700_v44, %v9718_v6  ;;  %3543 = vmatmul.f32.vlgmr.msrb.gmra.mxu2 %v11622_v23 }
 0x21c   : > { %v11621_v11 = vrot.slane %v9463_v25, 3  ;;  %3960 = vmatpush.msra.mxu1 %v3873_v54  ;;  %v9832_v56 = vperm.slane %v3761_v45, 0  ;;  %v3869_v17 = vmul.f32 %v3781_v16, %v11616_v26  ;;  %v3793_v41 = vperm.slane %v11290_v38, 0  ;;  %3575 = vmatpush.msrb.mxu0 %v3415_v5 }
 0x21d   : > { %v3397_v13 = vmul.f32 %v9779_v61, %v11595_v48  ;;  %3461 = vmatpush.msra.mxu3 %v3338_v46  ;;  %v3409_v25 = vmul.f32 %v3289_v34, %v11595_v48  ;;  %v11291_v51 = vrot.slane %v9825_v47, 2  ;;  %v3395_v63 = vmul.f32 %v3283_v24, %v11591_v27 }
 0x21e   : > { %v3287_v22 = vperm.slane %v11621_v11, 1  ;;  %11623 = vst [vmem:[#allocation48_spill] sm:$0xff] %v9832_v56  ;;  %v9845_v58 = vsel %vm671_vm4, %v9766_v9, %v9781_v31  ;;  %3961 = vmatpush.msra.mxu1 %v3871_v0  ;;  %v3909_v2 = vmul.f32 %v9832_v56, %v11619_v4  ;;  %v3907_v52 = vmul.f32 %v9832_v56, %v11615_v37 }
 0x21f   : > { %v3867_v5 = vmul.f32 %v3781_v16, %v11619_v4  ;;  %v3865_v34 = vmul.f32 %v3781_v16, %v11615_v37  ;;  %3576 = vmatpush.msrb.mxu0 %v3413_v30  ;;  %3462 = vmatpush.msra.mxu3 %v3336_v57  ;;  %v3905_v54 = vmul.f32 %v3793_v41, %v11616_v26  ;;  %v3779_v46 = vperm.slane %v11291_v51, 0  ;;  %v11624_v51 = vld [vmem:[#allocation47_spill] sm:$0xff] }
 0x220   : > { %v3407_v60 = vmul.f32 %v3287_v22, %v11591_v27  ;;  %v3791_v0 = vperm.slane %v9845_v58, 0  ;;  %3978 = vmatpush.msra.mxu2 %v3909_v2  ;;  %3962 = vmatpush.msra.mxu1 %v3869_v17  ;;  %v3903_v11 = vmul.f32 %v3793_v41, %v11619_v4  ;;  %v3901_v49 = vmul.f32 %v3793_v41, %v11615_v37 }
 0x221   : > { %v3393_v38 = vmul.f32 %v3283_v24, %v11592_v36  ;;  %3463 = vmatmul.f32.vlgmr.msra.gmra.mxu3 %v11622_v23  ;;  %3577 = vmatpush.msrb.mxu0 %v3411_v55  ;;  %v3405_v30 = vmul.f32 %v3287_v22, %v11592_v36  ;;  %v3391_v16 = vmul.f32 %v3283_v24, %v11595_v48  ;;  %v9873_v23 = vperm.slane %v11624_v51, 1  ;;  %v11625_v51 = vld [vmem:[#allocation17_spill] sm:$0xff] }
 0x222   : > { %v3403_v57 = vmul.f32 %v3287_v22, %v11595_v48  ;;  %3979 = vmatpush.msra.mxu2 %v3907_v52  ;;  %3963 = vmatpush.msra.mxu1 %v3867_v5  ;;  %v3863_v2 = vmul.f32 %v3779_v46, %v11616_v26  ;;  %v3861_v17 = vmul.f32 %v3779_v46, %v11619_v4 }
 0x223   : > { %v9870_v41 = vsel %vm673_vm0, %v9700_v44, %v9718_v6  ;;  %3547 = vmatpush.msrb.mxu3 %v3399_v43  ;;  %3578 = vmatpush.msrb.mxu0 %v3409_v25  ;;  %v3899_v24 = vmul.f32 %v3791_v0, %v11616_v26  ;;  %v3859_v55 = vmul.f32 %v3779_v46, %v11615_v37  ;;  %v11626_v43 = vld [vmem:[#allocation45_spill] sm:$0xff] }
 0x224   : > { %v3897_v22 = vmul.f32 %v3791_v0, %v11619_v4  ;;  %v11296_v52 = vrot.slane %v9870_v41, 1  ;;  %3980 = vmatpush.msra.mxu2 %v3905_v54  ;;  %3964 = vmatpush.msra.mxu1 %v3865_v34  ;;  %v9882_v5 = vsel %vm691_vm2, %v9718_v6, %v9700_v44  ;;  %vm3615_vm9 = vcmp.eq.f32.partialorder %v11625_v51, %v9581_v18 }
 0x225   : > { %vm3616_vm11 = vcmp.eq.f32.partialorder %v11625_v51, %v9589_v8  ;;  %v11627_v25 = vrot.slane %v11626_v43, 7  ;;  %3548 = vmatpush.msrb.mxu3 %v3397_v13  ;;  %3579 = vmatpush.msrb.mxu0 %v3407_v60  ;;  %v11297_v54 = vrot.slane %v9882_v5, 7  ;;  %v5460_v35 = vsel %vm3615_vm9, 1.0, %v11341_v39 }
 0x226   : > { %v3777_v34 = vperm.slane %v11296_v52, 0  ;;  %v5461_v20 = vsel %vm3616_vm11, 1.0, %v11341_v39  ;;  %3981 = vmatpush.msra.mxu2 %v3903_v11  ;;  %3965 = vmatpush.msra.mxu1 %v3863_v2  ;;  %v3895_v18 = vmul.f32 %v3791_v0, %v11615_v37  ;;  %v3401_v8 = vmul.f32 %v9779_v61, %v11591_v27  ;;  %v11628_v0 = vld [vmem:[#allocation27_spill] sm:$0xff]  ;;  %v2482_v52 = vpop.f32.mrf.mxu1 }
 0x227   : > { %v9890_v46 = vperm.slane %v11627_v25, 1  ;;  %vm3643_vm12 = vcmp.eq.f32.partialorder %v11625_v51, %v9648_v59  ;;  %v9904_v13 = vperm.slane %v3761_v45, 1  ;;  %3549 = vmatpush.msrb.mxu3 %v3395_v63  ;;  %3580 = vmatpush.msrb.mxu0 %v3405_v30  ;;  %v3635_v60 = vmul.f32 %v5460_v35, %v9599_v10 }
 0x228   : > { %v3636_v43 = vmul.f32 %v5461_v20, %v9641_v3  ;;  %vm3644_vm13 = vcmp.eq.f32.partialorder %v11625_v51, %v9653_v53  ;;  %v11629_v11 = vrot.slane %v11628_v0, 6  ;;  %3982 = vmatpush.msra.mxu2 %v3901_v49  ;;  %3966 = vmatpush.msra.mxu1 %v3861_v17  ;;  %v3857_v59 = vmul.f32 %v3777_v34, %v11616_v26 }
 0x229   : > { %v3789_v61 = vperm.slane %v11297_v54, 0  ;;  %v5466_v29 = vsel %vm3643_vm12, 1.0, %v11341_v39  ;;  %v5467_v10 = vsel %vm3644_vm13, 1.0, %v11341_v39  ;;  %3550 = vmatpush.msrb.mxu3 %v3393_v38  ;;  %3581 = vmatpush.msrb.mxu0 %v3403_v57  ;;  %v3389_v3 = vmul.f32 %v9873_v23, %v11591_v27 }
 0x22a   : > { %v9912_v2 = vperm.slane %v11629_v11, 1  ;;  %v3663_v53 = vmul.f32 %v5466_v29, %v9661_v7  ;;  %v3664_v20 = vmul.f32 %v5467_v10, %v9670_v32  ;;  %v11630_v35 = vrot.slane %v9736_v33, 5  ;;  %3983 = vmatpush.msra.mxu2 %v3899_v24  ;;  %3967 = vmatpush.msra.mxu1 %v3859_v55  ;;  %v11634_v10 = vld [vmem:[#allocation58_spill] sm:$0xff] }
 0x22b   : > { %v3855_v45 = vmul.f32 %v3777_v34, %v11619_v4  ;;  %v3387_v63 = vmul.f32 %v9873_v23, %v11592_v36  ;;  %v9933_v38 = vsel %vm671_vm4, %v9700_v44, %v9718_v6  ;;  %v11631_v7 = vrot.slane %v9741_v40, 4  ;;  %3551 = vmatpush.msrb.mxu3 %v3391_v16  ;;  %3582 = vmatpush.msrb.mxu0 %v3401_v8 }
 0x22c   : > { %v9925_v49 = vperm.slane %v11630_v35, 1  ;;  %v3669_v32 = vadd.f32 %v3663_v53, %v3635_v60  ;;  %v3670_v33 = vadd.f32 %v3664_v20, %v3636_v43  ;;  %v3853_v57 = vmul.f32 %v3777_v34, %v11615_v37  ;;  %3984 = vmatpush.msra.mxu2 %v3897_v22  ;;  %3968 = vmatpush.msra.mxu1 %v3857_v59  ;;  %v11635_v20 = vld [vmem:[#allocation56_spill] sm:$0xff] }
 0x22d   : > { %v9937_v30 = vperm.slane %v11631_v7, 1  ;;  %v3775_v17 = vperm.slane %v9933_v38, 0  ;;  %v3893_v24 = vmul.f32 %v3789_v61, %v11616_v26  ;;  %v3891_v55 = vmul.f32 %v3789_v61, %v11619_v4  ;;  %3552 = vmatpush.msrb.mxu3 %v3389_v3  ;;  %3583 = vmatmul.f32.vlgmr.msrb.gmra.mxu0 %v11610_v28 }
 0x22e   : > { %v9946_v40 = vsel %vm688_vm6, %v9700_v44, %v9718_v6  ;;  %v11632_v16 = vrot.slane %v9808_v1, 1  ;;  %v3741_v34 = vrot.slane %v3670_v33, 7  ;;  %v3385_v22 = vmul.f32 %v9873_v23, %v11595_v48  ;;  %3985 = vmatpush.msra.mxu2 %v3895_v18  ;;  %3969 = vmatpush.msra.mxu1 %v3855_v45 }
 0x22f   : > { %v3889_v8 = vmul.f32 %v3789_v61, %v11615_v37  ;;  %v11295_v60 = vrot.slane %v9946_v40, 6  ;;  %v3851_v44 = vmul.f32 %v3775_v17, %v11616_v26  ;;  %v3383_v6 = vmul.f32 %v9890_v46, %v11591_v27  ;;  %3553 = vmatpush.msrb.mxu3 %v3387_v63 }
 0x230   : > { %v9950_v25 = vperm.slane %v11632_v16, 1  ;;  %v3381_v1 = vmul.f32 %v9890_v46, %v11592_v36  ;;  %v11633_v28 = vrot.slane %v9790_v50, 3  ;;  %v9967_v23 = vsel %vm673_vm0, %v3669_v32, %v3741_v34  ;;  %3986 = vmatpush.msra.mxu2 %v3893_v24  ;;  %3970 = vmatpush.msra.mxu1 %v3853_v57 }
 0x231   : > { %v3849_v0 = vmul.f32 %v3775_v17, %v11619_v4  ;;  %v3787_v18 = vperm.slane %v11295_v60, 0  ;;  %v9973_v11 = vsel %vm671_vm4, %v3669_v32, %v3741_v34  ;;  %v11294_v59 = vrot.slane %v9967_v23, 1  ;;  %3554 = vmatpush.msrb.mxu3 %v3385_v22 }
 0x232   : > { %v9964_v43 = vperm.slane %v11633_v28, 1  ;;  %v3807_v50 = vperm.slane %v9973_v11, 0  ;;  %v3847_v61 = vmul.f32 %v3775_v17, %v11615_v37  ;;  %v3379_v29 = vmul.f32 %v9890_v46, %v11595_v48  ;;  %3987 = vmatpush.msra.mxu2 %v3891_v55  ;;  %3971 = vmatpush.msra.mxu1 %v3851_v44  ;;  %v2442_v55 = vpop.f32.mrf.mxu3  ;;  %v11636_v28 = vld [vmem:[#allocation60_spill] sm:$0xff] }
 0x233   : > { %v3910_v3 = vmul.f32 %v9904_v13, %v11634_v10  ;;  %v3377_v53 = vmul.f32 %v9912_v2, %v11591_v27  ;;  %v9986_v35 = vmul.f32 %v9925_v49, %v11635_v20  ;;  %v9990_v45 = vmul.f32 %v9904_v13, %v11635_v20  ;;  %3555 = vmatpush.msrb.mxu3 %v3383_v6  ;;  %v2462_v6 = vpop.f32.mrf.mxu0 }
 0x234   : > { %v3809_v63 = vperm.slane %v11294_v59, 0  ;;  %v3887_v46 = vmul.f32 %v3787_v18, %v11616_v26  ;;  %v3885_v7 = vmul.f32 %v3787_v18, %v11619_v4  ;;  %v3883_v32 = vmul.f32 %v3787_v18, %v11615_v37  ;;  %3988 = vmatpush.msra.mxu2 %v3889_v8  ;;  %3972 = vmatpush.msra.mxu1 %v3849_v0 }
 0x235   : > { %v3947_v33 = vmul.f32 %v3807_v50, %v11616_v26  ;;  %v9999_v57 = vmul.f32 %v3807_v50, %v11619_v4  ;;  %v10002_v17 = vmul.f32 %v3807_v50, %v11615_v37  ;;  %v3881_v24 = vmul.f32 %v9758_v19, %v11616_v26  ;;  %3556 = vmatpush.msrb.mxu3 %v3381_v1 }
 0x236   : > { %v3953_v16 = vmul.f32 %v3809_v63, %v11616_v26  ;;  %v3951_v34 = vmul.f32 %v3809_v63, %v11619_v4  ;;  %v3375_v22 = vmul.f32 %v9912_v2, %v11592_v36  ;;  %v3792_v44 = vperm.slane %v9845_v58, 1  ;;  %3989 = vmatpush.msra.mxu2 %v3887_v46  ;;  %3973 = vmatpush.msra.mxu1 %v3847_v61 }
 0x237   : > { %v10013_v18 = vmul.f32 %v9937_v30, %v11636_v28  ;;  %v3906_v50 = vmul.f32 %v9950_v25, %v11636_v28  ;;  %v3879_v59 = vmul.f32 %v9758_v19, %v11619_v4  ;;  %v3770_v8 = vsel %vm691_vm2, %v9781_v31, %v9766_v9  ;;  %3557 = vmatpush.msrb.mxu3 %v3379_v29 }
 0x238   : > { %4028 = vmatpush.msra.mxu0 %v3953_v16  ;;  %v3949_v0 = vmul.f32 %v3809_v63, %v11615_v37  ;;  %v3373_v58 = vmul.f32 %v9912_v2, %v11595_v48  ;;  %v3771_v1 = vrot.slane %v3770_v8, 7  ;;  %v2463_v60 = vadd.f32 %v2462_v6, %v2442_v55  ;;  %v11637_v16 = vld [vmem:[#allocation29_spill] sm:$0xff]  ;;  %3990 = vmatpush.msra.mxu2 %v3885_v7  ;;  %v2502_v55 = vpop.f32.mrf.mxu2  ;;  %v11639_v6 = vld [vmem:[#allocation39_spill] sm:$0xff] }
 0x239   : > { %v10027_v54 = vmul.f32 %v9937_v30, %v11634_v10  ;;  %v3904_v19 = vmul.f32 %v9950_v25, %v11634_v10  ;;  %v3371_v14 = vmul.f32 %v11637_v16, %v11591_v27  ;;  %v11638_v63 = vrot.slane %v9825_v47, 2  ;;  %3974 = vmatmul.f32.vlgmr.msra.gmra.mxu1 %v11639_v6  ;;  %3558 = vmatpush.msrb.mxu3 %v3377_v53 }
 0x23a   : > { %4029 = vmatpush.msra.mxu0 %v3951_v34  ;;  %v3806_v48 = vperm.slane %v3771_v1, 1  ;;  %v2483_v2 = vadd.f32 %v2482_v52, %v2463_v60  ;;  %v10037_v61 = vmul.f32 %v9937_v30, %v11635_v20  ;;  %v3805_v29 = vperm.slane %v3771_v1, 0  ;;  %4058 = vmatpush.msrb.mxu1 %v3910_v3 }
 0x23b   : > { %v3780_v46 = vperm.slane %v11638_v63, 1  ;;  %v3902_v8 = vmul.f32 %v9950_v25, %v11635_v20  ;;  %v3369_v27 = vmul.f32 %v11637_v16, %v11592_v36  ;;  %v3768_v47 = vsel %vm688_vm6, %v9766_v9, %v9781_v31  ;;  %3991 = vmatpush.msra.mxu2 %v3883_v32  ;;  %3559 = vmatpush.msrb.mxu3 %v3375_v22 }
 0x23c   : > { %v11640_v52 = vrot.slane %v9882_v5, 7  ;;  %4030 = vmatpush.msra.mxu0 %v3949_v0  ;;  %v10049_v30 = vadd.f32 %v2502_v55, %v2483_v2  ;;  %v10053_v53 = vmul.f32 %v9964_v43, %v11636_v28  ;;  %v3900_v25 = vmul.f32 %v3792_v44, %v11636_v28  ;;  %4059 = vmatpush.msrb.mxu1 %v9990_v45 }
 0x23d   : > { %v3769_v7 = vrot.slane %v3768_v47, 6  ;;  %v3942_v36 = vmul.f32 %v3806_v48, %v11636_v28  ;;  %v10059_v34 = vmul.f32 %v9964_v43, %v11634_v10  ;;  %v10062_v5 = vmul.f32 %v3792_v44, %v11634_v10  ;;  %3992 = vmatpush.msra.mxu2 %v3881_v24  ;;  %3560 = vmatpush.msrb.mxu3 %v3373_v58 }
 0x23e   : > { %v3790_v60 = vperm.slane %v11640_v52, 1  ;;  %11641 = vst [vmem:[#allocation79_spill] sm:$0xff] %v10049_v30  ;;  %v11642_v3 = vrot.slane %v9870_v41, 1  ;;  %4031 = vmatpush.msra.mxu0 %v3947_v33  ;;  %v3940_v1 = vmul.f32 %v3806_v48, %v11634_v10  ;;  %v3938_v32 = vmul.f32 %v3806_v48, %v11635_v20  ;;  %4060 = vmatpush.msrb.mxu1 %v3906_v50  ;;  %v11645_v52 = vld [vmem:[#allocation82_spill] sm:$0xff] }
 0x23f   : > { %v3941_v22 = vmul.f32 %v3805_v29, %v11616_v26  ;;  %v3804_v16 = vperm.slane %v3769_v7, 1  ;;  %v10071_v63 = vmul.f32 %v3805_v29, %v11619_v4  ;;  %v10075_v2 = vmul.f32 %v9964_v43, %v11635_v20  ;;  %3993 = vmatpush.msra.mxu2 %v3879_v59  ;;  %3561 = vmatpush.msrb.mxu3 %v3371_v14 }
 0x240   : > { %v3778_v0 = vperm.slane %v11642_v3, 1  ;;  %v10078_v41 = vmul.f32 %v3792_v44, %v11635_v20  ;;  %v3803_v45 = vperm.slane %v3769_v7, 0  ;;  %4032 = vmatpush.msra.mxu0 %v9999_v57  ;;  %v10082_v33 = vmul.f32 %v3805_v29, %v11615_v37  ;;  %v11644_v29 = vld [vmem:[#allocation36_spill] sm:$0xff]  ;;  %4061 = vmatpush.msrb.mxu1 %v3904_v19  ;;  %v11646_v3 = vld [vmem:[#allocation6_spill] sm:$0xff] }
 0x241   : > { %v10085_v24 = vmul.f32 %v3780_v46, %v11636_v28  ;;  %v10088_v58 = vmul.f32 %v3790_v60, %v11636_v28  ;;  %v11643_v48 = vrot.slane %v9946_v40, 6  ;;  %v3936_v44 = vmul.f32 %v3804_v16, %v11636_v28  ;;  %3994 = vmatmul.f32.vlgmr.msra.gmra.mxu2 %v11644_v29  ;;  %3562 = vmatpush.msrb.mxu3 %v3369_v27 }
 0x242   : > { %v10094_v55 = vmul.f32 %v3780_v46, %v11634_v10  ;;  %v3766_v57 = vsel %vm685_vm10, %v9766_v9, %v9781_v31  ;;  %v10100_v50 = vperm.slane %v9933_v38, 1  ;;  %4033 = vmatpush.msra.mxu0 %v10002_v17  ;;  %v3934_v40 = vmul.f32 %v3804_v16, %v11634_v10  ;;  %4078 = vmatpush.msrb.mxu2 %v3942_v36  ;;  %v11647_v36 = vld [vmem:[#allocation7_spill] sm:$0xff] }
 0x243   : > { %v3788_v43 = vperm.slane %v11643_v48, 1  ;;  %v10106_v14 = vmul.f32 %v3804_v16, %v11635_v20  ;;  %v10109_v59 = vmul.f32 %v3803_v45, %v11616_v26  ;;  %v3767_v47 = vrot.slane %v3766_v57, 5  ;;  %5480 = vmatmul.msk.f32.vlgmr.msra.gmra.mxu0 %vm1238_vm1, %v11645_v52  ;;  %4062 = vmatpush.msrb.mxu1 %v3902_v8 }
 0x244   : > { %v10114_v38 = vmul.f32 %v3790_v60, %v11634_v10  ;;  %v10117_v17 = vmul.f32 %v3803_v45, %v11619_v4  ;;  %v10120_v7 = vmul.f32 %v3780_v46, %v11635_v20  ;;  %v10123_v16 = vperm.slane %v11646_v3, 7  ;;  %4038 = vmatpush.msrb.mxu0 %v9986_v35  ;;  %4079 = vmatpush.msrb.mxu2 %v3940_v1  ;;  %v11649_v1 = vld [vmem:[#allocation16_spill] sm:$0xff] }
 0x245   : > { %v3802_v48 = vperm.slane %v3767_v47, 1  ;;  %v10127_v57 = vmul.f32 %v3790_v60, %v11635_v20  ;;  %v10130_v19 = vmul.f32 %v3803_v45, %v11615_v37  ;;  %v3801_v30 = vperm.slane %v3767_v47, 0  ;;  %v11648_v45 = vld [vmem:[#allocation15_spill] sm:$0xff]  ;;  %4063 = vmatpush.msrb.mxu1 %v3900_v25  ;;  %3563 = vmatmul.f32.vlgmr.msrb.gmra.mxu3 %v11612_v42 }
 0x246   : > { %v10133_v52 = vmul.f32 %v3778_v0, %v11636_v28  ;;  %v10136_v46 = vmul.f32 %v3788_v43, %v11636_v28  ;;  %v3764_v35 = vsel %vm682_vm15, %v9766_v9, %v9781_v31  ;;  %v10142_v3 = vperm.slane %v11647_v36, 7  ;;  %4039 = vmatpush.msrb.mxu0 %v10013_v18  ;;  %4080 = vmatpush.msrb.mxu2 %v3938_v32 }
 0x247   : > { %v10146_v60 = vmul.f32 %v3778_v0, %v11634_v10  ;;  %v10149_v8 = vmul.f32 %v3788_v43, %v11634_v10  ;;  %v3765_v27 = vrot.slane %v3764_v35, 4  ;;  %v10152_v47 = vperm.slane %v11648_v45, 7  ;;  %3998 = vmatpush.msra.mxu3 %v3941_v22  ;;  %4064 = vmatpush.msrb.mxu1 %v10062_v5 }
 0x248   : > { %v3930_v6 = vmul.f32 %v3802_v48, %v11636_v28  ;;  %v10157_v36 = vmul.f32 %v3778_v0, %v11635_v20  ;;  %v10160_v18 = vmul.f32 %v3788_v43, %v11635_v20  ;;  %v10163_v56 = vperm.slane %v11649_v1, 7  ;;  %4040 = vmatpush.msrb.mxu0 %v10027_v54  ;;  %4081 = vmatpush.msrb.mxu2 %v3936_v44  ;;  %v11650_v44 = vld [vmem:[#allocation21_spill] sm:$0xff] }
 0x249   : > { %v3928_v35 = vmul.f32 %v3802_v48, %v11634_v10  ;;  %v10168_v25 = vmul.f32 %v3802_v48, %v11635_v20  ;;  %v10171_v42 = vmul.f32 %v3801_v30, %v11616_v26  ;;  %v10174_v0 = vperm.slane %v11606_v12, 7  ;;  %3999 = vmatpush.msra.mxu3 %v10071_v63  ;;  %4065 = vmatpush.msrb.mxu1 %v10078_v41 }
 0x24a   : > { %v10178_v43 = vmul.f32 %v3801_v30, %v11619_v4  ;;  %v10181_v54 = vmul.f32 %v3801_v30, %v11615_v37  ;;  %v10186_v32 = vsel %vm679_vm3, %v9766_v9, %v9781_v31  ;;  %v10189_v48 = vperm.slane %v11607_v21, 7  ;;  %4041 = vmatpush.msrb.mxu0 %v10037_v61  ;;  %4082 = vmatpush.msrb.mxu2 %v3934_v40 }
 0x24b   : > { %v3800_v12 = vperm.slane %v3765_v27, 1  ;;  %v10194_v5 = vmul.f32 %v10100_v50, %v11636_v28  ;;  %v10198_v30 = vmul.f32 %v9925_v49, %v11636_v28  ;;  %v3763_v22 = vrot.slane %v10186_v32, 3  ;;  %4000 = vmatpush.msra.mxu3 %v10082_v33  ;;  %4066 = vmatpush.msrb.mxu1 %v10088_v58 }
 0x24c   : > { %v10203_v21 = vperm.slane %v3765_v27, 0  ;;  %v10207_v9 = vmul.f32 %v10100_v50, %v11634_v10  ;;  %vm4124_vm14 = vcmp.eq.f32.partialorder %v11613_v62, %v10123_v16  ;;  %v10212_v31 = vperm.slane %v11575_v15, 7  ;;  %4042 = vmatpush.msrb.mxu0 %v10053_v53  ;;  %4083 = vmatpush.msrb.mxu2 %v10106_v14 }
 0x24d   : > { %v10217_v61 = vmul.f32 %v9925_v49, %v11634_v10  ;;  %vm4125_vm7 = vcmp.eq.f32.partialorder %v11613_v62, %v10142_v3  ;;  %v5484_v63 = vsel %vm4124_vm14, 1.0, %v11341_v39  ;;  %vm4152_vm8 = vcmp.eq.f32.partialorder %v11613_v62, %v10174_v0  ;;  %4001 = vmatpush.msra.mxu3 %v10109_v59  ;;  %4067 = vmatpush.msrb.mxu1 %v10114_v38 }
 0x24e   : > { %v10228_v15 = vperm.slane %v3763_v22, 1  ;;  %v5485_v53 = vsel %vm4125_vm7, 1.0, %v11341_v39  ;;  %vm4153_vm9 = vcmp.eq.f32.partialorder %v11613_v62, %v10189_v48  ;;  %v5490_v49 = vsel %vm4152_vm8, 1.0, %v11341_v39  ;;  %4043 = vmatpush.msrb.mxu0 %v10059_v34  ;;  %4084 = vmatpush.msrb.mxu2 %v3930_v6 }
 0x24f   : > { %v4144_v41 = vmul.f32 %v5484_v63, %v10152_v47  ;;  %v4145_v33 = vmul.f32 %v5485_v53, %v10163_v56  ;;  %v5491_v58 = vsel %vm4153_vm9, 1.0, %v11341_v39  ;;  %v10240_v40 = vperm.slane %v11650_v44, 7  ;;  %4002 = vmatpush.msra.mxu3 %v10117_v17  ;;  %4068 = vmatpush.msrb.mxu1 %v10127_v57 }
 0x250   : > { %v3924_v27 = vmul.f32 %v3800_v12, %v11636_v28  ;;  %v3922_v45 = vmul.f32 %v3800_v12, %v11634_v10  ;;  %v4172_v34 = vmul.f32 %v5490_v49, %v10212_v31  ;;  %4044 = vmatpush.msrb.mxu0 %v10075_v2  ;;  %v3920_v14 = vmul.f32 %v3800_v12, %v11635_v20 }
 0x251   : > { %v3923_v1 = vmul.f32 %v10203_v21, %v11616_v26  ;;  %v4173_v63 = vmul.f32 %v5491_v58, %v10240_v40  ;;  %v10256_v59 = vmul.f32 %v10228_v15, %v11636_v28  ;;  %v10260_v38 = vmul.f32 %v10203_v21, %v11619_v4  ;;  %4085 = vmatpush.msrb.mxu2 %v3928_v35 }
 0x252   : > { %v10264_v6 = vmul.f32 %v10100_v50, %v11635_v20  ;;  %4045 = vmatpush.msrb.mxu0 %v10085_v24  ;;  %v10267_v2 = vadd.f32 %v4172_v34, %v4144_v41  ;;  %v10271_v57 = vmul.f32 %v10228_v15, %v11634_v10  ;;  %4003 = vmatpush.msra.mxu3 %v10130_v19  ;;  %v2542_v12 = vpop.f32.mrf.mxu3 }
 0x253   : > { %v4179_v17 = vadd.f32 %v4173_v63, %v4145_v33  ;;  %4069 = vmatpush.msrb.mxu1 %v10136_v46  ;;  %vm4126_vm11 = vcmp.eq.f32.partialorder %v11625_v51, %v10123_v16  ;;  %vm4127_vm12 = vcmp.eq.f32.partialorder %v11625_v51, %v10142_v3  ;;  %vm4154_vm13 = vcmp.eq.f32.partialorder %v11625_v51, %v10174_v0 }
 0x254   : > { %4046 = vmatpush.msrb.mxu0 %v10094_v55  ;;  %4086 = vmatpush.msrb.mxu2 %v10168_v25  ;;  %v5486_v50 = vsel %vm4126_vm11, 1.0, %v11341_v39  ;;  %v5487_v19 = vsel %vm4127_vm12, 1.0, %v11341_v39  ;;  %vm4155_vm14 = vcmp.eq.f32.partialorder %v11625_v51, %v10189_v48  ;;  %v5492_v55 = vsel %vm4154_vm13, 1.0, %v11341_v39 }
 0x255   : > { %v10283_v24 = vrot.slane %v4179_v17, 7  ;;  %4004 = vmatpush.msra.mxu3 %v10171_v42  ;;  %4070 = vmatpush.msrb.mxu1 %v10149_v8  ;;  %v4146_v46 = vmul.f32 %v5486_v50, %v10152_v47  ;;  %v4147_v35 = vmul.f32 %v5487_v19, %v10163_v56  ;;  %v5493_v25 = vsel %vm4155_vm14, 1.0, %v11341_v39 }
 0x256   : > { %4047 = vmatpush.msrb.mxu0 %v10120_v7  ;;  %4087 = vmatpush.msrb.mxu2 %v3924_v27  ;;  %v3797_v42 = vperm.slane %v3763_v22, 0  ;;  %v2522_v7 = vpop.f32.mrf.mxu2  ;;  %v2562_v27 = vpop.f32.mrf.mxu0  ;;  %v3919_v63 = vmul.f32 %v10203_v21, %v11615_v37  ;;  %v11651_v21 = vld [vmem:[#allocation65_spill] sm:$0xff] }
 0x257   : > { %v10299_v53 = vsel %vm691_vm2, %v10283_v24, %v10267_v2  ;;  %v10304_v8 = vsel %vm676_vm5, %v10267_v2, %v10283_v24  ;;  %v10311_v49 = vsel %vm673_vm0, %v10267_v2, %v10283_v24  ;;  %4005 = vmatpush.msra.mxu3 %v10178_v43  ;;  %4071 = vmatpush.msrb.mxu1 %v10160_v18 }
 0x258   : > { %v4282_v41 = vrot.slane %v10299_v53, 7  ;;  %v11303_v33 = vrot.slane %v10304_v8, 2  ;;  %v11302_v58 = vrot.slane %v10311_v49, 1  ;;  %v10321_v32 = vsel %vm688_vm6, %v10267_v2, %v10283_v24  ;;  %4048 = vmatpush.msrb.mxu0 %v10133_v52  ;;  %4088 = vmatpush.msrb.mxu2 %v3922_v45 }
 0x259   : > { %v4280_v22 = vrot.slane %v10321_v32, 6  ;;  %v4174_v43 = vmul.f32 %v5492_v55, %v10212_v31  ;;  %v4175_v18 = vmul.f32 %v5493_v25, %v10240_v40  ;;  %v2543_v44 = vadd.f32 %v2542_v12, %v2522_v7  ;;  %4006 = vmatpush.msra.mxu3 %v10181_v54  ;;  %4072 = vmatpush.msrb.mxu1 %v10198_v30  ;;  %v11653_v12 = vld [vmem:[#allocation61_spill] sm:$0xff] }
 0x25a   : > { %v4316_v34 = vperm.slane %v4282_v41, 0  ;;  %v10335_v52 = vperm.slane %v11303_v33, 0  ;;  %v3914_v45 = vmul.f32 %v10228_v15, %v11635_v20  ;;  %4049 = vmatpush.msrb.mxu0 %v10146_v60  ;;  %4089 = vmatpush.msrb.mxu2 %v3920_v14  ;;  %v4304_v54 = vperm.slane %v11302_v58, 0  ;;  %v2582_v15 = vpop.f32.mrf.mxu1  ;;  %v11652_v14 = vld [vmem:[#allocation63_spill] sm:$0xff] }
 0x25b   : > { %v4180_v30 = vadd.f32 %v4174_v43, %v4146_v46  ;;  %v4181_v17 = vadd.f32 %v4175_v18, %v4147_v35  ;;  %v2563_v50 = vadd.f32 %v2562_v27, %v2543_v44  ;;  %4007 = vmatpush.msra.mxu3 %v3923_v1  ;;  %4073 = vmatpush.msrb.mxu1 %v10217_v61  ;;  %v4314_v60 = vperm.slane %v4280_v22, 0 }
 0x25c   : > { %v4452_v19 = vmul.f32 %v4316_v34, %v11651_v21  ;;  %v3917_v55 = vmul.f32 %v3797_v42, %v11616_v26  ;;  %v3912_v25 = vmul.f32 %v9904_v13, %v11636_v28  ;;  %4050 = vmatpush.msrb.mxu0 %v10157_v36  ;;  %4090 = vmatpush.msrb.mxu2 %v10256_v59  ;;  %v10390_v27 = vperm.slane %v9973_v11, 1 }
 0x25d   : > { %v4450_v46 = vmul.f32 %v4316_v34, %v11652_v14  ;;  %v3915_v1 = vmul.f32 %v3797_v42, %v11619_v4  ;;  %v4252_v61 = vrot.slane %v4181_v17, 7  ;;  %v3913_v35 = vmul.f32 %v3797_v42, %v11615_v37  ;;  %4008 = vmatpush.msra.mxu3 %v10260_v38  ;;  %4074 = vmatmul.f32.vlgmr.msrb.gmra.mxu1 %v11644_v29 }
 0x25e   : > { %v4420_v13 = vmul.f32 %v10335_v52, %v11652_v14  ;;  %v4418_v7 = vmul.f32 %v10335_v52, %v11653_v12  ;;  %v10360_v36 = vadd.f32 %v2582_v15, %v2563_v50  ;;  %4051 = vmatpush.msrb.mxu0 %v10194_v5  ;;  %4509 = vmatpush.msra.mxu1 %v4452_v19  ;;  %v11654_v29 = vrot.slane %v9967_v23, 1  ;;  %v11656_v19 = vld [vmem:[#allocation39_spill] sm:$0xff] }
 0x25f   : > { %v4448_v4 = vmul.f32 %v4316_v34, %v11653_v12  ;;  %v4416_v59 = vmul.f32 %v4304_v54, %v11651_v21  ;;  %v10366_v37 = vsel %vm673_vm0, %v4180_v30, %v4252_v61  ;;  %4091 = vmatpush.msrb.mxu2 %v10271_v57  ;;  %4009 = vmatpush.msra.mxu3 %v3919_v63 }
 0x260   : > { %v3810_v38 = vperm.slane %v11654_v29, 1  ;;  %v4446_v42 = vmul.f32 %v4314_v60, %v11651_v21  ;;  %v4285_v43 = vrot.slane %v10366_v37, 1  ;;  %v4414_v5 = vmul.f32 %v4304_v54, %v11652_v14  ;;  %4052 = vmatpush.msrb.mxu0 %v10207_v9  ;;  %4510 = vmatpush.msra.mxu1 %v4450_v46 }
 0x261   : > { %v4444_v18 = vmul.f32 %v4314_v60, %v11652_v14  ;;  %v10379_v44 = vsel %vm671_vm4, %v10267_v2, %v10283_v24  ;;  %v10384_v23 = vsel %vm685_vm10, %v10267_v2, %v10283_v24  ;;  %v10387_v57 = vsel %vm671_vm4, %v4180_v30, %v4252_v61  ;;  %4092 = vmatpush.msrb.mxu2 %v3914_v45  ;;  %v11655_v30 = vld [vmem:[#allocation48_spill] sm:$0xff] }
 0x262   : > { %4010 = vmatpush.msra.mxu3 %v3917_v55  ;;  %v4320_v9 = vperm.slane %v4285_v43, 0  ;;  %v4302_v34 = vperm.slane %v10379_v44, 0  ;;  %v4278_v63 = vrot.slane %v10384_v23, 5  ;;  %v4318_v17 = vperm.slane %v10387_v57, 0  ;;  %4053 = vmatpush.msrb.mxu0 %v10264_v6 }
 0x263   : > { %4511 = vmatpush.msra.mxu1 %v4448_v4  ;;  %v3911_v50 = vmul.f32 %v11655_v30, %v11616_v26  ;;  %v4412_v11 = vmul.f32 %v4304_v54, %v11653_v12  ;;  %v4442_v45 = vmul.f32 %v4314_v60, %v11653_v12  ;;  %4054 = vmatmul.f32.vlgmr.msrb.gmra.mxu0 %v11656_v19  ;;  %v11659_v19 = vld [vmem:[#allocation66_spill] sm:$0xff] }
 0x264   : > { %4093 = vmatpush.msrb.mxu2 %v3912_v25  ;;  %v4464_v55 = vmul.f32 %v4320_v9, %v11651_v21  ;;  %v3954_v15 = vmul.f32 %v3810_v38, %v11636_v28  ;;  %v4312_v46 = vperm.slane %v4278_v63, 0  ;;  %v3952_v6 = vmul.f32 %v3810_v38, %v11634_v10  ;;  %4489 = vmatpush.msra.mxu0 %v4420_v13  ;;  %v11657_v25 = vld [vmem:[#allocation33_spill] sm:$0xff] }
 0x265   : > { %4011 = vmatpush.msra.mxu3 %v3915_v1  ;;  %v4462_v26 = vmul.f32 %v4320_v9, %v11652_v14  ;;  %v10410_v54 = vmul.f32 %v3810_v38, %v11635_v20  ;;  %v10414_v60 = vmul.f32 %v10390_v27, %v11636_v28  ;;  %4094 = vmatmul.f32.vlgmr.msrb.gmra.mxu2 %v11657_v25  ;;  %v11658_v28 = vld [vmem:[#allocation5_spill] sm:$0xff] }
 0x266   : > { %4512 = vmatpush.msra.mxu1 %v4446_v42  ;;  %v4460_v61 = vmul.f32 %v4320_v9, %v11653_v12  ;;  %v4410_v4 = vmul.f32 %v4302_v34, %v11651_v21  ;;  %v4458_v29 = vmul.f32 %v4318_v17, %v11651_v21  ;;  %4490 = vmatpush.msra.mxu0 %v4418_v7 }
 0x267   : > { %4539 = vmatpush.msra.mxu2 %v4464_v55  ;;  %v4440_v1 = vmul.f32 %v4312_v46, %v11651_v21  ;;  %v4408_v13 = vmul.f32 %v4302_v34, %v11652_v14  ;;  %v4438_v38 = vmul.f32 %v4312_v46, %v11652_v14  ;;  %4012 = vmatpush.msra.mxu3 %v3913_v35 }
 0x268   : > { %4513 = vmatpush.msra.mxu1 %v4444_v18  ;;  %vm4122_vm7 = vcmp.eq.f32.partialorder %v11658_v28, %v10123_v16  ;;  %vm4123_vm8 = vcmp.eq.f32.partialorder %v11658_v28, %v10142_v3  ;;  %vm4150_vm9 = vcmp.eq.f32.partialorder %v11658_v28, %v10174_v0  ;;  %4491 = vmatpush.msra.mxu0 %v4416_v59 }
 0x269   : > { %4540 = vmatpush.msra.mxu2 %v4462_v26  ;;  %v5482_v7 = vsel %vm4122_vm7, 1.0, %v11341_v39  ;;  %v5483_v42 = vsel %vm4123_vm8, 1.0, %v11341_v39  ;;  %vm4151_vm11 = vcmp.eq.f32.partialorder %v11658_v28, %v10189_v48  ;;  %v5488_v35 = vsel %vm4150_vm9, 1.0, %v11341_v39  ;;  %4013 = vmatpush.msra.mxu3 %v3911_v50 }
 0x26a   : > { %4514 = vmatpush.msra.mxu1 %v4442_v45  ;;  %v4142_v16 = vmul.f32 %v5482_v7, %v10152_v47  ;;  %v4143_v3 = vmul.f32 %v5483_v42, %v10163_v56  ;;  %v5489_v18 = vsel %vm4151_vm11, 1.0, %v11341_v39  ;;  %v4170_v0 = vmul.f32 %v5488_v35, %v10212_v31  ;;  %4492 = vmatpush.msra.mxu0 %v4414_v5 }
 0x26b   : > { %4541 = vmatpush.msra.mxu2 %v4460_v61  ;;  %v4456_v59 = vmul.f32 %v4318_v17, %v11652_v14  ;;  %v4171_v9 = vmul.f32 %v5489_v18, %v10240_v40  ;;  %v10443_v48 = vsel %vm682_vm15, %v10267_v2, %v10283_v24  ;;  %v10447_v47 = vperm.slane %v4285_v43, 1  ;;  %4014 = vmatmul.f32.vlgmr.msra.gmra.mxu3 %v11657_v25 }
 0x26c   : > { %4515 = vmatpush.msra.mxu1 %v4440_v1  ;;  %v4406_v56 = vmul.f32 %v4302_v34, %v11653_v12  ;;  %v4436_v31 = vmul.f32 %v4312_v46, %v11653_v12  ;;  %v4454_v5 = vmul.f32 %v4318_v17, %v11653_v12  ;;  %v4276_v40 = vrot.slane %v10443_v48, 4  ;;  %4493 = vmatpush.msra.mxu0 %v4412_v11 }
 0x26d   : > { %4108 = vmatpush.msrb.mxu3 %v3954_v15  ;;  %v10454_v30 = vadd.f32 %v4170_v0, %v4142_v16  ;;  %v4177_v50 = vadd.f32 %v4171_v9, %v4143_v3  ;;  %v10459_v37 = vsel %vm679_vm3, %v10267_v2, %v10283_v24  ;;  %4542 = vmatpush.msra.mxu2 %v4458_v29  ;;  %v10468_v11 = vperm.slane %v4282_v41, 1  ;;  %v11660_v29 = vld [vmem:[#allocation64_spill] sm:$0xff]  ;;  %v11662_v0 = vld [vmem:[#allocation62_spill] sm:$0xff] }
 0x26e   : > { %4516 = vmatpush.msra.mxu1 %v4438_v38  ;;  %v4310_v43 = vperm.slane %v4276_v40, 0  ;;  %v3946_v34 = vmul.f32 %v10390_v27, %v11634_v10  ;;  %v11301_v17 = vrot.slane %v10459_v37, 3  ;;  %4494 = vmatpush.msra.mxu0 %v4410_v4  ;;  %v3944_v2 = vmul.f32 %v10390_v27, %v11635_v20 }
 0x26f   : > { %4109 = vmatpush.msrb.mxu3 %v3952_v6  ;;  %v10470_v45 = vrot.slane %v4177_v50, 7  ;;  %v10476_v24 = vmul.f32 %v10335_v52, %v11651_v21  ;;  %v10480_v10 = vmul.f32 %v10447_v47, %v11659_v19  ;;  %4543 = vmatpush.msra.mxu2 %v4456_v59  ;;  %v10512_v4 = vmul.f32 %v10468_v11, %v11659_v19 }
 0x270   : > { %4517 = vmatpush.msra.mxu1 %v4436_v31  ;;  %v4434_v53 = vmul.f32 %v4310_v43, %v11651_v21  ;;  %v4432_v41 = vmul.f32 %v4310_v43, %v11652_v14  ;;  %v4430_v55 = vmul.f32 %v4310_v43, %v11653_v12  ;;  %4495 = vmatpush.msra.mxu0 %v4408_v13  ;;  %v4308_v15 = vperm.slane %v11301_v17, 0  ;;  %v11661_v13 = vld [vmem:[#allocation37_spill] sm:$0xff] }
 0x271   : > { %4110 = vmatpush.msrb.mxu3 %v10410_v54  ;;  %v4262_v20 = vsel %vm685_vm10, %v10454_v30, %v10470_v45  ;;  %v10492_v52 = vsel %vm691_vm2, %v10470_v45, %v10454_v30  ;;  %v4260_v27 = vsel %vm682_vm15, %v10454_v30, %v10470_v45  ;;  %4544 = vmatpush.msra.mxu2 %v4454_v5  ;;  %v11671_v17 = vld [vmem:[#allocation13_spill] sm:$0xff] }
 0x272   : > { %v4263_v46 = vrot.slane %v4262_v20, 5  ;;  %v11300_v6 = vrot.slane %v10492_v52, 7  ;;  %4518 = vmatpush.msra.mxu1 %v4434_v53  ;;  %v4261_v26 = vrot.slane %v4260_v27, 4  ;;  %v10503_v54 = vsel %vm688_vm6, %v10454_v30, %v10470_v45  ;;  %4496 = vmatpush.msra.mxu0 %v4406_v56  ;;  %v11663_v20 = vld [vmem:[#allocation82_spill] sm:$0xff] }
 0x273   : > { %4111 = vmatpush.msrb.mxu3 %v10414_v60  ;;  %v11299_v25 = vrot.slane %v10503_v54, 6  ;;  %v4258_v61 = vsel %vm679_vm3, %v10454_v30, %v10470_v45  ;;  %v10516_v1 = vmul.f32 %v10447_v47, %v11660_v29  ;;  %5506 = vmatmul.msk.f32.vlgmr.msra.gmra.mxu2 %vm1238_vm1, %v11661_v13  ;;  %v4428_v3 = vmul.f32 %v4308_v15, %v11651_v21 }
 0x274   : > { %v10520_v38 = vperm.slane %v4263_v46, 1  ;;  %v4300_v60 = vperm.slane %v11300_v6, 0  ;;  %v4295_v7 = vperm.slane %v4261_v26, 1  ;;  %4519 = vmatpush.msra.mxu1 %v4432_v41  ;;  %v4296_v42 = vperm.slane %v4263_v46, 0 }
 0x275   : > { %4112 = vmatpush.msrb.mxu3 %v3946_v34  ;;  %v4294_v35 = vperm.slane %v4261_v26, 0  ;;  %v4298_v16 = vperm.slane %v11299_v25, 0  ;;  %v4259_v18 = vrot.slane %v4258_v61, 3  ;;  %v4426_v50 = vmul.f32 %v4308_v15, %v11652_v14  ;;  %v11666_v25 = vld [vmem:[#allocation79_spill] sm:$0xff] }
 0x276   : > { %v4389_v59 = vmul.f32 %v10520_v38, %v11662_v0  ;;  %v4404_v9 = vmul.f32 %v4300_v60, %v11651_v21  ;;  %v4387_v56 = vmul.f32 %v4295_v7, %v11659_v19  ;;  %v4402_v31 = vmul.f32 %v4300_v60, %v11652_v14  ;;  %4520 = vmatpush.msra.mxu1 %v4430_v55 }
 0x277   : > { %4113 = vmatpush.msrb.mxu3 %v3944_v2  ;;  %v4388_v5 = vmul.f32 %v4296_v42, %v11653_v12  ;;  %v10536_v43 = vmul.f32 %v10468_v11, %v11660_v29  ;;  %v10540_v34 = vmul.f32 %v10447_v47, %v11662_v0  ;;  %v4385_v53 = vmul.f32 %v4295_v7, %v11660_v29 }
 0x278   : > { %4549 = vmatpush.msrb.mxu2 %v4389_v59  ;;  %4497 = vmatpush.msra.mxu0 %v4404_v9  ;;  %v4400_v41 = vmul.f32 %v4300_v60, %v11653_v12  ;;  %v4293_v55 = vperm.slane %v4259_v18, 1  ;;  %v4424_v2 = vmul.f32 %v4308_v15, %v11653_v12  ;;  %v4383_v27 = vmul.f32 %v4295_v7, %v11662_v0 }
 0x279   : > { %5481 = vmatmul.msk.f32.vlgmr.msrb.gmra.mxu3 %vm1238_vm1, %v11663_v20  ;;  %v4386_v46 = vmul.f32 %v4294_v35, %v11651_v21  ;;  %v4398_v26 = vmul.f32 %v4298_v16, %v11651_v21  ;;  %4521 = vmatpush.msra.mxu1 %v4428_v3  ;;  %v4292_v47 = vperm.slane %v4259_v18, 0  ;;  %v4384_v61 = vmul.f32 %v4294_v35, %v11652_v14 }
 0x27a   : > { %4550 = vmatpush.msrb.mxu2 %v4387_v56  ;;  %4498 = vmatpush.msra.mxu0 %v4402_v31  ;;  %v4396_v60 = vmul.f32 %v4298_v16, %v11652_v14  ;;  %v4382_v59 = vmul.f32 %v4294_v35, %v11653_v12  ;;  %v10554_v15 = vperm.slane %v10387_v57, 1  ;;  %v4381_v7 = vmul.f32 %v4293_v55, %v11659_v19 }
 0x27b   : > { %4469 = vmatpush.msra.mxu3 %v4388_v5  ;;  %4522 = vmatpush.msra.mxu1 %v4426_v50  ;;  %v4394_v9 = vmul.f32 %v4298_v16, %v11653_v12  ;;  %v4256_v3 = vsel %vm676_vm5, %v10454_v30, %v10470_v45  ;;  %v10563_v18 = vperm.slane %v4280_v22, 1  ;;  %v4379_v35 = vmul.f32 %v4293_v55, %v11660_v29  ;;  %v11664_v22 = vld [vmem:[#allocation8_spill] sm:$0xff] }
 0x27c   : > { %4551 = vmatpush.msrb.mxu2 %v4385_v53  ;;  %4499 = vmatpush.msra.mxu0 %v4400_v41  ;;  %v4377_v57 = vmul.f32 %v4293_v55, %v11662_v0  ;;  %v4380_v56 = vmul.f32 %v4292_v47, %v11651_v21  ;;  %v4257_v31 = vrot.slane %v4256_v3, 2  ;;  %v4392_v16 = vmul.f32 %v4296_v42, %v11651_v21  ;;  %v11665_v3 = vld [vmem:[#allocation46_spill] sm:$0xff] }
 0x27d   : > { %4470 = vmatpush.msra.mxu3 %v4386_v46  ;;  %4523 = vmatpush.msra.mxu1 %v4424_v2  ;;  %v4378_v5 = vmul.f32 %v4292_v47, %v11652_v14  ;;  %v4254_v32 = vsel %vm673_vm0, %v10454_v30, %v10470_v45  ;;  %v10574_v50 = vperm.slane %v11664_v22, 0  ;;  %v4390_v41 = vmul.f32 %v4296_v42, %v11652_v14 }
 0x27e   : > { %4552 = vmatpush.msrb.mxu2 %v4383_v27  ;;  %4500 = vmatpush.msra.mxu0 %v4398_v26  ;;  %v4291_v53 = vperm.slane %v4257_v31, 1  ;;  %v4290_v55 = vperm.slane %v4257_v31, 0  ;;  %v4255_v20 = vrot.slane %v4254_v32, 1  ;;  %v4376_v2 = vmul.f32 %v4292_v47, %v11653_v12  ;;  %v11667_v27 = vld [vmem:[#allocation9_spill] sm:$0xff]  ;;  %v11668_v47 = vld [vmem:[#allocation18_spill] sm:$0xff]  ;;  %v11669_v31 = vld [vmem:[#allocation80_spill] sm:$0xff] }
 0x27f   : > { %4471 = vmatpush.msra.mxu3 %v4384_v61  ;;  %4524 = vmatpush.msra.mxu1 %v10476_v24  ;;  %v10581_v46 = vmul.f32 %v10468_v11, %v11662_v0  ;;  %v10585_v22 = vadd.f32 %v11666_v25, %v11665_v3  ;;  %v10588_v26 = vperm.slane %v11667_v27, 0  ;;  %v4459_v61 = vmul.f32 %v10554_v15, %v11659_v19 }
 0x280   : > { %4553 = vmatpush.msrb.mxu2 %v4381_v7  ;;  %4501 = vmatpush.msra.mxu0 %v4396_v60  ;;  %v4289_v42 = vperm.slane %v4255_v20, 1  ;;  %v10594_v24 = vmul.f32 %v10563_v18, %v11659_v19  ;;  %v10597_v11 = vperm.slane %v11668_v47, 0  ;;  %v4375_v25 = vmul.f32 %v4291_v53, %v11659_v19  ;;  %v11670_v7 = vld [vmem:[#allocation19_spill] sm:$0xff] }
 0x281   : > { %4472 = vmatpush.msra.mxu3 %v4382_v59  ;;  %4525 = vmatmul.f32.vlgmr.msra.gmra.mxu1 %v11669_v31  ;;  %v4373_v32 = vmul.f32 %v4291_v53, %v11660_v29  ;;  %v4371_v60 = vmul.f32 %v4291_v53, %v11662_v0  ;;  %v10604_v3 = vperm.slane %v11670_v7, 0  ;;  %v4374_v27 = vmul.f32 %v4290_v55, %v11651_v21 }
 0x282   : > { %4554 = vmatpush.msrb.mxu2 %v4379_v35  ;;  %4502 = vmatpush.msra.mxu0 %v4394_v9  ;;  %v4372_v6 = vmul.f32 %v4290_v55, %v11652_v14  ;;  %v4288_v47 = vperm.slane %v4255_v20, 0  ;;  %v10609_v59 = vperm.slane %v11671_v17, 0  ;;  %v4369_v58 = vmul.f32 %v4289_v42, %v11659_v19  ;;  %v11672_v35 = vld [vmem:[#allocation14_spill] sm:$0xff] }
 0x283   : > { %4473 = vmatpush.msra.mxu3 %v4380_v56  ;;  %4619 = vmatpush.msrb.mxu1 %v10480_v10  ;;  %v4367_v53 = vmul.f32 %v4289_v42, %v11660_v29  ;;  %v4457_v7 = vmul.f32 %v10554_v15, %v11660_v29  ;;  %v10617_v9 = vperm.slane %v11672_v35, 0  ;;  %v4370_v20 = vmul.f32 %v4290_v55, %v11653_v12  ;;  %v11673_v56 = vld [vmem:[#allocation22_spill] sm:$0xff] }
 0x284   : > { %4555 = vmatpush.msrb.mxu2 %v4377_v57  ;;  %4503 = vmatpush.msra.mxu0 %v4392_v16  ;;  %v10621_v17 = vmul.f32 %v4289_v42, %v11662_v0  ;;  %v10625_v10 = vmul.f32 %v10563_v18, %v11660_v29  ;;  %v10628_v33 = vperm.slane %v11673_v56, 0  ;;  %vm4633_vm12 = vcmp.eq.f32.partialorder %v11658_v28, %v10574_v50  ;;  %v11674_v57 = vld [vmem:[#allocation23_spill] sm:$0xff]  ;;  %v11675_v42 = vld [vmem:[#allocation41_spill] sm:$0xff] }
 0x285   : > { %4474 = vmatpush.msra.mxu3 %v4378_v5  ;;  %4620 = vmatpush.msrb.mxu1 %v10516_v1  ;;  %vm4634_vm13 = vcmp.eq.f32.partialorder %v11658_v28, %v10588_v26  ;;  %vm4661_vm14 = vcmp.eq.f32.partialorder %v11658_v28, %v10609_v59  ;;  %v10638_v16 = vperm.slane %v11674_v57, 0  ;;  %v5508_v55 = vsel %vm4633_vm12, 1.0, %v11341_v39 }
 0x286   : > { %4556 = vmatpush.msrb.mxu2 %v4375_v25  ;;  %4504 = vmatpush.msra.mxu0 %v4390_v41  ;;  %v5509_v5 = vsel %vm4634_vm13, 1.0, %v11341_v39  ;;  %vm4662_vm7 = vcmp.eq.f32.partialorder %v11658_v28, %v10617_v9  ;;  %v5514_v1 = vsel %vm4661_vm14, 1.0, %v11341_v39  ;;  %v4653_v35 = vmul.f32 %v5508_v55, %v10597_v11 }
 0x287   : > { %4505 = vmatmul.f32.vlgmr.msra.gmra.mxu0 %v11675_v42  ;;  %4475 = vmatpush.msra.mxu3 %v4376_v2  ;;  %v4654_v56 = vmul.f32 %v5509_v5, %v10604_v3  ;;  %v5515_v57 = vsel %vm4662_vm7, 1.0, %v11341_v39  ;;  %v4681_v41 = vmul.f32 %v5514_v1, %v10628_v33  ;;  %v4455_v25 = vmul.f32 %v10554_v15, %v11662_v0 }
 0x288   : > { %4557 = vmatpush.msrb.mxu2 %v4373_v32  ;;  %4589 = vmatpush.msrb.mxu0 %v10512_v4  ;;  %v4682_v28 = vmul.f32 %v5515_v57, %v10638_v16  ;;  %v4253_v2 = vsel %vm671_vm4, %v10454_v30, %v10470_v45  ;;  %v4313_v55 = vperm.slane %v4278_v63, 1  ;;  %v4368_v5 = vmul.f32 %v4288_v47, %v11651_v21 }
 0x289   : > { %4621 = vmatpush.msrb.mxu1 %v10540_v34  ;;  %4476 = vmatpush.msra.mxu3 %v4374_v27  ;;  %v10661_v32 = vadd.f32 %v4681_v41, %v4653_v35  ;;  %v4287_v4 = vperm.slane %v4253_v2, 1  ;;  %v4443_v15 = vmul.f32 %v10563_v18, %v11662_v0  ;;  %v4366_v30 = vmul.f32 %v4288_v47, %v11652_v14 }
 0x28a   : > { %4558 = vmatpush.msrb.mxu2 %v4371_v60  ;;  %4590 = vmatpush.msrb.mxu0 %v10536_v43  ;;  %v4688_v1 = vadd.f32 %v4682_v28, %v4654_v56  ;;  %v4364_v23 = vmul.f32 %v4288_v47, %v11653_v12  ;;  %v4441_v45 = vmul.f32 %v4313_v55, %v11659_v19  ;;  %v4286_v27 = vperm.slane %v4253_v2, 0  ;;  %v11676_v56 = vld [vmem:[#allocation44_spill] sm:$0xff] }
 0x28b   : > { %4622 = vmatpush.msrb.mxu1 %v4459_v61  ;;  %4477 = vmatpush.msra.mxu3 %v4372_v6  ;;  %v4363_v63 = vmul.f32 %v4287_v4, %v11659_v19  ;;  %v4439_v34 = vmul.f32 %v4313_v55, %v11660_v29  ;;  %v4361_v43 = vmul.f32 %v4287_v4, %v11660_v29  ;;  %v11677_v2 = vrot.slane %v10304_v8, 2 }
 0x28c   : > { %4559 = vmatpush.msrb.mxu2 %v4369_v58  ;;  %4591 = vmatpush.msrb.mxu0 %v10581_v46  ;;  %v10672_v18 = vrot.slane %v4688_v1, 7  ;;  %vm4635_vm8 = vcmp.eq.f32.partialorder %v11613_v62, %v10574_v50  ;;  %vm4636_vm9 = vcmp.eq.f32.partialorder %v11613_v62, %v10588_v26  ;;  %vm4663_vm11 = vcmp.eq.f32.partialorder %v11613_v62, %v10609_v59  ;;  %v11678_v1 = vld [vmem:[#allocation67_spill] sm:$0xff] }
 0x28d   : > { %4623 = vmatpush.msrb.mxu1 %v4457_v7  ;;  %4478 = vmatpush.msra.mxu3 %v4370_v20  ;;  %v5510_v6 = vsel %vm4635_vm8, 1.0, %v11341_v39  ;;  %v5511_v61 = vsel %vm4636_vm9, 1.0, %v11341_v39  ;;  %vm4664_vm12 = vcmp.eq.f32.partialorder %v11613_v62, %v10617_v9  ;;  %v5516_v47 = vsel %vm4663_vm11, 1.0, %v11341_v39 }
 0x28e   : > { %4560 = vmatpush.msrb.mxu2 %v4367_v53  ;;  %4592 = vmatpush.msrb.mxu0 %v10594_v24  ;;  %v10689_v58 = vsel %vm685_vm10, %v10661_v32, %v10672_v18  ;;  %v10694_v46 = vsel %vm682_vm15, %v10661_v32, %v10672_v18  ;;  %v4655_v60 = vmul.f32 %v5510_v6, %v10597_v11  ;;  %v5517_v7 = vsel %vm4664_vm12, 1.0, %v11341_v39  ;;  %v11679_v6 = vld [vmem:[#allocation76_spill] sm:$0xff] }
 0x28f   : > { %4624 = vmatpush.msrb.mxu1 %v4455_v25  ;;  %4479 = vmatpush.msra.mxu3 %v4368_v5  ;;  %v4774_v62 = vrot.slane %v10689_v58, 5  ;;  %v11305_v24 = vrot.slane %v10694_v46, 4  ;;  %v4656_v53 = vmul.f32 %v5511_v61, %v10604_v3  ;;  %v4683_v20 = vmul.f32 %v5516_v47, %v10628_v33 }
 0x290   : > { %4561 = vmatpush.msrb.mxu2 %v10621_v17  ;;  %4593 = vmatpush.msrb.mxu0 %v10625_v10  ;;  %v4684_v35 = vmul.f32 %v5517_v7, %v10638_v16  ;;  %v10708_v57 = vadd.f32 %v10360_v36, %v11676_v56  ;;  %v4362_v10 = vmul.f32 %v4286_v27, %v11651_v21  ;;  %v4311_v25 = vperm.slane %v4276_v40, 1  ;;  %v11680_v40 = vld [vmem:[#allocation69_spill] sm:$0xff] }
 0x291   : > { %5507 = vmatmul.msk.f32.vlgmr.msrb.gmra.mxu1 %vm1238_vm1, %v11661_v13  ;;  %v10714_v41 = vperm.slane %v4774_v62, 0  ;;  %4480 = vmatpush.msra.mxu3 %v4366_v30  ;;  %v4805_v17 = vperm.slane %v11305_v24, 0  ;;  %v4359_v36 = vmul.f32 %v4287_v4, %v11662_v0  ;;  %v10722_v28 = vadd.f32 %v4683_v20, %v4655_v60 }
 0x292   : > { %4562 = vmatpush.msrb.mxu2 %v4363_v63  ;;  %4594 = vmatpush.msrb.mxu0 %v4443_v15  ;;  %v4690_v13 = vadd.f32 %v4684_v35, %v4656_v53  ;;  %v10726_v5 = vperm.slane %v11677_v2, 1  ;;  %v4437_v21 = vmul.f32 %v4313_v55, %v11662_v0  ;;  %v4360_v48 = vmul.f32 %v4286_v27, %v11652_v14 }
 0x293   : > { %v4899_v30 = vmul.f32 %v10714_v41, %v11678_v1  ;;  %v4897_v61 = vmul.f32 %v4805_v17, %v11679_v6  ;;  %4481 = vmatpush.msra.mxu3 %v4364_v23  ;;  %v4895_v4 = vmul.f32 %v4805_v17, %v11680_v40  ;;  %v10739_v8 = vsel %vm679_vm3, %v10661_v32, %v10672_v18 }
 0x294   : > { %4563 = vmatpush.msrb.mxu2 %v4361_v43  ;;  %4595 = vmatpush.msrb.mxu0 %v4441_v45  ;;  %v10734_v15 = vrot.slane %v4690_v13, 7  ;;  %v11681_v63 = vrot.slane %v10311_v49, 1  ;;  %v4893_v55 = vmul.f32 %v4805_v17, %v11678_v1  ;;  %v11304_v14 = vrot.slane %v10739_v8, 3 }
 0x295   : > { %4980 = vmatpush.msra.mxu1 %v4899_v30  ;;  %4482 = vmatpush.msra.mxu3 %v4362_v10  ;;  %v4435_v23 = vmul.f32 %v4311_v25, %v11659_v19  ;;  %v4358_v45 = vmul.f32 %v4286_v27, %v11653_v12  ;;  %v4421_v47 = vmul.f32 %v10726_v5, %v11660_v29  ;;  %v11682_v53 = vrot.slane %v10459_v37, 3  ;;  %v11683_v12 = vld [vmem:[#allocation81_spill] sm:$0xff] }
 0x296   : > { %v4305_v60 = vperm.slane %v11681_v63, 1  ;;  %4564 = vmatpush.msrb.mxu2 %v4359_v36  ;;  %4596 = vmatpush.msrb.mxu0 %v4439_v34  ;;  %v10750_v43 = vsel %vm676_vm5, %v10722_v28, %v10734_v15  ;;  %v10755_v49 = vsel %vm673_vm0, %v10722_v28, %v10734_v15  ;;  %v4803_v27 = vperm.slane %v11304_v14, 0 }
 0x297   : > { %v4309_v7 = vperm.slane %v11682_v53, 1  ;;  %4981 = vmatpush.msra.mxu1 %v4897_v61  ;;  %4565 = vmatmul.f32.vlgmr.msrb.gmra.mxu2 %v11683_v12  ;;  %v4783_v34 = vrot.slane %v10750_v43, 2  ;;  %v4781_v20 = vrot.slane %v10755_v49, 1  ;;  %v4433_v35 = vmul.f32 %v4311_v25, %v11660_v29 }
 0x298   : > { %4597 = vmatpush.msrb.mxu0 %v4437_v21  ;;  %4483 = vmatpush.msra.mxu3 %v4360_v48  ;;  %v4419_v56 = vmul.f32 %v10726_v5, %v11662_v0  ;;  %v4431_v37 = vmul.f32 %v4311_v25, %v11662_v0  ;;  %v10773_v17 = vsel %vm676_vm5, %v10661_v32, %v10672_v18  ;;  %v10791_v21 = vperm.slane %v10379_v44, 1 }
 0x299   : > { %4982 = vmatpush.msra.mxu1 %v4895_v4  ;;  %v10777_v10 = vperm.slane %v4783_v34, 0  ;;  %v4891_v36 = vmul.f32 %v4803_v27, %v11679_v6  ;;  %v4815_v13 = vperm.slane %v4781_v20, 0  ;;  %v4417_v2 = vmul.f32 %v4305_v60, %v11659_v19 }
 0x29a   : > { %4598 = vmatpush.msrb.mxu0 %v4435_v23  ;;  %4484 = vmatpush.msra.mxu3 %v4358_v45  ;;  %v11306_v25 = vrot.slane %v10773_v17, 2  ;;  %v4429_v30 = vmul.f32 %v4309_v7, %v11659_v19  ;;  %v10788_v61 = vsel %vm671_vm4, %v10722_v28, %v10734_v15  ;;  %v4889_v63 = vmul.f32 %v4803_v27, %v11680_v40 }
 0x29b   : > { %4983 = vmatpush.msra.mxu1 %v4893_v55  ;;  %v4931_v48 = vmul.f32 %v10777_v10, %v11680_v40  ;;  %v4929_v4 = vmul.f32 %v10777_v10, %v11678_v1  ;;  %4485 = vmatmul.f32.vlgmr.msra.gmra.mxu3 %v11683_v12  ;;  %v4813_v23 = vperm.slane %v10788_v61, 0  ;;  %v4927_v45 = vmul.f32 %v4815_v13, %v11679_v6 }
 0x29c   : > { %4569 = vmatpush.msrb.mxu3 %v4421_v47  ;;  %4599 = vmatpush.msrb.mxu0 %v4433_v35  ;;  %v4887_v44 = vmul.f32 %v4803_v27, %v11678_v1  ;;  %v4801_v55 = vperm.slane %v11306_v25, 0  ;;  %v4415_v53 = vmul.f32 %v4305_v60, %v11660_v29  ;;  %v4925_v14 = vmul.f32 %v4815_v13, %v11680_v40 }
 0x29d   : > { %5000 = vmatpush.msra.mxu2 %v4931_v48  ;;  %4984 = vmatpush.msra.mxu1 %v4891_v36  ;;  %v4923_v24 = vmul.f32 %v4815_v13, %v11678_v1  ;;  %v4427_v12 = vmul.f32 %v4309_v7, %v11660_v29  ;;  %v4921_v35 = vmul.f32 %v4813_v23, %v11679_v6  ;;  %v11690_v58 = vrot.slane %v10694_v46, 4 }
 0x29e   : > { %4570 = vmatpush.msrb.mxu3 %v4419_v56  ;;  %4600 = vmatpush.msrb.mxu0 %v4431_v37  ;;  %v4885_v47 = vmul.f32 %v4801_v55, %v11679_v6  ;;  %v4413_v27 = vmul.f32 %v4305_v60, %v11662_v0  ;;  %v4883_v25 = vmul.f32 %v4801_v55, %v11680_v40 }
 0x29f   : > { %5001 = vmatpush.msra.mxu2 %v4929_v4  ;;  %4985 = vmatpush.msra.mxu1 %v4889_v63  ;;  %v4425_v36 = vmul.f32 %v4309_v7, %v11662_v0  ;;  %v10816_v13 = vsel %vm673_vm0, %v10661_v32, %v10672_v18  ;;  %v4411_v37 = vmul.f32 %v10791_v21, %v11659_v19 }
 0x2a0   : > { %4571 = vmatpush.msrb.mxu3 %v4417_v2  ;;  %4601 = vmatpush.msrb.mxu0 %v4429_v30  ;;  %v4766_v56 = vrot.slane %v10816_v13, 1  ;;  %v4423_v60 = vmul.f32 %v10726_v5, %v11659_v19  ;;  %v10826_v48 = vsel %vm691_vm2, %v10672_v18, %v10661_v32  ;;  %vm4637_vm5 = vcmp.eq.f32.partialorder %v11625_v51, %v10574_v50 }
 0x2a1   : > { %5002 = vmatpush.msra.mxu2 %v4927_v45  ;;  %4986 = vmatpush.msra.mxu1 %v4887_v44  ;;  %v4778_v7 = vrot.slane %v10826_v48, 7  ;;  %vm4638_vm13 = vcmp.eq.f32.partialorder %v11625_v51, %v10588_v26  ;;  %vm4665_vm14 = vcmp.eq.f32.partialorder %v11625_v51, %v10609_v59  ;;  %v5512_v2 = vsel %vm4637_vm5, 1.0, %v11341_v39 }
 0x2a2   : > { %4572 = vmatpush.msrb.mxu3 %v4415_v53  ;;  %4602 = vmatpush.msrb.mxu0 %v4427_v12  ;;  %v4799_v5 = vperm.slane %v4766_v56, 0  ;;  %v5513_v30 = vsel %vm4638_vm13, 1.0, %v11341_v39  ;;  %vm4666_vm7 = vcmp.eq.f32.partialorder %v11625_v51, %v10617_v9  ;;  %v4881_v50 = vmul.f32 %v4801_v55, %v11678_v1 }
 0x2a3   : > { %5003 = vmatpush.msra.mxu2 %v4925_v14  ;;  %4987 = vmatpush.msra.mxu1 %v4885_v47  ;;  %v4657_v26 = vmul.f32 %v5512_v2, %v10597_v11  ;;  %v4658_v59 = vmul.f32 %v5513_v30, %v10604_v3  ;;  %v5518_v4 = vsel %vm4665_vm14, 1.0, %v11341_v39  ;;  %v4919_v63 = vmul.f32 %v4813_v23, %v11680_v40 }
 0x2a4   : > { %4573 = vmatpush.msrb.mxu3 %v4413_v27  ;;  %4603 = vmatpush.msrb.mxu0 %v4425_v36  ;;  %v5519_v45 = vsel %vm4666_vm7, 1.0, %v11341_v39  ;;  %v4685_v44 = vmul.f32 %v5518_v4, %v10628_v33  ;;  %v11684_v51 = vrot.slane %v10492_v52, 7  ;;  %v4879_v14 = vmul.f32 %v4799_v5, %v11679_v6 }
 0x2a5   : > { %5004 = vmatpush.msra.mxu2 %v4923_v24  ;;  %4988 = vmatpush.msra.mxu1 %v4883_v25  ;;  %v4811_v11 = vperm.slane %v4778_v7, 0  ;;  %v4686_v3 = vmul.f32 %v5519_v45, %v10638_v16  ;;  %v4409_v55 = vmul.f32 %v10791_v21, %v11660_v29  ;;  %v4917_v53 = vmul.f32 %v4813_v23, %v11678_v1 }
 0x2a6   : > { %v4301_v9 = vperm.slane %v11684_v51, 1  ;;  %4574 = vmatpush.msrb.mxu3 %v4411_v37  ;;  %4604 = vmatpush.msrb.mxu0 %v4423_v60  ;;  %v4877_v39 = vmul.f32 %v4799_v5, %v11680_v40  ;;  %v4691_v33 = vadd.f32 %v4685_v44, %v4657_v26  ;;  %v4407_v24 = vmul.f32 %v10791_v21, %v11662_v0 }
 0x2a7   : > { %5005 = vmatpush.msra.mxu2 %v4921_v35  ;;  %4989 = vmatpush.msra.mxu1 %v4881_v50  ;;  %v4692_v52 = vadd.f32 %v4686_v3, %v4658_v59  ;;  %v10863_v16 = vsel %vm671_vm4, %v10661_v32, %v10672_v18  ;;  %v10871_v12 = vsel %vm688_vm6, %v10661_v32, %v10672_v18  ;;  %v11685_v36 = vrot.slane %v10503_v54, 6 }
 0x2a8   : > { %4605 = vmatmul.f32.vlgmr.msrb.gmra.mxu0 %v11669_v31  ;;  %4575 = vmatpush.msrb.mxu3 %v4409_v55  ;;  %v4797_v25 = vperm.slane %v10863_v16, 0  ;;  %v4405_v23 = vmul.f32 %v4301_v9, %v11659_v19  ;;  %v4915_v21 = vmul.f32 %v4811_v11, %v11679_v6  ;;  %v4875_v35 = vmul.f32 %v4799_v5, %v11678_v1 }
 0x2a9   : > { %5006 = vmatpush.msra.mxu2 %v4919_v63  ;;  %4990 = vmatpush.msra.mxu1 %v4879_v14  ;;  %v4763_v47 = vrot.slane %v4692_v52, 7  ;;  %v4776_v27 = vrot.slane %v10871_v12, 6  ;;  %v4403_v31 = vmul.f32 %v4301_v9, %v11660_v29  ;;  %v4299_v37 = vperm.slane %v11685_v36, 1  ;;  %v11686_v14 = vld [vmem:[#allocation70_spill] sm:$0xff]  ;;  %v11687_v52 = vld [vmem:[#allocation68_spill] sm:$0xff] }
 0x2aa   : > { %4576 = vmatpush.msrb.mxu3 %v4407_v24  ;;  %v4913_v18 = vmul.f32 %v4811_v11, %v11680_v40  ;;  %v4873_v60 = vmul.f32 %v4797_v25, %v11679_v6  ;;  %v4401_v30 = vmul.f32 %v4301_v9, %v11662_v0  ;;  %v4911_v54 = vmul.f32 %v4811_v11, %v11678_v1 }
 0x2ab   : > { %5007 = vmatpush.msra.mxu2 %v4917_v53  ;;  %4991 = vmatpush.msra.mxu1 %v4877_v39  ;;  %v10880_v32 = vsel %vm673_vm0, %v4691_v33, %v4763_v47  ;;  %v4809_v5 = vperm.slane %v4776_v27, 0  ;;  %v4871_v50 = vmul.f32 %v4797_v25, %v11680_v40  ;;  %v10891_v26 = vsel %vm671_vm4, %v4691_v33, %v4763_v47 }
 0x2ac   : > { %v4796_v2 = vrot.slane %v10880_v32, 1  ;;  %4577 = vmatpush.msrb.mxu3 %v4405_v23  ;;  %v10895_v59 = vperm.slane %v4783_v34, 1  ;;  %v4399_v63 = vmul.f32 %v4299_v37, %v11659_v19  ;;  %v4869_v44 = vmul.f32 %v4797_v25, %v11678_v1  ;;  %v11688_v23 = vld [vmem:[#allocation42_spill] sm:$0xff] }
 0x2ad   : > { %5008 = vmatpush.msra.mxu2 %v4915_v21  ;;  %4992 = vmatpush.msra.mxu1 %v4875_v35  ;;  %v4909_v45 = vmul.f32 %v4809_v5, %v11679_v6  ;;  %v4829_v43 = vperm.slane %v10891_v26, 0  ;;  %v4907_v34 = vmul.f32 %v4809_v5, %v11680_v40  ;;  %v4816_v3 = vperm.slane %v4781_v20, 1  ;;  %v11689_v35 = vld [vmem:[#allocation71_spill] sm:$0xff] }
 0x2ae   : > { %v4831_v4 = vperm.slane %v4796_v2, 0  ;;  %4578 = vmatpush.msrb.mxu3 %v4403_v31  ;;  %v4932_v11 = vmul.f32 %v10895_v59, %v11686_v14  ;;  %v4397_v53 = vmul.f32 %v4299_v37, %v11660_v29  ;;  %v4792_v39 = vsel %vm691_vm2, %v10734_v15, %v10722_v28 }
 0x2af   : > { %5009 = vmatpush.msra.mxu2 %v4913_v18  ;;  %4993 = vmatpush.msra.mxu1 %v4873_v60  ;;  %v4905_v33 = vmul.f32 %v4809_v5, %v11678_v1  ;;  %v4930_v24 = vmul.f32 %v10895_v59, %v11687_v52  ;;  %v4793_v25 = vrot.slane %v4792_v39, 7  ;;  %v4393_v49 = vmul.f32 %v10520_v38, %v11659_v19 }
 0x2b0   : > { %v4975_v51 = vmul.f32 %v4831_v4, %v11679_v6  ;;  %v4973_v9 = vmul.f32 %v4831_v4, %v11680_v40  ;;  %4579 = vmatpush.msrb.mxu3 %v4401_v30  ;;  %v4971_v55 = vmul.f32 %v4831_v4, %v11678_v1  ;;  %v4969_v20 = vmul.f32 %v4829_v43, %v11679_v6 }
 0x2b1   : > { %5010 = vmatpush.msra.mxu2 %v4911_v54  ;;  %4994 = vmatpush.msra.mxu1 %v4871_v50  ;;  %v4395_v21 = vmul.f32 %v4299_v37, %v11662_v0  ;;  %v4903_v47 = vmul.f32 %v10714_v41, %v11679_v6  ;;  %v4928_v31 = vmul.f32 %v4816_v3, %v11689_v35  ;;  %v4828_v36 = vperm.slane %v4793_v25, 1 }
 0x2b2   : > { %5050 = vmatpush.msra.mxu0 %v4975_v51  ;;  %4580 = vmatpush.msrb.mxu3 %v4399_v63  ;;  %v4967_v18 = vmul.f32 %v4829_v43, %v11680_v40  ;;  %v10929_v19 = vperm.slane %v4774_v62, 1  ;;  %v4790_v0 = vsel %vm688_vm6, %v10722_v28, %v10734_v15  ;;  %v4901_v37 = vmul.f32 %v10714_v41, %v11680_v40  ;;  %v11691_v51 = vld [vmem:[#allocation31_spill] sm:$0xff] }
 0x2b3   : > { %5011 = vmatpush.msra.mxu2 %v4909_v45  ;;  %4995 = vmatpush.msra.mxu1 %v4869_v44  ;;  %v4926_v60 = vmul.f32 %v4816_v3, %v11686_v14  ;;  %v4791_v5 = vrot.slane %v4790_v0, 6  ;;  %v4965_v30 = vmul.f32 %v4829_v43, %v11678_v1  ;;  %v4806_v62 = vperm.slane %v11690_v58, 1 }
 0x2b4   : > { %5051 = vmatpush.msra.mxu0 %v4973_v9  ;;  %4996 = vmatmul.f32.vlgmr.msra.gmra.mxu1 %v11688_v23  ;;  %v4814_v54 = vperm.slane %v10788_v61, 1  ;;  %v4964_v50 = vmul.f32 %v4828_v36, %v11689_v35  ;;  %v4900_v41 = vmul.f32 %v10929_v19, %v11687_v52  ;;  %v4924_v4 = vmul.f32 %v4816_v3, %v11687_v52 }
 0x2b5   : > { %5012 = vmatpush.msra.mxu2 %v4907_v34  ;;  %5080 = vmatpush.msrb.mxu1 %v4932_v11  ;;  %v4827_v63 = vperm.slane %v4793_v25, 0  ;;  %v4962_v46 = vmul.f32 %v4828_v36, %v11686_v14  ;;  %v4391_v45 = vmul.f32 %v10520_v38, %v11660_v29  ;;  %v4826_v61 = vperm.slane %v4791_v5, 1  ;;  %v11692_v34 = vld [vmem:[#allocation73_spill] sm:$0xff] }
 0x2b6   : > { %5052 = vmatpush.msra.mxu0 %v4971_v55  ;;  %4581 = vmatpush.msrb.mxu3 %v4397_v53  ;;  %v4898_v44 = vmul.f32 %v4806_v62, %v11689_v35  ;;  %v4922_v9 = vmul.f32 %v4814_v54, %v11689_v35  ;;  %v4788_v43 = vsel %vm685_vm10, %v10722_v28, %v10734_v15  ;;  %v11693_v38 = vrot.slane %v10739_v8, 3 }
 0x2b7   : > { %5013 = vmatpush.msra.mxu2 %v4905_v33  ;;  %5081 = vmatpush.msrb.mxu1 %v4930_v24  ;;  %v4960_v11 = vmul.f32 %v4828_v36, %v11687_v52  ;;  %v4789_v3 = vrot.slane %v4788_v43, 5  ;;  %v4896_v29 = vmul.f32 %v4806_v62, %v11686_v14  ;;  %v4963_v53 = vmul.f32 %v4827_v63, %v11679_v6 }
 0x2b8   : > { %5053 = vmatpush.msra.mxu0 %v4969_v20  ;;  %4582 = vmatpush.msrb.mxu3 %v4395_v21  ;;  %v4804_v55 = vperm.slane %v11693_v38, 1  ;;  %v4920_v39 = vmul.f32 %v4814_v54, %v11686_v14  ;;  %v4958_v33 = vmul.f32 %v4826_v61, %v11689_v35  ;;  %v4812_v24 = vperm.slane %v4778_v7, 1 }
 0x2b9   : > { %5014 = vmatpush.msra.mxu2 %v4903_v47  ;;  %5082 = vmatpush.msrb.mxu1 %v4928_v31  ;;  %v4894_v25 = vmul.f32 %v4806_v62, %v11687_v52  ;;  %v4825_v20 = vperm.slane %v4791_v5, 0  ;;  %v4786_v8 = vsel %vm682_vm15, %v10722_v28, %v10734_v15  ;;  %v4918_v21 = vmul.f32 %v4814_v54, %v11687_v52 }
 0x2ba   : > { %5054 = vmatpush.msra.mxu0 %v4967_v18  ;;  %4583 = vmatpush.msrb.mxu3 %v4393_v49  ;;  %v4961_v49 = vmul.f32 %v4827_v63, %v11680_v40  ;;  %v4956_v47 = vmul.f32 %v4826_v61, %v11686_v14  ;;  %v4824_v48 = vperm.slane %v4789_v3, 1  ;;  %v4892_v7 = vmul.f32 %v4804_v55, %v11689_v35 }
 0x2bb   : > { %5015 = vmatpush.msra.mxu2 %v4901_v37  ;;  %5083 = vmatpush.msrb.mxu1 %v4926_v60  ;;  %v4959_v31 = vmul.f32 %v4827_v63, %v11678_v1  ;;  %v4916_v36 = vmul.f32 %v4812_v24, %v11689_v35  ;;  %v4954_v18 = vmul.f32 %v4826_v61, %v11687_v52  ;;  %v4787_v0 = vrot.slane %v4786_v8, 4 }
 0x2bc   : > { %5055 = vmatpush.msra.mxu0 %v4965_v30  ;;  %5016 = vmatmul.f32.vlgmr.msra.gmra.mxu2 %v11691_v51  ;;  %v11694_v37 = vrot.slane %v10773_v17, 2  ;;  %v4957_v5 = vmul.f32 %v4825_v20, %v11679_v6  ;;  %v4914_v30 = vmul.f32 %v4812_v24, %v11686_v14  ;;  %v4952_v58 = vmul.f32 %v4824_v48, %v11689_v35 }
 0x2bd   : > { %5532 = vmatmul.msk.f32.vlgmr.msra.gmra.mxu0 %vm1238_vm1, %v11692_v34  ;;  %5100 = vmatpush.msrb.mxu2 %v4964_v50  ;;  %v4810_v62 = vperm.slane %v4776_v27, 1  ;;  %v4888_v54 = vmul.f32 %v4804_v55, %v11687_v52  ;;  %v4955_v50 = vmul.f32 %v4825_v20, %v11680_v40  ;;  %v4784_v17 = vsel %vm679_vm3, %v10722_v28, %v10734_v15 }
 0x2be   : > { %5060 = vmatpush.msrb.mxu0 %v4900_v41  ;;  %5084 = vmatpush.msrb.mxu1 %v4924_v4  ;;  %v4802_v60 = vperm.slane %v11694_v37, 1  ;;  %v4823_v41 = vperm.slane %v4789_v3, 0  ;;  %v4912_v4 = vmul.f32 %v4812_v24, %v11687_v52  ;;  %v4950_v63 = vmul.f32 %v4824_v48, %v11686_v14 }
 0x2bf   : > { %5101 = vmatpush.msrb.mxu2 %v4962_v46  ;;  %4584 = vmatpush.msrb.mxu3 %v4391_v45  ;;  %v4822_v46 = vperm.slane %v4787_v0, 1  ;;  %v10994_v12 = vmul.f32 %v10777_v10, %v11679_v6  ;;  %v4953_v45 = vmul.f32 %v4825_v20, %v11678_v1  ;;  %v4910_v28 = vmul.f32 %v4810_v62, %v11689_v35 }
 0x2c0   : > { %5061 = vmatpush.msrb.mxu0 %v4898_v44  ;;  %5085 = vmatpush.msrb.mxu1 %v4922_v9  ;;  %v4886_v27 = vmul.f32 %v4802_v60, %v11689_v35  ;;  %v4948_v15 = vmul.f32 %v4824_v48, %v11687_v52  ;;  %v4785_v61 = vrot.slane %v4784_v17, 3  ;;  %v4884_v44 = vmul.f32 %v4802_v60, %v11686_v14 }
 0x2c1   : > { %5102 = vmatpush.msrb.mxu2 %v4960_v11  ;;  %4585 = vmatmul.f32.vlgmr.msrb.gmra.mxu3 %v11675_v42  ;;  %v4890_v42 = vmul.f32 %v4804_v55, %v11686_v14  ;;  %v4800_v10 = vperm.slane %v4766_v56, 1  ;;  %v4951_v9 = vmul.f32 %v4823_v41, %v11679_v6  ;;  %v4908_v43 = vmul.f32 %v4810_v62, %v11686_v14 }
 0x2c2   : > { %5062 = vmatpush.msrb.mxu0 %v4896_v29  ;;  %5020 = vmatpush.msra.mxu3 %v4963_v53  ;;  %v4946_v11 = vmul.f32 %v4822_v46, %v11689_v35  ;;  %v4882_v3 = vmul.f32 %v4802_v60, %v11687_v52  ;;  %v4949_v29 = vmul.f32 %v4823_v41, %v11680_v40  ;;  %v4821_v38 = vperm.slane %v4787_v0, 0 }
 0x2c3   : > { %5086 = vmatpush.msrb.mxu1 %v4920_v39  ;;  %5103 = vmatpush.msrb.mxu2 %v4958_v33  ;;  %v4906_v13 = vmul.f32 %v4810_v62, %v11687_v52  ;;  %v4944_v56 = vmul.f32 %v4822_v46, %v11686_v14  ;;  %v4820_v55 = vperm.slane %v4785_v61, 1  ;;  %v4880_v53 = vmul.f32 %v4800_v10, %v11689_v35  ;;  %v3013_v62 = vpop.f32.mrf.mxu0 }
 0x2c4   : > { %5063 = vmatpush.msrb.mxu0 %v4894_v25  ;;  %5021 = vmatpush.msra.mxu3 %v4961_v49  ;;  %v4947_v39 = vmul.f32 %v4823_v41, %v11678_v1  ;;  %v4904_v33 = vmul.f32 %v10929_v19, %v11689_v35  ;;  %v4942_v24 = vmul.f32 %v4822_v46, %v11687_v52  ;;  %v4798_v49 = vperm.slane %v10863_v16, 1 }
 0x2c5   : > { %5087 = vmatpush.msrb.mxu1 %v4918_v21  ;;  %5104 = vmatpush.msrb.mxu2 %v4956_v47  ;;  %v4878_v25 = vmul.f32 %v4800_v10, %v11686_v14  ;;  %v4945_v20 = vmul.f32 %v4821_v38, %v11679_v6  ;;  %v4902_v8 = vmul.f32 %v10929_v19, %v11686_v14 }
 0x2c6   : > { %5064 = vmatpush.msrb.mxu0 %v4892_v7  ;;  %5022 = vmatpush.msra.mxu3 %v4959_v31  ;;  %v4940_v21 = vmul.f32 %v4820_v55, %v11689_v35  ;;  %v4876_v47 = vmul.f32 %v4800_v10, %v11687_v52  ;;  %v4943_v48 = vmul.f32 %v4821_v38, %v11680_v40  ;;  %v4819_v7 = vperm.slane %v4785_v61, 0 }
 0x2c7   : > { %5088 = vmatpush.msrb.mxu1 %v4916_v36  ;;  %5105 = vmatpush.msrb.mxu2 %v4954_v18  ;;  %v4938_v16 = vmul.f32 %v4820_v55, %v11686_v14  ;;  %v4874_v31 = vmul.f32 %v4798_v49, %v11689_v35  ;;  %v4941_v36 = vmul.f32 %v4821_v38, %v11678_v1 }
 0x2c8   : > { %5065 = vmatpush.msrb.mxu0 %v4890_v42  ;;  %5023 = vmatpush.msra.mxu3 %v4957_v5  ;;  %v4936_v19 = vmul.f32 %v4820_v55, %v11687_v52  ;;  %v4872_v18 = vmul.f32 %v4798_v49, %v11686_v14  ;;  %v4939_v0 = vmul.f32 %v4819_v7, %v11679_v6  ;;  %v4832_v6 = vperm.slane %v4796_v2, 1 }
 0x2c9   : > { %5089 = vmatpush.msrb.mxu1 %v4914_v30  ;;  %5106 = vmatpush.msrb.mxu2 %v4952_v58  ;;  %v4934_v42 = vmul.f32 %v10895_v59, %v11689_v35  ;;  %v4870_v37 = vmul.f32 %v4798_v49, %v11687_v52  ;;  %v4937_v60 = vmul.f32 %v4819_v7, %v11680_v40  ;;  %v11695_v59 = vld [vmem:[#allocation40_spill] sm:$0xff]  ;;  %v4830_v30 = vperm.slane %v10891_v26, 1  ;;  %v2973_v26 = vpop.f32.mrf.mxu2  ;;  %v2953_v58 = vpop.f32.mrf.mxu1 }
 0x2ca   : > { %5066 = vmatpush.msrb.mxu0 %v4888_v54  ;;  %5024 = vmatpush.msra.mxu3 %v4955_v50  ;;  %v4935_v5 = vmul.f32 %v4819_v7, %v11678_v1  ;;  %v4974_v40 = vmul.f32 %v4832_v6, %v11686_v14  ;;  %v4972_v1 = vmul.f32 %v4832_v6, %v11687_v52  ;;  %v2993_v54 = vpop.f32.mrf.mxu3 }
 0x2cb   : > { %5090 = vmatpush.msrb.mxu1 %v4912_v4  ;;  %5107 = vmatpush.msrb.mxu2 %v4950_v63  ;;  %v4970_v32 = vmul.f32 %v4830_v30, %v11689_v35  ;;  %v4968_v2 = vmul.f32 %v4830_v30, %v11686_v14  ;;  %v3033_v17 = vpop.f32.mrf.mxu0 }
 0x2cc   : > { %5067 = vmatpush.msrb.mxu0 %v4886_v27  ;;  %5025 = vmatpush.msra.mxu3 %v4953_v45 }
 0x2cd   : > { %5091 = vmatpush.msrb.mxu1 %v4910_v28  ;;  %5108 = vmatpush.msrb.mxu2 %v4948_v15 }
 0x2ce   : > { %5068 = vmatpush.msrb.mxu0 %v4884_v44  ;;  %5026 = vmatpush.msra.mxu3 %v4951_v9 }
 0x2cf   : > { %5092 = vmatpush.msrb.mxu1 %v4908_v43  ;;  %5109 = vmatpush.msrb.mxu2 %v4946_v11 }
 0x2d0   : > { %5069 = vmatpush.msrb.mxu0 %v4882_v3  ;;  %5027 = vmatpush.msra.mxu3 %v4949_v29 }
 0x2d1   : > { %5093 = vmatpush.msrb.mxu1 %v4906_v13  ;;  %5110 = vmatpush.msrb.mxu2 %v4944_v56  ;;  %v3073_v50 = vpop.f32.mrf.mxu2  ;;  %v3053_v41 = vpop.f32.mrf.mxu1  ;;  %v2974_v13 = vadd.f32 %v2973_v26, %v2953_v58 }
 0x2d2   : > { %5070 = vmatpush.msrb.mxu0 %v4880_v53  ;;  %5028 = vmatpush.msra.mxu3 %v4947_v39  ;;  %v3093_v4 = vpop.f32.mrf.mxu3 }
 0x2d3   : > { %5094 = vmatpush.msrb.mxu1 %v4904_v33  ;;  %5111 = vmatpush.msrb.mxu2 %v4942_v24  ;;  %v3484_v46 = vpop.f32.mrf.mxu0  ;;  %v2994_v53 = vadd.f32 %v2993_v54, %v2974_v13 }
 0x2d4   : > { %5071 = vmatpush.msrb.mxu0 %v4878_v25  ;;  %5029 = vmatpush.msra.mxu3 %v4945_v20 }
 0x2d5   : > { %5095 = vmatpush.msrb.mxu1 %v4902_v8  ;;  %5112 = vmatpush.msrb.mxu2 %v4940_v21  ;;  %v3014_v8 = vadd.f32 %v3013_v62, %v2994_v53 }
 0x2d6   : > { %5072 = vmatpush.msrb.mxu0 %v4876_v47  ;;  %5030 = vmatpush.msra.mxu3 %v4943_v48 }
 0x2d7   : > { %5096 = vmatmul.f32.vlgmr.msrb.gmra.mxu1 %v11691_v51  ;;  %5113 = vmatpush.msrb.mxu2 %v4938_v16  ;;  %v4976_v51 = vmul.f32 %v4832_v6, %v11689_v35  ;;  %v3096_v16 = vadd.f32 %v3014_v8, %v10585_v22 }
 0x2d8   : > { %5073 = vmatpush.msrb.mxu0 %v4874_v31  ;;  %5031 = vmatpush.msra.mxu3 %v4941_v36 }
 0x2d9   : > { %5114 = vmatpush.msrb.mxu2 %v4936_v19  ;;  %v3524_v35 = vpop.f32.mrf.mxu2  ;;  %v3504_v63 = vpop.f32.mrf.mxu1  ;;  %v3054_v19 = vadd.f32 %v3053_v41, %v3033_v17 }
 0x2da   : > { %5074 = vmatpush.msrb.mxu0 %v4872_v18  ;;  %5032 = vmatpush.msra.mxu3 %v4939_v0  ;;  %v3464_v14 = vpop.f32.mrf.mxu3 }
 0x2db   : > { %5115 = vmatpush.msrb.mxu2 %v4934_v42  ;;  %v3485_v56 = vadd.f32 %v3484_v46, %v3464_v14 }
 0x2dc   : > { %5075 = vmatpush.msrb.mxu0 %v4870_v37  ;;  %5033 = vmatpush.msra.mxu3 %v4937_v60 }
 0x2dd   : > { %5076 = vmatmul.f32.vlgmr.msrb.gmra.mxu0 %v11688_v23  ;;  %5116 = vmatmul.f32.vlgmr.msrb.gmra.mxu2 %v11695_v59  ;;  %v4966_v23 = vmul.f32 %v4830_v30, %v11687_v52  ;;  %v3584_v52 = vpop.f32.mrf.mxu0  ;;  %v3505_v24 = vadd.f32 %v3504_v63, %v3485_v56 }
 0x2de   : > { %5034 = vmatpush.msra.mxu3 %v4935_v5  ;;  %v3074_v5 = vadd.f32 %v3073_v50, %v3054_v19 }
 0x2df   : > { %v3525_v47 = vadd.f32 %v3524_v35, %v3505_v24 }
 0x2e0   : > { %5035 = vmatpush.msra.mxu3 %v10994_v12  ;;  %v3094_v22 = vadd.f32 %v3093_v4, %v3074_v5 }
 0x2e1   : > { %5036 = vmatmul.f32.vlgmr.msra.gmra.mxu3 %v11695_v59  ;;  %v3544_v12 = vpop.f32.mrf.mxu2  ;;  %v3604_v27 = vpop.f32.mrf.mxu1  ;;  %v3607_v42 = vadd.f32 %v3525_v47, %v3096_v16 }
 0x2e2   : > { %5130 = vmatpush.msrb.mxu3 %v4976_v51  ;;  %v3564_v45 = vpop.f32.mrf.mxu3  ;;  %v3097_v50 = vadd.f32 %v3094_v22, %v10708_v57 }
 0x2e3   : > { %v3565_v31 = vadd.f32 %v3564_v45, %v3544_v12 }
 0x2e4   : > { %5131 = vmatpush.msrb.mxu3 %v4974_v40 }
 0x2e5   : > { %v4035_v61 = vpop.f32.mrf.mxu0  ;;  %v3585_v59 = vadd.f32 %v3584_v52, %v3565_v31 }
 0x2e6   : > { %5132 = vmatpush.msrb.mxu3 %v4972_v1 }
 0x2e8   : > { %5133 = vmatpush.msrb.mxu3 %v4970_v32 }
 0x2e9   : > { %v3995_v28 = vpop.f32.mrf.mxu2  ;;  %v3975_v15 = vpop.f32.mrf.mxu1 }
 0x2ea   : > { %5134 = vmatpush.msrb.mxu3 %v4968_v2  ;;  %v3996_v25 = vadd.f32 %v3995_v28, %v3975_v15 }
 0x2ec   : > { %5135 = vmatpush.msrb.mxu3 %v4966_v23  ;;  %v3605_v23 = vadd.f32 %v3604_v27, %v3585_v59 }
 0x2ed   : > { %5533 = vmatmul.msk.f32.vlgmr.msrb.gmra.mxu3 %vm1238_vm1, %v11692_v34  ;;  %v4055_v9 = vpop.f32.mrf.mxu0 }
 0x2ee   : > { %v4015_v34 = vpop.f32.mrf.mxu3  ;;  %v3608_v63 = vadd.f32 %v3605_v23, %v3097_v50 }
 0x2ef   : > { %v4016_v21 = vadd.f32 %v4015_v34, %v3996_v25 }
 0x2f1   : > { %v4095_v44 = vpop.f32.mrf.mxu2  ;;  %v4075_v10 = vpop.f32.mrf.mxu1  ;;  %v4036_v36 = vadd.f32 %v4035_v61, %v4016_v21 }
 0x2f2   : > { %v4076_v1 = vadd.f32 %v4075_v10, %v4055_v9 }
 0x2f3   : > { %v4118_v51 = vadd.f32 %v4036_v36, %v3607_v42 }
 0x2f4   : > { %v4096_v26 = vadd.f32 %v4095_v44, %v4076_v1 }
 0x2f9   : > { %v4546_v11 = vpop.f32.mrf.mxu2 }
 0x2fc   : > { %v4115_v43 = vpop.f32.mrf.mxu3 }
 0x2fd   : > { %v4116_v41 = vadd.f32 %v4115_v43, %v4096_v26 }
 0x2fe   : > { %v4526_v3 = vpop.f32.mrf.mxu1 }
 0x2ff   : > { %v4119_v14 = vadd.f32 %v4116_v41, %v3608_v63 }
 0x304   : > { %v4506_v29 = vpop.f32.mrf.mxu0 }
 0x30e   : > { %v4626_v39 = vpop.f32.mrf.mxu1 }
 0x31a   : > { %v4566_v55 = vpop.f32.mrf.mxu2 }
 0x31e   : > { %v4486_v38 = vpop.f32.mrf.mxu3 }
 0x31f   : > { %v4507_v49 = vadd.f32 %v4506_v29, %v4486_v38 }
 0x321   : > { %v4527_v48 = vadd.f32 %v4526_v3, %v4507_v49 }
 0x323   : > { %v4547_v37 = vadd.f32 %v4546_v11, %v4527_v48 }
 0x325   : > { %v4606_v33 = vpop.f32.mrf.mxu0  ;;  %v4629_v32 = vadd.f32 %v4547_v37, %v4118_v51 }
 0x331   : > { %v4997_v18 = vpop.f32.mrf.mxu1 }
 0x33a   : > { %v5057_v0 = vpop.f32.mrf.mxu0 }
 0x33f   : > { %v5017_v7 = vpop.f32.mrf.mxu2 }
 0x340   : > { %v5018_v60 = vadd.f32 %v5017_v7, %v4997_v18 }
 0x344   : > { %v4586_v20 = vpop.f32.mrf.mxu3 }
 0x345   : > { %v4587_v40 = vadd.f32 %v4586_v20, %v4566_v55 }
 0x347   : > { %v4607_v58 = vadd.f32 %v4606_v33, %v4587_v40 }
 0x349   : > { %v4627_v46 = vadd.f32 %v4626_v39, %v4607_v58 }
 0x34b   : > { %v4630_v57 = vadd.f32 %v4627_v46, %v4119_v14 }
 0x354   : > { %v5097_v17 = vpop.f32.mrf.mxu1 }
 0x35a   : > { %v5077_v54 = vpop.f32.mrf.mxu0 }
 0x35b   : > { %v5098_v4 = vadd.f32 %v5097_v17, %v5077_v54 }
 0x360   : > { %v5117_v35 = vpop.f32.mrf.mxu2 }
 0x361   : > { %v5118_v12 = vadd.f32 %v5117_v35, %v5098_v4 }
 0x364   : > { %v5037_v6 = vpop.f32.mrf.mxu3 }
 0x365   : > { %v5038_v30 = vadd.f32 %v5037_v6, %v5018_v60 }
 0x367   : > { %v5058_v2 = vadd.f32 %v5057_v0, %v5038_v30 }
 0x369   : > { %v5140_v62 = vadd.f32 %v5058_v2, %v4629_v32 }
 0x36b   : > { %5142 = vst [vmem:[%s203_s18] sm:$0xff] %v5140_v62 }
 0x370   : > { %v5137_v27 = vpop.f32.mrf.mxu3 }
 0x371   : > { %v5138_v52 = vadd.f32 %v5137_v27, %v5118_v12 }
 0x373   : > { %v5141_v45 = vadd.f32 %v5138_v52, %v4630_v57 }
 0x375   : > { %5143 = vst [vmem:[%s203_s18 + $0x8] sm:$0xff] %v5141_v45 }
 0x376   : > { %5625 = shalt.err (!%p5622_p5)
}
 0x377   : > { %5542 = dma.vmem_to_hbm [thread:$0]  (%p5739_p4), %s5161_s15, 256, %s5163_s26, %s5145_s27  }
 0x378 PF: > { %p5548_p6 = scmp.ge.s32.totalorder %s5676_s17, 2  ;;  %s5174_s8 = sand.u32 1, %s5656_s12  }
 0x379   : > { %s5175_s9 = scalar_lea.sflag [#allocation3], %s5174_s8 }
 0x37a   : > { %p5545_p7 = pnand %p5548_p6, %p5746_p8 }
 0x37c   : > { %p5546_p9 = pneg %p5545_p7 }
 0x37e   : > { %5651 = dma.done.wait (%p5546_p9), %s5175_s9, 256  }
 0x37f   : > { %5653 = vsyncadd (%p5546_p9), %s5175_s9, 4294967040  ;;  %s16_s17 = sadd.s32 1, %s5676_s17   ;;  %s11696_s12 = smov %s5660_s13 }
 0x380   : > { %p13_p10 = scmp.ge.s32.totalorder %s16_s17, 4   ;;  %s11697_s13 = smov %s5664_s14 }
 0x381   : > { %s11698_s14 = smov %s5752_s25  ;;  %s11699_s15 = smov %s5672_s16 }
 0x382   : > { %s11700_s16 = smov %s11702_s20  ;;  %15 = sbr.rel (!%p13_p10) target bundleno = 4 (0x4), region = 71 }
 0x387   :  { %5181 = vsyncpa [#allocation3], 1 }
 0x388   :  { %5183 = vsyncpa [#allocation3 + $0x1], 1 }

</bundles_post_ra>
